<compile_context>
chip_gen: v6e
topology: v6e:2x2x1
jax: 0.10.0
libtpu: 0.0.40
codegen_flags: <defaults>
</compile_context>

<pallas_src>
import math
import functools

import jax
import jax.numpy as jnp
from jax.experimental import pallas as pl
from jax.experimental.pallas import tpu as pltpu


VMEM_LIMIT_BYTES = 48 * 1024 * 1024  # headroom below v7x 64 MiB physical VMEM


# ---------------------------------------------------------------------------
# Fused 6-layer encoder-stack kernel.
# Grid = (batch_tiles "parallel", layers "arbitrary").
# Per grid step: one layer of one batch tile, activation carried in VMEM scratch.
# ---------------------------------------------------------------------------
def _encoder_stack_kernel(x_ref, pe_ref, bias_ref,
                          wqkv_ref, bqkv_ref, wo_ref, bo_ref, g1_ref, be1_ref,
                          w1_ref, b1_ref, w2_ref, b2_ref, g2_ref, be2_ref,
                          o_ref, act_ref, attn_ref,
                          *, BT, S, D, H, Dh, eps, emb_scale):
    l = pl.program_id(1)

    # Layer 0: build the input activation (embedding scale + positional encoding)
    # directly in VMEM -- no extra [B,S,D] HBM round trip before the stack.
    @pl.when(l == 0)
    def _():
        x0 = x_ref[...] * emb_scale + pe_ref[...][None, :, :]      # [BT, S, D]
        act_ref[...] = x0.reshape(BT * S, D)

    x = act_ref[...]                                               # [BT*S, D] f32
    x_bf = x.astype(jnp.bfloat16)

    # ---- Multi-head attention ------------------------------------------------
    # Fused Q/K/V projection on the full M = BT*S slab (bf16 MXU, f32 acc).
    # The 1/sqrt(Dh) scale is pre-folded into the Q columns of wqkv.
    qkv = jnp.dot(x_bf, wqkv_ref[0],
                  preferred_element_type=jnp.float32) + bqkv_ref[0]  # [BT*S, 3D]
    qkv_bf = qkv.astype(jnp.bfloat16)                                # single cast

    for b in range(BT):                       # static, unrolled
        bias_b = bias_ref[b]                  # [1, S] additive key-mask bias
        r0 = b * S
        for h in range(H):                    # static, unrolled
            c = h * Dh
            q_h = qkv_bf[r0:r0 + S, c:c + Dh]                        # [S, Dh]
            k_h = qkv_bf[r0:r0 + S, D + c:D + c + Dh]                # [S, Dh]
            v_h = qkv_bf[r0:r0 + S, 2 * D + c:2 * D + c + Dh]        # [S, Dh]

            # Scores via dot_general contracting dim 1 of both -> no K transpose.
            s = jax.lax.dot_general(
                q_h, k_h, dimension_numbers=(((1,), (1,)), ((), ())),
                preferred_element_type=jnp.float32) + bias_b         # [S, S]
            m = jnp.max(s, axis=-1, keepdims=True)
            p = jnp.exp(s - m)
            denom = jnp.sum(p, axis=-1, keepdims=True)
            p = p * pl.reciprocal(denom, approx=True)                # EUP divide
            attn_ref[r0:r0 + S, c:c + Dh] = jnp.dot(
                p.astype(jnp.bfloat16), v_h,
                preferred_element_type=jnp.float32)                  # [S, Dh]

    # Output projection + LayerNorm1 + residual:  y = x + LN1(MHA(x))
    attn = jnp.dot(attn_ref[...].astype(jnp.bfloat16), wo_ref[0],
                   preferred_element_type=jnp.float32) + bo_ref[0]
    mean1 = jnp.mean(attn, axis=-1, keepdims=True)
    var1 = jnp.mean(jnp.square(attn - mean1), axis=-1, keepdims=True)
    ln1 = (attn - mean1) * jax.lax.rsqrt(var1 + eps) * g1_ref[0] + be1_ref[0]
    y = x + ln1

    # ---- Feed-forward --------------------------------------------------------
    # out = y + LN2( relu(y W1 + b1) W2 + b2 )
    hdn = jnp.dot(y.astype(jnp.bfloat16), w1_ref[0],
                  preferred_element_type=jnp.float32) + b1_ref[0]
    hdn = jnp.maximum(hdn, 0.0)
    f = jnp.dot(hdn.astype(jnp.bfloat16), w2_ref[0],
                preferred_element_type=jnp.float32) + b2_ref[0]
    mean2 = jnp.mean(f, axis=-1, keepdims=True)
    var2 = jnp.mean(jnp.square(f - mean2), axis=-1, keepdims=True)
    ln2 = (f - mean2) * jax.lax.rsqrt(var2 + eps) * g2_ref[0] + be2_ref[0]
    out = y + ln2

    # Carry to next layer; write HBM output only on the last layer.
    act_ref[...] = out

    @pl.when(l == pl.num_programs(1) - 1)
    def _():
        o_ref[...] = out.reshape(BT, S, D)


def fused_encoder_stack(x_emb, pe, bias, p, *, H, eps=1e-5, batch_tile=2):
    """x_emb: [B,S,D] raw embeddings; pe: [S,D]; bias: [B,1,S] additive mask."""
    B, S, D = x_emb.shape
    L = p["wqkv"].shape[0]
    Hd = p["w1"].shape[2]
    Dh = D // H
    BT = batch_tile if (B % batch_tile == 0 and B >= batch_tile) else 1

    kern = functools.partial(_encoder_stack_kernel, BT=BT, S=S, D=D, H=H, Dh=Dh,
                             eps=eps, emb_scale=math.sqrt(D))

    return pl.pallas_call(
        kern,
        out_shape=jax.ShapeDtypeStruct((B, S, D), jnp.float32),
        grid=(B // BT, L),
        in_specs=[
            pl.BlockSpec((BT, S, D), lambda b, l: (b, 0, 0)),      # raw embeddings
            pl.BlockSpec((S, D), lambda b, l: (0, 0)),             # positional enc
            pl.BlockSpec((BT, 1, S), lambda b, l: (b, 0, 0)),      # mask bias
            pl.BlockSpec((1, D, 3 * D), lambda b, l: (l, 0, 0)),   # Wqkv (bf16)
            pl.BlockSpec((1, 1, 3 * D), lambda b, l: (l, 0, 0)),   # bqkv
            pl.BlockSpec((1, D, D), lambda b, l: (l, 0, 0)),       # Wo (bf16)
            pl.BlockSpec((1, 1, D), lambda b, l: (l, 0, 0)),       # bo
            pl.BlockSpec((1, 1, D), lambda b, l: (l, 0, 0)),       # gamma1
            pl.BlockSpec((1, 1, D), lambda b, l: (l, 0, 0)),       # beta1
            pl.BlockSpec((1, D, Hd), lambda b, l: (l, 0, 0)),      # W1 (bf16)
            pl.BlockSpec((1, 1, Hd), lambda b, l: (l, 0, 0)),      # b1
            pl.BlockSpec((1, Hd, D), lambda b, l: (l, 0, 0)),      # W2 (bf16)
            pl.BlockSpec((1, 1, D), lambda b, l: (l, 0, 0)),       # b2
            pl.BlockSpec((1, 1, D), lambda b, l: (l, 0, 0)),       # gamma2
            pl.BlockSpec((1, 1, D), lambda b, l: (l, 0, 0)),       # beta2
        ],
        out_specs=pl.BlockSpec((BT, S, D), lambda b, l: (b, 0, 0)),
        scratch_shapes=[
            pltpu.VMEM((BT * S, D), jnp.float32),                  # activation carry
            pltpu.VMEM((BT * S, D), jnp.float32),                  # per-head output slab
        ],
        compiler_params=pltpu.CompilerParams(
            dimension_semantics=("parallel", "arbitrary"),
            vmem_limit_bytes=VMEM_LIMIT_BYTES),
    )(x_emb, pe, bias, p["wqkv"], p["bqkv"], p["wo"], p["bo"], p["g1"], p["be1"],
      p["w1"], p["b1"], p["w2"], p["b2"], p["g2"], p["be2"])


# ---------------------------------------------------------------------------
# Model glue
# ---------------------------------------------------------------------------
@functools.partial(jax.jit, static_argnames=("H",))
def transformer_encoder_forward(words, encoder_mask, params, *, H):
    B, S = words.shape
    # Embedder (gather) stays in XLA; PE add / sqrt(D) scale is folded into the
    # l==0 branch of the fused kernel.
    # TODO(synk): a Pallas DMA-gather kernel for the embedding adds no value at
    # these sizes; the gather is fused by jit with the kernel launch.
    x_emb = params["emb"][words]                                   # [B, S, D]
    pe = params["pe"][:S]                                          # [S, D]
    # Additive key-mask bias kept at [B, 1, S]; broadcast over heads in-kernel.
    bias = ((encoder_mask.astype(jnp.float32) - 1.0) * 1e9).reshape(B, 1, S)
    return fused_encoder_stack(x_emb, pe, bias, params, H=H)


def make_positional_encoding(max_len, D):
    pos = jnp.arange(max_len, dtype=jnp.float32)[:, None]
    i = jnp.arange(0, D, 2, dtype=jnp.float32)
    div = jnp.exp(-math.log(10000.0) * i / D)
    pe = jnp.zeros((max_len, D), dtype=jnp.float32)
    pe = pe.at[:, 0::2].set(jnp.sin(pos * div))
    pe = pe.at[:, 1::2].set(jnp.cos(pos * div))
    return pe


def init_params(key, vocab_size, D, H, max_len, hidden, n_layers=6):
    Dh = D // H
    scale = 1.0 / math.sqrt(Dh)

    def normal(k, shape, std=0.02):
        return (std * jax.random.normal(k, shape)).astype(jnp.float32)

    keys = jax.random.split(key, 2)
    wqkv, wo, w1, w2 = [], [], [], []
    for layer in range(n_layers):
        kl = jax.random.fold_in(keys[1], layer)
        ks = jax.random.split(kl, 6)
        # Fold the 1/sqrt(Dh) attention scale into the Q projection.
        wq = normal(ks[0], (D, D)) * scale
        wk = normal(ks[1], (D, D))
        wv = normal(ks[2], (D, D))
        wqkv.append(jnp.concatenate([wq, wk, wv], axis=1))
        wo.append(normal(ks[3], (D, D)))
        w1.append(normal(ks[4], (D, hidden)))
        w2.append(normal(ks[5], (hidden, D)))

    return {
        "emb": normal(keys[0], (vocab_size, D)),
        "pe": make_positional_encoding(max_len, D),
        # Stacked per-layer weights, selected by the layer grid index.
        "wqkv": jnp.stack(wqkv).astype(jnp.bfloat16),              # [L, D, 3D]
        "bqkv": jnp.zeros((n_layers, 1, 3 * D), jnp.float32),
        "wo": jnp.stack(wo).astype(jnp.bfloat16),                  # [L, D, D]
        "bo": jnp.zeros((n_layers, 1, D), jnp.float32),
        "g1": jnp.ones((n_layers, 1, D), jnp.float32),
        "be1": jnp.zeros((n_layers, 1, D), jnp.float32),
        "w1": jnp.stack(w1).astype(jnp.bfloat16),                  # [L, D, Hd]
        "b1": jnp.zeros((n_layers, 1, hidden), jnp.float32),
        "w2": jnp.stack(w2).astype(jnp.bfloat16),                  # [L, Hd, D]
        "b2": jnp.zeros((n_layers, 1, D), jnp.float32),
        "g2": jnp.ones((n_layers, 1, D), jnp.float32),
        "be2": jnp.zeros((n_layers, 1, D), jnp.float32),
    }


# TODO(synk): dropout layers are identity here (inference / eval-mode semantics).

if __name__ == "__main__":
    # Small but lane-dense shapes: all out_spec last dims are multiples of 128.
    B, S, D, H = 4, 128, 128, 4
    vocab_size, max_len, hidden = 1000, 256, 4 * D

    params = init_params(jax.random.PRNGKey(0), vocab_size, D, H, max_len, hidden)

    kw = jax.random.PRNGKey(0)
    words = jax.random.randint(kw, (B, S), 0, vocab_size, dtype=jnp.int32)
    # Mask out the trailing 32 key positions of the last two batch elements.
    encoder_mask = jnp.ones((B, S), dtype=jnp.int32)
    encoder_mask = encoder_mask.at[2:, S - 32:].set(0)

    out = transformer_encoder_forward(words, encoder_mask, params, H=H)
    jax.block_until_ready(out)
    assert out.shape == (B, S, D)
    assert bool(jnp.all(jnp.isfinite(out)))
    print("KERNEL_OK")
</pallas_src>

<mosaic_0001>
module attributes {stable_mosaic.version = 11 : i64} {
  func.func @_encoder_stack_kernel(%arg0: i32, %arg1: i32, %arg2: memref<2x128x128xf32, #tpu.memory_space<vmem>>, %arg3: memref<128x128xf32, #tpu.memory_space<vmem>>, %arg4: memref<2x1x128xf32, #tpu.memory_space<vmem>>, %arg5: memref<1x128x384xbf16, #tpu.memory_space<vmem>>, %arg6: memref<1x1x384xf32, #tpu.memory_space<vmem>>, %arg7: memref<1x128x128xbf16, #tpu.memory_space<vmem>>, %arg8: memref<1x1x128xf32, #tpu.memory_space<vmem>>, %arg9: memref<1x1x128xf32, #tpu.memory_space<vmem>>, %arg10: memref<1x1x128xf32, #tpu.memory_space<vmem>>, %arg11: memref<1x128x512xbf16, #tpu.memory_space<vmem>>, %arg12: memref<1x1x512xf32, #tpu.memory_space<vmem>>, %arg13: memref<1x512x128xbf16, #tpu.memory_space<vmem>>, %arg14: memref<1x1x128xf32, #tpu.memory_space<vmem>>, %arg15: memref<1x1x128xf32, #tpu.memory_space<vmem>>, %arg16: memref<1x1x128xf32, #tpu.memory_space<vmem>>, %arg17: memref<2x128x128xf32, #tpu.memory_space<vmem>>, %arg18: memref<256x128xf32, #tpu.memory_space<vmem>>, %arg19: memref<256x128xf32, #tpu.memory_space<vmem>>) attributes {dimension_semantics = [#tpu.dimension_semantics<parallel>, #tpu.dimension_semantics<arbitrary>], iteration_bounds = array<i64: 2, 6>, scalar_prefetch = 0 : i64, scratch_operands = 2 : i64, tpu.core_type = #tpu.core_type<tc>, window_params = [{transform_indices = @transform_0, window_bounds = array<i64: 2, 128, 128>}, {pipeline_mode = #tpu.pipeline_mode<synchronous>, transform_indices = @transform_1, window_bounds = array<i64: 128, 128>}, {transform_indices = @transform_2, window_bounds = array<i64: 2, 1, 128>}, {transform_indices = @transform_3, window_bounds = array<i64: 1, 128, 384>}, {transform_indices = @transform_4, window_bounds = array<i64: 1, 1, 384>}, {transform_indices = @transform_5, window_bounds = array<i64: 1, 128, 128>}, {transform_indices = @transform_6, window_bounds = array<i64: 1, 1, 128>}, {transform_indices = @transform_7, window_bounds = array<i64: 1, 1, 128>}, {transform_indices = @transform_8, window_bounds = array<i64: 1, 1, 128>}, {transform_indices = @transform_9, window_bounds = array<i64: 1, 128, 512>}, {transform_indices = @transform_10, window_bounds = array<i64: 1, 1, 512>}, {transform_indices = @transform_11, window_bounds = array<i64: 1, 512, 128>}, {transform_indices = @transform_12, window_bounds = array<i64: 1, 1, 128>}, {transform_indices = @transform_13, window_bounds = array<i64: 1, 1, 128>}, {transform_indices = @transform_14, window_bounds = array<i64: 1, 1, 128>}, {transform_indices = @transform_15, window_bounds = array<i64: 2, 128, 128>}]} {
    %c0_i32 = arith.constant 0 : i32
    %0 = arith.cmpi eq, %arg1, %c0_i32 : i32
    %1 = arith.extui %0 : i1 to i32
    %c0_i32_0 = arith.constant 0 : i32
    %2 = arith.cmpi ne, %1, %c0_i32_0 : i32
    scf.if %2 {
      %c0_106 = arith.constant 0 : index
      %c0_107 = arith.constant 0 : index
      %c0_108 = arith.constant 0 : index
      %254 = vector.load %arg2[%c0_106, %c0_107, %c0_108] : memref<2x128x128xf32, #tpu.memory_space<vmem>>, vector<2x128x128xf32>
      %cst_109 = arith.constant 11.3137083 : f32
      %255 = vector.broadcast %cst_109 : f32 to vector<2x128x128xf32>
      %256 = arith.mulf %254, %255 : vector<2x128x128xf32>
      %c0_110 = arith.constant 0 : index
      %c0_111 = arith.constant 0 : index
      %257 = vector.load %arg3[%c0_110, %c0_111] : memref<128x128xf32, #tpu.memory_space<vmem>>, vector<128x128xf32>
      %258 = vector.shape_cast %257 : vector<128x128xf32> to vector<1x128x128xf32>
      %259 = vector.broadcast %258 : vector<1x128x128xf32> to vector<2x128x128xf32>
      %260 = arith.addf %256, %259 : vector<2x128x128xf32>
      %261 = vector.shape_cast %260 : vector<2x128x128xf32> to vector<256x128xf32>
      %c0_112 = arith.constant 0 : index
      %c0_113 = arith.constant 0 : index
      %262 = vector.load %arg18[%c0_112, %c0_113] : memref<256x128xf32, #tpu.memory_space<vmem>>, vector<256x128xf32>
      tpu.vector_store %arg18[%c0_112, %c0_113], %261 {strides = array<i32>} : memref<256x128xf32, #tpu.memory_space<vmem>>, vector<256x128xf32>,
    } else {
    }
    %c0 = arith.constant 0 : index
    %c0_1 = arith.constant 0 : index
    %3 = vector.load %arg18[%c0, %c0_1] : memref<256x128xf32, #tpu.memory_space<vmem>>, vector<256x128xf32>
    %4 = arith.truncf %3 : vector<256x128xf32> to vector<256x128xbf16>
    %c0_2 = arith.constant 0 : index
    %c0_3 = arith.constant 0 : index
    %c0_4 = arith.constant 0 : index
    %5 = vector.load %arg5[%c0_2, %c0_3, %c0_4] : memref<1x128x384xbf16, #tpu.memory_space<vmem>>, vector<1x128x384xbf16>
    %6 = vector.shape_cast %5 : vector<1x128x384xbf16> to vector<128x384xbf16>
    %cst = arith.constant dense<0.000000e+00> : vector<256x384xf32>
    %7 = tpu.matmul %4, %6, %cst {dimension_numbers = #tpu.dot_dimension_numbers<[1], [0], [0], [1], [0, 0, 1, 1], [], []>} : vector<256x128xbf16>, vector<128x384xbf16>, vector<256x384xf32> -> vector<256x384xf32>
    %c0_5 = arith.constant 0 : index
    %c0_6 = arith.constant 0 : index
    %c0_7 = arith.constant 0 : index
    %8 = vector.load %arg6[%c0_5, %c0_6, %c0_7] : memref<1x1x384xf32, #tpu.memory_space<vmem>>, vector<1x1x384xf32>
    %9 = vector.shape_cast %8 : vector<1x1x384xf32> to vector<1x384xf32>
    %10 = vector.broadcast %9 : vector<1x384xf32> to vector<256x384xf32>
    %11 = arith.addf %7, %10 : vector<256x384xf32>
    %12 = arith.truncf %11 : vector<256x384xf32> to vector<256x384xbf16>
    %c0_8 = arith.constant 0 : index
    %c0_9 = arith.constant 0 : index
    %c0_10 = arith.constant 0 : index
    %13 = vector.load %arg4[%c0_8, %c0_9, %c0_10] : memref<2x1x128xf32, #tpu.memory_space<vmem>>, vector<1x1x128xf32>
    %14 = vector.shape_cast %13 : vector<1x1x128xf32> to vector<1x128xf32>
    %15 = vector.extract_strided_slice %12 {offsets = [0, 0], sizes = [128, 32], strides = [1, 1]} : vector<256x384xbf16> to vector<128x32xbf16>
    %16 = vector.extract_strided_slice %12 {offsets = [0, 128], sizes = [128, 32], strides = [1, 1]} : vector<256x384xbf16> to vector<128x32xbf16>
    %17 = vector.extract_strided_slice %12 {offsets = [0, 256], sizes = [128, 32], strides = [1, 1]} : vector<256x384xbf16> to vector<128x32xbf16>
    %cst_11 = arith.constant dense<0.000000e+00> : vector<128x128xf32>
    %18 = tpu.matmul %15, %16, %cst_11 {dimension_numbers = #tpu.dot_dimension_numbers<[1], [1], [0], [0], [0, 0, 1, 0], [], []>} : vector<128x32xbf16>, vector<128x32xbf16>, vector<128x128xf32> -> vector<128x128xf32>
    %19 = vector.broadcast %14 : vector<1x128xf32> to vector<128x128xf32>
    %20 = arith.addf %18, %19 : vector<128x128xf32>
    %cst_12 = arith.constant dense<0xFF800000> : vector<128xf32>
    %21 = vector.multi_reduction <maximumf>, %20, %cst_12 [1] : vector<128x128xf32> to vector<128xf32>
    %22 = vector.shape_cast %21 : vector<128xf32> to vector<128x1xf32>
    %23 = vector.broadcast %22 : vector<128x1xf32> to vector<128x128xf32>
    %24 = arith.subf %20, %23 : vector<128x128xf32>
    %25 = math.exp %24 : vector<128x128xf32>
    %cst_13 = arith.constant dense<0.000000e+00> : vector<128xf32>
    %26 = vector.multi_reduction <add>, %25, %cst_13 [1] : vector<128x128xf32> to vector<128xf32>
    %27 = vector.shape_cast %26 : vector<128xf32> to vector<128x1xf32>
    %28 = tpu.reciprocal %27 {approx = true} : vector<128x1xf32> -> vector<128x1xf32>
    %29 = vector.broadcast %28 : vector<128x1xf32> to vector<128x128xf32>
    %30 = arith.mulf %25, %29 : vector<128x128xf32>
    %31 = arith.truncf %30 : vector<128x128xf32> to vector<128x128xbf16>
    %cst_14 = arith.constant dense<0.000000e+00> : vector<128x32xf32>
    %32 = tpu.matmul %31, %17, %cst_14 {dimension_numbers = #tpu.dot_dimension_numbers<[1], [0], [0], [1], [0, 0, 1, 1], [], []>} : vector<128x128xbf16>, vector<128x32xbf16>, vector<128x32xf32> -> vector<128x32xf32>
    %c0_15 = arith.constant 0 : index
    %c0_16 = arith.constant 0 : index
    %33 = vector.load %arg19[%c0_15, %c0_16] : memref<256x128xf32, #tpu.memory_space<vmem>>, vector<128x32xf32>
    tpu.vector_store %arg19[%c0_15, %c0_16], %32 {strides = array<i32>} : memref<256x128xf32, #tpu.memory_space<vmem>>, vector<128x32xf32>,
    %34 = vector.extract_strided_slice %12 {offsets = [0, 32], sizes = [128, 32], strides = [1, 1]} : vector<256x384xbf16> to vector<128x32xbf16>
    %35 = vector.extract_strided_slice %12 {offsets = [0, 160], sizes = [128, 32], strides = [1, 1]} : vector<256x384xbf16> to vector<128x32xbf16>
    %36 = vector.extract_strided_slice %12 {offsets = [0, 288], sizes = [128, 32], strides = [1, 1]} : vector<256x384xbf16> to vector<128x32xbf16>
    %cst_17 = arith.constant dense<0.000000e+00> : vector<128x128xf32>
    %37 = tpu.matmul %34, %35, %cst_17 {dimension_numbers = #tpu.dot_dimension_numbers<[1], [1], [0], [0], [0, 0, 1, 0], [], []>} : vector<128x32xbf16>, vector<128x32xbf16>, vector<128x128xf32> -> vector<128x128xf32>
    %38 = vector.broadcast %14 : vector<1x128xf32> to vector<128x128xf32>
    %39 = arith.addf %37, %38 : vector<128x128xf32>
    %cst_18 = arith.constant dense<0xFF800000> : vector<128xf32>
    %40 = vector.multi_reduction <maximumf>, %39, %cst_18 [1] : vector<128x128xf32> to vector<128xf32>
    %41 = vector.shape_cast %40 : vector<128xf32> to vector<128x1xf32>
    %42 = vector.broadcast %41 : vector<128x1xf32> to vector<128x128xf32>
    %43 = arith.subf %39, %42 : vector<128x128xf32>
    %44 = math.exp %43 : vector<128x128xf32>
    %cst_19 = arith.constant dense<0.000000e+00> : vector<128xf32>
    %45 = vector.multi_reduction <add>, %44, %cst_19 [1] : vector<128x128xf32> to vector<128xf32>
    %46 = vector.shape_cast %45 : vector<128xf32> to vector<128x1xf32>
    %47 = tpu.reciprocal %46 {approx = true} : vector<128x1xf32> -> vector<128x1xf32>
    %48 = vector.broadcast %47 : vector<128x1xf32> to vector<128x128xf32>
    %49 = arith.mulf %44, %48 : vector<128x128xf32>
    %50 = arith.truncf %49 : vector<128x128xf32> to vector<128x128xbf16>
    %cst_20 = arith.constant dense<0.000000e+00> : vector<128x32xf32>
    %51 = tpu.matmul %50, %36, %cst_20 {dimension_numbers = #tpu.dot_dimension_numbers<[1], [0], [0], [1], [0, 0, 1, 1], [], []>} : vector<128x128xbf16>, vector<128x32xbf16>, vector<128x32xf32> -> vector<128x32xf32>
    %c0_21 = arith.constant 0 : index
    %c32 = arith.constant 32 : index
    %52 = vector.load %arg19[%c0_21, %c32] : memref<256x128xf32, #tpu.memory_space<vmem>>, vector<128x32xf32>
    tpu.vector_store %arg19[%c0_21, %c32], %51 {strides = array<i32>} : memref<256x128xf32, #tpu.memory_space<vmem>>, vector<128x32xf32>,
    %53 = vector.extract_strided_slice %12 {offsets = [0, 64], sizes = [128, 32], strides = [1, 1]} : vector<256x384xbf16> to vector<128x32xbf16>
    %54 = vector.extract_strided_slice %12 {offsets = [0, 192], sizes = [128, 32], strides = [1, 1]} : vector<256x384xbf16> to vector<128x32xbf16>
    %55 = vector.extract_strided_slice %12 {offsets = [0, 320], sizes = [128, 32], strides = [1, 1]} : vector<256x384xbf16> to vector<128x32xbf16>
    %cst_22 = arith.constant dense<0.000000e+00> : vector<128x128xf32>
    %56 = tpu.matmul %53, %54, %cst_22 {dimension_numbers = #tpu.dot_dimension_numbers<[1], [1], [0], [0], [0, 0, 1, 0], [], []>} : vector<128x32xbf16>, vector<128x32xbf16>, vector<128x128xf32> -> vector<128x128xf32>
    %57 = vector.broadcast %14 : vector<1x128xf32> to vector<128x128xf32>
    %58 = arith.addf %56, %57 : vector<128x128xf32>
    %cst_23 = arith.constant dense<0xFF800000> : vector<128xf32>
    %59 = vector.multi_reduction <maximumf>, %58, %cst_23 [1] : vector<128x128xf32> to vector<128xf32>
    %60 = vector.shape_cast %59 : vector<128xf32> to vector<128x1xf32>
    %61 = vector.broadcast %60 : vector<128x1xf32> to vector<128x128xf32>
    %62 = arith.subf %58, %61 : vector<128x128xf32>
    %63 = math.exp %62 : vector<128x128xf32>
    %cst_24 = arith.constant dense<0.000000e+00> : vector<128xf32>
    %64 = vector.multi_reduction <add>, %63, %cst_24 [1] : vector<128x128xf32> to vector<128xf32>
    %65 = vector.shape_cast %64 : vector<128xf32> to vector<128x1xf32>
    %66 = tpu.reciprocal %65 {approx = true} : vector<128x1xf32> -> vector<128x1xf32>
    %67 = vector.broadcast %66 : vector<128x1xf32> to vector<128x128xf32>
    %68 = arith.mulf %63, %67 : vector<128x128xf32>
    %69 = arith.truncf %68 : vector<128x128xf32> to vector<128x128xbf16>
    %cst_25 = arith.constant dense<0.000000e+00> : vector<128x32xf32>
    %70 = tpu.matmul %69, %55, %cst_25 {dimension_numbers = #tpu.dot_dimension_numbers<[1], [0], [0], [1], [0, 0, 1, 1], [], []>} : vector<128x128xbf16>, vector<128x32xbf16>, vector<128x32xf32> -> vector<128x32xf32>
    %c0_26 = arith.constant 0 : index
    %c64 = arith.constant 64 : index
    %71 = vector.load %arg19[%c0_26, %c64] : memref<256x128xf32, #tpu.memory_space<vmem>>, vector<128x32xf32>
    tpu.vector_store %arg19[%c0_26, %c64], %70 {strides = array<i32>} : memref<256x128xf32, #tpu.memory_space<vmem>>, vector<128x32xf32>,
    %72 = vector.extract_strided_slice %12 {offsets = [0, 96], sizes = [128, 32], strides = [1, 1]} : vector<256x384xbf16> to vector<128x32xbf16>
    %73 = vector.extract_strided_slice %12 {offsets = [0, 224], sizes = [128, 32], strides = [1, 1]} : vector<256x384xbf16> to vector<128x32xbf16>
    %74 = vector.extract_strided_slice %12 {offsets = [0, 352], sizes = [128, 32], strides = [1, 1]} : vector<256x384xbf16> to vector<128x32xbf16>
    %cst_27 = arith.constant dense<0.000000e+00> : vector<128x128xf32>
    %75 = tpu.matmul %72, %73, %cst_27 {dimension_numbers = #tpu.dot_dimension_numbers<[1], [1], [0], [0], [0, 0, 1, 0], [], []>} : vector<128x32xbf16>, vector<128x32xbf16>, vector<128x128xf32> -> vector<128x128xf32>
    %76 = vector.broadcast %14 : vector<1x128xf32> to vector<128x128xf32>
    %77 = arith.addf %75, %76 : vector<128x128xf32>
    %cst_28 = arith.constant dense<0xFF800000> : vector<128xf32>
    %78 = vector.multi_reduction <maximumf>, %77, %cst_28 [1] : vector<128x128xf32> to vector<128xf32>
    %79 = vector.shape_cast %78 : vector<128xf32> to vector<128x1xf32>
    %80 = vector.broadcast %79 : vector<128x1xf32> to vector<128x128xf32>
    %81 = arith.subf %77, %80 : vector<128x128xf32>
    %82 = math.exp %81 : vector<128x128xf32>
    %cst_29 = arith.constant dense<0.000000e+00> : vector<128xf32>
    %83 = vector.multi_reduction <add>, %82, %cst_29 [1] : vector<128x128xf32> to vector<128xf32>
    %84 = vector.shape_cast %83 : vector<128xf32> to vector<128x1xf32>
    %85 = tpu.reciprocal %84 {approx = true} : vector<128x1xf32> -> vector<128x1xf32>
    %86 = vector.broadcast %85 : vector<128x1xf32> to vector<128x128xf32>
    %87 = arith.mulf %82, %86 : vector<128x128xf32>
    %88 = arith.truncf %87 : vector<128x128xf32> to vector<128x128xbf16>
    %cst_30 = arith.constant dense<0.000000e+00> : vector<128x32xf32>
    %89 = tpu.matmul %88, %74, %cst_30 {dimension_numbers = #tpu.dot_dimension_numbers<[1], [0], [0], [1], [0, 0, 1, 1], [], []>} : vector<128x128xbf16>, vector<128x32xbf16>, vector<128x32xf32> -> vector<128x32xf32>
    %c0_31 = arith.constant 0 : index
    %c96 = arith.constant 96 : index
    %90 = vector.load %arg19[%c0_31, %c96] : memref<256x128xf32, #tpu.memory_space<vmem>>, vector<128x32xf32>
    tpu.vector_store %arg19[%c0_31, %c96], %89 {strides = array<i32>} : memref<256x128xf32, #tpu.memory_space<vmem>>, vector<128x32xf32>,
    %c1 = arith.constant 1 : index
    %c0_32 = arith.constant 0 : index
    %c0_33 = arith.constant 0 : index
    %91 = vector.load %arg4[%c1, %c0_32, %c0_33] : memref<2x1x128xf32, #tpu.memory_space<vmem>>, vector<1x1x128xf32>
    %92 = vector.shape_cast %91 : vector<1x1x128xf32> to vector<1x128xf32>
    %93 = vector.extract_strided_slice %12 {offsets = [128, 0], sizes = [128, 32], strides = [1, 1]} : vector<256x384xbf16> to vector<128x32xbf16>
    %94 = vector.extract_strided_slice %12 {offsets = [128, 128], sizes = [128, 32], strides = [1, 1]} : vector<256x384xbf16> to vector<128x32xbf16>
    %95 = vector.extract_strided_slice %12 {offsets = [128, 256], sizes = [128, 32], strides = [1, 1]} : vector<256x384xbf16> to vector<128x32xbf16>
    %cst_34 = arith.constant dense<0.000000e+00> : vector<128x128xf32>
    %96 = tpu.matmul %93, %94, %cst_34 {dimension_numbers = #tpu.dot_dimension_numbers<[1], [1], [0], [0], [0, 0, 1, 0], [], []>} : vector<128x32xbf16>, vector<128x32xbf16>, vector<128x128xf32> -> vector<128x128xf32>
    %97 = vector.broadcast %92 : vector<1x128xf32> to vector<128x128xf32>
    %98 = arith.addf %96, %97 : vector<128x128xf32>
    %cst_35 = arith.constant dense<0xFF800000> : vector<128xf32>
    %99 = vector.multi_reduction <maximumf>, %98, %cst_35 [1] : vector<128x128xf32> to vector<128xf32>
    %100 = vector.shape_cast %99 : vector<128xf32> to vector<128x1xf32>
    %101 = vector.broadcast %100 : vector<128x1xf32> to vector<128x128xf32>
    %102 = arith.subf %98, %101 : vector<128x128xf32>
    %103 = math.exp %102 : vector<128x128xf32>
    %cst_36 = arith.constant dense<0.000000e+00> : vector<128xf32>
    %104 = vector.multi_reduction <add>, %103, %cst_36 [1] : vector<128x128xf32> to vector<128xf32>
    %105 = vector.shape_cast %104 : vector<128xf32> to vector<128x1xf32>
    %106 = tpu.reciprocal %105 {approx = true} : vector<128x1xf32> -> vector<128x1xf32>
    %107 = vector.broadcast %106 : vector<128x1xf32> to vector<128x128xf32>
    %108 = arith.mulf %103, %107 : vector<128x128xf32>
    %109 = arith.truncf %108 : vector<128x128xf32> to vector<128x128xbf16>
    %cst_37 = arith.constant dense<0.000000e+00> : vector<128x32xf32>
    %110 = tpu.matmul %109, %95, %cst_37 {dimension_numbers = #tpu.dot_dimension_numbers<[1], [0], [0], [1], [0, 0, 1, 1], [], []>} : vector<128x128xbf16>, vector<128x32xbf16>, vector<128x32xf32> -> vector<128x32xf32>
    %c128 = arith.constant 128 : index
    %c0_38 = arith.constant 0 : index
    %111 = vector.load %arg19[%c128, %c0_38] : memref<256x128xf32, #tpu.memory_space<vmem>>, vector<128x32xf32>
    tpu.vector_store %arg19[%c128, %c0_38], %110 {strides = array<i32>} : memref<256x128xf32, #tpu.memory_space<vmem>>, vector<128x32xf32>,
    %112 = vector.extract_strided_slice %12 {offsets = [128, 32], sizes = [128, 32], strides = [1, 1]} : vector<256x384xbf16> to vector<128x32xbf16>
    %113 = vector.extract_strided_slice %12 {offsets = [128, 160], sizes = [128, 32], strides = [1, 1]} : vector<256x384xbf16> to vector<128x32xbf16>
    %114 = vector.extract_strided_slice %12 {offsets = [128, 288], sizes = [128, 32], strides = [1, 1]} : vector<256x384xbf16> to vector<128x32xbf16>
    %cst_39 = arith.constant dense<0.000000e+00> : vector<128x128xf32>
    %115 = tpu.matmul %112, %113, %cst_39 {dimension_numbers = #tpu.dot_dimension_numbers<[1], [1], [0], [0], [0, 0, 1, 0], [], []>} : vector<128x32xbf16>, vector<128x32xbf16>, vector<128x128xf32> -> vector<128x128xf32>
    %116 = vector.broadcast %92 : vector<1x128xf32> to vector<128x128xf32>
    %117 = arith.addf %115, %116 : vector<128x128xf32>
    %cst_40 = arith.constant dense<0xFF800000> : vector<128xf32>
    %118 = vector.multi_reduction <maximumf>, %117, %cst_40 [1] : vector<128x128xf32> to vector<128xf32>
    %119 = vector.shape_cast %118 : vector<128xf32> to vector<128x1xf32>
    %120 = vector.broadcast %119 : vector<128x1xf32> to vector<128x128xf32>
    %121 = arith.subf %117, %120 : vector<128x128xf32>
    %122 = math.exp %121 : vector<128x128xf32>
    %cst_41 = arith.constant dense<0.000000e+00> : vector<128xf32>
    %123 = vector.multi_reduction <add>, %122, %cst_41 [1] : vector<128x128xf32> to vector<128xf32>
    %124 = vector.shape_cast %123 : vector<128xf32> to vector<128x1xf32>
    %125 = tpu.reciprocal %124 {approx = true} : vector<128x1xf32> -> vector<128x1xf32>
    %126 = vector.broadcast %125 : vector<128x1xf32> to vector<128x128xf32>
    %127 = arith.mulf %122, %126 : vector<128x128xf32>
    %128 = arith.truncf %127 : vector<128x128xf32> to vector<128x128xbf16>
    %cst_42 = arith.constant dense<0.000000e+00> : vector<128x32xf32>
    %129 = tpu.matmul %128, %114, %cst_42 {dimension_numbers = #tpu.dot_dimension_numbers<[1], [0], [0], [1], [0, 0, 1, 1], [], []>} : vector<128x128xbf16>, vector<128x32xbf16>, vector<128x32xf32> -> vector<128x32xf32>
    %c128_43 = arith.constant 128 : index
    %c32_44 = arith.constant 32 : index
    %130 = vector.load %arg19[%c128_43, %c32_44] : memref<256x128xf32, #tpu.memory_space<vmem>>, vector<128x32xf32>
    tpu.vector_store %arg19[%c128_43, %c32_44], %129 {strides = array<i32>} : memref<256x128xf32, #tpu.memory_space<vmem>>, vector<128x32xf32>,
    %131 = vector.extract_strided_slice %12 {offsets = [128, 64], sizes = [128, 32], strides = [1, 1]} : vector<256x384xbf16> to vector<128x32xbf16>
    %132 = vector.extract_strided_slice %12 {offsets = [128, 192], sizes = [128, 32], strides = [1, 1]} : vector<256x384xbf16> to vector<128x32xbf16>
    %133 = vector.extract_strided_slice %12 {offsets = [128, 320], sizes = [128, 32], strides = [1, 1]} : vector<256x384xbf16> to vector<128x32xbf16>
    %cst_45 = arith.constant dense<0.000000e+00> : vector<128x128xf32>
    %134 = tpu.matmul %131, %132, %cst_45 {dimension_numbers = #tpu.dot_dimension_numbers<[1], [1], [0], [0], [0, 0, 1, 0], [], []>} : vector<128x32xbf16>, vector<128x32xbf16>, vector<128x128xf32> -> vector<128x128xf32>
    %135 = vector.broadcast %92 : vector<1x128xf32> to vector<128x128xf32>
    %136 = arith.addf %134, %135 : vector<128x128xf32>
    %cst_46 = arith.constant dense<0xFF800000> : vector<128xf32>
    %137 = vector.multi_reduction <maximumf>, %136, %cst_46 [1] : vector<128x128xf32> to vector<128xf32>
    %138 = vector.shape_cast %137 : vector<128xf32> to vector<128x1xf32>
    %139 = vector.broadcast %138 : vector<128x1xf32> to vector<128x128xf32>
    %140 = arith.subf %136, %139 : vector<128x128xf32>
    %141 = math.exp %140 : vector<128x128xf32>
    %cst_47 = arith.constant dense<0.000000e+00> : vector<128xf32>
    %142 = vector.multi_reduction <add>, %141, %cst_47 [1] : vector<128x128xf32> to vector<128xf32>
    %143 = vector.shape_cast %142 : vector<128xf32> to vector<128x1xf32>
    %144 = tpu.reciprocal %143 {approx = true} : vector<128x1xf32> -> vector<128x1xf32>
    %145 = vector.broadcast %144 : vector<128x1xf32> to vector<128x128xf32>
    %146 = arith.mulf %141, %145 : vector<128x128xf32>
    %147 = arith.truncf %146 : vector<128x128xf32> to vector<128x128xbf16>
    %cst_48 = arith.constant dense<0.000000e+00> : vector<128x32xf32>
    %148 = tpu.matmul %147, %133, %cst_48 {dimension_numbers = #tpu.dot_dimension_numbers<[1], [0], [0], [1], [0, 0, 1, 1], [], []>} : vector<128x128xbf16>, vector<128x32xbf16>, vector<128x32xf32> -> vector<128x32xf32>
    %c128_49 = arith.constant 128 : index
    %c64_50 = arith.constant 64 : index
    %149 = vector.load %arg19[%c128_49, %c64_50] : memref<256x128xf32, #tpu.memory_space<vmem>>, vector<128x32xf32>
    tpu.vector_store %arg19[%c128_49, %c64_50], %148 {strides = array<i32>} : memref<256x128xf32, #tpu.memory_space<vmem>>, vector<128x32xf32>,
    %150 = vector.extract_strided_slice %12 {offsets = [128, 96], sizes = [128, 32], strides = [1, 1]} : vector<256x384xbf16> to vector<128x32xbf16>
    %151 = vector.extract_strided_slice %12 {offsets = [128, 224], sizes = [128, 32], strides = [1, 1]} : vector<256x384xbf16> to vector<128x32xbf16>
    %152 = vector.extract_strided_slice %12 {offsets = [128, 352], sizes = [128, 32], strides = [1, 1]} : vector<256x384xbf16> to vector<128x32xbf16>
    %cst_51 = arith.constant dense<0.000000e+00> : vector<128x128xf32>
    %153 = tpu.matmul %150, %151, %cst_51 {dimension_numbers = #tpu.dot_dimension_numbers<[1], [1], [0], [0], [0, 0, 1, 0], [], []>} : vector<128x32xbf16>, vector<128x32xbf16>, vector<128x128xf32> -> vector<128x128xf32>
    %154 = vector.broadcast %92 : vector<1x128xf32> to vector<128x128xf32>
    %155 = arith.addf %153, %154 : vector<128x128xf32>
    %cst_52 = arith.constant dense<0xFF800000> : vector<128xf32>
    %156 = vector.multi_reduction <maximumf>, %155, %cst_52 [1] : vector<128x128xf32> to vector<128xf32>
    %157 = vector.shape_cast %156 : vector<128xf32> to vector<128x1xf32>
    %158 = vector.broadcast %157 : vector<128x1xf32> to vector<128x128xf32>
    %159 = arith.subf %155, %158 : vector<128x128xf32>
    %160 = math.exp %159 : vector<128x128xf32>
    %cst_53 = arith.constant dense<0.000000e+00> : vector<128xf32>
    %161 = vector.multi_reduction <add>, %160, %cst_53 [1] : vector<128x128xf32> to vector<128xf32>
    %162 = vector.shape_cast %161 : vector<128xf32> to vector<128x1xf32>
    %163 = tpu.reciprocal %162 {approx = true} : vector<128x1xf32> -> vector<128x1xf32>
    %164 = vector.broadcast %163 : vector<128x1xf32> to vector<128x128xf32>
    %165 = arith.mulf %160, %164 : vector<128x128xf32>
    %166 = arith.truncf %165 : vector<128x128xf32> to vector<128x128xbf16>
    %cst_54 = arith.constant dense<0.000000e+00> : vector<128x32xf32>
    %167 = tpu.matmul %166, %152, %cst_54 {dimension_numbers = #tpu.dot_dimension_numbers<[1], [0], [0], [1], [0, 0, 1, 1], [], []>} : vector<128x128xbf16>, vector<128x32xbf16>, vector<128x32xf32> -> vector<128x32xf32>
    %c128_55 = arith.constant 128 : index
    %c96_56 = arith.constant 96 : index
    %168 = vector.load %arg19[%c128_55, %c96_56] : memref<256x128xf32, #tpu.memory_space<vmem>>, vector<128x32xf32>
    tpu.vector_store %arg19[%c128_55, %c96_56], %167 {strides = array<i32>} : memref<256x128xf32, #tpu.memory_space<vmem>>, vector<128x32xf32>,
    %c0_57 = arith.constant 0 : index
    %c0_58 = arith.constant 0 : index
    %169 = vector.load %arg19[%c0_57, %c0_58] : memref<256x128xf32, #tpu.memory_space<vmem>>, vector<256x128xf32>
    %170 = arith.truncf %169 : vector<256x128xf32> to vector<256x128xbf16>
    %c0_59 = arith.constant 0 : index
    %c0_60 = arith.constant 0 : index
    %c0_61 = arith.constant 0 : index
    %171 = vector.load %arg7[%c0_59, %c0_60, %c0_61] : memref<1x128x128xbf16, #tpu.memory_space<vmem>>, vector<1x128x128xbf16>
    %172 = vector.shape_cast %171 : vector<1x128x128xbf16> to vector<128x128xbf16>
    %cst_62 = arith.constant dense<0.000000e+00> : vector<256x128xf32>
    %173 = tpu.matmul %170, %172, %cst_62 {dimension_numbers = #tpu.dot_dimension_numbers<[1], [0], [0], [1], [0, 0, 1, 1], [], []>} : vector<256x128xbf16>, vector<128x128xbf16>, vector<256x128xf32> -> vector<256x128xf32>
    %c0_63 = arith.constant 0 : index
    %c0_64 = arith.constant 0 : index
    %c0_65 = arith.constant 0 : index
    %174 = vector.load %arg8[%c0_63, %c0_64, %c0_65] : memref<1x1x128xf32, #tpu.memory_space<vmem>>, vector<1x1x128xf32>
    %175 = vector.shape_cast %174 : vector<1x1x128xf32> to vector<1x128xf32>
    %176 = vector.broadcast %175 : vector<1x128xf32> to vector<256x128xf32>
    %177 = arith.addf %173, %176 : vector<256x128xf32>
    %cst_66 = arith.constant dense<0.000000e+00> : vector<256xf32>
    %178 = vector.multi_reduction <add>, %177, %cst_66 [1] : vector<256x128xf32> to vector<256xf32>
    %179 = vector.shape_cast %178 : vector<256xf32> to vector<256x1xf32>
    %cst_67 = arith.constant 1.280000e+02 : f32
    %180 = vector.broadcast %cst_67 : f32 to vector<256x1xf32>
    %181 = arith.divf %179, %180 : vector<256x1xf32>
    %182 = vector.broadcast %181 : vector<256x1xf32> to vector<256x128xf32>
    %183 = arith.subf %177, %182 : vector<256x128xf32>
    %184 = arith.mulf %183, %183 : vector<256x128xf32>
    %cst_68 = arith.constant dense<0.000000e+00> : vector<256xf32>
    %185 = vector.multi_reduction <add>, %184, %cst_68 [1] : vector<256x128xf32> to vector<256xf32>
    %186 = vector.shape_cast %185 : vector<256xf32> to vector<256x1xf32>
    %cst_69 = arith.constant 1.280000e+02 : f32
    %187 = vector.broadcast %cst_69 : f32 to vector<256x1xf32>
    %188 = arith.divf %186, %187 : vector<256x1xf32>
    %189 = vector.broadcast %181 : vector<256x1xf32> to vector<256x128xf32>
    %190 = arith.subf %177, %189 : vector<256x128xf32>
    %cst_70 = arith.constant 9.99999974E-6 : f32
    %191 = vector.broadcast %cst_70 : f32 to vector<256x1xf32>
    %192 = arith.addf %188, %191 : vector<256x1xf32>
    %193 = math.rsqrt %192 : vector<256x1xf32>
    %194 = vector.broadcast %193 : vector<256x1xf32> to vector<256x128xf32>
    %195 = arith.mulf %190, %194 : vector<256x128xf32>
    %c0_71 = arith.constant 0 : index
    %c0_72 = arith.constant 0 : index
    %c0_73 = arith.constant 0 : index
    %196 = vector.load %arg9[%c0_71, %c0_72, %c0_73] : memref<1x1x128xf32, #tpu.memory_space<vmem>>, vector<1x1x128xf32>
    %197 = vector.shape_cast %196 : vector<1x1x128xf32> to vector<1x128xf32>
    %198 = vector.broadcast %197 : vector<1x128xf32> to vector<256x128xf32>
    %199 = arith.mulf %195, %198 : vector<256x128xf32>
    %c0_74 = arith.constant 0 : index
    %c0_75 = arith.constant 0 : index
    %c0_76 = arith.constant 0 : index
    %200 = vector.load %arg10[%c0_74, %c0_75, %c0_76] : memref<1x1x128xf32, #tpu.memory_space<vmem>>, vector<1x1x128xf32>
    %201 = vector.shape_cast %200 : vector<1x1x128xf32> to vector<1x128xf32>
    %202 = vector.broadcast %201 : vector<1x128xf32> to vector<256x128xf32>
    %203 = arith.addf %199, %202 : vector<256x128xf32>
    %204 = arith.addf %3, %203 : vector<256x128xf32>
    %205 = arith.truncf %204 : vector<256x128xf32> to vector<256x128xbf16>
    %c0_77 = arith.constant 0 : index
    %c0_78 = arith.constant 0 : index
    %c0_79 = arith.constant 0 : index
    %206 = vector.load %arg11[%c0_77, %c0_78, %c0_79] : memref<1x128x512xbf16, #tpu.memory_space<vmem>>, vector<1x128x512xbf16>
    %207 = vector.shape_cast %206 : vector<1x128x512xbf16> to vector<128x512xbf16>
    %cst_80 = arith.constant dense<0.000000e+00> : vector<256x512xf32>
    %208 = tpu.matmul %205, %207, %cst_80 {dimension_numbers = #tpu.dot_dimension_numbers<[1], [0], [0], [1], [0, 0, 1, 1], [], []>} : vector<256x128xbf16>, vector<128x512xbf16>, vector<256x512xf32> -> vector<256x512xf32>
    %c0_81 = arith.constant 0 : index
    %c0_82 = arith.constant 0 : index
    %c0_83 = arith.constant 0 : index
    %209 = vector.load %arg12[%c0_81, %c0_82, %c0_83] : memref<1x1x512xf32, #tpu.memory_space<vmem>>, vector<1x1x512xf32>
    %210 = vector.shape_cast %209 : vector<1x1x512xf32> to vector<1x512xf32>
    %211 = vector.broadcast %210 : vector<1x512xf32> to vector<256x512xf32>
    %212 = arith.addf %208, %211 : vector<256x512xf32>
    %cst_84 = arith.constant 0.000000e+00 : f32
    %213 = vector.broadcast %cst_84 : f32 to vector<256x512xf32>
    %214 = arith.maximumf %212, %213 : vector<256x512xf32>
    %215 = arith.truncf %214 : vector<256x512xf32> to vector<256x512xbf16>
    %c0_85 = arith.constant 0 : index
    %c0_86 = arith.constant 0 : index
    %c0_87 = arith.constant 0 : index
    %216 = vector.load %arg13[%c0_85, %c0_86, %c0_87] : memref<1x512x128xbf16, #tpu.memory_space<vmem>>, vector<1x512x128xbf16>
    %217 = vector.shape_cast %216 : vector<1x512x128xbf16> to vector<512x128xbf16>
    %cst_88 = arith.constant dense<0.000000e+00> : vector<256x128xf32>
    %218 = tpu.matmul %215, %217, %cst_88 {dimension_numbers = #tpu.dot_dimension_numbers<[1], [0], [0], [1], [0, 0, 1, 1], [], []>} : vector<256x512xbf16>, vector<512x128xbf16>, vector<256x128xf32> -> vector<256x128xf32>
    %c0_89 = arith.constant 0 : index
    %c0_90 = arith.constant 0 : index
    %c0_91 = arith.constant 0 : index
    %219 = vector.load %arg14[%c0_89, %c0_90, %c0_91] : memref<1x1x128xf32, #tpu.memory_space<vmem>>, vector<1x1x128xf32>
    %220 = vector.shape_cast %219 : vector<1x1x128xf32> to vector<1x128xf32>
    %221 = vector.broadcast %220 : vector<1x128xf32> to vector<256x128xf32>
    %222 = arith.addf %218, %221 : vector<256x128xf32>
    %cst_92 = arith.constant dense<0.000000e+00> : vector<256xf32>
    %223 = vector.multi_reduction <add>, %222, %cst_92 [1] : vector<256x128xf32> to vector<256xf32>
    %224 = vector.shape_cast %223 : vector<256xf32> to vector<256x1xf32>
    %cst_93 = arith.constant 1.280000e+02 : f32
    %225 = vector.broadcast %cst_93 : f32 to vector<256x1xf32>
    %226 = arith.divf %224, %225 : vector<256x1xf32>
    %227 = vector.broadcast %226 : vector<256x1xf32> to vector<256x128xf32>
    %228 = arith.subf %222, %227 : vector<256x128xf32>
    %229 = arith.mulf %228, %228 : vector<256x128xf32>
    %cst_94 = arith.constant dense<0.000000e+00> : vector<256xf32>
    %230 = vector.multi_reduction <add>, %229, %cst_94 [1] : vector<256x128xf32> to vector<256xf32>
    %231 = vector.shape_cast %230 : vector<256xf32> to vector<256x1xf32>
    %cst_95 = arith.constant 1.280000e+02 : f32
    %232 = vector.broadcast %cst_95 : f32 to vector<256x1xf32>
    %233 = arith.divf %231, %232 : vector<256x1xf32>
    %234 = vector.broadcast %226 : vector<256x1xf32> to vector<256x128xf32>
    %235 = arith.subf %222, %234 : vector<256x128xf32>
    %cst_96 = arith.constant 9.99999974E-6 : f32
    %236 = vector.broadcast %cst_96 : f32 to vector<256x1xf32>
    %237 = arith.addf %233, %236 : vector<256x1xf32>
    %238 = math.rsqrt %237 : vector<256x1xf32>
    %239 = vector.broadcast %238 : vector<256x1xf32> to vector<256x128xf32>
    %240 = arith.mulf %235, %239 : vector<256x128xf32>
    %c0_97 = arith.constant 0 : index
    %c0_98 = arith.constant 0 : index
    %c0_99 = arith.constant 0 : index
    %241 = vector.load %arg15[%c0_97, %c0_98, %c0_99] : memref<1x1x128xf32, #tpu.memory_space<vmem>>, vector<1x1x128xf32>
    %242 = vector.shape_cast %241 : vector<1x1x128xf32> to vector<1x128xf32>
    %243 = vector.broadcast %242 : vector<1x128xf32> to vector<256x128xf32>
    %244 = arith.mulf %240, %243 : vector<256x128xf32>
    %c0_100 = arith.constant 0 : index
    %c0_101 = arith.constant 0 : index
    %c0_102 = arith.constant 0 : index
    %245 = vector.load %arg16[%c0_100, %c0_101, %c0_102] : memref<1x1x128xf32, #tpu.memory_space<vmem>>, vector<1x1x128xf32>
    %246 = vector.shape_cast %245 : vector<1x1x128xf32> to vector<1x128xf32>
    %247 = vector.broadcast %246 : vector<1x128xf32> to vector<256x128xf32>
    %248 = arith.addf %244, %247 : vector<256x128xf32>
    %249 = arith.addf %204, %248 : vector<256x128xf32>
    %c0_103 = arith.constant 0 : index
    %c0_104 = arith.constant 0 : index
    %250 = vector.load %arg18[%c0_103, %c0_104] : memref<256x128xf32, #tpu.memory_space<vmem>>, vector<256x128xf32>
    tpu.vector_store %arg18[%c0_103, %c0_104], %249 {strides = array<i32>} : memref<256x128xf32, #tpu.memory_space<vmem>>, vector<256x128xf32>,
    %c5_i32 = arith.constant 5 : i32
    %251 = arith.cmpi eq, %arg1, %c5_i32 : i32
    %252 = arith.extui %251 : i1 to i32
    %c0_i32_105 = arith.constant 0 : i32
    %253 = arith.cmpi ne, %252, %c0_i32_105 : i32
    scf.if %253 {
      %254 = vector.shape_cast %249 : vector<256x128xf32> to vector<2x128x128xf32>
      %c0_106 = arith.constant 0 : index
      %c0_107 = arith.constant 0 : index
      %c0_108 = arith.constant 0 : index
      %255 = vector.load %arg17[%c0_106, %c0_107, %c0_108] : memref<2x128x128xf32, #tpu.memory_space<vmem>>, vector<2x128x128xf32>
      tpu.vector_store %arg17[%c0_106, %c0_107, %c0_108], %254 {strides = array<i32>} : memref<2x128x128xf32, #tpu.memory_space<vmem>>, vector<2x128x128xf32>,
    } else {
    }
    return
  }
  func.func @transform_0(%arg0: i32, %arg1: i32) -> (i32, i32, i32) {
    %c0_i32 = arith.constant 0 : i32
    %c0_i32_0 = arith.constant 0 : i32
    %c0_i32_1 = arith.constant 0 : i32
    return %arg0, %c0_i32, %c0_i32_0 : i32, i32, i32
  }
  func.func @transform_1(%arg0: i32, %arg1: i32) -> (i32, i32) {
    %c0_i32 = arith.constant 0 : i32
    %c0_i32_0 = arith.constant 0 : i32
    %c0_i32_1 = arith.constant 0 : i32
    return %c0_i32, %c0_i32_0 : i32, i32
  }
  func.func @transform_2(%arg0: i32, %arg1: i32) -> (i32, i32, i32) {
    %c0_i32 = arith.constant 0 : i32
    %c0_i32_0 = arith.constant 0 : i32
    %c0_i32_1 = arith.constant 0 : i32
    return %arg0, %c0_i32, %c0_i32_0 : i32, i32, i32
  }
  func.func @transform_3(%arg0: i32, %arg1: i32) -> (i32, i32, i32) {
    %c0_i32 = arith.constant 0 : i32
    %c0_i32_0 = arith.constant 0 : i32
    %c0_i32_1 = arith.constant 0 : i32
    return %arg1, %c0_i32, %c0_i32_0 : i32, i32, i32
  }
  func.func @transform_4(%arg0: i32, %arg1: i32) -> (i32, i32, i32) {
    %c0_i32 = arith.constant 0 : i32
    %c0_i32_0 = arith.constant 0 : i32
    %c0_i32_1 = arith.constant 0 : i32
    return %arg1, %c0_i32, %c0_i32_0 : i32, i32, i32
  }
  func.func @transform_5(%arg0: i32, %arg1: i32) -> (i32, i32, i32) {
    %c0_i32 = arith.constant 0 : i32
    %c0_i32_0 = arith.constant 0 : i32
    %c0_i32_1 = arith.constant 0 : i32
    return %arg1, %c0_i32, %c0_i32_0 : i32, i32, i32
  }
  func.func @transform_6(%arg0: i32, %arg1: i32) -> (i32, i32, i32) {
    %c0_i32 = arith.constant 0 : i32
    %c0_i32_0 = arith.constant 0 : i32
    %c0_i32_1 = arith.constant 0 : i32
    return %arg1, %c0_i32, %c0_i32_0 : i32, i32, i32
  }
  func.func @transform_7(%arg0: i32, %arg1: i32) -> (i32, i32, i32) {
    %c0_i32 = arith.constant 0 : i32
    %c0_i32_0 = arith.constant 0 : i32
    %c0_i32_1 = arith.constant 0 : i32
    return %arg1, %c0_i32, %c0_i32_0 : i32, i32, i32
  }
  func.func @transform_8(%arg0: i32, %arg1: i32) -> (i32, i32, i32) {
    %c0_i32 = arith.constant 0 : i32
    %c0_i32_0 = arith.constant 0 : i32
    %c0_i32_1 = arith.constant 0 : i32
    return %arg1, %c0_i32, %c0_i32_0 : i32, i32, i32
  }
  func.func @transform_9(%arg0: i32, %arg1: i32) -> (i32, i32, i32) {
    %c0_i32 = arith.constant 0 : i32
    %c0_i32_0 = arith.constant 0 : i32
    %c0_i32_1 = arith.constant 0 : i32
    return %arg1, %c0_i32, %c0_i32_0 : i32, i32, i32
  }
  func.func @transform_10(%arg0: i32, %arg1: i32) -> (i32, i32, i32) {
    %c0_i32 = arith.constant 0 : i32
    %c0_i32_0 = arith.constant 0 : i32
    %c0_i32_1 = arith.constant 0 : i32
    return %arg1, %c0_i32, %c0_i32_0 : i32, i32, i32
  }
  func.func @transform_11(%arg0: i32, %arg1: i32) -> (i32, i32, i32) {
    %c0_i32 = arith.constant 0 : i32
    %c0_i32_0 = arith.constant 0 : i32
    %c0_i32_1 = arith.constant 0 : i32
    return %arg1, %c0_i32, %c0_i32_0 : i32, i32, i32
  }
  func.func @transform_12(%arg0: i32, %arg1: i32) -> (i32, i32, i32) {
    %c0_i32 = arith.constant 0 : i32
    %c0_i32_0 = arith.constant 0 : i32
    %c0_i32_1 = arith.constant 0 : i32
    return %arg1, %c0_i32, %c0_i32_0 : i32, i32, i32
  }
  func.func @transform_13(%arg0: i32, %arg1: i32) -> (i32, i32, i32) {
    %c0_i32 = arith.constant 0 : i32
    %c0_i32_0 = arith.constant 0 : i32
    %c0_i32_1 = arith.constant 0 : i32
    return %arg1, %c0_i32, %c0_i32_0 : i32, i32, i32
  }
  func.func @transform_14(%arg0: i32, %arg1: i32) -> (i32, i32, i32) {
    %c0_i32 = arith.constant 0 : i32
    %c0_i32_0 = arith.constant 0 : i32
    %c0_i32_1 = arith.constant 0 : i32
    return %arg1, %c0_i32, %c0_i32_0 : i32, i32, i32
  }
  func.func @transform_15(%arg0: i32, %arg1: i32) -> (i32, i32, i32) {
    %c0_i32 = arith.constant 0 : i32
    %c0_i32_0 = arith.constant 0 : i32
    %c0_i32_1 = arith.constant 0 : i32
    return %arg0, %c0_i32, %c0_i32_0 : i32, i32, i32
  }
}

</mosaic_0001>

<bundles_post_ra>
// kernel: transformer_encoder_forward.1
= control target key start
LH: loop header
LB: loop body
LE: loop exit
PB: predicated region body
PF: predicated region fallthrough
CT: control target
= control target key end

     0   :  { %s15278_s0 = inlined_call_operand.vmem [shape: f32[4,128,128], index: 0, kind: input, shape index: {}]   ;;  %s15279_s1 = inlined_call_operand.vmem [shape: f32[128,128], index: 1, kind: input, shape index: {}]   ;;  %s15280_s2 = inlined_call_operand.vmem [shape: f32[4,1,128], index: 2, kind: input, shape index: {}]   ;;  %s15281_s3 = inlined_call_operand.vmem [shape: bf16[6,128,384], index: 3, kind: input, shape index: {}]   ;;  %s15282_s4 = inlined_call_operand.vmem [shape: f32[6,1,384], index: 4, kind: input, shape index: {}]   ;;  %s15283_s5 = inlined_call_operand.vmem [shape: bf16[6,128,128], index: 5, kind: input, shape index: {}]   ;;  %s15284_s6 = inlined_call_operand.vmem [shape: f32[6,1,128], index: 6, kind: input, shape index: {}]   ;;  %s15285_s7 = inlined_call_operand.vmem [shape: f32[6,1,128], index: 7, kind: input, shape index: {}]   ;;  %s15286_s8 = inlined_call_operand.vmem [shape: f32[6,1,128], index: 8, kind: input, shape index: {}]   ;;  %s15287_s9 = inlined_call_operand.vmem [shape: bf16[6,128,512], index: 9, kind: input, shape index: {}]   ;;  %s15288_s10 = inlined_call_operand.vmem [shape: f32[6,1,512], index: 10, kind: input, shape index: {}]   ;;  %s15289_s11 = inlined_call_operand.vmem [shape: bf16[6,512,128], index: 11, kind: input, shape index: {}]   ;;  %s15290_s12 = inlined_call_operand.vmem [shape: f32[6,1,128], index: 12, kind: input, shape index: {}]   ;;  %s15291_s13 = inlined_call_operand.vmem [shape: f32[6,1,128], index: 13, kind: input, shape index: {}]   ;;  %s15292_s14 = inlined_call_operand.vmem [shape: f32[6,1,128], index: 14, kind: input, shape index: {}]   ;;  %s15293_s15 = inlined_call_operand.hbm [shape: f32[4,128,128], index: 15, kind: output, shape index: {}]  }
   0x1   :  { %15398 = sst [smem:[#allocation103_spill]] %s15278_s0 }
   0x2   :  { %15399 = sst [smem:[#allocation104_spill]] %s15279_s1 }
   0x3   :  { %15400 = sst [smem:[#allocation105_spill]] %s15280_s2 }
   0x4   :  { %15401 = sst [smem:[#allocation106_spill]] %s15281_s3 }
   0x5   :  { %15402 = sst [smem:[#allocation107_spill]] %s15282_s4 }
   0x6   :  { %15403 = sst [smem:[#allocation108_spill]] %s15283_s5 }
   0x7   :  { %15404 = sst [smem:[#allocation109_spill]] %s15287_s9 }
   0x8   :  { %15405 = sst [smem:[#allocation110_spill]] %s15293_s15 }
   0x9   :  { %20 = vsyncpa [#allocation5], 0 }
   0xa   :  { %22 = vsyncpa [#allocation5 + $0x1], 0  ;;  %s10931_s18 = smov 0   ;;  %s10933_s19 = smov 0  }
   0xb   :  { %s10935_s20 = smov 0   ;;  %s10937_s21 = smov 0  }
   0xc   :  { %s10939_s22 = smov 0   ;;  %s10941_s23 = smov 0  }
   0xd   :  { %s10943_s24 = smov 0   ;;  %s10945_s25 = smov 0  }
   0xe LB: > { %15406 = sst [smem:[#allocation7_spill]] %s10814_s18  ;;  %s8460_s26 = sadd.s32 4294967295, %s10842_s25   ;;  %s10842_s25 = sphi %s10945_s25, %s28_s25   ;;  %s10838_s24 = sphi %s10943_s24, %s15762_s24   ;;  %s10834_s23 = sphi %s10941_s23, %s15761_s23   ;;  %s10830_s22 = sphi %s10939_s22, %s15760_s22   ;;  %s10826_s21 = sphi %s10937_s21, %s15759_s21   ;;  %s10822_s20 = sphi %s10935_s20, %s15758_s20   ;;  %s10818_s19 = sphi %s10933_s19, %s15757_s19   ;;  %s10814_s18 = sphi %s10931_s18, %s15756_s18  }
   0xf   : > { %15407 = sst [smem:[#allocation8_spill]] %s10818_s19  ;;  %s8461_s27 = sadd.s32 4294967294, %s10842_s25  }
  0x10   : > { %15408 = sst [smem:[#allocation9_spill]] %s10822_s20  ;;  %s37_s28 = sadd.s32 1, %s10834_s23 }
  0x11   : > { %15409 = sst [smem:[#allocation10_spill]] %s10826_s21  ;;  %p38_p0 = scmp.ge.s32.totalorder %s37_s28, 6 }
  0x12   : > { %15410 = sst [smem:[#allocation11_spill]] %s10830_s22  ;;  %s40_s29 = sadd.s32 1, %s10838_s24 }
  0x13   : > { %15411 = sst [smem:[#allocation12_spill]] %s10834_s23  ;;  %p442_p1 = scmp.ne.s32.totalorder %s10822_s20, %s10818_s19 }
  0x14   : > { %15412 = sst [smem:[#allocation13_spill]] %s10838_s24  ;;  %p443_p2 = scmp.eq.s32.totalorder %s8460_s26, 11 }
  0x15   : > { %15413 = sst [smem:[#allocation14_spill]] %s10842_s25  ;;  %s15764_s28 = smov (%p38_p0, %s37_s28), 0 }
  0x16   : > { %15414 = sst [smem:[#allocation15_spill]] %s15764_s28  ;;  %s15766_s29 = smov (!%p38_p0, %s40_s29), %s10838_s24 }
  0x17   : > { %p10980_p3 = por %p443_p2, %p442_p1  ;;  %p448_p4 = scmp.ne.s32.totalorder %s10818_s19, %s10814_s18 }
  0x18   : > { %p42_p5 = scmp.ge.s32.totalorder %s15766_s29, 2  ;;  %p449_p6 = scmp.eq.s32.totalorder %s8461_s27, 11 }
  0x19   : > { %s15415_s30 = scalar_select %p10980_p3, 1, 0 }
  0x1a   : > { %p8464_p7 = scmp.ge.s32.totalorder %s10842_s25, 1  ;;  %p570_p8 = scmp.lt.s32.totalorder %s10842_s25, 13 }
  0x1b   : > { %15416 = sst [smem:[#allocation16_spill]] %s15415_s30  ;;  %s15768_s29 = smov (%p42_p5, %s15766_s29), 0 }
  0x1c   : > { %15417 = sst [smem:[#allocation17_spill]] %s15768_s29  ;;  %p10990_p9 = por %p449_p6, %p448_p4 }
  0x1d   : > { %p571_p10 = pnand %p8464_p7, %p570_p8  ;;  %s429_s17 = ssub.s32 %s10838_s24, %s15768_s29 }
  0x1e   : > { %s15418_s16 = scalar_select %p10990_p9, 1, 0 }
  0x1f   : > { %s432_s26 = sadd.s32 1, %s10822_s20  ;;  %p430_p11 = scmp.eq.s32.totalorder %s429_s17, 0 }
  0x20   : > { %15419 = sst [smem:[#allocation18_spill]] %s15418_s16  ;;  %574 = sbr.rel (%p571_p10) target bundleno = 5943 (0x1737), region = 80 }
  0x21   : > { %s10998_s28 = scalar_select %p430_p11, %s10822_s20, %s432_s26  }
  0x23   : > { %15420 = sst [smem:[#allocation19_spill]] %s10998_s28 }
  0x25   : > { %s15299_s27 = sand.u32 1, %s10818_s19   ;;  %s8466_s23 = sshll.u32 %s10830_s22, 1 }
  0x26   : > { %s8465_s18 = sshll.u32 %s15299_s27, 8  ;;  %p670_p12 = scmp.lt.s32.totalorder %s8466_s23, 3 }
  0x27   : > { %p681_p13 = scmp.lt.s32.totalorder %s10826_s21, 5  ;;  %s15421_s2 = sld [smem:[#allocation105_spill]] }
  0x28   : > { %s15770_s23 = smov (!%p670_p12, %s8466_s23), 3  ;;  %s15423_s0 = sld [smem:[#allocation103_spill]] }
  0x29   : > { %s11006_s16 = scalar_select %p681_p13, %s10826_s21, 5 }
  0x2a   : > { %s8655_s17 = sshll.u32 %s15770_s23, 7  ;;  %s15425_s3 = sld [smem:[#allocation106_spill]] }
  0x2b   : > { %s9877_s25 = smul.u32 192, %s11006_s16  ;;  %s8656_s30 = sshll.u32 %s11006_s16, 6 }
  0x2c   : > { %s9878_s15 = smul.u32 3, %s11006_s16  ;;  %s15426_s5 = sld [smem:[#allocation108_spill]] }
  0x2d   : > { %s11011_s24 = scalar_lea.vmem %s15421_s2, %s15770_s23  ;;  %s15427_s4 = sld [smem:[#allocation107_spill]] }
  0x2e   : > { %15422 = sst [smem:[#allocation20_spill]] %s11011_s24  ;;  %s11016_s20 = scalar_lea.vmem %s15423_s0, %s8655_s17 }
  0x2f   : > { %15424 = sst [smem:[#allocation21_spill]] %s11016_s20  ;;  %s8657_s21 = sshll.u32 %s11006_s16, 8 }
  0x30   : > { %s11024_s1 = scalar_lea.vmem %s15425_s3, %s9877_s25  ;;  %s15428_s9 = sld [smem:[#allocation109_spill]] }
  0x31   : > { %s11063_s20 = scalar_lea.vmem %s15289_s11, %s8657_s21  ;;  %s720_s25 = scalar_lea.vmem %s15290_s12, %s11006_s16 }
  0x32   : > { %s11029_s23 = scalar_lea.vmem %s15426_s5, %s8656_s30  ;;  %s8475_s30 = sshll.u32 %s11006_s16, 2 }
  0x33   : > { %s11034_s27 = scalar_lea.vmem %s15427_s4, %s9878_s15  ;;  %s11058_s0 = scalar_lea.vmem %s15288_s10, %s8475_s30 }
  0x34   : > { %s723_s5 = scalar_lea.vmem %s15291_s13, %s11006_s16  ;;  %s11077_s15 = scalar_lea.vmem [#allocation4], %s8465_s18 }
  0x35   : > { %s15429_s30 = sld [smem:[#allocation10_spill]] }
  0x36   : > { %s11053_s26 = scalar_lea.vmem %s15428_s9, %s8657_s21  ;;  %s726_s9 = scalar_lea.vmem %s15292_s14, %s11006_s16 }
  0x3b   : > { %p8478_p0 = scmp.ne.s32.totalorder %s15429_s30, 0 }
  0x3c   : > { %s15430_s2 = sld [smem:[#allocation21_spill]] (!%p8478_p0) }
  0x3d   : > { %732 = sbr.rel (%p8478_p0) target bundleno = 94 (0x5e), region = 84  ;;  %s15431_s17 = sld [smem:[#allocation104_spill]] (!%p8478_p0) }
  0x42   : > { %v733_v0 = vld [vmem:[%s15430_s2] sm:$0xff]  ;;  %v734_v2 = vld [vmem:[%s15430_s2 + $0x8] sm:$0xff]  ;;  %v735_v6 = vld [vmem:[%s15430_s2 + $0x10] sm:$0xff] }
  0x43   : > { %v11084_v1 = vld [vmem:[%s15431_s17] sm:$0xff]  ;;  %v765_v3 = vmul.f32 11.313708, %v733_v0  ;;  %v766_v4 = vmul.f32 11.313708, %v734_v2  ;;  %v11090_v5 = vld [vmem:[%s15431_s17 + $0x8] sm:$0xff] }
  0x44   : > { %v767_v7 = vmul.f32 11.313708, %v735_v6  ;;  %v11096_v8 = vld [vmem:[%s15431_s17 + $0x10] sm:$0xff]  ;;  %v736_v9 = vld [vmem:[%s15430_s2 + $0x18] sm:$0xff]  ;;  %v737_v14 = vld [vmem:[%s15430_s2 + $0x20] sm:$0xff] }
  0x45   : > { %v11102_v10 = vld [vmem:[%s15431_s17 + $0x18] sm:$0xff]  ;;  %v813_v11 = vadd.f32 %v11084_v1, %v765_v3  ;;  %v814_v12 = vadd.f32 %v11090_v5, %v766_v4  ;;  %v768_v13 = vmul.f32 11.313708, %v736_v9  ;;  %v11110_v15 = vld [vmem:[%s15431_s17 + $0x20] sm:$0xff]  ;;  %v738_v16 = vld [vmem:[%s15430_s2 + $0x28] sm:$0xff] }
  0x46   : > { %v815_v17 = vadd.f32 %v11096_v8, %v767_v7  ;;  %v769_v18 = vmul.f32 11.313708, %v737_v14  ;;  %v770_v19 = vmul.f32 11.313708, %v738_v16  ;;  %v11117_v20 = vld [vmem:[%s15431_s17 + $0x28] sm:$0xff]  ;;  %v739_v21 = vld [vmem:[%s15430_s2 + $0x30] sm:$0xff] }
  0x47   : > { %845 = vst [vmem:[#allocation2 + $0xb0] sm:$0xff] %v813_v11  ;;  %846 = vst [vmem:[#allocation2] sm:$0xff] %v814_v12  ;;  %v816_v22 = vadd.f32 %v11102_v10, %v768_v13  ;;  %v771_v23 = vmul.f32 11.313708, %v739_v21  ;;  %v11124_v24 = vld [vmem:[%s15431_s17 + $0x30] sm:$0xff]  ;;  %v740_v25 = vld [vmem:[%s15430_s2 + $0x38] sm:$0xff] }
  0x48   : > { %v11130_v26 = vld [vmem:[%s15431_s17 + $0x38] sm:$0xff]  ;;  %847 = vst [vmem:[#allocation2 + $0xd8] sm:$0xff] %v815_v17  ;;  %v817_v27 = vadd.f32 %v11110_v15, %v769_v18  ;;  %v818_v28 = vadd.f32 %v11117_v20, %v770_v19  ;;  %v772_v29 = vmul.f32 11.313708, %v740_v25  ;;  %v741_v30 = vld [vmem:[%s15430_s2 + $0x40] sm:$0xff]  ;;  %v742_v32 = vld [vmem:[%s15430_s2 + $0x48] sm:$0xff] }
  0x49   : > { %v11138_v31 = vld [vmem:[%s15431_s17 + $0x40] sm:$0xff]  ;;  %848 = vst [vmem:[#allocation2 + $0x18] sm:$0xff] %v816_v22  ;;  %v819_v33 = vadd.f32 %v11124_v24, %v771_v23  ;;  %v773_v34 = vmul.f32 11.313708, %v741_v30  ;;  %v774_v35 = vmul.f32 11.313708, %v742_v32 }
  0x4a   : > { %v11145_v36 = vld [vmem:[%s15431_s17 + $0x48] sm:$0xff]  ;;  %v743_v37 = vld [vmem:[%s15430_s2 + $0x50] sm:$0xff]  ;;  %849 = vst [vmem:[#allocation2 + $0x50] sm:$0xff] %v817_v27  ;;  %850 = vst [vmem:[#allocation2 + $0x68] sm:$0xff] %v818_v28  ;;  %v820_v38 = vadd.f32 %v11130_v26, %v772_v29 }
  0x4b   : > { %v775_v39 = vmul.f32 11.313708, %v743_v37  ;;  %v11152_v40 = vld [vmem:[%s15431_s17 + $0x50] sm:$0xff]  ;;  %v744_v41 = vld [vmem:[%s15430_s2 + $0x58] sm:$0xff]  ;;  %851 = vst [vmem:[#allocation2 + $0x30] sm:$0xff] %v819_v33  ;;  %v821_v43 = vadd.f32 %v11138_v31, %v773_v34  ;;  %v822_v44 = vadd.f32 %v11145_v36, %v774_v35  ;;  %v745_v46 = vld [vmem:[%s15430_s2 + $0x60] sm:$0xff] }
  0x4c   : > { %v11158_v42 = vld [vmem:[%s15431_s17 + $0x58] sm:$0xff]  ;;  %v776_v45 = vmul.f32 11.313708, %v744_v41  ;;  %v11166_v47 = vld [vmem:[%s15431_s17 + $0x60] sm:$0xff]  ;;  %v746_v48 = vld [vmem:[%s15430_s2 + $0x68] sm:$0xff]  ;;  %852 = vst [vmem:[#allocation2 + $0x48] sm:$0xff] %v820_v38 }
  0x4d   : > { %v823_v49 = vadd.f32 %v11152_v40, %v775_v39  ;;  %v777_v50 = vmul.f32 11.313708, %v745_v46  ;;  %v778_v51 = vmul.f32 11.313708, %v746_v48  ;;  %v11173_v52 = vld [vmem:[%s15431_s17 + $0x68] sm:$0xff]  ;;  %v747_v53 = vld [vmem:[%s15430_s2 + $0x70] sm:$0xff] }
  0x4e   : > { %853 = vst [vmem:[#allocation2 + $0x80] sm:$0xff] %v821_v43  ;;  %854 = vst [vmem:[#allocation2 + $0x88] sm:$0xff] %v822_v44  ;;  %v824_v54 = vadd.f32 %v11158_v42, %v776_v45  ;;  %v779_v55 = vmul.f32 11.313708, %v747_v53  ;;  %v11180_v56 = vld [vmem:[%s15431_s17 + $0x70] sm:$0xff]  ;;  %v748_v57 = vld [vmem:[%s15430_s2 + $0x78] sm:$0xff] }
  0x4f   : > { %v11186_v58 = vld [vmem:[%s15431_s17 + $0x78] sm:$0xff]  ;;  %855 = vst [vmem:[#allocation2 + $0xe8] sm:$0xff] %v823_v49  ;;  %v825_v59 = vadd.f32 %v11166_v47, %v777_v50  ;;  %v826_v60 = vadd.f32 %v11173_v52, %v778_v51  ;;  %v780_v61 = vmul.f32 11.313708, %v748_v57  ;;  %v749_v62 = vld [vmem:[%s15430_s2 + $0x80] sm:$0xff]  ;;  %v750_v63 = vld [vmem:[%s15430_s2 + $0x88] sm:$0xff] }
  0x50   : > { %v751_v0 = vld [vmem:[%s15430_s2 + $0x90] sm:$0xff]  ;;  %856 = vst [vmem:[#allocation2 + $0xb8] sm:$0xff] %v824_v54  ;;  %v827_v2 = vadd.f32 %v11180_v56, %v779_v55  ;;  %v781_v3 = vmul.f32 11.313708, %v749_v62  ;;  %v782_v4 = vmul.f32 11.313708, %v750_v63 }
  0x51   : > { %v783_v6 = vmul.f32 11.313708, %v751_v0  ;;  %857 = vst [vmem:[#allocation2 + $0x60] sm:$0xff] %v825_v59  ;;  %858 = vst [vmem:[#allocation2 + $0xf0] sm:$0xff] %v826_v60  ;;  %v828_v7 = vadd.f32 %v11186_v58, %v780_v61  ;;  %v752_v9 = vld [vmem:[%s15430_s2 + $0x98] sm:$0xff]  ;;  %v753_v11 = vld [vmem:[%s15430_s2 + $0xa0] sm:$0xff] }
  0x52   : > { %v754_v12 = vld [vmem:[%s15430_s2 + $0xa8] sm:$0xff]  ;;  %859 = vst [vmem:[#allocation2 + $0x8] sm:$0xff] %v827_v2  ;;  %v829_v13 = vadd.f32 %v11084_v1, %v781_v3  ;;  %v830_v14 = vadd.f32 %v11090_v5, %v782_v4  ;;  %v784_v17 = vmul.f32 11.313708, %v752_v9  ;;  %v755_v18 = vld [vmem:[%s15430_s2 + $0xb0] sm:$0xff]  ;;  %v756_v19 = vld [vmem:[%s15430_s2 + $0xb8] sm:$0xff] }
  0x53   : > { %v831_v16 = vadd.f32 %v11096_v8, %v783_v6  ;;  %v757_v21 = vld [vmem:[%s15430_s2 + $0xc0] sm:$0xff]  ;;  %860 = vst [vmem:[#allocation2 + $0x78] sm:$0xff] %v828_v7  ;;  %v785_v22 = vmul.f32 11.313708, %v753_v11  ;;  %v786_v23 = vmul.f32 11.313708, %v754_v12 }
  0x54   : > { %v787_v25 = vmul.f32 11.313708, %v755_v18  ;;  %861 = vst [vmem:[#allocation2 + $0x38] sm:$0xff] %v829_v13  ;;  %862 = vst [vmem:[#allocation2 + $0x58] sm:$0xff] %v830_v14  ;;  %v832_v1 = vadd.f32 %v11102_v10, %v784_v17  ;;  %v788_v5 = vmul.f32 11.313708, %v756_v19 }
  0x55   : > { %863 = vst [vmem:[#allocation2 + $0x40] sm:$0xff] %v831_v16  ;;  %v789_v8 = vmul.f32 11.313708, %v757_v21  ;;  %v758_v27 = vld [vmem:[%s15430_s2 + $0xc8] sm:$0xff]  ;;  %v759_v28 = vld [vmem:[%s15430_s2 + $0xd0] sm:$0xff]  ;;  %v833_v29 = vadd.f32 %v11110_v15, %v785_v22  ;;  %v834_v30 = vadd.f32 %v11117_v20, %v786_v23  ;;  %v760_v34 = vld [vmem:[%s15430_s2 + $0xd8] sm:$0xff] }
  0x56   : > { %v835_v32 = vadd.f32 %v11124_v24, %v787_v25  ;;  %v790_v33 = vmul.f32 11.313708, %v758_v27  ;;  %v761_v35 = vld [vmem:[%s15430_s2 + $0xe0] sm:$0xff]  ;;  %v762_v37 = vld [vmem:[%s15430_s2 + $0xe8] sm:$0xff]  ;;  %864 = vst [vmem:[#allocation2 + $0xc8] sm:$0xff] %v832_v1  ;;  %v836_v38 = vadd.f32 %v11130_v26, %v788_v5  ;;  %v763_v43 = vld [vmem:[%s15430_s2 + $0xf0] sm:$0xff] }
  0x57   : > { %v837_v10 = vadd.f32 %v11138_v31, %v789_v8  ;;  %v791_v39 = vmul.f32 11.313708, %v759_v28  ;;  %v792_v41 = vmul.f32 11.313708, %v760_v34  ;;  %v764_v44 = vld [vmem:[%s15430_s2 + $0xf8] sm:$0xff]  ;;  %865 = vst [vmem:[#allocation2 + $0xe0] sm:$0xff] %v833_v29 }
  0x58   : > { %866 = vst [vmem:[#allocation2 + $0x90] sm:$0xff] %v834_v30  ;;  %867 = vst [vmem:[#allocation2 + $0x70] sm:$0xff] %v835_v32  ;;  %v838_v15 = vadd.f32 %v11145_v36, %v790_v33  ;;  %v793_v20 = vmul.f32 11.313708, %v761_v35  ;;  %v794_v24 = vmul.f32 11.313708, %v762_v37 }
  0x59   : > { %v795_v45 = vmul.f32 11.313708, %v763_v43  ;;  %868 = vst [vmem:[#allocation2 + $0xc0] sm:$0xff] %v836_v38  ;;  %869 = vst [vmem:[#allocation2 + $0xa8] sm:$0xff] %v837_v10  ;;  %v839_v46 = vadd.f32 %v11152_v40, %v791_v39  ;;  %v840_v26 = vadd.f32 %v11158_v42, %v792_v41  ;;  %v796_v48 = vmul.f32 11.313708, %v764_v44 }
  0x5a   : > { %870 = vst [vmem:[#allocation2 + $0xd0] sm:$0xff] %v838_v15  ;;  %v841_v31 = vadd.f32 %v11166_v47, %v793_v20  ;;  %v842_v49 = vadd.f32 %v11173_v52, %v794_v24 }
  0x5b   : > { %v843_v50 = vadd.f32 %v11180_v56, %v795_v45  ;;  %871 = vst [vmem:[#allocation2 + $0x10] sm:$0xff] %v839_v46  ;;  %872 = vst [vmem:[#allocation2 + $0x28] sm:$0xff] %v840_v26  ;;  %v844_v36 = vadd.f32 %v11186_v58, %v796_v48 }
  0x5c   : > { %873 = vst [vmem:[#allocation2 + $0xa0] sm:$0xff] %v841_v31  ;;  %874 = vst [vmem:[#allocation2 + $0xf8] sm:$0xff] %v842_v49 }
  0x5d   : > { %875 = vst [vmem:[#allocation2 + $0x20] sm:$0xff] %v843_v50  ;;  %876 = vst [vmem:[#allocation2 + $0x98] sm:$0xff] %v844_v36 }
  0x5e PF: > { %v9956_v40 = vld [vmem:[%s11024_s1 + $0xac] ss:$12 sps:$4 sm:$0xff]   ;;  %v9958_v42 = vld [vmem:[%s11024_s1 + $0xa8] ss:$12 sps:$4 sm:$0xff]   ;;  %v15315_v47 = vmov 0   ;;  %v878_v3 = vld [vmem:[#allocation2] sm:$0xff]  ;;  %s15697_s18 = scalar_lea.vmem %s15284_s6, %s11006_s16  ;;  %s15699_s24 = scalar_lea.vmem %s15285_s7, %s11006_s16 }
  0x5f   : > { %1134 = vmatprep.mubr.bf16.mxu0 %v15315_v47  ;;  %1254 = vmatprep.mubr.bf16.mxu1 %v15315_v47  ;;  %v9959_v51 = vld [vmem:[%s11024_s1 + $0x94] ss:$12 sps:$4 sm:$0xff]   ;;  %v9961_v52 = vld [vmem:[%s11024_s1 + $0x90] ss:$12 sps:$4 sm:$0xff]   ;;  %v9964_v54 = vld [vmem:[%s11024_s1 + $0x78] ss:$12 sps:$4 sm:$0xff]   ;;  %s15700_s30 = scalar_lea.vmem %s15286_s8, %s11006_s16 }
  0x60   : > { %1102 = vmatprep.subr.bf16.mxu0 %v9956_v40  ;;  %9797 = vmatprep.subr.bf16.mxu1 %v9956_v40  ;;  %v9962_v53 = vld [vmem:[%s11024_s1 + $0x7c] ss:$12 sps:$4 sm:$0xff]   ;;  %v9965_v55 = vld [vmem:[%s11024_s1 + $0x64] ss:$12 sps:$4 sm:$0xff]   ;;  %v9967_v56 = vld [vmem:[%s11024_s1 + $0x60] ss:$12 sps:$4 sm:$0xff]  }
  0x61   : > { %1103 = vmatpush1.bf16.msra.mxu0 %v9958_v42  ;;  %9805 = vmatpush1.bf16.msra.mxu1 %v9958_v42  ;;  %v9968_v57 = vld [vmem:[%s11024_s1 + $0x4c] ss:$12 sps:$4 sm:$0xff]   ;;  %v9970_v58 = vld [vmem:[%s11024_s1 + $0x48] ss:$12 sps:$4 sm:$0xff]   ;;  %v9973_v60 = vld [vmem:[%s11024_s1 + $0x30] ss:$12 sps:$4 sm:$0xff]  }
  0x62   : > { %1104 = vmatprep.subr.bf16.mxu0 %v9959_v51  ;;  %9798 = vmatprep.subr.bf16.mxu1 %v9959_v51  ;;  %v9971_v59 = vld [vmem:[%s11024_s1 + $0x34] ss:$12 sps:$4 sm:$0xff]   ;;  %v9974_v61 = vld [vmem:[%s11024_s1 + $0x1c] ss:$12 sps:$4 sm:$0xff]   ;;  %v9976_v62 = vld [vmem:[%s11024_s1 + $0x18] ss:$12 sps:$4 sm:$0xff]  }
  0x63   : > { %v9977_v63 = vld [vmem:[%s11024_s1 + $0x4] ss:$12 sps:$4 sm:$0xff]   ;;  %v9979_v0 = vld [vmem:[%s11024_s1] ss:$12 sps:$4 sm:$0xff]   ;;  %v879_v13 = vld [vmem:[#allocation2 + $0xd8] sm:$0xff]  ;;  %vm1511_vm0 = vcmask 261120  }
  0x64   : > { %v877_v2 = vld [vmem:[#allocation2 + $0xb0] sm:$0xff]  ;;  %v901_v4 = vld [vmem:[#allocation2 + $0xa8] sm:$0xff]  ;;  %v9981_v12 = vld [vmem:[%s11024_s1 + $0x98] ss:$12 sps:$4 sm:$0xff]   ;;  %s10847_s2 = smov 32   ;;  %s15488_s3 = sld [smem:[#allocation20_spill]] }
  0x65   : > { %1105 = vmatpush1.bf16.msra.mxu0 %v9961_v52  ;;  %9806 = vmatpush1.bf16.msra.mxu1 %v9961_v52  ;;  %v902_v6 = vld [vmem:[#allocation2 + $0xd0] sm:$0xff]  ;;  %v909_v9 = vpack.c.bf16 %v878_v3, %v877_v2  ;;  %v880_v14 = vld [vmem:[#allocation2 + $0x18] sm:$0xff]  ;;  %v904_v17 = vld [vmem:[#allocation2 + $0x28] sm:$0xff]  ;;  %vm2460_vm1 = vcmask 523520   ;;  %vm2991_vm2 = vcmask 785920   ;;  %vm3522_vm3 = vcmask 1048320  }
  0x66   : > { %1106 = vmatprep.subr.bf16.mxu0 %v9962_v53  ;;  %9799 = vmatprep.subr.bf16.mxu1 %v9962_v53  ;;  %v9980_v7 = vld [vmem:[%s11024_s1 + $0xb0] ss:$12 sps:$4 sm:$0xff]   ;;  %v11243_v11 = vpack.c.bf16 %v902_v6, %v901_v4  ;;  %v9982_v18 = vld [vmem:[%s11024_s1 + $0x80] ss:$12 sps:$4 sm:$0xff]   ;;  %v910_v19 = vpack.c.bf16 %v880_v14, %v879_v13  ;;  %v9983_v22 = vld [vmem:[%s11024_s1 + $0x68] ss:$12 sps:$4 sm:$0xff]  }
  0x67   : > { %v903_v16 = vld [vmem:[#allocation2 + $0x10] sm:$0xff]  ;;  %v882_v25 = vld [vmem:[#allocation2 + $0x68] sm:$0xff]  ;;  %v905_v1 = vld [vmem:[#allocation2 + $0xa0] sm:$0xff] }
  0x68   : > { %v11250_v21 = vpack.c.bf16 %v904_v17, %v903_v16  ;;  %v881_v23 = vld [vmem:[#allocation2 + $0x50] sm:$0xff]  ;;  %v906_v5 = vld [vmem:[#allocation2 + $0xf8] sm:$0xff]  ;;  %v884_v32 = vld [vmem:[#allocation2 + $0x48] sm:$0xff] }
  0x69   : > { %1107 = vmatpush1.bf16.msra.mxu0 %v9964_v54  ;;  %9807 = vmatpush1.bf16.msra.mxu1 %v9964_v54  ;;  %v9984_v8 = vld [vmem:[%s11024_s1 + $0x50] ss:$12 sps:$4 sm:$0xff]   ;;  %v911_v27 = vpack.c.bf16 %v882_v25, %v881_v23  ;;  %v11257_v28 = vpack.c.bf16 %v906_v5, %v905_v1  ;;  %v9985_v29 = vld [vmem:[%s11024_s1 + $0x38] ss:$12 sps:$4 sm:$0xff]   ;;  %v9986_v35 = vld [vmem:[%s11024_s1 + $0x20] ss:$12 sps:$4 sm:$0xff]  }
  0x6a   : > { %1108 = vmatprep.subr.bf16.mxu0 %v9965_v55  ;;  %9800 = vmatprep.subr.bf16.mxu1 %v9965_v55  ;;  %v883_v30 = vld [vmem:[#allocation2 + $0x30] sm:$0xff]  ;;  %v907_v33 = vld [vmem:[#allocation2 + $0x20] sm:$0xff]  ;;  %v908_v34 = vld [vmem:[#allocation2 + $0x98] sm:$0xff] }
  0x6b   : > { %v912_v37 = vpack.c.bf16 %v884_v32, %v883_v30  ;;  %v924_v38 = vpack.c.bf16 %v908_v34, %v907_v33  ;;  %v9987_v10 = vld [vmem:[%s11024_s1 + $0x8] ss:$12 sps:$4 sm:$0xff]   ;;  %v885_v39 = vld [vmem:[#allocation2 + $0x80] sm:$0xff]  ;;  %v888_v15 = vld [vmem:[#allocation2 + $0xb8] sm:$0xff]  ;;  %s10845_s1 = smov 96  }
  0x6c   : > { %v886_v41 = vld [vmem:[#allocation2 + $0x88] sm:$0xff]  ;;  %v889_v24 = vld [vmem:[#allocation2 + $0x60] sm:$0xff]  ;;  %v890_v45 = vld [vmem:[#allocation2 + $0xf0] sm:$0xff] }
  0x6d   : > { %1109 = vmatpush1.bf16.msra.mxu0 %v9967_v56  ;;  %9808 = vmatpush1.bf16.msra.mxu1 %v9967_v56  ;;  %v913_v43 = vpack.c.bf16 %v886_v41, %v885_v39  ;;  %v887_v44 = vld [vmem:[#allocation2 + $0xe8] sm:$0xff]  ;;  %v915_v46 = vpack.c.bf16 %v890_v45, %v889_v24  ;;  %v892_v48 = vld [vmem:[#allocation2 + $0x78] sm:$0xff]  ;;  %v895_v40 = vld [vmem:[#allocation2 + $0x40] sm:$0xff] }
  0x6e   : > { %1110 = vmatprep.subr.bf16.mxu0 %v9968_v57  ;;  %9801 = vmatprep.subr.bf16.mxu1 %v9968_v57  ;;  %v914_v20 = vpack.c.bf16 %v888_v15, %v887_v44  ;;  %v891_v26 = vld [vmem:[#allocation2 + $0x8] sm:$0xff]  ;;  %v893_v31 = vld [vmem:[#allocation2 + $0x38] sm:$0xff]  ;;  %v897_v51 = vld [vmem:[#allocation2 + $0xe0] sm:$0xff] }
  0x6f   : > { %v894_v49 = vld [vmem:[#allocation2 + $0x58] sm:$0xff]  ;;  %v916_v50 = vpack.c.bf16 %v892_v48, %v891_v26  ;;  %v896_v42 = vld [vmem:[#allocation2 + $0xc8] sm:$0xff]  ;;  %v898_v52 = vld [vmem:[#allocation2 + $0x90] sm:$0xff] }
  0x70   : > { %v917_v36 = vpack.c.bf16 %v894_v49, %v893_v31  ;;  %v918_v53 = vpack.c.bf16 %v896_v42, %v895_v40  ;;  %v919_v54 = vpack.c.bf16 %v898_v52, %v897_v51  ;;  %v899_v55 = vld [vmem:[#allocation2 + $0x70] sm:$0xff]  ;;  %v900_v56 = vld [vmem:[#allocation2 + $0xc0] sm:$0xff] }
  0x71   : > { %1111 = vmatpush1.bf16.msra.mxu0 %v9970_v58  ;;  %9809 = vmatpush1.bf16.msra.mxu1 %v9970_v58  ;;  %v920_v57 = vpack.c.bf16 %v900_v56, %v899_v55  ;;  %v959_v58 = vlaneseq }
  0x72   : > { %1112 = vmatprep.subr.bf16.mxu0 %v9971_v59  ;;  %9802 = vmatprep.subr.bf16.mxu1 %v9971_v59 }
  0x73   : > { %v11276_v59 = vshrl.u32 %v959_v58, 7 }
  0x75   : > { %1113 = vmatpush1.bf16.msra.mxu0 %v9973_v60  ;;  %9810 = vmatpush1.bf16.msra.mxu1 %v9973_v60  ;;  %15432 = vst [vmem:[#allocation22_spill] sm:$0xff] %v11276_v59  ;;  %v15313_v60 = vsub.s32 0, %v11276_v59 }
  0x76   : > { %1114 = vmatprep.subr.bf16.mxu0 %v9974_v61  ;;  %9803 = vmatprep.subr.bf16.mxu1 %v9974_v61  ;;  %v11280_v61 = vld [vmem:[%s11034_s27] sm:$0x7]  ;;  %s10846_s27 = smov 64  }
  0x79   : > { %1115 = vmatpush1.bf16.msra.mxu0 %v9976_v62  ;;  %9811 = vmatpush1.bf16.msra.mxu1 %v9976_v62 }
  0x7a   : > { %1116 = vmatprep.subr.bf16.mxu0 %v9977_v63  ;;  %9804 = vmatprep.subr.bf16.mxu1 %v9977_v63 }
  0x7d   : > { %1117 = vmatpush1.bf16.msra.mxu0 %v9979_v0  ;;  %9812 = vmatpush1.bf16.msra.mxu1 %v9979_v0  ;;  %v11285_v0 = vrot.slane %v11280_v61, %v15313_v60 }
  0x7e   : > { %9189 = vmatprep.subr.bf16.mxu1 %v9980_v7 }
  0x80   : > { %1135 = vmatmul.mubr.bf16.vlgmr.msra.gmra.mxu0 %v909_v9  ;;  %1255 = vmatmul.mubr.bf16.vlgmr.msra.gmra.mxu1 %v11243_v11 }
  0x81   : > { %1144 = vmatprep.mubr.bf16.mxu0 %v15315_v47  ;;  %9190 = vmatpush3.bf16.msra.mxu1 %v9980_v7 }
  0x82   : > { %9191 = vmatprep.subr.bf16.mxu1 %v9981_v12  ;;  %1264 = vmatprep.mubr.bf16.mxu1 %v15315_v47 }
  0x85   : > { %9192 = vmatpush3.bf16.msra.mxu1 %v9981_v12 }
  0x86   : > { %9193 = vmatprep.subr.bf16.mxu1 %v9982_v18 }
  0x88   : > { %1145 = vmatmul.mubr.bf16.gmra.mxu0 %v910_v19  ;;  %1265 = vmatmul.mubr.bf16.gmra.mxu1 %v11250_v21 }
  0x89   : > { %1154 = vmatprep.mubr.bf16.mxu0 %v15315_v47  ;;  %9194 = vmatpush3.bf16.msra.mxu1 %v9982_v18 }
  0x8a   : > { %9195 = vmatprep.subr.bf16.mxu1 %v9983_v22  ;;  %1274 = vmatprep.mubr.bf16.mxu1 %v15315_v47 }
  0x8d   : > { %9196 = vmatpush3.bf16.msra.mxu1 %v9983_v22 }
  0x8e   : > { %9197 = vmatprep.subr.bf16.mxu1 %v9984_v8 }
  0x90   : > { %1155 = vmatmul.mubr.bf16.gmra.mxu0 %v911_v27  ;;  %1275 = vmatmul.mubr.bf16.gmra.mxu1 %v11257_v28 }
  0x91   : > { %1164 = vmatprep.mubr.bf16.mxu0 %v15315_v47  ;;  %9198 = vmatpush3.bf16.msra.mxu1 %v9984_v8 }
  0x92   : > { %9199 = vmatprep.subr.bf16.mxu1 %v9985_v29  ;;  %1284 = vmatprep.mubr.bf16.mxu1 %v15315_v47 }
  0x95   : > { %9200 = vmatpush3.bf16.msra.mxu1 %v9985_v29 }
  0x96   : > { %9201 = vmatprep.subr.bf16.mxu1 %v9986_v35 }
  0x98   : > { %1165 = vmatmul.mubr.bf16.gmra.mxu0 %v912_v37  ;;  %1285 = vmatmul.mubr.bf16.gmra.mxu1 %v924_v38 }
  0x99   : > { %1174 = vmatprep.mubr.bf16.mxu0 %v15315_v47  ;;  %9202 = vmatpush3.bf16.msra.mxu1 %v9986_v35 }
  0x9a   : > { %9203 = vmatprep.subr.bf16.mxu1 %v9987_v10  ;;  %9205 = vmatprep.mubr.bf16.mxu1 %v909_v9 }
  0x9d   : > { %9204 = vmatpush3.bf16.msra.mxu1 %v9987_v10 }
  0xa0   : > { %1175 = vmatmul.mubr.bf16.gmra.mxu0 %v913_v43  ;;  %9206 = vmatmul.mubr.bf16.vlgmr.msra.gmra.mxu1 %v910_v19 }
  0xa1   : > { %1184 = vmatprep.mubr.bf16.mxu0 %v15315_v47  ;;  %9209 = vmatprep.mubr.bf16.mxu1 %v911_v27 }
  0xa8   : > { %1185 = vmatmul.mubr.bf16.gmra.mxu0 %v914_v20  ;;  %9210 = vmatmul.mubr.bf16.gmra.mxu1 %v912_v37 }
  0xa9   : > { %1194 = vmatprep.mubr.bf16.mxu0 %v15315_v47  ;;  %9213 = vmatprep.mubr.bf16.mxu1 %v913_v43 }
  0xb0   : > { %1195 = vmatmul.mubr.bf16.gmra.mxu0 %v915_v46  ;;  %9214 = vmatmul.mubr.bf16.gmra.mxu1 %v914_v20 }
  0xb1   : > { %1204 = vmatprep.mubr.bf16.mxu0 %v15315_v47  ;;  %9217 = vmatprep.mubr.bf16.mxu1 %v915_v46 }
  0xb8   : > { %1205 = vmatmul.mubr.bf16.gmra.mxu0 %v916_v50  ;;  %9218 = vmatmul.mubr.bf16.gmra.mxu1 %v916_v50 }
  0xb9   : > { %9221 = vmatprep.mubr.bf16.mxu1 %v917_v36  ;;  %1214 = vmatprep.mubr.bf16.mxu0 %v15315_v47 }
  0xc0   : > { %9222 = vmatmul.mubr.bf16.gmra.mxu1 %v918_v53  ;;  %1215 = vmatmul.mubr.bf16.gmra.mxu0 %v917_v36 }
  0xc1   : > { %9225 = vmatprep.mubr.bf16.mxu1 %v919_v54  ;;  %1224 = vmatprep.mubr.bf16.mxu0 %v15315_v47 }
  0xc8   : > { %9226 = vmatmul.mubr.bf16.gmra.mxu1 %v920_v57  ;;  %1225 = vmatmul.mubr.bf16.gmra.mxu0 %v918_v53 }
  0xc9   : > { %9229 = vmatprep.mubr.bf16.mxu1 %v11243_v11  ;;  %1234 = vmatprep.mubr.bf16.mxu0 %v15315_v47 }
  0xd0   : > { %9230 = vmatmul.mubr.bf16.gmra.mxu1 %v11250_v21  ;;  %1235 = vmatmul.mubr.bf16.gmra.mxu0 %v919_v54 }
  0xd1   : > { %9233 = vmatprep.mubr.bf16.mxu1 %v11257_v28  ;;  %1244 = vmatprep.mubr.bf16.mxu0 %v15315_v47 }
  0xd8   : > { %9234 = vmatmul.mubr.bf16.gmra.mxu1 %v924_v38  ;;  %1245 = vmatmul.mubr.bf16.gmra.mxu0 %v920_v57  ;;  %v15314_v57 = vsub.s32 1, %v11276_v59 }
 0x140   : > { %v1136_v62 = vpop.f32.mrf.mxu0  ;;  %v1256_v63 = vpop.f32.mrf.mxu1 }
 0x141   : > { %v1257_v4 = vadd.f32 %v1256_v63, %v11285_v0  ;;  %v1137_v9 = vadd.f32 %v1136_v62, %v11285_v0  ;;  %v11357_v63 = vrot.slane %v11280_v61, %v15314_v57 }
 0x142   : > { %v11287_v2 = vpop.f32.mrf.mxu0  ;;  %v11289_v3 = vpop.f32.mrf.mxu1 }
 0x143   : > { %15433 = vst [vmem:[#allocation23_spill] sm:$0xff] %v11289_v3  ;;  %15447 = vst [vmem:[#allocation37_spill] sm:$0xff] %v11357_v63 }
 0x144   : > { %v1140_v6 = vpop.f32.mrf.mxu0  ;;  %v1260_v7 = vpop.f32.mrf.mxu1 }
 0x145   : > { %v1141_v11 = vadd.f32 %v1140_v6, %v11285_v0  ;;  %v1261_v12 = vadd.f32 %v1260_v7, %v11285_v0 }
 0x146   : > { %v11295_v13 = vpop.f32.mrf.mxu0  ;;  %v11297_v14 = vpop.f32.mrf.mxu1 }
 0x147   : > { %15434 = vst [vmem:[#allocation24_spill] sm:$0xff] %v11297_v14  ;;  %v11299_v16 = vpack.c.bf16 %v1141_v11, %v1137_v9  ;;  %v11301_v17 = vpack.c.bf16 %v1261_v12, %v1257_v4 }
 0x148   : > { %v1146_v18 = vpop.f32.mrf.mxu0  ;;  %v1266_v19 = vpop.f32.mrf.mxu1 }
 0x149   : > { %15435 = vst [vmem:[#allocation25_spill] sm:$0xff] %v11299_v16  ;;  %15436 = vst [vmem:[#allocation26_spill] sm:$0xff] %v11301_v17  ;;  %9253 = vmatprep.mubr.msk.bf16.mxu1 %vm1511_vm0, %v11299_v16  ;;  %v1267_v23 = vadd.f32 %v1266_v19, %v11285_v0  ;;  %v1147_v5 = vadd.f32 %v1146_v18, %v11285_v0 }
 0x14a   : > { %v11305_v21 = vpop.f32.mrf.mxu0  ;;  %v11307_v22 = vpop.f32.mrf.mxu1 }
 0x14b   : > { %15437 = vst [vmem:[#allocation27_spill] sm:$0xff] %v11307_v22 }
 0x14c   : > { %v1150_v25 = vpop.f32.mrf.mxu0  ;;  %v1270_v1 = vpop.f32.mrf.mxu1 }
 0x14d   : > { %v1151_v8 = vadd.f32 %v1150_v25, %v11285_v0  ;;  %v1271_v27 = vadd.f32 %v1270_v1, %v11285_v0 }
 0x14e   : > { %v11313_v28 = vpop.f32.mrf.mxu0  ;;  %v11315_v29 = vpop.f32.mrf.mxu1 }
 0x14f   : > { %15438 = vst [vmem:[#allocation28_spill] sm:$0xff] %v11315_v29  ;;  %v11317_v30 = vpack.c.bf16 %v1151_v8, %v1147_v5  ;;  %v11319_v32 = vpack.c.bf16 %v1271_v27, %v1267_v23 }
 0x150   : > { %v11321_v33 = vpop.f32.mrf.mxu0  ;;  %v1276_v34 = vpop.f32.mrf.mxu1 }
 0x151   : > { %15439 = vst [vmem:[#allocation29_spill] sm:$0xff] %v11317_v30  ;;  %15440 = vst [vmem:[#allocation30_spill] sm:$0xff] %v11319_v32  ;;  %v1277_v38 = vadd.f32 %v1276_v34, %v11285_v0 }
 0x152   : > { %v1158_v35 = vpop.f32.mrf.mxu0  ;;  %v11323_v37 = vpop.f32.mrf.mxu1 }
 0x153   : > { %15441 = vst [vmem:[#allocation31_spill] sm:$0xff] %v11323_v37 }
 0x154   : > { %v11326_v10 = vpop.f32.mrf.mxu0  ;;  %v1280_v39 = vpop.f32.mrf.mxu1 }
 0x155   : > { %v1281_v41 = vadd.f32 %v1280_v39, %v11285_v0 }
 0x156   : > { %v1162_v43 = vpop.f32.mrf.mxu0  ;;  %v11329_v44 = vpop.f32.mrf.mxu1 }
 0x157   : > { %15442 = vst [vmem:[#allocation32_spill] sm:$0xff] %v11329_v44  ;;  %v11331_v15 = vpack.c.bf16 %v1281_v41, %v1277_v38  ;;  %v1163_v5 = vadd.f32 %v1162_v43, %v11357_v63  ;;  %v1159_v38 = vadd.f32 %v1158_v35, %v11357_v63  ;;  %v1143_v41 = vadd.f32 %v11295_v13, %v11357_v63 }
 0x158   : > { %v1166_v20 = vpop.f32.mrf.mxu0  ;;  %v1286_v24 = vpop.f32.mrf.mxu1 }
 0x159   : > { %15443 = vst [vmem:[#allocation33_spill] sm:$0xff] %v11331_v15  ;;  %v1287_v26 = vadd.f32 %v1286_v24, %v11285_v0  ;;  %v1167_v49 = vadd.f32 %v1166_v20, %v11285_v0  ;;  %v11387_v20 = vpack.c.bf16 %v1163_v5, %v1159_v38  ;;  %v1161_v5 = vadd.f32 %v11326_v10, %v11285_v0 }
 0x15a   : > { %v11333_v45 = vpop.f32.mrf.mxu0  ;;  %v11335_v46 = vpop.f32.mrf.mxu1  ;;  %v1157_v38 = vadd.f32 %v11321_v33, %v11285_v0 }
 0x15b   : > { %15444 = vst [vmem:[#allocation34_spill] sm:$0xff] %v11335_v46  ;;  %15449 = vst [vmem:[#allocation39_spill] sm:$0xff] %v11387_v20 }
 0x15c   : > { %v1170_v48 = vpop.f32.mrf.mxu0  ;;  %v1290_v31 = vpop.f32.mrf.mxu1 }
 0x15d   : > { %v1171_v50 = vadd.f32 %v1170_v48, %v11285_v0  ;;  %v1291_v36 = vadd.f32 %v1290_v31, %v11285_v0 }
 0x15e   : > { %v1172_v40 = vpop.f32.mrf.mxu0  ;;  %v11359_v4 = vpop.f32.mrf.mxu1 }
 0x15f   : > { %v11341_v42 = vpack.c.bf16 %v1171_v50, %v1167_v49  ;;  %v11343_v51 = vpack.c.bf16 %v1291_v36, %v1287_v26  ;;  %15448 = vst [vmem:[#allocation38_spill] sm:$0xff] %v11359_v4  ;;  %v1139_v26 = vadd.f32 %v11287_v2, %v11357_v63 }
 0x160   : > { %v11345_v52 = vpop.f32.mrf.mxu0  ;;  %v11368_v19 = vpop.f32.mrf.mxu1 }
 0x161   : > { %15445 = vst [vmem:[#allocation35_spill] sm:$0xff] %v11341_v42  ;;  %15446 = vst [vmem:[#allocation36_spill] sm:$0xff] %v11343_v51  ;;  %v11397_v48 = vpack.c.bf16 %v1143_v41, %v1139_v26 }
 0x162   : > { %v1178_v53 = vpop.f32.mrf.mxu0  ;;  %v11378_v27 = vpop.f32.mrf.mxu1 }
 0x163   : > { %v1179_v25 = vadd.f32 %v1178_v53, %v11357_v63  ;;  %15450 = vst [vmem:[#allocation40_spill] sm:$0xff] %v11397_v48 }
 0x164   : > { %v11347_v54 = vpop.f32.mrf.mxu0  ;;  %v11389_v24 = vpop.f32.mrf.mxu1 }
 0x166   : > { %v1182_v55 = vpop.f32.mrf.mxu0  ;;  %v11399_v31 = vpop.f32.mrf.mxu1 }
 0x167   : > { %v1183_v12 = vadd.f32 %v1182_v55, %v11357_v63 }
 0x168   : > { %v11349_v56 = vpop.f32.mrf.mxu0  ;;  %v11409_v55 = vpop.f32.mrf.mxu1 }
 0x169   : > { %v11376_v8 = vpack.c.bf16 %v1183_v12, %v1179_v25  ;;  %v1169_v12 = vadd.f32 %v11333_v45, %v11357_v63  ;;  %v1187_v26 = vadd.f32 %v11349_v56, %v11285_v0 }
 0x16a   : > { %v1188_v58 = vpop.f32.mrf.mxu0 }
 0x16b   : > { %v1189_v7 = vadd.f32 %v1188_v58, %v11357_v63 }
 0x16c   : > { %v11352_v62 = vpop.f32.mrf.mxu0 }
 0x16d   : > { %v1191_v41 = vadd.f32 %v11352_v62, %v11285_v0 }
 0x16e   : > { %v1192_v6 = vpop.f32.mrf.mxu0 }
 0x16f   : > { %v1193_v9 = vadd.f32 %v1192_v6, %v11357_v63 }
 0x170   : > { %v11363_v11 = vpop.f32.mrf.mxu0 }
 0x171   : > { %v11366_v18 = vpack.c.bf16 %v1193_v9, %v1189_v7  ;;  %v1173_v7 = vadd.f32 %v1172_v40, %v11357_v63  ;;  %v11424_v9 = vpop.f32.mrf.mxu1 }
 0x172   : > { %v1198_v23 = vpop.f32.mrf.mxu0 }
 0x173   : > { %1964 = vrot.lane.b32.xlu1 %v11366_v18, %s10845_s1  ;;  %v1199_v2 = vadd.f32 %v1198_v23, %v11357_v63  ;;  %v1153_v23 = vadd.f32 %v11313_v28, %v11357_v63  ;;  %v11434_v25 = vpack.c.bf16 %v1173_v7, %v1169_v12  ;;  %v11436_v40 = vpop.f32.mrf.mxu1  ;;  %v1177_v7 = vadd.f32 %v11345_v52, %v11285_v0 }
 0x174   : > { %v11373_v1 = vpop.f32.mrf.mxu0 }
 0x175   : > { %v11454_v10 = vpop.f32.mrf.mxu1  ;;  %v1201_v62 = vadd.f32 %v11373_v1, %v11285_v0  ;;  %v1181_v1 = vadd.f32 %v11347_v54, %v11285_v0  ;;  %v1546_v12 = vsel %vm1511_vm0, %v11434_v25, 0 }
 0x176   : > { %v1202_v34 = vpop.f32.mrf.mxu0 }
 0x177   : > { %1962 = vrot.lane.b32.xlu1 %v11376_v8, %s10845_s1  ;;  %v1203_v13 = vadd.f32 %v1202_v34, %v11357_v63  ;;  %v1149_v34 = vadd.f32 %v11305_v21, %v11357_v63  ;;  %v11456_v21 = vpack.c.bf16 %v1161_v5, %v1157_v38  ;;  %v11462_v33 = vpop.f32.mrf.mxu1  ;;  %v11511_v5 = vpack.c.bf16 %v1181_v1, %v1177_v7 }
 0x178   : > { %v11383_v39 = vpop.f32.mrf.mxu0 }
 0x179   : > { %v11411_v58 = vpack.c.bf16 %v1203_v13, %v1199_v2  ;;  %v11450_v28 = vpack.c.bf16 %v1153_v23, %v1149_v34  ;;  %15452 = vst [vmem:[#allocation42_spill] sm:$0xff] %v11456_v21  ;;  %v11476_v13 = vpack.c.bf16 %v1191_v41, %v1187_v26  ;;  %v1549_v2 = vsel %vm1511_vm0, %v11376_v8, 0  ;;  %15455 = vst [vmem:[#allocation45_spill] sm:$0xff] %v11511_v5 }
 0x17a   : > { %v1208_v43 = vpop.f32.mrf.mxu0  ;;  %v15312_v23 = vsub.s32 2, %v11276_v59  ;;  %v1207_v38 = vadd.f32 %v11383_v39, %v11285_v0  ;;  %v1543_v41 = vsel %vm1511_vm0, %v11387_v20, 0 }
 0x17b   : > { %1958 = vrot.lane.b32.xlu1 %v11387_v20, %s10845_s1  ;;  %v1209_v50 = vadd.f32 %v1208_v43, %v11357_v63  ;;  %v1555_v45 = vsel %vm1511_vm0, %v11411_v58, 0  ;;  %15451 = vst [vmem:[#allocation41_spill] sm:$0xff] %v11450_v28  ;;  %v1552_v43 = vsel %vm1511_vm0, %v11366_v18, 0  ;;  %15453 = vst [vmem:[#allocation43_spill] sm:$0xff] %v11476_v13 }
 0x17c   : > { %v11395_v35 = vpop.f32.mrf.mxu0  ;;  %v11520_v52 = vrot.slane %v11280_v61, %v15312_v23 }
 0x17d   : > { %v1211_v34 = vadd.f32 %v11395_v35, %v11285_v0 }
 0x17e   : > { %v1212_v49 = vpop.f32.mrf.mxu0  ;;  %15456 = vst [vmem:[#allocation46_spill] sm:$0xff] %v11520_v52  ;;  %v1357_v1 = vadd.f32 %v11436_v40, %v11520_v52  ;;  %v1370_v40 = vadd.f32 %v11462_v33, %v11520_v52 }
 0x17f   : > { %v1213_v36 = vadd.f32 %v1212_v49, %v11357_v63  ;;  %1954 = vrot.lane.b32.xlu1 %v11397_v48, %s10845_s1  ;;  %v1361_v49 = vpop.f32.mrf.mxu1  ;;  %v11536_v26 = vpack.c.bf16 %v1211_v34, %v1207_v38 }
 0x180   : > { %v1362_v39 = vadd.f32 %v1361_v49, %v11520_v52 }
 0x181   : > { %v11407_v53 = vpack.c.bf16 %v1213_v36, %v1209_v50  ;;  %v1197_v50 = vadd.f32 %v11363_v11, %v11285_v0  ;;  %v9216_v56 = vpop.f32.mrf.mxu1  ;;  %15457 = vst [vmem:[#allocation47_spill] sm:$0xff] %v11536_v26 }
 0x182   : > { %v1373_v7 = vadd.f32 %v9216_v56, %v11520_v52  ;;  %v1346_v56 = vadd.f32 %v11424_v9, %v11520_v52 }
 0x183   : > { %1968 = vrot.lane.b32.xlu0 %v11407_v53, %s10845_s1  ;;  %9813 = vmatprep.subr.msk.bf16.mxu1 %vm1511_vm0, %v11407_v53  ;;  %v1558_v6 = vsel %vm1511_vm0, %v11407_v53, 0  ;;  %v11486_v36 = vpack.c.bf16 %v1201_v62, %v1197_v50  ;;  %v1364_v11 = vpop.f32.mrf.mxu1  ;;  %v1540_v50 = vsel %vm1511_vm0, %v11450_v28, 0 }
 0x184   : > { %2507 = vrot.lane.b32.xlu1 %v11407_v53, %s10846_s27  ;;  %9238 = vmatpush3.bf16.xpose.msra.mxu1 %v1558_v6  ;;  %v1365_v35 = vadd.f32 %v1364_v11, %v11520_v52  ;;  %v1330_v11 = vadd.f32 %v11378_v27, %v11520_v52  ;;  %v11590_v38 = vpack.c.bf16 %v1373_v7, %v1370_v40 }
 0x185   : > { %9814 = vmatprep.subr.msk.bf16.mxu1 %vm1511_vm0, %v11411_v58  ;;  %15454 = vst [vmem:[#allocation44_spill] sm:$0xff] %v11486_v36  ;;  %v9219_v6 = vpop.f32.mrf.mxu1 }
 0x186   : > { %v11556_v49 = vpack.c.bf16 %v1365_v35, %v1362_v39  ;;  %15462 = vst [vmem:[#allocation52_spill] sm:$0xff] %v11590_v38 }
 0x187   : > { %1966 = vrot.lane.b32.xlu0 %v11411_v58, %s10845_s1  ;;  %v1377_v54 = vpop.f32.mrf.mxu1 }
 0x188   : > { %2505 = vrot.lane.b32.xlu1 %v11411_v58, %s10846_s27  ;;  %15459 = vst [vmem:[#allocation49_spill] sm:$0xff] %v11556_v49 }
 0x18b   : > { %1960 = vrot.lane.b32.xlu0 %v11434_v25, %s10845_s1 }
 0x18c   : > { %2501 = vrot.lane.b32.xlu1 %v11376_v8, %s10846_s27  ;;  %9240 = vmatpush3.bf16.xpose.msra.mxu1 %v1555_v45  ;;  %v9220_v45 = vpop.f32.mrf.mxu1 }
 0x18d   : > { %9815 = vmatprep.subr.msk.bf16.mxu1 %vm1511_vm0, %v11366_v18  ;;  %v1389_v61 = vadd.f32 %v9220_v45, %v11520_v52  ;;  %v1349_v45 = vadd.f32 %v11454_v10, %v11520_v52 }
 0x18e   : > { %v1380_v27 = vpop.f32.mrf.mxu1 }
 0x18f   : > { %1956 = vrot.lane.b32.xlu0 %v11450_v28, %s10845_s1  ;;  %v1381_v33 = vadd.f32 %v1380_v27, %v11520_v52  ;;  %v11602_v9 = vpack.c.bf16 %v1349_v45, %v1346_v56 }
 0x190   : > { %1934 = vrot.lane.b32.xlu1 %v11456_v21, %s10845_s1 }
 0x191   : > { %15464 = vst [vmem:[#allocation54_spill] sm:$0xff] %v11602_v9 }
 0x193   : > { %1930 = vrot.lane.b32.xlu0 %v11299_v16, %s10845_s1 }
 0x194   : > { %2497 = vrot.lane.b32.xlu1 %v11387_v20, %s10846_s27  ;;  %9242 = vmatpush3.bf16.xpose.msra.mxu1 %v1552_v43  ;;  %v1386_v43 = vadd.f32 %v9219_v6, %v11520_v52 }
 0x195   : > { %9816 = vmatprep.subr.msk.bf16.mxu1 %vm1511_vm0, %v11376_v8 }
 0x196   : > { %v11544_v62 = vpack.c.bf16 %v1389_v61, %v1386_v43  ;;  %v1341_v43 = vadd.f32 %v11389_v24, %v11520_v52  ;;  %v9223_v24 = vpop.f32.mrf.mxu1 }
 0x197   : > { %1932 = vrot.lane.b32.xlu0 %v11317_v30, %s10845_s1  ;;  %v1402_v10 = vadd.f32 %v9223_v24, %v11520_v52 }
 0x198   : > { %1940 = vrot.lane.b32.xlu1 %v11476_v13, %s10845_s1  ;;  %15458 = vst [vmem:[#allocation48_spill] sm:$0xff] %v11544_v62 }
 0x19b   : > { %2503 = vrot.lane.b32.xlu0 %v11366_v18, %s10846_s27 }
 0x19c   : > { %1942 = vrot.lane.b32.xlu1 %v11486_v36, %s10845_s1  ;;  %9244 = vmatpush3.bf16.xpose.msra.mxu1 %v1549_v2  ;;  %v1354_v2 = vadd.f32 %v11409_v55, %v11520_v52  ;;  %v1333_v55 = vadd.f32 %v11399_v31, %v11520_v52  ;;  %v1378_v31 = vadd.f32 %v1377_v54, %v11520_v52 }
 0x19d   : > { %9817 = vmatprep.subr.msk.bf16.mxu1 %vm1511_vm0, %v11434_v25  ;;  %v1338_v54 = vadd.f32 %v11368_v19, %v11520_v52 }
 0x19e   : > { %v11568_v6 = vpack.c.bf16 %v1357_v1, %v1354_v2  ;;  %v11579_v34 = vpack.c.bf16 %v1333_v55, %v1330_v11 }
 0x19f   : > { %2499 = vrot.lane.b32.xlu0 %v11434_v25, %s10846_s27  ;;  %v11614_v19 = vpack.c.bf16 %v1341_v43, %v1338_v54 }
 0x1a0   : > { %2493 = vrot.lane.b32.xlu1 %v11397_v48, %s10846_s27  ;;  %15460 = vst [vmem:[#allocation50_spill] sm:$0xff] %v11568_v6  ;;  %15461 = vst [vmem:[#allocation51_spill] sm:$0xff] %v11579_v34 }
 0x1a1   : > { %15465 = vst [vmem:[#allocation55_spill] sm:$0xff] %v11614_v19 }
 0x1a3   : > { %1936 = vrot.lane.b32.xlu0 %v11341_v42, %s10845_s1 }
 0x1a4   : > { %2479 = vrot.lane.b32.xlu1 %v11317_v30, %s10846_s27  ;;  %9246 = vmatpush3.bf16.xpose.msra.mxu1 %v1546_v12  ;;  %v1537_v12 = vsel %vm1511_vm0, %v11397_v48, 0 }
 0x1a5   : > { %9818 = vmatprep.subr.msk.bf16.mxu1 %vm1511_vm0, %v11387_v20 }
 0x1a7   : > { %1938 = vrot.lane.b32.xlu0 %v11511_v5, %s10845_s1 }
 0x1a8   : > { %2483 = vrot.lane.b32.xlu1 %v11341_v42, %s10846_s27 }
 0x1ab   : > { %2495 = vrot.lane.b32.xlu0 %v11450_v28, %s10846_s27 }
 0x1ac   : > { %2487 = vrot.lane.b32.xlu1 %v11476_v13, %s10846_s27  ;;  %9248 = vmatpush3.bf16.xpose.msra.mxu1 %v1543_v41  ;;  %v11596_v41 = vpack.c.bf16 %v1381_v33, %v1378_v31 }
 0x1ad   : > { %9819 = vmatprep.subr.msk.bf16.mxu1 %vm1511_vm0, %v11450_v28 }
 0x1ae   : > { %15463 = vst [vmem:[#allocation53_spill] sm:$0xff] %v11596_v41 }
 0x1af   : > { %1944 = vrot.lane.b32.xlu0 %v11536_v26, %s10845_s1 }
 0x1b0   : > { %2491 = vrot.lane.b32.xlu1 %v11536_v26, %s10846_s27 }
 0x1b3   : > { %2477 = vrot.lane.b32.xlu0 %v11299_v16, %s10846_s27 }
 0x1b4   : > { %2289 = vrot.lane.b32.xlu1 %v11544_v62, %s10845_s1  ;;  %9250 = vmatpush3.bf16.xpose.msra.mxu1 %v1540_v50 }
 0x1b5   : > { %9820 = vmatprep.subr.msk.bf16.mxu1 %vm1511_vm0, %v11397_v48 }
 0x1b7   : > { %2481 = vrot.lane.b32.xlu0 %v11456_v21, %s10846_s27 }
 0x1b8   : > { %2283 = vrot.lane.b32.xlu1 %v11556_v49, %s10845_s1 }
 0x1bb   : > { %2485 = vrot.lane.b32.xlu0 %v11511_v5, %s10846_s27 }
 0x1bc   : > { %2281 = vrot.lane.b32.xlu1 %v11568_v6, %s10845_s1  ;;  %9252 = vmatpush3.bf16.xpose.msra.mxu1 %v1537_v12 }
 0x1bd   : > { %9269 = vmatprep.subr.bf16.mxu1 %v11544_v62 }
 0x1bf   : > { %2489 = vrot.lane.b32.xlu0 %v11486_v36, %s10846_s27 }
 0x1c0   : > { %2275 = vrot.lane.b32.xlu1 %v11579_v34, %s10845_s1 }
 0x1c3   : > { %2285 = vrot.lane.b32.xlu0 %v11590_v38, %s10845_s1  ;;  %9254 = vmatmul.mubr.msk.bf16.vlgmr.msra.gmra.mxu1 %vm1511_vm0, %v11317_v30 }
 0x1c4   : > { %2820 = vrot.lane.b32.xlu1 %v11544_v62, %s10846_s27  ;;  %9257 = vmatprep.mubr.msk.bf16.mxu1 %vm1511_vm0, %v11456_v21 }
 0x1c5   : > { %9270 = vmatpush3.bf16.msra.mxu1 %v11544_v62 }
 0x1c6   : > { %9271 = vmatprep.subr.bf16.mxu1 %v11596_v41 }
 0x1c7   : > { %2279 = vrot.lane.b32.xlu0 %v11602_v9, %s10845_s1 }
 0x1c8   : > { %2814 = vrot.lane.b32.xlu1 %v11556_v49, %s10846_s27 }
 0x1c9   : > { %9272 = vmatpush3.bf16.msra.mxu1 %v11596_v41 }
 0x1ca   : > { %9273 = vmatprep.subr.bf16.mxu1 %v11590_v38 }
 0x1cb   : > { %2277 = vrot.lane.b32.xlu0 %v11614_v19, %s10845_s1  ;;  %9258 = vmatmul.mubr.msk.bf16.gmra.mxu1 %vm1511_vm0, %v11341_v42 }
 0x1cc   : > { %3038 = vrot.lane.b32.xlu1 %v11407_v53, %s10847_s2  ;;  %9261 = vmatprep.mubr.msk.bf16.mxu1 %vm1511_vm0, %v11511_v5  ;;  %v11656_v53 = vpop.f32.mrf.mxu1 }
 0x1cd   : > { %9274 = vmatpush3.bf16.msra.mxu1 %v11590_v38  ;;  %15466 = vst [vmem:[#allocation56_spill] sm:$0xff] %v11656_v53 }
 0x1ce   : > { %9275 = vmatprep.subr.bf16.mxu1 %v11556_v49  ;;  %v9224_v61 = vpop.f32.mrf.mxu1 }
 0x1cf   : > { %2816 = vrot.lane.b32.xlu0 %v11590_v38, %s10846_s27  ;;  %v1405_v39 = vadd.f32 %v9224_v61, %v11520_v52 }
 0x1d0   : > { %v11663_v35 = vpop.f32.mrf.mxu1 }
 0x1d1   : > { %9276 = vmatpush3.bf16.msra.mxu1 %v11556_v49  ;;  %15467 = vst [vmem:[#allocation57_spill] sm:$0xff] %v11663_v35  ;;  %v11665_v2 = vpack.c.bf16 %v1405_v39, %v1402_v10 }
 0x1d2   : > { %9277 = vmatprep.subr.bf16.mxu1 %v11568_v6  ;;  %v9227_v1 = vpop.f32.mrf.mxu1 }
 0x1d3   : > { %2812 = vrot.lane.b32.xlu0 %v11568_v6, %s10846_s27  ;;  %9262 = vmatmul.mubr.msk.bf16.gmra.mxu1 %vm1511_vm0, %v11476_v13  ;;  %15468 = vst [vmem:[#allocation58_spill] sm:$0xff] %v11665_v2  ;;  %v1418_v40 = vadd.f32 %v9227_v1, %v11520_v52 }
 0x1d4   : > { %9265 = vmatprep.mubr.msk.bf16.mxu1 %vm1511_vm0, %v11486_v36  ;;  %v11669_v11 = vpop.f32.mrf.mxu1 }
 0x1d5   : > { %9278 = vmatpush3.bf16.msra.mxu1 %v11568_v6  ;;  %15469 = vst [vmem:[#allocation59_spill] sm:$0xff] %v11669_v11 }
 0x1d6   : > { %9279 = vmatprep.subr.bf16.mxu1 %v11602_v9  ;;  %v9228_v7 = vpop.f32.mrf.mxu1 }
 0x1d7   : > { %2810 = vrot.lane.b32.xlu0 %v11602_v9, %s10846_s27 }
 0x1d8   : > { %v11675_v12 = vpop.f32.mrf.mxu1 }
 0x1d9   : > { %9280 = vmatpush3.bf16.msra.mxu1 %v11602_v9  ;;  %15470 = vst [vmem:[#allocation60_spill] sm:$0xff] %v11675_v12 }
 0x1da   : > { %9281 = vmatprep.subr.bf16.mxu1 %v11614_v19  ;;  %v9231_v33 = vpop.f32.mrf.mxu1 }
 0x1db   : > { %2808 = vrot.lane.b32.xlu0 %v11614_v19, %s10846_s27  ;;  %9266 = vmatmul.mubr.msk.bf16.gmra.mxu1 %vm1511_vm0, %v11536_v26  ;;  %v1434_v54 = vadd.f32 %v9231_v33, %v11520_v52 }
 0x1dd   : > { %9282 = vmatpush3.bf16.msra.mxu1 %v11614_v19 }
 0x1de   : > { %9283 = vmatprep.subr.bf16.mxu1 %v11579_v34 }
 0x1df   : > { %2806 = vrot.lane.b32.xlu0 %v11579_v34, %s10846_s27 }
 0x1e1   : > { %9284 = vmatpush3.bf16.msra.mxu1 %v11579_v34 }
 0x1e3   : > { %3036 = vrot.lane.b32.xlu0 %v11411_v58, %s10847_s2  ;;  %v1421_v58 = vadd.f32 %v9228_v7, %v11520_v52 }
 0x1e5   : > { %v1965_v50 = vpop.permute.xlu1 %1964  ;;  %v11677_v31 = vpack.c.bf16 %v1421_v58, %v1418_v40 }
 0x1e7   : > { %3034 = vrot.lane.b32.xlu0 %v11366_v18, %s10847_s2  ;;  %15471 = vst [vmem:[#allocation61_spill] sm:$0xff] %v11677_v31  ;;  %v11681_v18 = vpop.f32.mrf.mxu1 }
 0x1e8   : > { %15472 = vst [vmem:[#allocation62_spill] sm:$0xff] %v11681_v18 }
 0x1e9   : > { %v1963_v55 = vpop.permute.xlu1 %1962  ;;  %v9232_v45 = vpop.f32.mrf.mxu1 }
 0x1ea   : > { %v1437_v10 = vadd.f32 %v9232_v45, %v11520_v52 }
 0x1eb   : > { %2287 = vrot.lane.b32.xlu0 %v11596_v41, %s10845_s1  ;;  %v11686_v43 = vpop.f32.mrf.mxu1 }
 0x1ec   : > { %15473 = vst [vmem:[#allocation63_spill] sm:$0xff] %v11686_v43  ;;  %v11693_v40 = vpack.c.bf16 %v1437_v10, %v1434_v54 }
 0x1ed   : > { %v1959_v27 = vpop.permute.xlu1 %1958  ;;  %v9235_v1 = vpop.f32.mrf.mxu1 }
 0x1ee   : > { %15474 = vst [vmem:[#allocation64_spill] sm:$0xff] %v11693_v40  ;;  %v1450_v33 = vadd.f32 %v9235_v1, %v11520_v52  ;;  %v2010_v1 = vsel %vm1511_vm0, %v1965_v50, 0  ;;  %v2001_v15 = vsel %vm1511_vm0, %v1959_v27, 0 }
 0x1ef   : > { %2818 = vrot.lane.b32.xlu0 %v11596_v41, %s10846_s27  ;;  %v11695_v7 = vpop.f32.mrf.mxu1 }
 0x1f0   : > { %15475 = vst [vmem:[#allocation65_spill] sm:$0xff] %v11695_v7 }
 0x1f1   : > { %v11683_v56 = vpop.permute.xlu1 %1954  ;;  %v9236_v45 = vpop.f32.mrf.mxu1 }
 0x1f2   : > { %v1453_v57 = vadd.f32 %v9236_v45, %v11520_v52 }
 0x1f4   : > { %v11705_v54 = vpack.c.bf16 %v1453_v57, %v1450_v33  ;;  %v2007_v57 = vsel %vm1511_vm0, %v1963_v55, 0 }
 0x1f5   : > { %v1969_v24 = vpop.permute.xlu0 %1968 }
 0x1f6   : > { %v11689_v61 = vpop.permute.xlu1 %2507  ;;  %9821 = vmatprep.subr.msk.bf16.mxu0 %vm1511_vm0, %v1969_v24  ;;  %v2016_v39 = vsel %vm1511_vm0, %v1969_v24, 0  ;;  %15476 = vst [vmem:[#allocation66_spill] sm:$0xff] %v11705_v54 }
 0x1f7   : > { %9302 = vmatpush3.bf16.xpose.msra.mxu0 %v2016_v39 }
 0x1f9   : > { %v1967_v58 = vpop.permute.xlu0 %1966 }
 0x1fa   : > { %v11697_v23 = vpop.permute.xlu1 %2505  ;;  %9822 = vmatprep.subr.msk.bf16.mxu0 %vm1511_vm0, %v1967_v58  ;;  %v2013_v24 = vsel %vm1511_vm0, %v1967_v58, 0 }
 0x1fd   : > { %v1961_v60 = vpop.permute.xlu0 %1960 }
 0x1fe   : > { %v11702_v47 = vpop.permute.xlu1 %2501 }
 0x1ff   : > { %9304 = vmatpush3.bf16.xpose.msra.mxu0 %v2013_v24 }
 0x200   : > { %9823 = vmatprep.subr.msk.bf16.mxu0 %vm1511_vm0, %v1965_v50 }
 0x201   : > { %v1957_v10 = vpop.permute.xlu0 %1956 }
 0x202   : > { %v1935_v39 = vpop.permute.xlu1 %1934  ;;  %v1998_v17 = vsel %vm1511_vm0, %v1957_v10, 0 }
 0x205   : > { %v1931_v59 = vpop.permute.xlu0 %1930 }
 0x206   : > { %v11708_v51 = vpop.permute.xlu1 %2497  ;;  %9317 = vmatprep.mubr.msk.bf16.mxu0 %vm1511_vm0, %v1931_v59  ;;  %v2004_v59 = vsel %vm1511_vm0, %v1961_v60, 0 }
 0x207   : > { %9306 = vmatpush3.bf16.xpose.msra.mxu0 %v2010_v1 }
 0x208   : > { %9824 = vmatprep.subr.msk.bf16.mxu0 %vm1511_vm0, %v1963_v55 }
 0x20a   : > { %v11713_v45 = vpop.permute.xlu1 %1940 }
 0x20e   : > { %v11715_v58 = vpop.permute.xlu1 %1942 }
 0x20f   : > { %9308 = vmatpush3.bf16.xpose.msra.mxu0 %v2007_v57  ;;  %v1933_v57 = vpop.permute.xlu0 %1932 }
 0x210   : > { %9825 = vmatprep.subr.msk.bf16.mxu0 %vm1511_vm0, %v1961_v60  ;;  %v1216_v60 = vpop.f32.mrf.mxu0 }
 0x212   : > { %v11719_v33 = vpop.permute.xlu1 %2493 }
 0x216   : > { %v11721_v24 = vpop.permute.xlu1 %2479 }
 0x217   : > { %9310 = vmatpush3.bf16.xpose.msra.mxu0 %v2004_v59  ;;  %v11739_v59 = vpop.f32.mrf.mxu0 }
 0x218   : > { %9826 = vmatprep.subr.msk.bf16.mxu0 %vm1511_vm0, %v1959_v27  ;;  %15477 = vst [vmem:[#allocation67_spill] sm:$0xff] %v11739_v59  ;;  %v2504_v27 = vpop.permute.xlu0 %2503 }
 0x219   : > { %v1220_v14 = vpop.f32.mrf.mxu0 }
 0x21a   : > { %v11725_v50 = vpop.permute.xlu1 %2483  ;;  %v1221_v3 = vadd.f32 %v1220_v14, %v11285_v0 }
 0x21b   : > { %v11743_v29 = vpop.f32.mrf.mxu0 }
 0x21c   : > { %15478 = vst [vmem:[#allocation68_spill] sm:$0xff] %v11743_v29  ;;  %v2500_v44 = vpop.permute.xlu0 %2499 }
 0x21e   : > { %v11727_v1 = vpop.permute.xlu1 %2487 }
 0x21f   : > { %9312 = vmatpush3.bf16.xpose.msra.mxu0 %v2001_v15  ;;  %v1217_v15 = vadd.f32 %v1216_v60, %v11285_v0 }
 0x220   : > { %9827 = vmatprep.subr.msk.bf16.mxu0 %vm1511_vm0, %v1957_v10  ;;  %v1226_v10 = vpop.f32.mrf.mxu0 }
 0x221   : > { %v11745_v22 = vpack.c.bf16 %v1221_v3, %v1217_v15  ;;  %v1227_v60 = vadd.f32 %v1226_v10, %v11285_v0  ;;  %v1937_v15 = vpop.permute.xlu0 %1936 }
 0x222   : > { %v11731_v55 = vpop.permute.xlu1 %2491  ;;  %v11751_v59 = vpop.f32.mrf.mxu0 }
 0x223   : > { %15479 = vst [vmem:[#allocation69_spill] sm:$0xff] %v11745_v22  ;;  %15480 = vst [vmem:[#allocation70_spill] sm:$0xff] %v11751_v59 }
 0x224   : > { %v1230_v37 = vpop.f32.mrf.mxu0 }
 0x225   : > { %v1231_v14 = vadd.f32 %v1230_v37, %v11285_v0 }
 0x226   : > { %v11733_v32 = vpop.permute.xlu1 %2289  ;;  %v11755_v4 = vpop.f32.mrf.mxu0 }
 0x227   : > { %9314 = vmatpush3.bf16.xpose.msra.mxu0 %v1998_v17  ;;  %9333 = vmatprep.subr.bf16.mxu1 %v11733_v32  ;;  %v1995_v17 = vsel %vm1511_vm0, %v11683_v56, 0  ;;  %15481 = vst [vmem:[#allocation71_spill] sm:$0xff] %v11755_v4  ;;  %v11757_v3 = vpack.c.bf16 %v1231_v14, %v1227_v60  ;;  %v1939_v14 = vpop.permute.xlu0 %1938 }
 0x228   : > { %9828 = vmatprep.subr.msk.bf16.mxu0 %vm1511_vm0, %v11683_v56  ;;  %v2555_v56 = vsel %vm1511_vm0, %v11689_v61, 0 }
 0x229   : > { %15482 = vst [vmem:[#allocation72_spill] sm:$0xff] %v11757_v3 }
 0x22f   : > { %9316 = vmatpush3.bf16.xpose.msra.mxu0 %v1995_v17  ;;  %v1236_v17 = vpop.f32.mrf.mxu0 }
 0x230   : > { %9829 = vmatprep.subr.msk.bf16.mxu0 %vm1511_vm0, %v11689_v61  ;;  %v1237_v37 = vadd.f32 %v1236_v17, %v11285_v0  ;;  %v2552_v61 = vsel %vm1511_vm0, %v11697_v23, 0  ;;  %v2496_v17 = vpop.permute.xlu0 %2495 }
 0x231   : > { %v11765_v10 = vpop.f32.mrf.mxu0 }
 0x232   : > { %15483 = vst [vmem:[#allocation73_spill] sm:$0xff] %v11765_v10  ;;  %v11901_v10 = vpop.permute.xlu1 %2283 }
 0x233   : > { %v1240_v22 = vpop.f32.mrf.mxu0 }
 0x234   : > { %v1241_v60 = vadd.f32 %v1240_v22, %v11285_v0 }
 0x235   : > { %v11769_v3 = vpop.f32.mrf.mxu0 }
 0x236   : > { %9318 = vmatmul.mubr.msk.bf16.vlgmr.msra.gmra.mxu0 %vm1511_vm0, %v1933_v57  ;;  %15484 = vst [vmem:[#allocation74_spill] sm:$0xff] %v11769_v3  ;;  %v11771_v57 = vpack.c.bf16 %v1241_v60, %v1237_v37  ;;  %v11910_v34 = vpop.permute.xlu1 %2281 }
 0x237   : > { %9321 = vmatprep.mubr.msk.bf16.mxu0 %vm1511_vm0, %v1935_v39  ;;  %9366 = vmatpush3.bf16.xpose.msra.mxu0 %v2555_v56  ;;  %v1246_v39 = vpop.f32.mrf.mxu0 }
 0x238   : > { %9830 = vmatprep.subr.msk.bf16.mxu0 %vm1511_vm0, %v11697_v23  ;;  %15485 = vst [vmem:[#allocation75_spill] sm:$0xff] %v11771_v57  ;;  %v1247_v22 = vadd.f32 %v1246_v39, %v11285_v0  ;;  %v2549_v23 = vsel %vm1511_vm0, %v2504_v27, 0 }
 0x239   : > { %v11778_v56 = vpop.f32.mrf.mxu0 }
 0x23a   : > { %15486 = vst [vmem:[#allocation76_spill] sm:$0xff] %v11778_v56  ;;  %v11923_v62 = vpop.permute.xlu1 %2275 }
 0x23b   : > { %v1250_v29 = vpop.f32.mrf.mxu0 }
 0x23c   : > { %v1251_v37 = vadd.f32 %v1250_v29, %v11285_v0  ;;  %v2546_v0 = vsel %vm1511_vm0, %v11702_v47, 0  ;;  %v2543_v29 = vsel %vm1511_vm0, %v2500_v44, 0 }
 0x23e   : > { %9322 = vmatmul.mubr.msk.bf16.gmra.mxu0 %vm1511_vm0, %v1937_v15  ;;  %v11782_v60 = vpack.c.bf16 %v1251_v37, %v1247_v22  ;;  %v1945_v15 = vpop.permute.xlu0 %1944 }
 0x23f   : > { %9325 = vmatprep.mubr.msk.bf16.mxu0 %vm1511_vm0, %v1939_v14  ;;  %9368 = vmatpush3.bf16.xpose.msra.mxu0 %v2552_v61  ;;  %v11816_v61 = vld [vmem:[%s15488_s3] ss:$0 sm:$0xff] }
 0x240   : > { %9831 = vmatprep.subr.msk.bf16.mxu0 %vm1511_vm0, %v2504_v27  ;;  %15487 = vst [vmem:[#allocation77_spill] sm:$0xff] %v11782_v60  ;;  %v11813_v27 = vpop.f32.mrf.mxu1 }
 0x241   : > { %15489 = vst [vmem:[#allocation78_spill] sm:$0xff] %v11813_v27 }
 0x242   : > { %v2478_v14 = vpop.permute.xlu0 %2477 }
 0x246   : > { %9326 = vmatmul.mubr.msk.bf16.gmra.mxu0 %vm1511_vm0, %v11713_v45  ;;  %v2540_v45 = vsel %vm1511_vm0, %v11708_v51, 0 }
 0x247   : > { %9329 = vmatprep.mubr.msk.bf16.mxu0 %vm1511_vm0, %v11715_v58  ;;  %9370 = vmatpush3.bf16.xpose.msra.mxu0 %v2549_v23  ;;  %v2482_v58 = vpop.permute.xlu0 %2481 }
 0x248   : > { %9832 = vmatprep.subr.msk.bf16.mxu0 %vm1511_vm0, %v11702_v47  ;;  %v2537_v47 = vsel %vm1511_vm0, %v2496_v17, 0 }
 0x24e   : > { %9330 = vmatmul.mubr.msk.bf16.gmra.mxu0 %vm1511_vm0, %v1945_v15 }
 0x24f   : > { %9372 = vmatpush3.bf16.xpose.msra.mxu0 %v2546_v0  ;;  %9381 = vmatprep.mubr.msk.bf16.mxu0 %vm1511_vm0, %v2478_v14 }
 0x250   : > { %9833 = vmatprep.subr.msk.bf16.mxu0 %vm1511_vm0, %v2500_v44  ;;  %v2534_v44 = vsel %vm1511_vm0, %v11719_v33, 0 }
 0x257   : > { %9374 = vmatpush3.bf16.xpose.msra.mxu0 %v2543_v29 }
 0x258   : > { %9834 = vmatprep.subr.msk.bf16.mxu0 %vm1511_vm0, %v11708_v51  ;;  %v2486_v51 = vpop.permute.xlu0 %2485 }
 0x25f   : > { %9376 = vmatpush3.bf16.xpose.msra.mxu0 %v2540_v45 }
 0x260   : > { %9835 = vmatprep.subr.msk.bf16.mxu0 %vm1511_vm0, %v2496_v17  ;;  %v2490_v17 = vpop.permute.xlu0 %2489 }
 0x267   : > { %9378 = vmatpush3.bf16.xpose.msra.mxu0 %v2537_v47 }
 0x268   : > { %9836 = vmatprep.subr.msk.bf16.mxu0 %vm1511_vm0, %v11719_v33 }
 0x26f   : > { %9380 = vmatpush3.bf16.xpose.msra.mxu0 %v2534_v44 }
 0x276   : > { %9382 = vmatmul.mubr.msk.bf16.vlgmr.msra.gmra.mxu0 %vm1511_vm0, %v11721_v24 }
 0x277   : > { %9385 = vmatprep.mubr.msk.bf16.mxu0 %vm1511_vm0, %v2482_v58 }
 0x27e   : > { %9386 = vmatmul.mubr.msk.bf16.gmra.mxu0 %vm1511_vm0, %v11725_v50 }
 0x27f   : > { %9389 = vmatprep.mubr.msk.bf16.mxu0 %vm1511_vm0, %v2486_v51 }
 0x283   : > { %v9255_v39 = vpop.f32.mrf.mxu1 }
 0x284   : > { %v11819_v33 = vadd.f32 %v9255_v39, %v11816_v61 }
 0x285   : > { %v1594_v22 = vpop.f32.mrf.mxu1 }
 0x286   : > { %9390 = vmatmul.mubr.msk.bf16.gmra.mxu0 %vm1511_vm0, %v11727_v1  ;;  %1661 = vmax.xlane.f32.xlu0 %v11819_v33  ;;  %v11826_v50 = vadd.f32 %v11816_v61, %v1594_v22 }
 0x287   : > { %v9256_v24 = vpop.f32.mrf.mxu1  ;;  %9393 = vmatprep.mubr.msk.bf16.mxu0 %vm1511_vm0, %v2490_v17 }
 0x288   : > { %v11833_v14 = vadd.f32 %v9256_v24, %v11816_v61 }
 0x289   : > { %v1597_v37 = vpop.f32.mrf.mxu1 }
 0x28a   : > { %1657 = vmax.xlane.f32.xlu0 %v11826_v50  ;;  %v11830_v23 = vadd.f32 %v11816_v61, %v1597_v37 }
 0x28b   : > { %v9259_v15 = vpop.f32.mrf.mxu1 }
 0x28c   : > { %1659 = vmax.xlane.f32.xlu1 %v11830_v23  ;;  %v11837_v0 = vadd.f32 %v9259_v15, %v11816_v61 }
 0x28d   : > { %v1610_v1 = vpop.f32.mrf.mxu1 }
 0x28e   : > { %9394 = vmatmul.mubr.msk.bf16.gmra.mxu0 %vm1511_vm0, %v11731_v55  ;;  %1663 = vmax.xlane.f32.xlu0 %v11833_v14  ;;  %v11847_v44 = vadd.f32 %v11816_v61, %v1610_v1 }
 0x28f   : > { %v9260_v29 = vpop.f32.mrf.mxu1 }
 0x290   : > { %v11843_v45 = vadd.f32 %v9260_v29, %v11816_v61  ;;  %1669 = vmax.xlane.f32.xlu1 %v11837_v0 }
 0x291   : > { %v1613_v47 = vpop.f32.mrf.mxu1 }
 0x292   : > { %1671 = vmax.xlane.f32.xlu0 %v11843_v45  ;;  %v11852_v51 = vadd.f32 %v11816_v61, %v1613_v47 }
 0x293   : > { %v9263_v58 = vpop.f32.mrf.mxu1 }
 0x294   : > { %1665 = vmax.xlane.f32.xlu1 %v11847_v44  ;;  %v11855_v39 = vadd.f32 %v9263_v58, %v11816_v61 }
 0x295   : > { %v1626_v55 = vpop.f32.mrf.mxu1 }
 0x296   : > { %1667 = vmax.xlane.f32.xlu0 %v11852_v51  ;;  %v11863_v37 = vadd.f32 %v11816_v61, %v1626_v55 }
 0x297   : > { %v9264_v22 = vpop.f32.mrf.mxu1 }
 0x298   : > { %v11859_v17 = vadd.f32 %v9264_v22, %v11816_v61  ;;  %1677 = vmax.xlane.f32.xlu1 %v11855_v39 }
 0x299   : > { %v1629_v24 = vpop.f32.mrf.mxu1 }
 0x29a   : > { %1679 = vmax.xlane.f32.xlu0 %v11859_v17  ;;  %v11868_v1 = vadd.f32 %v11816_v61, %v1629_v24 }
 0x29b   : > { %v9267_v15 = vpop.f32.mrf.mxu1 }
 0x29c   : > { %1673 = vmax.xlane.f32.xlu1 %v11863_v37  ;;  %v11871_v47 = vadd.f32 %v9267_v15, %v11816_v61  ;;  %v11887_v15 = vpop.permute.xlu0 %2285 }
 0x29d   : > { %v1642_v29 = vpop.f32.mrf.mxu1 }
 0x29e   : > { %1675 = vmax.xlane.f32.xlu0 %v11868_v1  ;;  %v11879_v60 = vadd.f32 %v11816_v61, %v1642_v29 }
 0x29f   : > { %v9268_v58 = vpop.f32.mrf.mxu1 }
 0x2a0   : > { %v11875_v22 = vadd.f32 %v9268_v58, %v11816_v61  ;;  %1685 = vmax.xlane.f32.xlu1 %v11871_v47  ;;  %v11889_v57 = vpop.permute.xlu0 %2279 }
 0x2a1   : > { %v1645_v55 = vpop.f32.mrf.mxu1 }
 0x2a2   : > { %1687 = vmax.xlane.f32.xlu0 %v11875_v22  ;;  %v11884_v24 = vadd.f32 %v11816_v61, %v1645_v55  ;;  %v11903_v55 = vpop.f32.mrf.mxu0 }
 0x2a3   : > { %15494 = vst [vmem:[#allocation83_spill] sm:$0xff] %v11903_v55 }
 0x2a4   : > { %1681 = vmax.xlane.f32.xlu1 %v11879_v60  ;;  %v11891_v58 = vpop.permute.xlu0 %2277 }
 0x2a6   : > { %1683 = vmax.xlane.f32.xlu0 %v11884_v24 }
 0x2a8   : > { %v11893_v4 = vpop.permute.xlu0 %2816 }
 0x2a9   : > { %15490 = vst [vmem:[#allocation79_spill] sm:$0xff] %v11893_v4 }
 0x2ac   : > { %v11895_v59 = vpop.permute.xlu0 %2812 }
 0x2ad   : > { %15491 = vst [vmem:[#allocation80_spill] sm:$0xff] %v11895_v59 }
 0x2b0   : > { %v11897_v29 = vpop.permute.xlu0 %2810 }
 0x2b1   : > { %15492 = vst [vmem:[#allocation81_spill] sm:$0xff] %v11897_v29 }
 0x2b4   : > { %v11899_v3 = vpop.permute.xlu0 %2808 }
 0x2b5   : > { %15493 = vst [vmem:[#allocation82_spill] sm:$0xff] %v11899_v3 }
 0x2b8   : > { %v11905_v56 = vpop.permute.xlu0 %2806 }
 0x2b9   : > { %15495 = vst [vmem:[#allocation84_spill] sm:$0xff] %v11905_v56 }
 0x2bc   : > { %v11913_v6 = vpop.permute.xlu0 %3036 }
 0x2bd   : > { %15496 = vst [vmem:[#allocation85_spill] sm:$0xff] %v11913_v6 }
 0x2f6   : > { %v9319_v46 = vpop.f32.mrf.mxu0 }
 0x2f7   : > { %v11908_v63 = vadd.f32 %v9319_v46, %v11816_v61 }
 0x2f8   : > { %v2052_v19 = vpop.f32.mrf.mxu0 }
 0x2f9   : > { %2119 = vmax.xlane.f32.xlu1 %v11908_v63  ;;  %v11916_v49 = vadd.f32 %v11816_v61, %v2052_v19  ;;  %v11931_v19 = vpop.permute.xlu0 %3034 }
 0x2fa   : > { %v9320_v9 = vpop.f32.mrf.mxu0  ;;  %15497 = vst [vmem:[#allocation86_spill] sm:$0xff] %v11931_v19 }
 0x2fb   : > { %v11919_v38 = vadd.f32 %v9320_v9, %v11816_v61 }
 0x2fc   : > { %v2055_v55 = vpop.f32.mrf.mxu0 }
 0x2fd   : > { %2115 = vmax.xlane.f32.xlu1 %v11916_v49  ;;  %2121 = vmax.xlane.f32.xlu0 %v11919_v38  ;;  %v11929_v2 = vadd.f32 %v11816_v61, %v2055_v55  ;;  %v11943_v11 = vpop.permute.xlu0 %2287 }
 0x2fe   : > { %v9323_v46 = vpop.f32.mrf.mxu0 }
 0x2ff   : > { %v11926_v41 = vadd.f32 %v9323_v46, %v11816_v61  ;;  %v11941_v46 = vpop.permute.xlu1 %2820 }
 0x300   : > { %v2068_v35 = vpop.f32.mrf.mxu0 }
 0x301   : > { %2127 = vmax.xlane.f32.xlu1 %v11926_v41  ;;  %2117 = vmax.xlane.f32.xlu0 %v11929_v2  ;;  %v11936_v53 = vadd.f32 %v11816_v61, %v2068_v35  ;;  %v11957_v27 = vpop.permute.xlu0 %2818 }
 0x302   : > { %v9324_v9 = vpop.f32.mrf.mxu0  ;;  %15499 = vst [vmem:[#allocation88_spill] sm:$0xff] %v11957_v27 }
 0x303   : > { %v11939_v31 = vadd.f32 %v9324_v9, %v11816_v61  ;;  %v11955_v18 = vpop.permute.xlu1 %2814 }
 0x304   : > { %v2071_v12 = vpop.f32.mrf.mxu0  ;;  %15498 = vst [vmem:[#allocation87_spill] sm:$0xff] %v11955_v18 }
 0x305   : > { %2123 = vmax.xlane.f32.xlu1 %v11936_v53  ;;  %2129 = vmax.xlane.f32.xlu0 %v11939_v31  ;;  %v11951_v43 = vadd.f32 %v11816_v61, %v2071_v12 }
 0x306   : > { %v9327_v55 = vpop.f32.mrf.mxu0 }
 0x307   : > { %v11948_v40 = vadd.f32 %v9327_v55, %v11816_v61  ;;  %v11974_v26 = vpop.permute.xlu1 %3038 }
 0x308   : > { %v2084_v35 = vpop.f32.mrf.mxu0  ;;  %15500 = vst [vmem:[#allocation89_spill] sm:$0xff] %v11974_v26 }
 0x309   : > { %2135 = vmax.xlane.f32.xlu1 %v11948_v40  ;;  %2125 = vmax.xlane.f32.xlu0 %v11951_v43  ;;  %v11960_v7 = vadd.f32 %v11816_v61, %v2084_v35 }
 0x30a   : > { %v9328_v9 = vpop.f32.mrf.mxu0 }
 0x30b   : > { %v11963_v52 = vadd.f32 %v9328_v9, %v11816_v61 }
 0x30c   : > { %v2087_v55 = vpop.f32.mrf.mxu0 }
 0x30d   : > { %2131 = vmax.xlane.f32.xlu1 %v11960_v7  ;;  %2137 = vmax.xlane.f32.xlu0 %v11963_v52  ;;  %v11971_v6 = vadd.f32 %v11816_v61, %v2087_v55 }
 0x30e   : > { %v9331_v12 = vpop.f32.mrf.mxu0 }
 0x30f   : > { %v11968_v54 = vadd.f32 %v9331_v12, %v11816_v61  ;;  %v1662_v19 = vpop.xlane.xlu0 %1661 }
 0x310   : > { %v1691_v56 = vsub.f32 %v11819_v33, %v1662_v19  ;;  %v2100_v35 = vpop.f32.mrf.mxu0 }
 0x311   : > { %2143 = vmax.xlane.f32.xlu1 %v11968_v54  ;;  %2133 = vmax.xlane.f32.xlu0 %v11971_v6  ;;  %v11979_v13 = vadd.f32 %v11816_v61, %v2100_v35 }
 0x312   : > { %v1709_v9 = vmul.f32 1.442695, %v1691_v56  ;;  %v9332_v3 = vpop.f32.mrf.mxu0 }
 0x313   : > { %v11982_v12 = vadd.f32 %v9332_v3, %v11816_v61  ;;  %v1658_v29 = vpop.xlane.xlu0 %1657 }
 0x314   : > { %10076 = vpow2.f32 %v1709_v9  ;;  %v1689_v55 = vsub.f32 %v11826_v50, %v1658_v29  ;;  %v2103_v33 = vpop.f32.mrf.mxu0 }
 0x315   : > { %2139 = vmax.xlane.f32.xlu1 %v11979_v13  ;;  %v1660_v19 = vpop.xlane.xlu1 %1659  ;;  %2145 = vmax.xlane.f32.xlu0 %v11982_v12  ;;  %v11988_v56 = vadd.f32 %v11816_v61, %v2103_v33 }
 0x316   : > { %v1705_v26 = vmul.f32 1.442695, %v1689_v55  ;;  %v1690_v35 = vsub.f32 %v11830_v23, %v1660_v19 }
 0x317   : > { %v1664_v36 = vpop.xlane.xlu0 %1663 }
 0x318   : > { %10078 = vpow2.f32 %v1705_v26  ;;  %v1692_v3 = vsub.f32 %v11833_v14, %v1664_v36  ;;  %v1707_v59 = vmul.f32 1.442695, %v1690_v35 }
 0x319   : > { %v1670_v42 = vpop.xlane.xlu1 %1669  ;;  %2141 = vmax.xlane.f32.xlu0 %v11988_v56 }
 0x31a   : > { %v1711_v50 = vmul.f32 1.442695, %v1692_v3  ;;  %v1695_v29 = vsub.f32 %v11837_v0, %v1670_v42 }
 0x31b   : > { %v1672_v9 = vpop.xlane.xlu0 %1671 }
 0x31c   : > { %10080 = vpow2.f32 %v1711_v50  ;;  %v1717_v5 = vmul.f32 1.442695, %v1695_v29  ;;  %v1696_v55 = vsub.f32 %v11843_v45, %v1672_v9 }
 0x31d   : > { %v1666_v30 = vpop.xlane.xlu1 %1665 }
 0x31e   : > { %10082 = vpow2.f32 %v1717_v5  ;;  %v1693_v26 = vsub.f32 %v11847_v44, %v1666_v30  ;;  %v1719_v23 = vmul.f32 1.442695, %v1696_v55 }
 0x31f   : > { %v1668_v33 = vpop.xlane.xlu0 %1667  ;;  %10084 = vpow2.f32 %v1707_v59 }
 0x320   : > { %v1713_v36 = vmul.f32 1.442695, %v1693_v26  ;;  %v1694_v14 = vsub.f32 %v11852_v51, %v1668_v33 }
 0x321   : > { %v11997_v19 = vpop.eup %10076  ;;  %v1678_v3 = vpop.xlane.xlu1 %1677 }
 0x322   : > { %10086 = vpow2.f32 %v1713_v36  ;;  %v1699_v42 = vsub.f32 %v11855_v39, %v1678_v3  ;;  %1741 = vadd.xlane.f32.xlu1 %v11997_v19  ;;  %v1715_v45 = vmul.f32 1.442695, %v1694_v14 }
 0x323   : > { %v1680_v0 = vpop.xlane.xlu0 %1679  ;;  %10088 = vpow2.f32 %v1719_v23 }
 0x324   : > { %v1725_v5 = vmul.f32 1.442695, %v1699_v42  ;;  %v1700_v30 = vsub.f32 %v11859_v17, %v1680_v0 }
 0x325   : > { %v12002_v44 = vpop.eup %10078  ;;  %v1674_v59 = vpop.xlane.xlu1 %1673 }
 0x326   : > { %10090 = vpow2.f32 %v1725_v5  ;;  %v1697_v51 = vsub.f32 %v11863_v37, %v1674_v59  ;;  %1737 = vadd.xlane.f32.xlu1 %v12002_v44  ;;  %v1727_v50 = vmul.f32 1.442695, %v1700_v30 }
 0x327   : > { %v1676_v35 = vpop.xlane.xlu0 %1675  ;;  %10092 = vpow2.f32 %v1715_v45 }
 0x328   : > { %v1721_v39 = vmul.f32 1.442695, %v1697_v51  ;;  %v1698_v29 = vsub.f32 %v11868_v1, %v1676_v35 }
 0x329   : > { %v12007_v9 = vpop.eup %10080  ;;  %v1686_v55 = vpop.xlane.xlu1 %1685 }
 0x32a   : > { %10094 = vpow2.f32 %v1721_v39  ;;  %v1703_v17 = vsub.f32 %v11871_v47, %v1686_v55  ;;  %1743 = vadd.xlane.f32.xlu0 %v12007_v9  ;;  %v1723_v37 = vmul.f32 1.442695, %v1698_v29 }
 0x32b   : > { %v12011_v26 = vpop.eup %10082  ;;  %10096 = vpow2.f32 %v1727_v50  ;;  %v1688_v23 = vpop.xlane.xlu0 %1687 }
 0x32c   : > { %1749 = vadd.xlane.f32.xlu1 %v12011_v26  ;;  %v12014_v33 = vpop.eup %10084  ;;  %v1733_v36 = vmul.f32 1.442695, %v1703_v17  ;;  %10098 = vpow2.f32 %v1723_v37  ;;  %v1704_v47 = vsub.f32 %v11875_v22, %v1688_v23 }
 0x32d   : > { %v1682_v14 = vpop.xlane.xlu1 %1681 }
 0x32e   : > { %1739 = vadd.xlane.f32.xlu0 %v12014_v33  ;;  %10100 = vpow2.f32 %v1733_v36  ;;  %v1701_v42 = vsub.f32 %v11879_v60, %v1682_v14  ;;  %v1735_v45 = vmul.f32 1.442695, %v1704_v47 }
 0x32f   : > { %v12017_v1 = vpop.eup %10086  ;;  %v1684_v30 = vpop.xlane.xlu0 %1683 }
 0x330   : > { %1745 = vadd.xlane.f32.xlu1 %v12017_v1  ;;  %v12021_v3 = vpop.eup %10088  ;;  %v1729_v59 = vmul.f32 1.442695, %v1701_v42  ;;  %10102 = vpow2.f32 %v1735_v45  ;;  %v1702_v35 = vsub.f32 %v11884_v24, %v1684_v30 }
 0x332   : > { %1751 = vadd.xlane.f32.xlu0 %v12021_v3  ;;  %10104 = vpow2.f32 %v1729_v59  ;;  %v1731_v55 = vmul.f32 1.442695, %v1702_v35 }
 0x333   : > { %v12025_v0 = vpop.eup %10090 }
 0x334   : > { %1757 = vadd.xlane.f32.xlu1 %v12025_v0  ;;  %v12028_v5 = vpop.eup %10092  ;;  %10106 = vpow2.f32 %v1731_v55 }
 0x336   : > { %v9383_v51 = vpop.f32.mrf.mxu0  ;;  %1747 = vadd.xlane.f32.xlu0 %v12028_v5 }
 0x337   : > { %v12031_v22 = vpop.eup %10094  ;;  %v12038_v39 = vadd.f32 %v9383_v51, %v11816_v61 }
 0x338   : > { %v2591_v60 = vpop.f32.mrf.mxu0  ;;  %1753 = vadd.xlane.f32.xlu1 %v12031_v22  ;;  %v12035_v50 = vpop.eup %10096 }
 0x339   : > { %v12042_v37 = vpop.eup %10098  ;;  %v12052_v47 = vadd.f32 %v11816_v61, %v2591_v60 }
 0x33a   : > { %v9384_v29 = vpop.f32.mrf.mxu0  ;;  %1759 = vadd.xlane.f32.xlu0 %v12035_v50 }
 0x33b   : > { %v12045_v24 = vpop.eup %10100  ;;  %v12048_v36 = vadd.f32 %v9384_v29, %v11816_v61 }
 0x33c   : > { %v2594_v17 = vpop.f32.mrf.mxu0  ;;  %2658 = vmax.xlane.f32.xlu1 %v12038_v39 }
 0x33d   : > { %v12056_v30 = vpop.eup %10102  ;;  %v12062_v35 = vadd.f32 %v11816_v61, %v2594_v17 }
 0x33e   : > { %v9387_v23 = vpop.f32.mrf.mxu0  ;;  %1755 = vadd.xlane.f32.xlu0 %v12042_v37 }
 0x33f   : > { %v12059_v59 = vpop.eup %10104  ;;  %v12066_v60 = vadd.f32 %v9387_v23, %v11816_v61 }
 0x340   : > { %v2607_v14 = vpop.f32.mrf.mxu0  ;;  %1765 = vadd.xlane.f32.xlu1 %v12045_v24 }
 0x341   : > { %v12070_v55 = vpop.eup %10106  ;;  %v12073_v18 = vadd.f32 %v11816_v61, %v2607_v14 }
 0x342   : > { %v9388_v42 = vpop.f32.mrf.mxu0  ;;  %2660 = vmax.xlane.f32.xlu0 %v12048_v36 }
 0x343   : > { %v12077_v17 = vadd.f32 %v9388_v42, %v11816_v61 }
 0x344   : > { %v2610_v45 = vpop.f32.mrf.mxu0  ;;  %2654 = vmax.xlane.f32.xlu1 %v12052_v47 }
 0x345   : > { %v12085_v4 = vadd.f32 %v11816_v61, %v2610_v45 }
 0x346   : > { %1767 = vadd.xlane.f32.xlu0 %v12056_v30  ;;  %v9391_v51 = vpop.f32.mrf.mxu0 }
 0x347   : > { %v12081_v23 = vadd.f32 %v9391_v51, %v11816_v61  ;;  %15502 = vst [vmem:[#allocation91_spill] sm:$0xff] %v12085_v4 }
 0x348   : > { %1761 = vadd.xlane.f32.xlu1 %v12059_v59  ;;  %v2623_v29 = vpop.f32.mrf.mxu0 }
 0x349   : > { %15501 = vst [vmem:[#allocation90_spill] sm:$0xff] %v12081_v23  ;;  %v12089_v14 = vadd.f32 %v11816_v61, %v2623_v29 }
 0x34a   : > { %2656 = vmax.xlane.f32.xlu0 %v12062_v35  ;;  %v9392_v21 = vpop.f32.mrf.mxu0 }
 0x34b   : > { %15503 = vst [vmem:[#allocation92_spill] sm:$0xff] %v12089_v14  ;;  %v12093_v16 = vadd.f32 %v9392_v21, %v11816_v61 }
 0x34c   : > { %2666 = vmax.xlane.f32.xlu1 %v12066_v60  ;;  %v2626_v48 = vpop.f32.mrf.mxu0 }
 0x34d   : > { %15504 = vst [vmem:[#allocation93_spill] sm:$0xff] %v12093_v16  ;;  %v12101_v45 = vadd.f32 %v11816_v61, %v2626_v48 }
 0x34e   : > { %1763 = vadd.xlane.f32.xlu0 %v12070_v55  ;;  %v9395_v42 = vpop.f32.mrf.mxu0 }
 0x34f   : > { %v12097_v51 = vadd.f32 %v9395_v42, %v11816_v61  ;;  %15506 = vst [vmem:[#allocation95_spill] sm:$0xff] %v12101_v45 }
 0x350   : > { %2662 = vmax.xlane.f32.xlu1 %v12073_v18  ;;  %v2639_v29 = vpop.f32.mrf.mxu0 }
 0x351   : > { %15505 = vst [vmem:[#allocation94_spill] sm:$0xff] %v12097_v51  ;;  %v12106_v28 = vadd.f32 %v11816_v61, %v2639_v29 }
 0x352   : > { %2668 = vmax.xlane.f32.xlu0 %v12077_v17  ;;  %v9396_v21 = vpop.f32.mrf.mxu0 }
 0x353   : > { %15507 = vst [vmem:[#allocation96_spill] sm:$0xff] %v12106_v28  ;;  %v12110_v27 = vadd.f32 %v9396_v21, %v11816_v61 }
 0x354   : > { %2674 = vmax.xlane.f32.xlu1 %v12081_v23  ;;  %v2642_v42 = vpop.f32.mrf.mxu0 }
 0x355   : > { %15508 = vst [vmem:[#allocation97_spill] sm:$0xff] %v12110_v27  ;;  %v12114_v48 = vadd.f32 %v11816_v61, %v2642_v42 }
 0x356   : > { %2664 = vmax.xlane.f32.xlu0 %v12085_v4 }
 0x357   : > { %15509 = vst [vmem:[#allocation98_spill] sm:$0xff] %v12114_v48 }
 0x358   : > { %2670 = vmax.xlane.f32.xlu1 %v12089_v14 }
 0x35a   : > { %2676 = vmax.xlane.f32.xlu0 %v12093_v16 }
 0x35c   : > { %2682 = vmax.xlane.f32.xlu1 %v12097_v51 }
 0x35e   : > { %2672 = vmax.xlane.f32.xlu0 %v12101_v45 }
 0x362   : > { %2678 = vmax.xlane.f32.xlu0 %v12106_v28 }
 0x366   : > { %2684 = vmax.xlane.f32.xlu0 %v12110_v27 }
 0x36a   : > { %2680 = vmax.xlane.f32.xlu0 %v12114_v48 }
 0x382   : > { %v2120_v20 = vpop.xlane.xlu1 %2119 }
 0x383   : > { %v2149_v45 = vsub.f32 %v11908_v63, %v2120_v20 }
 0x385   : > { %v2167_v16 = vmul.f32 1.442695, %v2149_v45 }
 0x386   : > { %v2116_v29 = vpop.xlane.xlu1 %2115  ;;  %v2122_v51 = vpop.xlane.xlu0 %2121 }
 0x387   : > { %10108 = vpow2.f32 %v2167_v16  ;;  %v2147_v28 = vsub.f32 %v11916_v49, %v2116_v29  ;;  %v2150_v21 = vsub.f32 %v11919_v38, %v2122_v51 }
 0x389   : > { %v2163_v14 = vmul.f32 1.442695, %v2147_v28  ;;  %v2169_v4 = vmul.f32 1.442695, %v2150_v21 }
 0x38a   : > { %v2128_v23 = vpop.xlane.xlu1 %2127  ;;  %v2118_v27 = vpop.xlane.xlu0 %2117 }
 0x38b   : > { %10110 = vpow2.f32 %v2163_v14  ;;  %v2153_v61 = vsub.f32 %v11926_v41, %v2128_v23  ;;  %v2148_v42 = vsub.f32 %v11929_v2, %v2118_v27 }
 0x38c   : > { %10112 = vpow2.f32 %v2169_v4 }
 0x38d   : > { %v2175_v48 = vmul.f32 1.442695, %v2153_v61  ;;  %v2165_v63 = vmul.f32 1.442695, %v2148_v42 }
 0x38e   : > { %v2124_v20 = vpop.xlane.xlu1 %2123  ;;  %v2130_v45 = vpop.xlane.xlu0 %2129 }
 0x38f   : > { %10114 = vpow2.f32 %v2175_v48  ;;  %v2151_v16 = vsub.f32 %v11936_v53, %v2124_v20  ;;  %v2154_v49 = vsub.f32 %v11939_v31, %v2130_v45 }
 0x390   : > { %10116 = vpow2.f32 %v2165_v63 }
 0x391   : > { %v2171_v38 = vmul.f32 1.442695, %v2151_v16  ;;  %v2177_v14 = vmul.f32 1.442695, %v2154_v49 }
 0x392   : > { %v2136_v28 = vpop.xlane.xlu1 %2135  ;;  %v2126_v51 = vpop.xlane.xlu0 %2125 }
 0x393   : > { %10118 = vpow2.f32 %v2171_v38  ;;  %v2152_v41 = vsub.f32 %v11951_v43, %v2126_v51  ;;  %v2157_v4 = vsub.f32 %v11948_v40, %v2136_v28 }
 0x394   : > { %v12125_v23 = vpop.eup %10108  ;;  %10120 = vpow2.f32 %v2177_v14 }
 0x395   : > { %v2173_v2 = vmul.f32 1.442695, %v2152_v41  ;;  %2199 = vadd.xlane.f32.xlu0 %v12125_v23  ;;  %v2183_v29 = vmul.f32 1.442695, %v2157_v4 }
 0x396   : > { %v2132_v27 = vpop.xlane.xlu1 %2131  ;;  %v2138_v48 = vpop.xlane.xlu0 %2137 }
 0x397   : > { %v2155_v53 = vsub.f32 %v11960_v7, %v2132_v27  ;;  %10122 = vpow2.f32 %v2173_v2  ;;  %v2158_v21 = vsub.f32 %v11963_v52, %v2138_v48 }
 0x398   : > { %v12130_v31 = vpop.eup %10110 }
 0x399   : > { %v2179_v61 = vmul.f32 1.442695, %v2155_v53  ;;  %2195 = vadd.xlane.f32.xlu0 %v12130_v31  ;;  %v12134_v40 = vpop.eup %10112  ;;  %v2185_v7 = vmul.f32 1.442695, %v2158_v21 }
 0x39a   : > { %v2144_v43 = vpop.xlane.xlu1 %2143  ;;  %v2134_v42 = vpop.xlane.xlu0 %2133 }
 0x39b   : > { %10124 = vpow2.f32 %v2179_v61  ;;  %v2161_v63 = vsub.f32 %v11968_v54, %v2144_v43  ;;  %v2156_v45 = vsub.f32 %v11971_v6, %v2134_v42 }
 0x39c   : > { %v12137_v20 = vpop.eup %10114  ;;  %10126 = vpow2.f32 %v2183_v29 }
 0x39d   : > { %v2191_v16 = vmul.f32 1.442695, %v2161_v63  ;;  %2207 = vadd.xlane.f32.xlu1 %v12137_v20  ;;  %2201 = vadd.xlane.f32.xlu0 %v12134_v40  ;;  %v12142_v38 = vpop.eup %10116  ;;  %v2181_v14 = vmul.f32 1.442695, %v2156_v45 }
 0x39e   : > { %v2140_v52 = vpop.xlane.xlu1 %2139  ;;  %v2146_v49 = vpop.xlane.xlu0 %2145 }
 0x39f   : > { %10128 = vpow2.f32 %v2191_v16  ;;  %v2159_v28 = vsub.f32 %v11979_v13, %v2140_v52  ;;  %v2162_v54 = vsub.f32 %v11982_v12, %v2146_v49 }
 0x3a0   : > { %v12146_v51 = vpop.eup %10118  ;;  %10130 = vpow2.f32 %v2185_v7 }
 0x3a1   : > { %v2187_v41 = vmul.f32 1.442695, %v2159_v28  ;;  %2203 = vadd.xlane.f32.xlu1 %v12146_v51  ;;  %2197 = vadd.xlane.f32.xlu0 %v12142_v38  ;;  %v2193_v6 = vmul.f32 1.442695, %v2162_v54  ;;  %v12151_v27 = vpop.eup %10120 }
 0x3a2   : > { %v2142_v4 = vpop.xlane.xlu0 %2141 }
 0x3a3   : > { %10132 = vpow2.f32 %v2187_v41  ;;  %v2160_v2 = vsub.f32 %v11988_v56, %v2142_v4 }
 0x3a4   : > { %10134 = vpow2.f32 %v2181_v14  ;;  %v12153_v13 = vpop.eup %10122 }
 0x3a5   : > { %v2189_v12 = vmul.f32 1.442695, %v2160_v2  ;;  %2209 = vadd.xlane.f32.xlu1 %v12151_v27  ;;  %10136 = vpow2.f32 %v2193_v6  ;;  %2205 = vadd.xlane.f32.xlu0 %v12153_v13 }
 0x3a7   : > { %10138 = vpow2.f32 %v2189_v12 }
 0x3a8   : > { %v12157_v48 = vpop.eup %10124 }
 0x3a9   : > { %v12159_v53 = vpop.eup %10126  ;;  %2211 = vadd.xlane.f32.xlu1 %v12157_v48 }
 0x3aa   : > { %2215 = vadd.xlane.f32.xlu0 %v12159_v53 }
 0x3ab   : > { %v1742_v56 = vpop.xlane.xlu1 %1741 }
 0x3ac   : > { %v12163_v29 = vpop.eup %10128 }
 0x3ad   : > { %15510 = vst [vmem:[#allocation99_spill] sm:$0xff] %v12163_v29  ;;  %v12165_v21 = vpop.eup %10130  ;;  %2223 = vadd.xlane.f32.xlu1 %v12163_v29 }
 0x3ae   : > { %2217 = vadd.xlane.f32.xlu0 %v12165_v21 }
 0x3af   : > { %v1738_v42 = vpop.xlane.xlu1 %1737 }
 0x3b0   : > { %v12169_v61 = vpop.eup %10132 }
 0x3b1   : > { %15511 = vst [vmem:[#allocation100_spill] sm:$0xff] %v12169_v61  ;;  %v12171_v43 = vpop.eup %10134  ;;  %2219 = vadd.xlane.f32.xlu1 %v12169_v61 }
 0x3b2   : > { %2213 = vadd.xlane.f32.xlu0 %v12171_v43  ;;  %v12175_v63 = vpop.eup %10136 }
 0x3b3   : > { %15512 = vst [vmem:[#allocation101_spill] sm:$0xff] %v12175_v63  ;;  %v1744_v7 = vpop.xlane.xlu0 %1743 }
 0x3b4   : > { %v12177_v45 = vpop.eup %10138  ;;  %10140 = vrcp.f32 %v1744_v7 }
 0x3b5   : > { %15513 = vst [vmem:[#allocation102_spill] sm:$0xff] %v12177_v45  ;;  %v1750_v16 = vpop.xlane.xlu1 %1749  ;;  %2225 = vadd.xlane.f32.xlu1 %v12175_v63  ;;  %10142 = vrcp.f32 %v1738_v42 }
 0x3b6   : > { %2221 = vadd.xlane.f32.xlu0 %v12177_v45  ;;  %10144 = vrcp.f32 %v1742_v56 }
 0x3b7   : > { %v1740_v52 = vpop.xlane.xlu0 %1739 }
 0x3b8   : > { %10146 = vrcp.f32 %v1740_v52 }
 0x3b9   : > { %v1746_v49 = vpop.xlane.xlu1 %1745 }
 0x3bb   : > { %v1752_v28 = vpop.xlane.xlu0 %1751 }
 0x3bc   : > { %10148 = vrcp.f32 %v1752_v28 }
 0x3bd   : > { %v1758_v54 = vpop.xlane.xlu1 %1757  ;;  %10150 = vrcp.f32 %v1746_v49 }
 0x3be   : > { %10152 = vrcp.f32 %v1750_v16 }
 0x3bf   : > { %v1748_v14 = vpop.xlane.xlu0 %1747 }
 0x3c0   : > { %10154 = vrcp.f32 %v1748_v14 }
 0x3c1   : > { %v1754_v41 = vpop.xlane.xlu1 %1753  ;;  %v10141_v6 = vpop.eup %10140 }
 0x3c2   : > { %v10143_v4 = vpop.eup %10142  ;;  %v1788_v56 = vmul.f32 %v10141_v6, %v12007_v9 }
 0x3c3   : > { %v1760_v2 = vpop.xlane.xlu0 %1759  ;;  %v10145_v12 = vpop.eup %10144  ;;  %v1785_v28 = vmul.f32 %v10143_v4, %v12002_v44 }
 0x3c4   : > { %10156 = vrcp.f32 %v1760_v2  ;;  %v1787_v14 = vmul.f32 %v10145_v12, %v11997_v19 }
 0x3c5   : > { %v10147_v7 = vpop.eup %10146  ;;  %v2659_v42 = vpop.xlane.xlu1 %2658  ;;  %10158 = vrcp.f32 %v1754_v41 }
 0x3c6   : > { %v2688_v52 = vsub.f32 %v12038_v39, %v2659_v42  ;;  %v1786_v49 = vmul.f32 %v10147_v7, %v12014_v33  ;;  %10160 = vrcp.f32 %v1758_v54  ;;  %v1802_v61 = vpack.c.bf16 %v1788_v56, %v1787_v14 }
 0x3c7   : > { %v1756_v16 = vpop.xlane.xlu0 %1755 }
 0x3c8   : > { %v2706_v29 = vmul.f32 1.442695, %v2688_v52  ;;  %10162 = vrcp.f32 %v1756_v16  ;;  %v1801_v63 = vpack.c.bf16 %v1786_v49, %v1785_v28 }
 0x3c9   : > { %v1766_v45 = vpop.xlane.xlu1 %1765  ;;  %v10149_v2 = vpop.eup %10148 }
 0x3ca   : > { %10164 = vpow2.f32 %v2706_v29  ;;  %9285 = vmatprep.mubr.bf16.mxu1 %v1801_v63  ;;  %v10151_v9 = vpop.eup %10150  ;;  %v1792_v54 = vmul.f32 %v10149_v2, %v12021_v3 }
 0x3cb   : > { %9286 = vmatmul.mubr.bf16.vlgmr.msra.gmra.mxu1 %v1802_v61  ;;  %v2661_v41 = vpop.xlane.xlu0 %2660  ;;  %v10153_v39 = vpop.eup %10152  ;;  %v1789_v29 = vmul.f32 %v10151_v9, %v12017_v1 }
 0x3cc   : > { %9334 = vmatpush3.bf16.msra.mxu1 %v11733_v32  ;;  %v2689_v44 = vsub.f32 %v12048_v36, %v2661_v41  ;;  %v1791_v12 = vmul.f32 %v10153_v39, %v12011_v26 }
 0x3cd   : > { %v10155_v33 = vpop.eup %10154  ;;  %9335 = vmatprep.subr.bf16.mxu1 %v11943_v11  ;;  %v2655_v19 = vpop.xlane.xlu1 %2654 }
 0x3ce   : > { %v2708_v6 = vmul.f32 1.442695, %v2689_v44  ;;  %v2686_v4 = vsub.f32 %v12052_v47, %v2655_v19  ;;  %v1790_v63 = vmul.f32 %v10155_v33, %v12028_v5  ;;  %v1804_v7 = vpack.c.bf16 %v1792_v54, %v1791_v12 }
 0x3cf   : > { %v1768_v61 = vpop.xlane.xlu0 %1767 }
 0x3d0   : > { %10166 = vpow2.f32 %v2708_v6  ;;  %v2702_v32 = vmul.f32 1.442695, %v2686_v4  ;;  %9336 = vmatpush3.bf16.msra.mxu1 %v11943_v11  ;;  %v1803_v36 = vpack.c.bf16 %v1790_v63, %v1789_v29 }
 0x3d1   : > { %9337 = vmatprep.subr.bf16.mxu1 %v11887_v15  ;;  %v10157_v42 = vpop.eup %10156  ;;  %v1762_v56 = vpop.xlane.xlu1 %1761 }
 0x3d2   : > { %10168 = vpow2.f32 %v2702_v32  ;;  %9289 = vmatprep.mubr.bf16.mxu1 %v1803_v36  ;;  %v10159_v3 = vpop.eup %10158  ;;  %v1796_v11 = vmul.f32 %v10157_v42, %v12035_v50 }
 0x3d3   : > { %9290 = vmatmul.mubr.bf16.gmra.mxu1 %v1804_v7  ;;  %v2657_v47 = vpop.xlane.xlu0 %2656  ;;  %v10161_v1 = vpop.eup %10160  ;;  %10170 = vrcp.f32 %v1766_v45  ;;  %v1793_v28 = vmul.f32 %v10159_v3, %v12031_v22  ;;  %v15515_v7 = vld [vmem:[#allocation91_spill] sm:$0xff] }
 0x3d4   : > { %9338 = vmatpush3.bf16.msra.mxu1 %v11887_v15  ;;  %v2687_v26 = vsub.f32 %v12062_v35, %v2657_v47  ;;  %10172 = vrcp.f32 %v1768_v61  ;;  %v1795_v15 = vmul.f32 %v10161_v1, %v12025_v0  ;;  %v15516_v47 = vld [vmem:[#allocation92_spill] sm:$0xff] }
 0x3d5   : > { %v10163_v5 = vpop.eup %10162  ;;  %9339 = vmatprep.subr.bf16.mxu1 %v11901_v10  ;;  %10174 = vrcp.f32 %v1762_v56  ;;  %v2667_v19 = vpop.xlane.xlu1 %2666  ;;  %v15517_v56 = vld [vmem:[#allocation94_spill] sm:$0xff] }
 0x3d6   : > { %v2704_v52 = vmul.f32 1.442695, %v2687_v26  ;;  %v1794_v49 = vmul.f32 %v10163_v5, %v12042_v37  ;;  %v1806_v50 = vpack.c.bf16 %v1796_v11, %v1795_v15  ;;  %v2692_v63 = vsub.f32 %v12066_v60, %v2667_v19  ;;  %v15518_v5 = vld [vmem:[#allocation93_spill] sm:$0xff]  ;;  %v15520_v15 = vld [vmem:[#allocation95_spill] sm:$0xff] }
 0x3d7   : > { %v12202_v16 = vpop.eup %10164  ;;  %v1764_v14 = vpop.xlane.xlu0 %1763 }
 0x3d8   : > { %10176 = vpow2.f32 %v2704_v52  ;;  %9340 = vmatpush3.bf16.msra.mxu1 %v11901_v10  ;;  %2738 = vadd.xlane.f32.xlu0 %v12202_v16  ;;  %v1805_v35 = vpack.c.bf16 %v1794_v49, %v1793_v28  ;;  %v2714_v36 = vmul.f32 1.442695, %v2692_v63  ;;  %v15519_v28 = vld [vmem:[#allocation96_spill] sm:$0xff] }
 0x3d9   : > { %10178 = vrcp.f32 %v1764_v14  ;;  %9341 = vmatprep.subr.bf16.mxu1 %v11910_v34  ;;  %v2663_v54 = vpop.xlane.xlu1 %2662 }
 0x3da   : > { %9293 = vmatprep.mubr.bf16.mxu1 %v1805_v35 }
 0x3db   : > { %9294 = vmatmul.mubr.bf16.gmra.mxu1 %v1806_v50  ;;  %v2669_v33 = vpop.xlane.xlu0 %2668 }
 0x3dc   : > { %9342 = vmatpush3.bf16.msra.mxu1 %v11910_v34  ;;  %v2693_v4 = vsub.f32 %v12077_v17, %v2669_v33 }
 0x3dd   : > { %v12209_v22 = vpop.eup %10166  ;;  %9343 = vmatprep.subr.bf16.mxu1 %v11889_v57 }
 0x3de   : > { %2740 = vadd.xlane.f32.xlu0 %v12209_v22  ;;  %v2716_v61 = vmul.f32 1.442695, %v2693_v4 }
 0x3df   : > { %v12213_v0 = vpop.eup %10168 }
 0x3e0   : > { %9344 = vmatpush3.bf16.msra.mxu1 %v11889_v57  ;;  %2734 = vadd.xlane.f32.xlu1 %v12213_v0  ;;  %v10171_v10 = vpop.eup %10170 }
 0x3e1   : > { %9345 = vmatprep.subr.bf16.mxu1 %v11891_v58  ;;  %v10173_v37 = vpop.eup %10172  ;;  %v1799_v39 = vmul.f32 %v10171_v10, %v12045_v24  ;;  %v2690_v24 = vsub.f32 %v12073_v18, %v2663_v54 }
 0x3e2   : > { %v10175_v45 = vpop.eup %10174  ;;  %v1800_v9 = vmul.f32 %v10173_v37, %v12056_v30  ;;  %v2665_v30 = vpop.xlane.xlu0 %2664 }
 0x3e3   : > { %v1797_v57 = vmul.f32 %v10175_v45, %v12059_v59  ;;  %v2710_v6 = vmul.f32 1.442695, %v2690_v24  ;;  %v2691_v42 = vsub.f32 %v15515_v7, %v2665_v30  ;;  %v15521_v45 = vld [vmem:[#allocation97_spill] sm:$0xff] }
 0x3e4   : > { %9346 = vmatpush3.bf16.msra.mxu1 %v11891_v58  ;;  %v1808_v44 = vpack.c.bf16 %v1800_v9, %v1799_v39 }
 0x3e5   : > { %v12219_v34 = vpop.eup %10176  ;;  %9347 = vmatprep.subr.bf16.mxu1 %v11923_v62  ;;  %10180 = vpow2.f32 %v2710_v6  ;;  %v2712_v1 = vmul.f32 1.442695, %v2691_v42 }
 0x3e6   : > { %v10179_v2 = vpop.eup %10178  ;;  %2736 = vadd.xlane.f32.xlu0 %v12219_v34  ;;  %v2677_v59 = vpop.xlane.xlu0 %2676  ;;  %10182 = vpow2.f32 %v2716_v61 }
 0x3e7   : > { %v1798_v41 = vmul.f32 %v10179_v2, %v12070_v55  ;;  %10184 = vpow2.f32 %v2714_v36  ;;  %v2697_v11 = vsub.f32 %v15518_v5, %v2677_v59 }
 0x3e8   : > { %9348 = vmatpush3.bf16.msra.mxu1 %v11923_v62  ;;  %v2675_v62 = vpop.xlane.xlu1 %2674 }
 0x3e9   : > { %9397 = vmatprep.subr.bf16.mxu1 %v11941_v46  ;;  %v1807_v58 = vpack.c.bf16 %v1798_v41, %v1797_v57  ;;  %v2724_v14 = vmul.f32 1.442695, %v2697_v11  ;;  %v15522_v57 = vld [vmem:[#allocation98_spill] sm:$0xff] }
 0x3ea   : > { %v2673_v55 = vpop.xlane.xlu0 %2672 }
 0x3eb   : > { %9297 = vmatprep.mubr.bf16.mxu1 %v1807_v58  ;;  %v2695_v35 = vsub.f32 %v15520_v15, %v2673_v55 }
 0x3ec   : > { %9298 = vmatmul.mubr.bf16.gmra.mxu1 %v1808_v44  ;;  %v2671_v29 = vpop.xlane.xlu1 %2670 }
 0x3ed   : > { %v2694_v18 = vsub.f32 %v15516_v47, %v2671_v29  ;;  %v2720_v9 = vmul.f32 1.442695, %v2695_v35 }
 0x3ee   : > { %v2679_v32 = vpop.xlane.xlu0 %2678 }
 0x3ef   : > { %v2718_v60 = vmul.f32 1.442695, %v2694_v18  ;;  %v2698_v49 = vsub.f32 %v15519_v28, %v2679_v32 }
 0x3f0   : > { %v2683_v3 = vpop.xlane.xlu1 %2682 }
 0x3f1   : > { %3032 = vrot.lane.b32.xlu1 %v11376_v8, %s10847_s2  ;;  %v15514_v8 = vld [vmem:[#allocation90_spill] sm:$0xff]  ;;  %v2700_v17 = vsub.f32 %v15517_v56, %v2683_v3  ;;  %v2726_v37 = vmul.f32 1.442695, %v2698_v49 }
 0x3f2   : > { %v2696_v12 = vsub.f32 %v15514_v8, %v2675_v62  ;;  %v2685_v26 = vpop.xlane.xlu0 %2684  ;;  %v12243_v50 = vpop.eup %10180 }
 0x3f3   : > { %v2730_v52 = vmul.f32 1.442695, %v2700_v17  ;;  %v2701_v2 = vsub.f32 %v15521_v45, %v2685_v26  ;;  %v12248_v39 = vpop.eup %10182 }
 0x3f4   : > { %v12251_v44 = vpop.eup %10184 }
 0x3f5   : > { %v2732_v58 = vmul.f32 1.442695, %v2701_v2 }
 0x3f6   : > { %v2681_v10 = vpop.xlane.xlu0 %2680 }
 0x3f7   : > { %v2699_v41 = vsub.f32 %v15522_v57, %v2681_v10  ;;  %v15525_v57 = vld [vmem:[#allocation41_spill] sm:$0xff] }
 0x3f9   : > { %v2728_v33 = vmul.f32 1.442695, %v2699_v41 }
 0x3fc   : > { %3030 = vrot.lane.b32.xlu0 %v11434_v25, %s10847_s2  ;;  %v2722_v25 = vmul.f32 1.442695, %v2696_v12 }
 0x3fe   : > { %10186 = vpow2.f32 %v2722_v25 }
 0x3ff   : > { %10188 = vpow2.f32 %v2712_v1 }
 0x400   : > { %10190 = vpow2.f32 %v2718_v60 }
 0x401   : > { %10192 = vpow2.f32 %v2730_v52 }
 0x402   : > { %10194 = vpow2.f32 %v2724_v14 }
 0x403   : > { %10196 = vpow2.f32 %v2726_v37 }
 0x404   : > { %10198 = vpow2.f32 %v2720_v9  ;;  %v15524_v9 = vld [vmem:[#allocation88_spill] sm:$0xff] }
 0x405   : > { %10200 = vpow2.f32 %v2732_v58  ;;  %v15528_v58 = vld [vmem:[#allocation40_spill] sm:$0xff] }
 0x406   : > { %10202 = vpow2.f32 %v2728_v33 }
 0x40b   : > { %v12254_v19 = vpop.eup %10186 }
 0x40c   : > { %v12257_v30 = vpop.eup %10188 }
 0x40d   : > { %v12260_v59 = vpop.eup %10190 }
 0x40e   : > { %v12263_v62 = vpop.eup %10192 }
 0x40f   : > { %v12266_v55 = vpop.eup %10194 }
 0x410   : > { %v12269_v6 = vpop.eup %10196 }
 0x411   : > { %v12272_v63 = vpop.eup %10198 }
 0x412   : > { %v12275_v61 = vpop.eup %10200 }
 0x413   : > { %v12278_v32 = vpop.eup %10202 }
 0x415   : > { %2742 = vadd.xlane.f32.xlu1 %v12243_v50 }
 0x419   : > { %2748 = vadd.xlane.f32.xlu1 %v12248_v39 }
 0x41b   : > { %2746 = vadd.xlane.f32.xlu0 %v12251_v44 }
 0x41d   : > { %2754 = vadd.xlane.f32.xlu1 %v12254_v19 }
 0x41e   : > { %v2200_v54 = vpop.xlane.xlu0 %2199 }
 0x41f   : > { %2744 = vadd.xlane.f32.xlu0 %v12257_v30 }
 0x421   : > { %2750 = vadd.xlane.f32.xlu1 %v12260_v59 }
 0x422   : > { %v2196_v24 = vpop.xlane.xlu0 %2195 }
 0x423   : > { %2762 = vadd.xlane.f32.xlu0 %v12263_v62 }
 0x425   : > { %2756 = vadd.xlane.f32.xlu1 %v12266_v55 }
 0x426   : > { %v2208_v4 = vpop.xlane.xlu1 %2207  ;;  %v2202_v29 = vpop.xlane.xlu0 %2201 }
 0x427   : > { %2758 = vadd.xlane.f32.xlu0 %v12269_v6  ;;  %10204 = vrcp.f32 %v2202_v29 }
 0x428   : > { %10206 = vrcp.f32 %v2196_v24  ;;  %v15529_v24 = vld [vmem:[#allocation42_spill] sm:$0xff] }
 0x429   : > { %2752 = vadd.xlane.f32.xlu1 %v12272_v63  ;;  %10208 = vrcp.f32 %v2200_v54 }
 0x42a   : > { %v2204_v8 = vpop.xlane.xlu1 %2203  ;;  %v2198_v12 = vpop.xlane.xlu0 %2197 }
 0x42b   : > { %2764 = vadd.xlane.f32.xlu0 %v12275_v61  ;;  %10210 = vrcp.f32 %v2198_v12 }
 0x42c   : > { %10212 = vrcp.f32 %v2204_v8  ;;  %v15530_v8 = vld [vmem:[#allocation87_spill] sm:$0xff] }
 0x42d   : > { %2760 = vadd.xlane.f32.xlu1 %v12278_v32 }
 0x42e   : > { %v2210_v36 = vpop.xlane.xlu1 %2209  ;;  %v2206_v7 = vpop.xlane.xlu0 %2205 }
 0x42f   : > { %10214 = vrcp.f32 %v2206_v7 }
 0x430   : > { %10216 = vrcp.f32 %v2210_v36  ;;  %v15532_v36 = vld [vmem:[#allocation45_spill] sm:$0xff] }
 0x431   : > { %10218 = vrcp.f32 %v2208_v4 }
 0x432   : > { %v2212_v42 = vpop.xlane.xlu1 %2211 }
 0x433   : > { %v2216_v3 = vpop.xlane.xlu0 %2215 }
 0x434   : > { %v10205_v25 = vpop.eup %10204 }
 0x435   : > { %v10207_v18 = vpop.eup %10206  ;;  %v2246_v26 = vmul.f32 %v10205_v25, %v12134_v40  ;;  %v15523_v40 = vld [vmem:[#allocation39_spill] sm:$0xff] }
 0x436   : > { %v2224_v47 = vpop.xlane.xlu1 %2223  ;;  %v10209_v56 = vpop.eup %10208  ;;  %v2243_v5 = vmul.f32 %v10207_v18, %v12130_v31 }
 0x437   : > { %v2218_v1 = vpop.xlane.xlu0 %2217  ;;  %v2245_v49 = vmul.f32 %v10209_v56, %v12125_v23  ;;  %v15534_v56 = vld [vmem:[#allocation35_spill] sm:$0xff] }
 0x438   : > { %v10211_v17 = vpop.eup %10210  ;;  %10220 = vrcp.f32 %v2218_v1  ;;  %v15533_v1 = vld [vmem:[#allocation80_spill] sm:$0xff] }
 0x439   : > { %10222 = vrcp.f32 %v2212_v42  ;;  %v2244_v11 = vmul.f32 %v10211_v17, %v12142_v38  ;;  %v10213_v52 = vpop.eup %10212  ;;  %v2260_v35 = vpack.c.bf16 %v2246_v26, %v2245_v49  ;;  %v15535_v26 = vld [vmem:[#allocation44_spill] sm:$0xff]  ;;  %v15540_v49 = vld [vmem:[#allocation101_spill] sm:$0xff] }
 0x43a   : > { %v2220_v60 = vpop.xlane.xlu1 %2219  ;;  %10224 = vrcp.f32 %v2216_v3  ;;  %v2247_v31 = vmul.f32 %v10213_v52, %v12146_v51  ;;  %v15526_v51 = vld [vmem:[#allocation25_spill] sm:$0xff] }
 0x43b   : > { %v2214_v28 = vpop.xlane.xlu0 %2213  ;;  %v2259_v14 = vpack.c.bf16 %v2244_v11, %v2243_v5  ;;  %v15538_v52 = vld [vmem:[#allocation81_spill] sm:$0xff] }
 0x43c   : > { %10226 = vrcp.f32 %v2214_v28  ;;  %v10215_v15 = vpop.eup %10214  ;;  %v15539_v28 = vld [vmem:[#allocation43_spill] sm:$0xff] }
 0x43d   : > { %v10217_v10 = vpop.eup %10216  ;;  %10228 = vrcp.f32 %v2220_v60  ;;  %9349 = vmatprep.mubr.bf16.mxu1 %v2259_v14  ;;  %v2248_v38 = vmul.f32 %v10215_v15, %v12153_v13  ;;  %v15537_v60 = vld [vmem:[#allocation102_spill] sm:$0xff]  ;;  %v15541_v15 = vld [vmem:[#allocation99_spill] sm:$0xff] }
 0x43e   : > { %v2226_v37 = vpop.xlane.xlu1 %2225  ;;  %3028 = vrot.lane.b32.xlu1 %v15523_v40, %s10847_s2  ;;  %9350 = vmatmul.mubr.bf16.vlgmr.msra.gmra.mxu1 %v2260_v35  ;;  %v10219_v2 = vpop.eup %10218  ;;  %v2250_v41 = vmul.f32 %v10217_v10, %v12151_v27  ;;  %v15542_v10 = vld [vmem:[#allocation82_spill] sm:$0xff] }
 0x43f   : > { %v2222_v45 = vpop.xlane.xlu0 %2221  ;;  %9398 = vmatpush3.bf16.msra.mxu1 %v11941_v46  ;;  %v2261_v23 = vpack.c.bf16 %v2248_v38, %v2247_v31  ;;  %v2249_v13 = vmul.f32 %v10219_v2, %v12137_v20  ;;  %v15527_v46 = vld [vmem:[#allocation79_spill] sm:$0xff]  ;;  %v15531_v20 = vld [vmem:[#allocation29_spill] sm:$0xff]  ;;  %v15544_v31 = vld [vmem:[#allocation84_spill] sm:$0xff] }
 0x440   : > { %10230 = vrcp.f32 %v2222_v45  ;;  %9399 = vmatprep.subr.bf16.mxu1 %v15524_v9  ;;  %v15545_v38 = vld [vmem:[#allocation89_spill] sm:$0xff] }
 0x441   : > { %10232 = vrcp.f32 %v2226_v37  ;;  %3026 = vrot.lane.b32.xlu0 %v15525_v57, %s10847_s2  ;;  %9353 = vmatprep.mubr.bf16.mxu1 %v2261_v23  ;;  %v2262_v33 = vpack.c.bf16 %v2250_v41, %v2249_v13  ;;  %v15543_v37 = vld [vmem:[#allocation47_spill] sm:$0xff] }
 0x442   : > { %3008 = vrot.lane.b32.xlu1 %v15526_v51, %s10847_s2  ;;  %10234 = vrcp.f32 %v2224_v47 }
 0x443   : > { %9400 = vmatpush3.bf16.msra.mxu1 %v15524_v9 }
 0x444   : > { %9401 = vmatprep.subr.bf16.mxu1 %v15527_v46 }
 0x445   : > { %3024 = vrot.lane.b32.xlu0 %v15528_v58, %s10847_s2  ;;  %v10221_v54 = vpop.eup %10220 }
 0x446   : > { %3012 = vrot.lane.b32.xlu1 %v15529_v24, %s10847_s2  ;;  %v10223_v27 = vpop.eup %10222  ;;  %9354 = vmatmul.mubr.bf16.gmra.mxu1 %v2262_v33  ;;  %v2254_v12 = vmul.f32 %v10221_v54, %v12165_v21 }
 0x447   : > { %v10225_v4 = vpop.eup %10224  ;;  %9402 = vmatpush3.bf16.msra.mxu1 %v15527_v46  ;;  %v2251_v7 = vmul.f32 %v10223_v27, %v12157_v48  ;;  %v15536_v48 = vld [vmem:[#allocation100_spill] sm:$0xff] }
 0x448   : > { %9403 = vmatprep.subr.bf16.mxu1 %v15530_v8  ;;  %v2253_v25 = vmul.f32 %v10225_v4, %v12159_v53  ;;  %v3086_v4 = vsel %vm1511_vm0, %v15545_v38, 0 }
 0x449   : > { %v10227_v29 = vpop.eup %10226  ;;  %3010 = vrot.lane.b32.xlu0 %v15531_v20, %s10847_s2 }
 0x44a   : > { %3016 = vrot.lane.b32.xlu1 %v15532_v36, %s10847_s2  ;;  %v2252_v42 = vmul.f32 %v10227_v29, %v12171_v43  ;;  %v10229_v3 = vpop.eup %10228  ;;  %v2264_v21 = vpack.c.bf16 %v2254_v12, %v2253_v25  ;;  %v15546_v29 = vld [vmem:[#allocation85_spill] sm:$0xff] }
 0x44b   : > { %9404 = vmatpush3.bf16.msra.mxu1 %v15530_v8  ;;  %v2255_v43 = vmul.f32 %v10229_v3, %v15536_v48 }
 0x44c   : > { %v2263_v47 = vpack.c.bf16 %v2252_v42, %v2251_v7  ;;  %9405 = vmatprep.subr.bf16.mxu1 %v15533_v1 }
 0x44d   : > { %v10231_v18 = vpop.eup %10230  ;;  %3014 = vrot.lane.b32.xlu0 %v15534_v56, %s10847_s2 }
 0x44e   : > { %v10233_v17 = vpop.eup %10232  ;;  %9357 = vmatprep.mubr.bf16.mxu1 %v2263_v47  ;;  %3020 = vrot.lane.b32.xlu1 %v15535_v26, %s10847_s2  ;;  %v2256_v5 = vmul.f32 %v10231_v18, %v15537_v60 }
 0x44f   : > { %9358 = vmatmul.mubr.bf16.gmra.mxu1 %v2264_v21  ;;  %v10235_v53 = vpop.eup %10234  ;;  %v2258_v14 = vmul.f32 %v10233_v17, %v15540_v49 }
 0x450   : > { %9406 = vmatpush3.bf16.msra.mxu1 %v15533_v1  ;;  %v2265_v11 = vpack.c.bf16 %v2256_v5, %v2255_v43  ;;  %v2257_v35 = vmul.f32 %v10235_v53, %v15541_v15 }
 0x451   : > { %9407 = vmatprep.subr.bf16.mxu1 %v15538_v52  ;;  %3018 = vrot.lane.b32.xlu0 %v15539_v28, %s10847_s2 }
 0x452   : > { %9361 = vmatprep.mubr.bf16.mxu1 %v2265_v11  ;;  %v2266_v40 = vpack.c.bf16 %v2258_v14, %v2257_v35 }
 0x454   : > { %9408 = vmatpush3.bf16.msra.mxu1 %v15538_v52 }
 0x455   : > { %9409 = vmatprep.subr.bf16.mxu1 %v15542_v10  ;;  %3022 = vrot.lane.b32.xlu0 %v15543_v37, %s10847_s2 }
 0x457   : > { %9362 = vmatmul.mubr.bf16.gmra.mxu1 %v2266_v40 }
 0x458   : > { %9410 = vmatpush3.bf16.msra.mxu1 %v15542_v10 }
 0x459   : > { %9411 = vmatprep.subr.bf16.mxu1 %v15544_v31 }
 0x45c   : > { %9412 = vmatpush3.bf16.msra.mxu1 %v15544_v31 }
 0x45d   : > { %9837 = vmatprep.subr.msk.bf16.mxu1 %vm1511_vm0, %v15545_v38 }
 0x461   : > { %v2739_v45 = vpop.xlane.xlu0 %2738 }
 0x467   : > { %v2741_v2 = vpop.xlane.xlu0 %2740 }
 0x468   : > { %10236 = vrcp.f32 %v2741_v2 }
 0x469   : > { %v2735_v23 = vpop.xlane.xlu1 %2734 }
 0x46a   : > { %10238 = vrcp.f32 %v2735_v23 }
 0x46b   : > { %10240 = vrcp.f32 %v2739_v45 }
 0x46d   : > { %v3033_v7 = vpop.permute.xlu1 %3032 }
 0x46e   : > { %v3077_v18 = vsel %vm1511_vm0, %v3033_v7, 0 }
 0x46f   : > { %v2737_v9 = vpop.xlane.xlu0 %2736 }
 0x470   : > { %10242 = vrcp.f32 %v2737_v9 }
 0x473   : > { %v3031_v1 = vpop.permute.xlu0 %3030 }
 0x474   : > { %v3074_v43 = vsel %vm1511_vm0, %v3031_v1, 0 }
 0x475   : > { %v10237_v57 = vpop.eup %10236 }
 0x476   : > { %v2785_v46 = vmul.f32 %v10237_v57, %v12209_v22  ;;  %v3083_v22 = vsel %vm1511_vm0, %v15546_v29, 0 }
 0x477   : > { %v10239_v41 = vpop.eup %10238 }
 0x478   : > { %v10241_v51 = vpop.eup %10240  ;;  %v2782_v58 = vmul.f32 %v10239_v41, %v12213_v0  ;;  %v15547_v0 = vld [vmem:[#allocation86_spill] sm:$0xff] }
 0x479   : > { %v2784_v54 = vmul.f32 %v10241_v51, %v12202_v16  ;;  %v3080_v36 = vsel %vm1511_vm0, %v15547_v0, 0 }
 0x47b   : > { %v2799_v27 = vpack.c.bf16 %v2785_v46, %v2784_v54 }
 0x47d   : > { %v10243_v13 = vpop.eup %10242 }
 0x47e   : > { %v2783_v33 = vmul.f32 %v10243_v13, %v12219_v34 }
 0x480   : > { %v2798_v24 = vpack.c.bf16 %v2783_v33, %v2782_v58 }
 0x482   : > { %9413 = vmatprep.mubr.bf16.mxu1 %v2798_v24 }
 0x483   : > { %9414 = vmatmul.mubr.bf16.vlgmr.msra.gmra.mxu1 %v2799_v27 }
 0x484   : > { %9430 = vmatpush3.bf16.xpose.msra.mxu1 %v3086_v4 }
 0x485   : > { %9838 = vmatprep.subr.msk.bf16.mxu1 %vm1511_vm0, %v15546_v29 }
 0x48b   : > { %v9287_v8 = vpop.f32.mrf.mxu1 }
 0x48c   : > { %1908 = vst.msk [vmem:[#allocation3 + $0x10] sm:$0xff] %vm1511_vm0, %v9287_v8  ;;  %9432 = vmatpush3.bf16.xpose.msra.mxu1 %v3083_v22 }
 0x48d   : > { %9839 = vmatprep.subr.msk.bf16.mxu1 %vm1511_vm0, %v15547_v0  ;;  %v1843_v16 = vpop.f32.mrf.mxu1 }
 0x48e   : > { %1906 = vst.msk [vmem:[#allocation3] sm:$0xff] %vm1511_vm0, %v1843_v16 }
 0x48f   : > { %v9288_v34 = vpop.f32.mrf.mxu1 }
 0x490   : > { %1909 = vst.msk [vmem:[#allocation3 + $0x18] sm:$0xff] %vm1511_vm0, %v9288_v34 }
 0x491   : > { %v1846_v20 = vpop.f32.mrf.mxu1 }
 0x492   : > { %1907 = vst.msk [vmem:[#allocation3 + $0x8] sm:$0xff] %vm1511_vm0, %v1846_v20 }
 0x493   : > { %v9291_v12 = vpop.f32.mrf.mxu1 }
 0x494   : > { %1912 = vst.msk [vmem:[#allocation3 + $0x30] sm:$0xff] %vm1511_vm0, %v9291_v12  ;;  %9434 = vmatpush3.bf16.xpose.msra.mxu1 %v3080_v36 }
 0x495   : > { %9840 = vmatprep.subr.msk.bf16.mxu1 %vm1511_vm0, %v3033_v7  ;;  %v1859_v42 = vpop.f32.mrf.mxu1 }
 0x496   : > { %1910 = vst.msk [vmem:[#allocation3 + $0x20] sm:$0xff] %vm1511_vm0, %v1859_v42 }
 0x497   : > { %v9292_v3 = vpop.f32.mrf.mxu1 }
 0x498   : > { %1913 = vst.msk [vmem:[#allocation3 + $0x38] sm:$0xff] %vm1511_vm0, %v9292_v3 }
 0x499   : > { %v1862_v25 = vpop.f32.mrf.mxu1 }
 0x49a   : > { %1911 = vst.msk [vmem:[#allocation3 + $0x28] sm:$0xff] %vm1511_vm0, %v1862_v25 }
 0x49b   : > { %v9295_v47 = vpop.f32.mrf.mxu1 }
 0x49c   : > { %1916 = vst.msk [vmem:[#allocation3 + $0x50] sm:$0xff] %vm1511_vm0, %v9295_v47  ;;  %9436 = vmatpush3.bf16.xpose.msra.mxu1 %v3077_v18  ;;  %v15548_v47 = vld [vmem:[#allocation66_spill] sm:$0xff] }
 0x49d   : > { %9841 = vmatprep.subr.msk.bf16.mxu1 %vm1511_vm0, %v3031_v1  ;;  %v1875_v56 = vpop.f32.mrf.mxu1  ;;  %v15551_v1 = vld [vmem:[#allocation78_spill] sm:$0xff] }
 0x49e   : > { %1914 = vst.msk [vmem:[#allocation3 + $0x40] sm:$0xff] %vm1511_vm0, %v1875_v56  ;;  %v2743_v21 = vpop.xlane.xlu1 %2742 }
 0x49f   : > { %v9296_v17 = vpop.f32.mrf.mxu1 }
 0x4a0   : > { %1917 = vst.msk [vmem:[#allocation3 + $0x58] sm:$0xff] %vm1511_vm0, %v9296_v17  ;;  %v15552_v17 = vld [vmem:[#allocation62_spill] sm:$0xff] }
 0x4a1   : > { %v1878_v26 = vpop.f32.mrf.mxu1 }
 0x4a2   : > { %1915 = vst.msk [vmem:[#allocation3 + $0x48] sm:$0xff] %vm1511_vm0, %v1878_v26  ;;  %v2749_v48 = vpop.xlane.xlu1 %2748 }
 0x4a4   : > { %9438 = vmatpush3.bf16.xpose.msra.mxu1 %v3074_v43  ;;  %v2747_v60 = vpop.xlane.xlu0 %2746 }
 0x4a5   : > { %10244 = vrcp.f32 %v2747_v60  ;;  %v15554_v60 = vld [vmem:[#allocation64_spill] sm:$0xff] }
 0x4a6   : > { %v2755_v5 = vpop.xlane.xlu1 %2754  ;;  %10246 = vrcp.f32 %v2743_v21 }
 0x4a7   : > { %10248 = vrcp.f32 %v2749_v48  ;;  %v15553_v48 = vld [vmem:[#allocation63_spill] sm:$0xff] }
 0x4a8   : > { %v2745_v53 = vpop.xlane.xlu0 %2744 }
 0x4a9   : > { %10250 = vrcp.f32 %v2745_v53 }
 0x4aa   : > { %v2751_v11 = vpop.xlane.xlu1 %2750 }
 0x4ac   : > { %v9299_v52 = vpop.f32.mrf.mxu1  ;;  %v2763_v28 = vpop.xlane.xlu0 %2762 }
 0x4ad   : > { %1920 = vst.msk [vmem:[#allocation3 + $0x70] sm:$0xff] %vm1511_vm0, %v9299_v52  ;;  %v15555_v52 = vld [vmem:[#allocation59_spill] sm:$0xff] }
 0x4ae   : > { %v1891_v49 = vpop.f32.mrf.mxu1  ;;  %v2757_v14 = vpop.xlane.xlu1 %2756 }
 0x4af   : > { %1918 = vst.msk [vmem:[#allocation3 + $0x60] sm:$0xff] %vm1511_vm0, %v1891_v49  ;;  %10252 = vrcp.f32 %v2757_v14  ;;  %v15556_v49 = vld [vmem:[#allocation60_spill] sm:$0xff] }
 0x4b0   : > { %v9300_v15 = vpop.f32.mrf.mxu1  ;;  %v2759_v35 = vpop.xlane.xlu0 %2758  ;;  %10254 = vrcp.f32 %v2751_v11 }
 0x4b1   : > { %1921 = vst.msk [vmem:[#allocation3 + $0x78] sm:$0xff] %vm1511_vm0, %v9300_v15  ;;  %10256 = vrcp.f32 %v2755_v5  ;;  %v15557_v15 = vld [vmem:[#allocation61_spill] sm:$0xff] }
 0x4b2   : > { %v1894_v10 = vpop.f32.mrf.mxu1  ;;  %v2753_v37 = vpop.xlane.xlu1 %2752 }
 0x4b3   : > { %v10245_v40 = vpop.eup %10244  ;;  %1919 = vst.msk [vmem:[#allocation3 + $0x68] sm:$0xff] %vm1511_vm0, %v1894_v10  ;;  %10258 = vrcp.f32 %v2753_v37 }
 0x4b4   : > { %v10247_v31 = vpop.eup %10246  ;;  %10260 = vrcp.f32 %v2759_v35  ;;  %v2765_v45 = vpop.xlane.xlu0 %2764  ;;  %v2788_v9 = vmul.f32 %v10245_v40, %v12251_v44  ;;  %v15558_v40 = vld [vmem:[#allocation56_spill] sm:$0xff] }
 0x4b5   : > { %v10249_v38 = vpop.eup %10248  ;;  %v2786_v57 = vmul.f32 %v10247_v31, %v12243_v50 }
 0x4b6   : > { %v10251_v2 = vpop.eup %10250  ;;  %v2761_v23 = vpop.xlane.xlu1 %2760  ;;  %v2789_v51 = vmul.f32 %v10249_v38, %v12248_v39  ;;  %v15559_v38 = vld [vmem:[#allocation57_spill] sm:$0xff] }
 0x4b7   : > { %10262 = vrcp.f32 %v2761_v23  ;;  %v2787_v41 = vmul.f32 %v10251_v2, %v12257_v30  ;;  %v15560_v2 = vld [vmem:[#allocation58_spill] sm:$0xff] }
 0x4b8   : > { %10264 = vrcp.f32 %v2765_v45  ;;  %v2801_v58 = vpack.c.bf16 %v2789_v51, %v2788_v9  ;;  %v3027_v44 = vpop.permute.xlu0 %3026 }
 0x4b9   : > { %v2800_v13 = vpack.c.bf16 %v2787_v41, %v2786_v57  ;;  %10266 = vrcp.f32 %v2763_v28  ;;  %v3068_v16 = vsel %vm1511_vm0, %v3027_v44, 0 }
 0x4ba   : > { %v3029_v46 = vpop.permute.xlu1 %3028 }
 0x4bb   : > { %9417 = vmatprep.mubr.bf16.mxu1 %v2800_v13  ;;  %9842 = vmatprep.subr.msk.bf16.mxu1 %vm1511_vm0, %v3029_v46  ;;  %v3071_v33 = vsel %vm1511_vm0, %v3029_v46, 0 }
 0x4bc   : > { %9418 = vmatmul.mubr.bf16.gmra.mxu1 %v2801_v58  ;;  %v10253_v54 = vpop.eup %10252  ;;  %v3025_v12 = vpop.permute.xlu0 %3024 }
 0x4bd   : > { %9440 = vmatpush3.bf16.xpose.msra.mxu1 %v3071_v33  ;;  %v10255_v24 = vpop.eup %10254  ;;  %v2793_v39 = vmul.f32 %v10253_v54, %v12266_v55  ;;  %v3065_v42 = vsel %vm1511_vm0, %v3025_v12, 0 }
 0x4be   : > { %9843 = vmatprep.subr.msk.bf16.mxu1 %vm1511_vm0, %v3027_v44  ;;  %v10257_v50 = vpop.eup %10256  ;;  %v2790_v27 = vmul.f32 %v10255_v24, %v12260_v59  ;;  %v3009_v25 = vpop.permute.xlu1 %3008 }
 0x4bf   : > { %v2792_v8 = vmul.f32 %v10257_v50, %v12254_v19 }
 0x4c0   : > { %v10259_v30 = vpop.eup %10258 }
 0x4c1   : > { %v2791_v4 = vmul.f32 %v10259_v30, %v12272_v63  ;;  %v10261_v29 = vpop.eup %10260  ;;  %v2803_v34 = vpack.c.bf16 %v2793_v39, %v2792_v8 }
 0x4c2   : > { %v2794_v36 = vmul.f32 %v10261_v29, %v12269_v6  ;;  %v15549_v6 = vld [vmem:[#allocation46_spill] sm:$0xff] }
 0x4c3   : > { %v2802_v22 = vpack.c.bf16 %v2791_v4, %v2790_v27  ;;  %v1445_v56 = vadd.f32 %v15551_v1, %v15549_v6  ;;  %v1426_v26 = vadd.f32 %v15552_v17, %v15549_v6  ;;  %v1429_v43 = vadd.f32 %v15553_v48, %v15549_v6  ;;  %v15590_v48 = vld [vmem:[#allocation53_spill] sm:$0xff] }
 0x4c4   : > { %v10263_v0 = vpop.eup %10262  ;;  %v1410_v28 = vadd.f32 %v15555_v52, %v15549_v6  ;;  %v1413_v14 = vadd.f32 %v15556_v49, %v15549_v6  ;;  %v1394_v31 = vadd.f32 %v15558_v40, %v15549_v6  ;;  %v1397_v45 = vadd.f32 %v15559_v38, %v15549_v6 }
 0x4c5   : > { %v10265_v20 = vpop.eup %10264  ;;  %9442 = vmatpush3.bf16.xpose.msra.mxu1 %v3068_v16  ;;  %9421 = vmatprep.mubr.bf16.mxu1 %v2802_v22  ;;  %v2795_v55 = vmul.f32 %v10263_v0, %v12278_v32  ;;  %v15550_v32 = vld [vmem:[#allocation65_spill] sm:$0xff]  ;;  %v12406_v53 = vpack.c.bf16 %v1429_v43, %v1426_v26  ;;  %v15591_v43 = vld [vmem:[#allocation48_spill] sm:$0xff] }
 0x4c6   : > { %9844 = vmatprep.subr.msk.bf16.mxu1 %vm1511_vm0, %v3025_v12  ;;  %9422 = vmatmul.mubr.bf16.gmra.mxu1 %v2803_v34  ;;  %v10267_v59 = vpop.eup %10266  ;;  %v2797_v19 = vmul.f32 %v10265_v20, %v12275_v61  ;;  %v1442_v18 = vadd.f32 %v15550_v32, %v15549_v6  ;;  %v3011_v61 = vpop.permute.xlu0 %3010  ;;  %v12418_v10 = vpack.c.bf16 %v1413_v14, %v1410_v28  ;;  %v10716_v32 = vld [vmem:[%s15488_s3] ss:$0 sm:$0xff] }
 0x4c7   : > { %v2804_v63 = vpack.c.bf16 %v2795_v55, %v2794_v36  ;;  %v2796_v7 = vmul.f32 %v10267_v59, %v12263_v62  ;;  %v3013_v62 = vpop.permute.xlu1 %3012  ;;  %v12430_v9 = vpack.c.bf16 %v1397_v45, %v1394_v31 }
 0x4c8   : > { %v12394_v21 = vpack.c.bf16 %v1445_v56, %v1442_v18 }
 0x4c9   : > { %9425 = vmatprep.mubr.bf16.mxu1 %v2804_v63  ;;  %v2805_v3 = vpack.c.bf16 %v2797_v19, %v2796_v7 }
 0x4ca   : > { %v3015_v5 = vpop.permute.xlu0 %3014 }
 0x4cb   : > { %v3017_v11 = vpop.permute.xlu1 %3016 }
 0x4cd   : > { %9444 = vmatpush3.bf16.xpose.msra.mxu1 %v3065_v42 }
 0x4ce   : > { %9525 = vmatprep.subr.bf16.mxu1 %v15548_v47  ;;  %9426 = vmatmul.mubr.bf16.gmra.mxu1 %v2805_v3  ;;  %v3019_v35 = vpop.permute.xlu0 %3018 }
 0x4cf   : > { %9445 = vmatprep.mubr.msk.bf16.mxu1 %vm1511_vm0, %v3009_v25  ;;  %v3021_v37 = vpop.permute.xlu1 %3020 }
 0x4d2   : > { %v3023_v23 = vpop.permute.xlu0 %3022 }
 0x4d6   : > { %9446 = vmatmul.mubr.msk.bf16.vlgmr.msra.gmra.mxu1 %vm1511_vm0, %v3011_v61 }
 0x4d7   : > { %9526 = vmatpush3.bf16.msra.mxu1 %v15548_v47  ;;  %9449 = vmatprep.mubr.msk.bf16.mxu1 %vm1511_vm0, %v3013_v62 }
 0x4d8   : > { %9527 = vmatprep.subr.bf16.mxu1 %v12394_v21 }
 0x4db   : > { %9528 = vmatpush3.bf16.msra.mxu1 %v12394_v21 }
 0x4dc   : > { %9529 = vmatprep.subr.bf16.mxu1 %v15554_v60 }
 0x4de   : > { %9450 = vmatmul.mubr.msk.bf16.gmra.mxu1 %vm1511_vm0, %v3015_v5 }
 0x4df   : > { %9530 = vmatpush3.bf16.msra.mxu1 %v15554_v60  ;;  %9453 = vmatprep.mubr.msk.bf16.mxu1 %vm1511_vm0, %v3017_v11 }
 0x4e0   : > { %9531 = vmatprep.subr.bf16.mxu1 %v12406_v53 }
 0x4e3   : > { %9532 = vmatpush3.bf16.msra.mxu1 %v12406_v53 }
 0x4e4   : > { %9533 = vmatprep.subr.bf16.mxu1 %v15557_v15 }
 0x4e6   : > { %9454 = vmatmul.mubr.msk.bf16.gmra.mxu1 %vm1511_vm0, %v3019_v35 }
 0x4e7   : > { %9534 = vmatpush3.bf16.msra.mxu1 %v15557_v15  ;;  %9457 = vmatprep.mubr.msk.bf16.mxu1 %vm1511_vm0, %v3021_v37 }
 0x4e8   : > { %9535 = vmatprep.subr.bf16.mxu1 %v12418_v10 }
 0x4eb   : > { %9536 = vmatpush3.bf16.msra.mxu1 %v12418_v10 }
 0x4ec   : > { %9537 = vmatprep.subr.bf16.mxu1 %v15560_v2 }
 0x4ee   : > { %9458 = vmatmul.mubr.msk.bf16.gmra.mxu1 %vm1511_vm0, %v3023_v23 }
 0x4ef   : > { %9538 = vmatpush3.bf16.msra.mxu1 %v15560_v2 }
 0x4f0   : > { %9539 = vmatprep.subr.bf16.mxu1 %v12430_v9 }
 0x4f3   : > { %9540 = vmatpush3.bf16.msra.mxu1 %v12430_v9 }
 0x4fe   : > { %v12436_v57 = vpop.f32.mrf.mxu1 }
 0x500   : > { %v12438_v41 = vpop.f32.mrf.mxu1 }
 0x502   : > { %v12440_v51 = vpop.f32.mrf.mxu1 }
 0x503   : > { %15561 = vst [vmem:[#allocation90_spill] sm:$0xff] %v12440_v51 }
 0x504   : > { %v12442_v13 = vpop.f32.mrf.mxu1 }
 0x506   : > { %v12444_v46 = vpop.f32.mrf.mxu1 }
 0x507   : > { %15562 = vst [vmem:[#allocation91_spill] sm:$0xff] %v12444_v46 }
 0x508   : > { %v12446_v58 = vpop.f32.mrf.mxu1 }
 0x509   : > { %15563 = vst [vmem:[#allocation92_spill] sm:$0xff] %v12446_v58 }
 0x50a   : > { %v12448_v33 = vpop.f32.mrf.mxu1 }
 0x50b   : > { %15564 = vst [vmem:[#allocation94_spill] sm:$0xff] %v12448_v33 }
 0x50c   : > { %v12450_v54 = vpop.f32.mrf.mxu1 }
 0x50d   : > { %15565 = vst [vmem:[#allocation93_spill] sm:$0xff] %v12450_v54 }
 0x50f   : > { %v12452_v44 = vpop.f32.mrf.mxu1 }
 0x510   : > { %15566 = vst [vmem:[#allocation96_spill] sm:$0xff] %v12452_v44 }
 0x511   : > { %v12454_v24 = vpop.f32.mrf.mxu1 }
 0x512   : > { %15567 = vst [vmem:[#allocation95_spill] sm:$0xff] %v12454_v24 }
 0x513   : > { %v12456_v50 = vpop.f32.mrf.mxu1 }
 0x514   : > { %15568 = vst [vmem:[#allocation97_spill] sm:$0xff] %v12456_v50 }
 0x515   : > { %v12458_v30 = vpop.f32.mrf.mxu1 }
 0x516   : > { %15569 = vst [vmem:[#allocation98_spill] sm:$0xff] %v12458_v30 }
 0x517   : > { %v12460_v39 = vpop.f32.mrf.mxu1 }
 0x518   : > { %15570 = vst [vmem:[#allocation39_spill] sm:$0xff] %v12460_v39 }
 0x519   : > { %v12462_v27 = vpop.f32.mrf.mxu1 }
 0x51a   : > { %15571 = vst [vmem:[#allocation88_spill] sm:$0xff] %v12462_v27 }
 0x51b   : > { %v12464_v4 = vpop.f32.mrf.mxu1 }
 0x51c   : > { %15572 = vst [vmem:[#allocation41_spill] sm:$0xff] %v12464_v4 }
 0x51d   : > { %v12466_v29 = vpop.f32.mrf.mxu1 }
 0x51e   : > { %15573 = vst [vmem:[#allocation25_spill] sm:$0xff] %v12466_v29 }
 0x543   : > { %v12468_v8 = vpop.f32.mrf.mxu1 }
 0x544   : > { %15574 = vst [vmem:[#allocation79_spill] sm:$0xff] %v12468_v8 }
 0x545   : > { %v12470_v22 = vpop.f32.mrf.mxu1 }
 0x546   : > { %15575 = vst [vmem:[#allocation40_spill] sm:$0xff] %v12470_v22 }
 0x547   : > { %v12472_v0 = vpop.f32.mrf.mxu1 }
 0x548   : > { %15576 = vst [vmem:[#allocation42_spill] sm:$0xff] %v12472_v0 }
 0x549   : > { %v12474_v16 = vpop.f32.mrf.mxu1 }
 0x54a   : > { %15577 = vst [vmem:[#allocation87_spill] sm:$0xff] %v12474_v16 }
 0x57c   : > { %v12476_v34 = vpop.f32.mrf.mxu1 }
 0x57d   : > { %15578 = vst [vmem:[#allocation29_spill] sm:$0xff] %v12476_v34 }
 0x57e   : > { %v12478_v20 = vpop.f32.mrf.mxu1 }
 0x57f   : > { %15579 = vst [vmem:[#allocation45_spill] sm:$0xff] %v12478_v20 }
 0x580   : > { %v12480_v12 = vpop.f32.mrf.mxu1 }
 0x581   : > { %15580 = vst [vmem:[#allocation80_spill] sm:$0xff] %v12480_v12 }
 0x582   : > { %v12482_v36 = vpop.f32.mrf.mxu1 }
 0x583   : > { %15581 = vst [vmem:[#allocation35_spill] sm:$0xff] %v12482_v36 }
 0x586   : > { %v12484_v55 = vpop.f32.mrf.mxu1 }
 0x587   : > { %15582 = vst [vmem:[#allocation44_spill] sm:$0xff] %v12484_v55  ;;  %v12768_v55 = vld [vmem:[%s15488_s3 + $0x1] ss:$0 sm:$0xff] }
 0x588   : > { %v12486_v59 = vpop.f32.mrf.mxu1 }
 0x589   : > { %15583 = vst [vmem:[#allocation100_spill] sm:$0xff] %v12486_v59 }
 0x58a   : > { %v12488_v63 = vpop.f32.mrf.mxu1 }
 0x58b   : > { %15584 = vst [vmem:[#allocation102_spill] sm:$0xff] %v12488_v63 }
 0x58c   : > { %v12490_v19 = vpop.f32.mrf.mxu1 }
 0x58d   : > { %15585 = vst [vmem:[#allocation81_spill] sm:$0xff] %v12490_v19 }
 0x58e   : > { %v12492_v7 = vpop.f32.mrf.mxu1 }
 0x58f   : > { %15586 = vst [vmem:[#allocation43_spill] sm:$0xff] %v12492_v7 }
 0x590   : > { %v12494_v42 = vpop.f32.mrf.mxu1 }
 0x591   : > { %15587 = vst [vmem:[#allocation101_spill] sm:$0xff] %v12494_v42 }
 0x592   : > { %v12496_v3 = vpop.f32.mrf.mxu1 }
 0x593   : > { %15588 = vst [vmem:[#allocation99_spill] sm:$0xff] %v12496_v3 }
 0x594   : > { %v12498_v25 = vpop.f32.mrf.mxu1 }
 0x595   : > { %15589 = vst [vmem:[#allocation82_spill] sm:$0xff] %v12498_v25 }
 0x596   : > { %v9447_v6 = vpop.f32.mrf.mxu1 }
 0x597   : > { %v3131_v18 = vadd.f32 %v10716_v32, %v9447_v6 }
 0x598   : > { %v3122_v1 = vpop.f32.mrf.mxu1 }
 0x599   : > { %v3123_v56 = vadd.f32 %v10716_v32, %v3122_v1  ;;  %3189 = vmax.xlane.f32.xlu0 %v3131_v18 }
 0x59a   : > { %v9448_v61 = vpop.f32.mrf.mxu1 }
 0x59b   : > { %3185 = vmax.xlane.f32.xlu1 %v3123_v56  ;;  %v3134_v17 = vadd.f32 %v10716_v32, %v9448_v61 }
 0x59c   : > { %v3125_v62 = vpop.f32.mrf.mxu1 }
 0x59d   : > { %v12501_v26 = vadd.f32 %v10716_v32, %v3125_v62 }
 0x59e   : > { %v9451_v5 = vpop.f32.mrf.mxu1 }
 0x59f   : > { %3187 = vmax.xlane.f32.xlu0 %v12501_v26  ;;  %3191 = vmax.xlane.f32.xlu1 %v3134_v17  ;;  %v12508_v37 = vadd.f32 %v10716_v32, %v9451_v5 }
 0x5a0   : > { %v3138_v11 = vpop.f32.mrf.mxu1 }
 0x5a1   : > { %v12514_v38 = vadd.f32 %v10716_v32, %v3138_v11 }
 0x5a2   : > { %v9452_v52 = vpop.f32.mrf.mxu1 }
 0x5a3   : > { %v12510_v40 = vadd.f32 %v10716_v32, %v9452_v52 }
 0x5a4   : > { %v3141_v28 = vpop.f32.mrf.mxu1 }
 0x5a5   : > { %v12516_v45 = vadd.f32 %v10716_v32, %v3141_v28 }
 0x5a6   : > { %v9455_v49 = vpop.f32.mrf.mxu1 }
 0x5a7   : > { %v12520_v6 = vadd.f32 %v10716_v32, %v9455_v49 }
 0x5a8   : > { %v3154_v14 = vpop.f32.mrf.mxu1 }
 0x5a9   : > { %v12526_v62 = vadd.f32 %v10716_v32, %v3154_v14  ;;  %v15592_v14 = vld [vmem:[#allocation52_spill] sm:$0xff] }
 0x5aa   : > { %v9456_v35 = vpop.f32.mrf.mxu1 }
 0x5ab   : > { %v12522_v1 = vadd.f32 %v10716_v32, %v9456_v35  ;;  %v15593_v35 = vld [vmem:[#allocation49_spill] sm:$0xff] }
 0x5ac   : > { %v3157_v31 = vpop.f32.mrf.mxu1 }
 0x5ae   : > { %v9459_v23 = vpop.f32.mrf.mxu1 }
 0x5af   : > { %v12532_v5 = vadd.f32 %v10716_v32, %v9459_v23  ;;  %v15595_v23 = vld [vmem:[#allocation54_spill] sm:$0xff] }
 0x5b0   : > { %3349 = vrot.lane.b32.xlu1 %v15590_v48, %s10847_s2  ;;  %v3170_v61 = vpop.f32.mrf.mxu1  ;;  %v12528_v48 = vadd.f32 %v10716_v32, %v3157_v31  ;;  %v15594_v31 = vld [vmem:[#allocation50_spill] sm:$0xff] }
 0x5b1   : > { %v12538_v28 = vadd.f32 %v10716_v32, %v3170_v61  ;;  %v15596_v61 = vld [vmem:[#allocation51_spill] sm:$0xff] }
 0x5b5   : > { %3351 = vrot.lane.b32.xlu0 %v15591_v43, %s10847_s2  ;;  %v9460_v43 = vpop.f32.mrf.mxu1 }
 0x5b6   : > { %v12534_v11 = vadd.f32 %v10716_v32, %v9460_v43 }
 0x5b7   : > { %v3173_v52 = vpop.f32.mrf.mxu1 }
 0x5b8   : > { %v12540_v49 = vadd.f32 %v10716_v32, %v3173_v52 }
 0x5d4   : > { %3197 = vmax.xlane.f32.xlu0 %v12508_v37  ;;  %3199 = vmax.xlane.f32.xlu1 %v12510_v40 }
 0x5d8   : > { %3195 = vmax.xlane.f32.xlu1 %v12516_v45  ;;  %3193 = vmax.xlane.f32.xlu0 %v12514_v38 }
 0x5dc   : > { %3205 = vmax.xlane.f32.xlu0 %v12520_v6  ;;  %3207 = vmax.xlane.f32.xlu1 %v12522_v1 }
 0x5e0   : > { %3203 = vmax.xlane.f32.xlu1 %v12528_v48  ;;  %3201 = vmax.xlane.f32.xlu0 %v12526_v62 }
 0x5e4   : > { %3213 = vmax.xlane.f32.xlu0 %v12532_v5  ;;  %3215 = vmax.xlane.f32.xlu1 %v12534_v11 }
 0x5e8   : > { %3211 = vmax.xlane.f32.xlu1 %v12540_v49  ;;  %3209 = vmax.xlane.f32.xlu0 %v12538_v28 }
 0x5fe   : > { %3347 = vrot.lane.b32.xlu0 %v15592_v14, %s10847_s2 }
 0x602   : > { %3345 = vrot.lane.b32.xlu0 %v15593_v35, %s10847_s2 }
 0x606   : > { %3343 = vrot.lane.b32.xlu0 %v15594_v31, %s10847_s2 }
 0x60a   : > { %3341 = vrot.lane.b32.xlu0 %v15595_v23, %s10847_s2 }
 0x60e   : > { %3337 = vrot.lane.b32.xlu0 %v15596_v61, %s10847_s2 }
 0x622   : > { %v3190_v32 = vpop.xlane.xlu0 %3189 }
 0x623   : > { %v3219_v43 = vsub.f32 %v3131_v18, %v3190_v32 }
 0x624   : > { %v3186_v52 = vpop.xlane.xlu1 %3185 }
 0x625   : > { %v3237_v3 = vmul.f32 1.442695, %v3219_v43  ;;  %v3217_v7 = vsub.f32 %v3123_v56, %v3186_v52 }
 0x627   : > { %10268 = vpow2.f32 %v3237_v3  ;;  %v3233_v25 = vmul.f32 1.442695, %v3217_v7 }
 0x628   : > { %v3192_v14 = vpop.xlane.xlu1 %3191  ;;  %v3188_v42 = vpop.xlane.xlu0 %3187 }
 0x629   : > { %v3220_v4 = vsub.f32 %v3134_v17, %v3192_v14  ;;  %10270 = vpow2.f32 %v3233_v25  ;;  %v3218_v31 = vsub.f32 %v12501_v26, %v3188_v42 }
 0x62b   : > { %v3239_v35 = vmul.f32 1.442695, %v3220_v4  ;;  %v3235_v61 = vmul.f32 1.442695, %v3218_v31 }
 0x62c   : > { %v3352_v39 = vpop.permute.xlu0 %3351  ;;  %v3350_v23 = vpop.permute.xlu1 %3349 }
 0x62d   : > { %9461 = vmatprep.subr.bf16.mxu0 %v3352_v39  ;;  %10272 = vpow2.f32 %v3239_v35 }
 0x62e   : > { %9462 = vmatpush3.bf16.msra.mxu0 %v3352_v39  ;;  %10274 = vpow2.f32 %v3235_v61  ;;  %v15597_v39 = vld [vmem:[#allocation55_spill] sm:$0xff] }
 0x62f   : > { %9463 = vmatprep.subr.bf16.mxu0 %v3350_v23 }
 0x632   : > { %9464 = vmatpush3.bf16.msra.mxu0 %v3350_v23 }
 0x634   : > { %v12555_v18 = vpop.eup %10268 }
 0x635   : > { %3269 = vadd.xlane.f32.xlu1 %v12555_v18 }
 0x636   : > { %v12558_v7 = vpop.eup %10270 }
 0x639   : > { %3265 = vadd.xlane.f32.xlu1 %v12558_v7 }
 0x63a   : > { %v12561_v4 = vpop.eup %10272 }
 0x63b   : > { %v12564_v42 = vpop.eup %10274 }
 0x63d   : > { %3271 = vadd.xlane.f32.xlu1 %v12561_v4 }
 0x641   : > { %3267 = vadd.xlane.f32.xlu1 %v12564_v42 }
 0x652   : > { %3339 = vrot.lane.b32.xlu1 %v15597_v39, %s10847_s2 }
 0x65d   : > { %v3200_v3 = vpop.xlane.xlu1 %3199  ;;  %v3198_v25 = vpop.xlane.xlu0 %3197 }
 0x65e   : > { %v3223_v26 = vsub.f32 %v12508_v37, %v3198_v25  ;;  %v3224_v52 = vsub.f32 %v12510_v40, %v3200_v3 }
 0x660   : > { %v3245_v61 = vmul.f32 1.442695, %v3223_v26  ;;  %v3247_v29 = vmul.f32 1.442695, %v3224_v52 }
 0x661   : > { %v3196_v56 = vpop.xlane.xlu1 %3195  ;;  %v3194_v17 = vpop.xlane.xlu0 %3193 }
 0x662   : > { %v3222_v32 = vsub.f32 %v12516_v45, %v3196_v56  ;;  %v3221_v43 = vsub.f32 %v12514_v38, %v3194_v17 }
 0x664   : > { %v3243_v14 = vmul.f32 1.442695, %v3222_v32  ;;  %v3241_v35 = vmul.f32 1.442695, %v3221_v43 }
 0x665   : > { %v3208_v31 = vpop.xlane.xlu1 %3207  ;;  %v3206_v23 = vpop.xlane.xlu0 %3205 }
 0x666   : > { %10276 = vpow2.f32 %v3243_v14  ;;  %v3227_v45 = vsub.f32 %v12520_v6, %v3206_v23  ;;  %v3228_v40 = vsub.f32 %v12522_v1, %v3208_v31 }
 0x667   : > { %10278 = vpow2.f32 %v3241_v35 }
 0x668   : > { %10280 = vpow2.f32 %v3245_v61  ;;  %v3253_v17 = vmul.f32 1.442695, %v3227_v45  ;;  %v3255_v26 = vmul.f32 1.442695, %v3228_v40 }
 0x669   : > { %v3204_v39 = vpop.xlane.xlu1 %3203  ;;  %v3202_v27 = vpop.xlane.xlu0 %3201  ;;  %10282 = vpow2.f32 %v3247_v29 }
 0x66a   : > { %v3226_v63 = vsub.f32 %v12528_v48, %v3204_v39  ;;  %v3225_v37 = vsub.f32 %v12526_v62, %v3202_v27 }
 0x66c   : > { %v3251_v38 = vmul.f32 1.442695, %v3226_v63  ;;  %v3249_v3 = vmul.f32 1.442695, %v3225_v37 }
 0x66d   : > { %v3216_v25 = vpop.xlane.xlu1 %3215  ;;  %v3214_v56 = vpop.xlane.xlu0 %3213 }
 0x66e   : > { %10284 = vpow2.f32 %v3249_v3  ;;  %v3231_v29 = vsub.f32 %v12532_v5, %v3214_v56  ;;  %v3232_v63 = vsub.f32 %v12534_v11, %v3216_v25  ;;  %v15598_v56 = vld [vmem:[#allocation37_spill] sm:$0xff] }
 0x66f   : > { %10286 = vpow2.f32 %v3251_v38 }
 0x670   : > { %10288 = vpow2.f32 %v3253_v17  ;;  %v3263_v35 = vmul.f32 1.442695, %v3232_v63  ;;  %v15599_v17 = vld [vmem:[#allocation34_spill] sm:$0xff] }
 0x671   : > { %v3212_v32 = vpop.xlane.xlu1 %3211  ;;  %v3210_v43 = vpop.xlane.xlu0 %3209  ;;  %10290 = vpow2.f32 %v3255_v26  ;;  %v1289_v26 = vadd.f32 %v15599_v17, %v15598_v56 }
 0x672   : > { %v3230_v52 = vsub.f32 %v12540_v49, %v3212_v32  ;;  %v3229_v48 = vsub.f32 %v12538_v28, %v3210_v43  ;;  %v3261_v28 = vmul.f32 1.442695, %v3231_v29  ;;  %v15600_v32 = vld [vmem:[#allocation38_spill] sm:$0xff] }
 0x673   : > { %v12579_v27 = vpop.eup %10276  ;;  %v1293_v43 = vadd.f32 %v15600_v32, %v15598_v56  ;;  %v15601_v32 = vld [vmem:[#allocation31_spill] sm:$0xff] }
 0x674   : > { %v3259_v6 = vmul.f32 1.442695, %v3230_v52  ;;  %v3257_v1 = vmul.f32 1.442695, %v3229_v48  ;;  %3275 = vadd.xlane.f32.xlu0 %v12579_v27  ;;  %v12584_v62 = vpop.eup %10278 }
 0x675   : > { %v3348_v14 = vpop.permute.xlu0 %3347  ;;  %v12587_v49 = vpop.eup %10280  ;;  %v12621_v52 = vpack.c.bf16 %v1293_v43, %v1289_v26  ;;  %v1279_v43 = vadd.f32 %v15601_v32, %v15598_v56 }
 0x676   : > { %3273 = vadd.xlane.f32.xlu1 %v12584_v62  ;;  %9465 = vmatprep.subr.bf16.mxu0 %v3348_v14  ;;  %10292 = vpow2.f32 %v3257_v1  ;;  %v12590_v5 = vpop.eup %10282 }
 0x677   : > { %9466 = vmatpush3.bf16.msra.mxu0 %v3348_v14  ;;  %10294 = vpow2.f32 %v3259_v6 }
 0x678   : > { %3277 = vadd.xlane.f32.xlu0 %v12587_v49  ;;  %10296 = vpow2.f32 %v3261_v28 }
 0x679   : > { %v3346_v11 = vpop.permute.xlu0 %3345  ;;  %10298 = vpow2.f32 %v3263_v35 }
 0x67a   : > { %3279 = vadd.xlane.f32.xlu1 %v12590_v5  ;;  %9467 = vmatprep.subr.bf16.mxu0 %v3346_v11 }
 0x67b   : > { %9468 = vmatpush3.bf16.msra.mxu0 %v3346_v11  ;;  %v12593_v31 = vpop.eup %10284 }
 0x67c   : > { %v12595_v23 = vpop.eup %10286  ;;  %3281 = vadd.xlane.f32.xlu0 %v12593_v31 }
 0x67d   : > { %v3344_v61 = vpop.permute.xlu0 %3343  ;;  %v12599_v39 = vpop.eup %10288 }
 0x67e   : > { %3283 = vadd.xlane.f32.xlu1 %v12595_v23  ;;  %9469 = vmatprep.subr.bf16.mxu0 %v3344_v61  ;;  %v12601_v37 = vpop.eup %10290 }
 0x67f   : > { %9470 = vmatpush3.bf16.msra.mxu0 %v3344_v61 }
 0x680   : > { %3285 = vadd.xlane.f32.xlu0 %v12599_v39 }
 0x681   : > { %v3342_v45 = vpop.permute.xlu0 %3341 }
 0x682   : > { %3287 = vadd.xlane.f32.xlu1 %v12601_v37  ;;  %9471 = vmatprep.subr.bf16.mxu0 %v3342_v45 }
 0x683   : > { %9472 = vmatpush3.bf16.msra.mxu0 %v3342_v45  ;;  %v12605_v40 = vpop.eup %10292 }
 0x684   : > { %v12607_v38 = vpop.eup %10294  ;;  %3289 = vadd.xlane.f32.xlu0 %v12605_v40 }
 0x685   : > { %v12611_v3 = vpop.eup %10296  ;;  %v3338_v14 = vpop.permute.xlu0 %3337 }
 0x686   : > { %3291 = vadd.xlane.f32.xlu1 %v12607_v38  ;;  %v12613_v25 = vpop.eup %10298 }
 0x688   : > { %3293 = vadd.xlane.f32.xlu0 %v12611_v3 }
 0x68a   : > { %3295 = vadd.xlane.f32.xlu1 %v12613_v25 }
 0x69e   : > { %4003 = vrot.lane.b32.xlu0 %v12621_v52, %s10845_s1 }
 0x6be   : > { %v3270_v48 = vpop.xlane.xlu1 %3269 }
 0x6c2   : > { %v3266_v29 = vpop.xlane.xlu1 %3265 }
 0x6c6   : > { %v3272_v63 = vpop.xlane.xlu1 %3271 }
 0x6c7   : > { %10300 = vrcp.f32 %v3272_v63 }
 0x6c8   : > { %10302 = vrcp.f32 %v3266_v29 }
 0x6c9   : > { %10304 = vrcp.f32 %v3270_v48  ;;  %v15602_v48 = vld [vmem:[#allocation32_spill] sm:$0xff] }
 0x6ca   : > { %v3268_v6 = vpop.xlane.xlu1 %3267  ;;  %v1283_v29 = vadd.f32 %v15602_v48, %v15598_v56  ;;  %v15607_v48 = vld [vmem:[#allocation76_spill] sm:$0xff] }
 0x6cb   : > { %10306 = vrcp.f32 %v3268_v6 }
 0x6ce   : > { %v3340_v1 = vpop.permute.xlu1 %3339 }
 0x6cf   : > { %9473 = vmatprep.subr.bf16.mxu0 %v3340_v1 }
 0x6d0   : > { %9474 = vmatpush3.bf16.msra.mxu0 %v3340_v1 }
 0x6d1   : > { %9475 = vmatprep.subr.bf16.mxu0 %v3338_v14 }
 0x6d4   : > { %9476 = vmatpush3.bf16.msra.mxu0 %v3338_v14  ;;  %v10301_v28 = vpop.eup %10300  ;;  %v12635_v14 = vpack.c.bf16 %v1283_v29, %v1279_v43  ;;  %v1249_v29 = vadd.f32 %v15607_v48, %v15598_v56 }
 0x6d5   : > { %9845 = vmatprep.subr.msk.bf16.mxu0 %vm1511_vm0, %v12621_v52  ;;  %v10303_v35 = vpop.eup %10302  ;;  %v3316_v45 = vmul.f32 %v10301_v28, %v12561_v4  ;;  %v3593_v4 = vsel %vm1511_vm0, %v12621_v52, 0  ;;  %v15604_v28 = vld [vmem:[#allocation28_spill] sm:$0xff] }
 0x6d6   : > { %v10305_v11 = vpop.eup %10304  ;;  %v3313_v17 = vmul.f32 %v10303_v35, %v12558_v7  ;;  %v15603_v7 = vld [vmem:[#allocation27_spill] sm:$0xff]  ;;  %v1273_v35 = vadd.f32 %v15604_v28, %v15598_v56  ;;  %v15610_v28 = vld [vmem:[#allocation74_spill] sm:$0xff] }
 0x6d7   : > { %v3315_v63 = vmul.f32 %v10305_v11, %v12555_v18  ;;  %v3590_v11 = vsel %vm1511_vm0, %v12635_v14, 0 }
 0x6d8   : > { %v10307_v61 = vpop.eup %10306 }
 0x6d9   : > { %v3314_v26 = vmul.f32 %v10307_v61, %v12564_v42  ;;  %v3330_v1 = vpack.c.bf16 %v3316_v45, %v3315_v63  ;;  %v1269_v42 = vadd.f32 %v15603_v7, %v15598_v56  ;;  %v15605_v61 = vld [vmem:[#allocation23_spill] sm:$0xff]  ;;  %v15609_v7 = vld [vmem:[#allocation73_spill] sm:$0xff] }
 0x6da   : > { %v1259_v45 = vadd.f32 %v15605_v61, %v15598_v56  ;;  %v15608_v63 = vld [vmem:[#allocation83_spill] sm:$0xff] }
 0x6db   : > { %v3329_v6 = vpack.c.bf16 %v3314_v26, %v3313_v17  ;;  %v12645_v18 = vpack.c.bf16 %v1273_v35, %v1269_v42  ;;  %v15606_v17 = vld [vmem:[#allocation24_spill] sm:$0xff]  ;;  %v1239_v42 = vadd.f32 %v15609_v7, %v15598_v56  ;;  %v1243_v35 = vadd.f32 %v15610_v28, %v15598_v56 }
 0x6dc   : > { %v1263_v26 = vadd.f32 %v15606_v17, %v15598_v56 }
 0x6dd   : > { %9477 = vmatprep.mubr.bf16.mxu0 %v3329_v6  ;;  %v3587_v43 = vsel %vm1511_vm0, %v12645_v18, 0  ;;  %v1253_v6 = vadd.f32 %v15608_v63, %v15598_v56  ;;  %v12675_v61 = vpack.c.bf16 %v1243_v35, %v1239_v42  ;;  %v15613_v35 = vld [vmem:[#allocation67_spill] sm:$0xff] }
 0x6de   : > { %9478 = vmatmul.mubr.bf16.vlgmr.msra.gmra.mxu0 %v3330_v1  ;;  %v12655_v32 = vpack.c.bf16 %v1263_v26, %v1259_v45 }
 0x6df   : > { %9494 = vmatpush3.bf16.xpose.msra.mxu0 %v3593_v4  ;;  %v12665_v1 = vpack.c.bf16 %v1253_v6, %v1249_v29  ;;  %v15612_v29 = vld [vmem:[#allocation71_spill] sm:$0xff]  ;;  %v3578_v42 = vsel %vm1511_vm0, %v12675_v61, 0 }
 0x6e0   : > { %9846 = vmatprep.subr.msk.bf16.mxu0 %vm1511_vm0, %v12635_v14  ;;  %v3584_v4 = vsel %vm1511_vm0, %v12655_v32, 0  ;;  %v1233_v63 = vadd.f32 %v15612_v29, %v15598_v56 }
 0x6e1   : > { %v3581_v45 = vsel %vm1511_vm0, %v12665_v1, 0 }
 0x6e7   : > { %9496 = vmatpush3.bf16.xpose.msra.mxu0 %v3590_v11 }
 0x6e8   : > { %9847 = vmatprep.subr.msk.bf16.mxu0 %vm1511_vm0, %v12645_v18 }
 0x6ef   : > { %9498 = vmatpush3.bf16.xpose.msra.mxu0 %v3587_v43  ;;  %v15611_v43 = vld [vmem:[#allocation70_spill] sm:$0xff] }
 0x6f0   : > { %9848 = vmatprep.subr.msk.bf16.mxu0 %vm1511_vm0, %v12655_v32  ;;  %v1229_v48 = vadd.f32 %v15611_v43, %v15598_v56 }
 0x6f7   : > { %9500 = vmatpush3.bf16.xpose.msra.mxu0 %v3584_v4  ;;  %v12685_v4 = vpack.c.bf16 %v1233_v63, %v1229_v48 }
 0x6f8   : > { %9849 = vmatprep.subr.msk.bf16.mxu0 %vm1511_vm0, %v12665_v1 }
 0x6fd   : > { %v3276_v11 = vpop.xlane.xlu0 %3275 }
 0x6fe   : > { %10308 = vrcp.f32 %v3276_v11  ;;  %v1219_v11 = vadd.f32 %v15613_v35, %v15598_v56 }
 0x6ff   : > { %9502 = vmatpush3.bf16.xpose.msra.mxu0 %v3581_v45  ;;  %v3274_v17 = vpop.xlane.xlu1 %3273  ;;  %v15614_v45 = vld [vmem:[#allocation68_spill] sm:$0xff] }
 0x700   : > { %10310 = vrcp.f32 %v3274_v17  ;;  %9850 = vmatprep.subr.msk.bf16.mxu0 %vm1511_vm0, %v12675_v61  ;;  %v1223_v17 = vadd.f32 %v15614_v45, %v15598_v56 }
 0x701   : > { %v3278_v26 = vpop.xlane.xlu0 %3277 }
 0x702   : > { %10312 = vrcp.f32 %v3278_v26  ;;  %v12695_v63 = vpack.c.bf16 %v1223_v17, %v1219_v11 }
 0x703   : > { %v3280_v6 = vpop.xlane.xlu1 %3279 }
 0x704   : > { %10314 = vrcp.f32 %v3280_v6 }
 0x705   : > { %v3282_v7 = vpop.xlane.xlu0 %3281 }
 0x706   : > { %10316 = vrcp.f32 %v3282_v7  ;;  %v3575_v7 = vsel %vm1511_vm0, %v12685_v4, 0 }
 0x707   : > { %9504 = vmatpush3.bf16.xpose.msra.mxu0 %v3578_v42  ;;  %v3284_v28 = vpop.xlane.xlu1 %3283 }
 0x708   : > { %10318 = vrcp.f32 %v3284_v28  ;;  %9851 = vmatprep.subr.msk.bf16.mxu0 %vm1511_vm0, %v12685_v4 }
 0x709   : > { %v3286_v26 = vpop.xlane.xlu0 %3285 }
 0x70a   : > { %10320 = vrcp.f32 %v3286_v26 }
 0x70b   : > { %v10309_v43 = vpop.eup %10308  ;;  %v3288_v48 = vpop.xlane.xlu1 %3287 }
 0x70c   : > { %10322 = vrcp.f32 %v3288_v48  ;;  %v3318_v28 = vmul.f32 %v10309_v43, %v12579_v27 }
 0x70d   : > { %v10311_v29 = vpop.eup %10310  ;;  %v3290_v6 = vpop.xlane.xlu0 %3289 }
 0x70e   : > { %v3317_v42 = vmul.f32 %v10311_v29, %v12584_v62  ;;  %10324 = vrcp.f32 %v3290_v6 }
 0x70f   : > { %v10313_v35 = vpop.eup %10312  ;;  %9506 = vmatpush3.bf16.xpose.msra.mxu0 %v3575_v7  ;;  %v3292_v56 = vpop.xlane.xlu1 %3291  ;;  %v3572_v7 = vsel %vm1511_vm0, %v12695_v63, 0 }
 0x710   : > { %10326 = vrcp.f32 %v3292_v56  ;;  %9852 = vmatprep.subr.msk.bf16.mxu0 %vm1511_vm0, %v12695_v63  ;;  %v3331_v45 = vpack.c.bf16 %v3318_v28, %v3317_v42  ;;  %v3319_v17 = vmul.f32 %v10313_v35, %v12587_v49 }
 0x711   : > { %v10315_v26 = vpop.eup %10314  ;;  %v3294_v11 = vpop.xlane.xlu0 %3293 }
 0x712   : > { %9481 = vmatprep.mubr.bf16.mxu0 %v3331_v45  ;;  %v3320_v48 = vmul.f32 %v10315_v26, %v12590_v5  ;;  %10328 = vrcp.f32 %v3294_v11 }
 0x713   : > { %v3296_v62 = vpop.xlane.xlu1 %3295  ;;  %v10317_v29 = vpop.eup %10316 }
 0x714   : > { %10330 = vrcp.f32 %v3296_v62  ;;  %v3332_v27 = vpack.c.bf16 %v3320_v48, %v3319_v17  ;;  %v3321_v42 = vmul.f32 %v10317_v29, %v12593_v31 }
 0x715   : > { %v10319_v43 = vpop.eup %10318  ;;  %v12705_v6 = vpop.permute.xlu0 %4003 }
 0x716   : > { %9482 = vmatmul.mubr.bf16.gmra.mxu0 %v3332_v27  ;;  %v3322_v28 = vmul.f32 %v10319_v43, %v12595_v23  ;;  %9853 = vmatprep.subr.msk.bf16.mxu1 %vm1511_vm0, %v12705_v6 }
 0x717   : > { %9508 = vmatpush3.bf16.xpose.msra.mxu0 %v3572_v7  ;;  %v10321_v49 = vpop.eup %10320 }
 0x718   : > { %v3333_v5 = vpack.c.bf16 %v3322_v28, %v3321_v42  ;;  %v3323_v56 = vmul.f32 %v10321_v49, %v12599_v39  ;;  %v15615_v39 = vld [vmem:[#allocation69_spill] sm:$0xff]  ;;  %v15617_v42 = vld [vmem:[#allocation75_spill] sm:$0xff]  ;;  %v15622_v28 = vld [vmem:[#allocation36_spill] sm:$0xff] }
 0x719   : > { %v10323_v35 = vpop.eup %10322 }
 0x71a   : > { %9485 = vmatprep.mubr.bf16.mxu0 %v3333_v5  ;;  %v3324_v45 = vmul.f32 %v10323_v35, %v12601_v37  ;;  %v15616_v37 = vld [vmem:[#allocation72_spill] sm:$0xff] }
 0x71b   : > { %v10325_v26 = vpop.eup %10324 }
 0x71c   : > { %v3334_v11 = vpack.c.bf16 %v3324_v45, %v3323_v56  ;;  %v3325_v31 = vmul.f32 %v10325_v26, %v12605_v40  ;;  %v15618_v40 = vld [vmem:[#allocation77_spill] sm:$0xff] }
 0x71d   : > { %v10327_v17 = vpop.eup %10326 }
 0x71e   : > { %9486 = vmatmul.mubr.bf16.gmra.mxu0 %v3334_v11  ;;  %v3326_v23 = vmul.f32 %v10327_v17, %v12607_v38  ;;  %v15619_v38 = vld [vmem:[#allocation26_spill] sm:$0xff] }
 0x71f   : > { %v10329_v48 = vpop.eup %10328 }
 0x720   : > { %v3335_v62 = vpack.c.bf16 %v3326_v23, %v3325_v31  ;;  %v3327_v27 = vmul.f32 %v10329_v48, %v12611_v3  ;;  %v15620_v3 = vld [vmem:[#allocation30_spill] sm:$0xff] }
 0x721   : > { %v10331_v29 = vpop.eup %10330 }
 0x722   : > { %9489 = vmatprep.mubr.bf16.mxu0 %v3335_v62  ;;  %v3328_v43 = vmul.f32 %v10331_v29, %v12613_v25  ;;  %v15621_v25 = vld [vmem:[#allocation33_spill] sm:$0xff] }
 0x724   : > { %v3336_v7 = vpack.c.bf16 %v3328_v43, %v3327_v27 }
 0x726   : > { %9490 = vmatmul.mubr.bf16.gmra.mxu0 %v3336_v7 }
 0x727   : > { %9509 = vmatprep.mubr.msk.bf16.mxu0 %vm1511_vm0, %v15615_v39 }
 0x72e   : > { %9510 = vmatmul.mubr.msk.bf16.vlgmr.msra.gmra.mxu0 %vm1511_vm0, %v15616_v37 }
 0x72f   : > { %9513 = vmatprep.mubr.msk.bf16.mxu0 %vm1511_vm0, %v15617_v42 }
 0x736   : > { %9514 = vmatmul.mubr.msk.bf16.gmra.mxu0 %vm1511_vm0, %v15618_v40 }
 0x737   : > { %9517 = vmatprep.mubr.msk.bf16.mxu0 %vm1511_vm0, %v15619_v38 }
 0x73e   : > { %9518 = vmatmul.mubr.msk.bf16.gmra.mxu0 %vm1511_vm0, %v15620_v3 }
 0x73f   : > { %9521 = vmatprep.mubr.msk.bf16.mxu0 %vm1511_vm0, %v15621_v25 }
 0x746   : > { %9522 = vmatmul.mubr.msk.bf16.gmra.mxu0 %vm1511_vm0, %v15622_v28 }
 0x79e   : > { %v12735_v49 = vpop.f32.mrf.mxu0 }
 0x79f   : > { %15623 = vst [vmem:[#allocation47_spill] sm:$0xff] %v12735_v49 }
 0x7a0   : > { %v12737_v5 = vpop.f32.mrf.mxu0 }
 0x7a1   : > { %15624 = vst [vmem:[#allocation84_spill] sm:$0xff] %v12737_v5 }
 0x7a2   : > { %v12739_v35 = vpop.f32.mrf.mxu0 }
 0x7a3   : > { %15625 = vst [vmem:[#allocation89_spill] sm:$0xff] %v12739_v35 }
 0x7a4   : > { %v12741_v56 = vpop.f32.mrf.mxu0 }
 0x7a5   : > { %15626 = vst [vmem:[#allocation85_spill] sm:$0xff] %v12741_v56 }
 0x7d6   : > { %v12743_v45 = vpop.f32.mrf.mxu0 }
 0x7d7   : > { %15627 = vst [vmem:[#allocation86_spill] sm:$0xff] %v12743_v45 }
 0x7d8   : > { %v12745_v26 = vpop.f32.mrf.mxu0 }
 0x7d9   : > { %15628 = vst [vmem:[#allocation66_spill] sm:$0xff] %v12745_v26 }
 0x7da   : > { %v12747_v11 = vpop.f32.mrf.mxu0 }
 0x7db   : > { %15629 = vst [vmem:[#allocation46_spill] sm:$0xff] %v12747_v11 }
 0x7dc   : > { %v12749_v17 = vpop.f32.mrf.mxu0 }
 0x7dd   : > { %15630 = vst [vmem:[#allocation65_spill] sm:$0xff] %v12749_v17 }
 0x7de   : > { %v12751_v31 = vpop.f32.mrf.mxu0 }
 0x7df   : > { %15631 = vst [vmem:[#allocation78_spill] sm:$0xff] %v12751_v31 }
 0x7e0   : > { %v12753_v23 = vpop.f32.mrf.mxu0 }
 0x7e1   : > { %15632 = vst [vmem:[#allocation62_spill] sm:$0xff] %v12753_v23 }
 0x7e2   : > { %v12755_v48 = vpop.f32.mrf.mxu0 }
 0x7e3   : > { %15633 = vst [vmem:[#allocation63_spill] sm:$0xff] %v12755_v48 }
 0x7e4   : > { %v12757_v62 = vpop.f32.mrf.mxu0 }
 0x7e5   : > { %15634 = vst [vmem:[#allocation64_spill] sm:$0xff] %v12757_v62 }
 0x7e6   : > { %v12759_v29 = vpop.f32.mrf.mxu0 }
 0x7e7   : > { %15635 = vst [vmem:[#allocation59_spill] sm:$0xff] %v12759_v29 }
 0x7e8   : > { %v12761_v27 = vpop.f32.mrf.mxu0 }
 0x7e9   : > { %15636 = vst [vmem:[#allocation60_spill] sm:$0xff] %v12761_v27 }
 0x7ea   : > { %v12763_v43 = vpop.f32.mrf.mxu0 }
 0x7eb   : > { %15637 = vst [vmem:[#allocation61_spill] sm:$0xff] %v12763_v43 }
 0x7ec   : > { %v12765_v7 = vpop.f32.mrf.mxu0 }
 0x7ed   : > { %15638 = vst [vmem:[#allocation56_spill] sm:$0xff] %v12765_v7 }
 0x7ee   : > { %v9511_v19 = vpop.f32.mrf.mxu0 }
 0x7ef   : > { %v3638_v59 = vadd.f32 %v9511_v19, %v12768_v55 }
 0x7f0   : > { %v3629_v31 = vpop.f32.mrf.mxu0 }
 0x7f1   : > { %3696 = vmax.xlane.f32.xlu0 %v3638_v59  ;;  %v3630_v48 = vadd.f32 %v12768_v55, %v3629_v31 }
 0x7f2   : > { %v9512_v23 = vpop.f32.mrf.mxu0 }
 0x7f3   : > { %v3641_v62 = vadd.f32 %v9512_v23, %v12768_v55 }
 0x7f4   : > { %v3632_v50 = vpop.f32.mrf.mxu0 }
 0x7f5   : > { %3698 = vmax.xlane.f32.xlu1 %v3641_v62  ;;  %3692 = vmax.xlane.f32.xlu0 %v3630_v48  ;;  %v3633_v43 = vadd.f32 %v12768_v55, %v3632_v50 }
 0x7f6   : > { %v9515_v29 = vpop.f32.mrf.mxu0 }
 0x7f7   : > { %v12775_v7 = vadd.f32 %v9515_v29, %v12768_v55 }
 0x7f8   : > { %v3645_v27 = vpop.f32.mrf.mxu0 }
 0x7f9   : > { %3694 = vmax.xlane.f32.xlu1 %v3633_v43  ;;  %3704 = vmax.xlane.f32.xlu0 %v12775_v7  ;;  %v12779_v44 = vadd.f32 %v12768_v55, %v3645_v27 }
 0x7fa   : > { %v9516_v19 = vpop.f32.mrf.mxu0 }
 0x7fc   : > { %v3648_v31 = vpop.f32.mrf.mxu0 }
 0x7fd   : > { %3700 = vmax.xlane.f32.xlu0 %v12779_v44 }
 0x7fe   : > { %v9519_v23 = vpop.f32.mrf.mxu0 }
 0x7ff   : > { %v12783_v30 = vadd.f32 %v9519_v23, %v12768_v55 }
 0x800   : > { %v3661_v24 = vpop.f32.mrf.mxu0 }
 0x801   : > { %3712 = vmax.xlane.f32.xlu0 %v12783_v30  ;;  %v12787_v29 = vadd.f32 %v12768_v55, %v3661_v24  ;;  %v3657_v24 = vadd.f32 %v9516_v19, %v12768_v55 }
 0x802   : > { %v9520_v50 = vpop.f32.mrf.mxu0 }
 0x803   : > { %v12805_v26 = vadd.f32 %v9520_v50, %v12768_v55 }
 0x804   : > { %v3664_v11 = vpop.f32.mrf.mxu0 }
 0x805   : > { %3708 = vmax.xlane.f32.xlu0 %v12787_v29  ;;  %v12809_v12 = vadd.f32 %v12768_v55, %v3664_v11 }
 0x806   : > { %v9523_v45 = vpop.f32.mrf.mxu0 }
 0x807   : > { %v12791_v27 = vadd.f32 %v9523_v45, %v12768_v55  ;;  %v3649_v45 = vadd.f32 %v12768_v55, %v3648_v31 }
 0x808   : > { %v3677_v17 = vpop.f32.mrf.mxu0 }
 0x809   : > { %3720 = vmax.xlane.f32.xlu0 %v12791_v27  ;;  %v12797_v23 = vadd.f32 %v12768_v55, %v3677_v17 }
 0x80a   : > { %4001 = vrot.lane.b32.xlu1 %v12635_v14, %s10845_s1  ;;  %v9524_v17 = vpop.f32.mrf.mxu0 }
 0x80b   : > { %v12813_v34 = vadd.f32 %v9524_v17, %v12768_v55 }
 0x80c   : > { %v3680_v36 = vpop.f32.mrf.mxu0 }
 0x80d   : > { %3716 = vmax.xlane.f32.xlu0 %v12797_v23  ;;  %v12817_v19 = vadd.f32 %v12768_v55, %v3680_v36 }
 0x823   : > { %3999 = vrot.lane.b32.xlu0 %v12645_v18, %s10845_s1 }
 0x82e   : > { %3706 = vmax.xlane.f32.xlu1 %v3657_v24 }
 0x832   : > { %3702 = vmax.xlane.f32.xlu1 %v3649_v45 }
 0x836   : > { %3714 = vmax.xlane.f32.xlu1 %v12805_v26 }
 0x83a   : > { %3710 = vmax.xlane.f32.xlu1 %v12809_v12 }
 0x83e   : > { %3722 = vmax.xlane.f32.xlu1 %v12813_v34 }
 0x842   : > { %3718 = vmax.xlane.f32.xlu1 %v12817_v19 }
 0x87a   : > { %v3697_v31 = vpop.xlane.xlu0 %3696 }
 0x87b   : > { %v3726_v50 = vsub.f32 %v3638_v59, %v3697_v31 }
 0x87d   : > { %v3744_v20 = vmul.f32 1.442695, %v3726_v50 }
 0x87e   : > { %v3699_v33 = vpop.xlane.xlu1 %3698  ;;  %v3693_v11 = vpop.xlane.xlu0 %3692 }
 0x87f   : > { %10332 = vpow2.f32 %v3744_v20  ;;  %v3727_v46 = vsub.f32 %v3641_v62, %v3699_v33  ;;  %v3724_v54 = vsub.f32 %v3630_v48, %v3693_v11 }
 0x881   : > { %v3746_v58 = vmul.f32 1.442695, %v3727_v46  ;;  %v3740_v35 = vmul.f32 1.442695, %v3724_v54 }
 0x882   : > { %v3695_v17 = vpop.xlane.xlu1 %3694 }
 0x883   : > { %10334 = vpow2.f32 %v3746_v58  ;;  %v3725_v49 = vsub.f32 %v3633_v43, %v3695_v17  ;;  %v3705_v58 = vpop.xlane.xlu0 %3704 }
 0x884   : > { %10336 = vpow2.f32 %v3740_v35  ;;  %v3730_v20 = vsub.f32 %v12775_v7, %v3705_v58 }
 0x885   : > { %v3742_v56 = vmul.f32 1.442695, %v3725_v49 }
 0x886   : > { %v12837_v35 = vpop.permute.xlu1 %4001  ;;  %v3752_v48 = vmul.f32 1.442695, %v3730_v20 }
 0x887   : > { %10338 = vpow2.f32 %v3742_v56  ;;  %v3701_v33 = vpop.xlane.xlu0 %3700 }
 0x888   : > { %v3728_v56 = vsub.f32 %v12779_v44, %v3701_v33  ;;  %10340 = vpow2.f32 %v3752_v48 }
 0x88a   : > { %v3748_v31 = vmul.f32 1.442695, %v3728_v56 }
 0x88b   : > { %v3713_v54 = vpop.xlane.xlu0 %3712 }
 0x88c   : > { %v12820_v36 = vpop.eup %10332  ;;  %v3734_v11 = vsub.f32 %v12783_v30, %v3713_v54  ;;  %10342 = vpow2.f32 %v3748_v31 }
 0x88d   : > { %3776 = vadd.xlane.f32.xlu0 %v12820_v36 }
 0x88e   : > { %v3760_v22 = vmul.f32 1.442695, %v3734_v11 }
 0x88f   : > { %v3709_v49 = vpop.xlane.xlu0 %3708 }
 0x890   : > { %v12823_v5 = vpop.eup %10334  ;;  %v3732_v51 = vsub.f32 %v12787_v29, %v3709_v49 }
 0x891   : > { %v12825_v59 = vpop.eup %10336  ;;  %3778 = vadd.xlane.f32.xlu1 %v12823_v5 }
 0x892   : > { %3772 = vadd.xlane.f32.xlu0 %v12825_v59 }
 0x893   : > { %v3721_v62 = vpop.xlane.xlu0 %3720 }
 0x894   : > { %v12829_v46 = vpop.eup %10338  ;;  %v3738_v8 = vsub.f32 %v12791_v27, %v3721_v62 }
 0x895   : > { %3774 = vadd.xlane.f32.xlu1 %v12829_v46  ;;  %v12845_v27 = vpop.eup %10340 }
 0x896   : > { %v3768_v33 = vmul.f32 1.442695, %v3738_v8 }
 0x897   : > { %v3717_v7 = vpop.xlane.xlu0 %3716 }
 0x898   : > { %v3736_v20 = vsub.f32 %v12797_v23, %v3717_v7 }
 0x899   : > { %v12850_v23 = vpop.eup %10342 }
 0x89a   : > { %v3764_v56 = vmul.f32 1.442695, %v3736_v20 }
 0x89b   : > { %v4000_v7 = vpop.permute.xlu0 %3999 }
 0x8a6   : > { %3997 = vrot.lane.b32.xlu1 %v12655_v32, %s10845_s1 }
 0x8a8   : > { %3995 = vrot.lane.b32.xlu0 %v12665_v1, %s10845_s1 }
 0x8b7   : > { %v3707_v43 = vpop.xlane.xlu1 %3706 }
 0x8b8   : > { %v3731_v50 = vsub.f32 %v3657_v24, %v3707_v43  ;;  %v3756_v24 = vmul.f32 1.442695, %v3732_v51 }
 0x8ba   : > { %v3754_v17 = vmul.f32 1.442695, %v3731_v50 }
 0x8bb   : > { %v3703_v0 = vpop.xlane.xlu1 %3702 }
 0x8bc   : > { %v3729_v16 = vsub.f32 %v3649_v45, %v3703_v0  ;;  %10344 = vpow2.f32 %v3754_v17 }
 0x8be   : > { %v3750_v58 = vmul.f32 1.442695, %v3729_v16 }
 0x8bf   : > { %v3715_v44 = vpop.xlane.xlu1 %3714 }
 0x8c0   : > { %10346 = vpow2.f32 %v3750_v58  ;;  %v3735_v30 = vsub.f32 %v12805_v26, %v3715_v44 }
 0x8c1   : > { %10348 = vpow2.f32 %v3760_v22 }
 0x8c2   : > { %10350 = vpow2.f32 %v3768_v33  ;;  %v3762_v0 = vmul.f32 1.442695, %v3735_v30 }
 0x8c3   : > { %v3711_v54 = vpop.xlane.xlu1 %3710  ;;  %10352 = vpow2.f32 %v3756_v24 }
 0x8c4   : > { %10354 = vpow2.f32 %v3764_v56  ;;  %v3733_v8 = vsub.f32 %v12809_v12, %v3711_v54 }
 0x8c5   : > { %10356 = vpow2.f32 %v3762_v0 }
 0x8c6   : > { %v3758_v45 = vmul.f32 1.442695, %v3733_v8 }
 0x8c7   : > { %3784 = vadd.xlane.f32.xlu0 %v12845_v27  ;;  %v3723_v16 = vpop.xlane.xlu1 %3722 }
 0x8c8   : > { %v3739_v29 = vsub.f32 %v12813_v34, %v3723_v16 }
 0x8c9   : > { %v12853_v26 = vpop.eup %10344 }
 0x8ca   : > { %v3770_v51 = vmul.f32 1.442695, %v3739_v29  ;;  %3780 = vadd.xlane.f32.xlu1 %v12850_v23 }
 0x8cb   : > { %v3719_v22 = vpop.xlane.xlu1 %3718 }
 0x8cc   : > { %10358 = vpow2.f32 %v3770_v51  ;;  %v3737_v49 = vsub.f32 %v12817_v19, %v3719_v22 }
 0x8cd   : > { %v12856_v48 = vpop.eup %10346  ;;  %10360 = vpow2.f32 %v3758_v45  ;;  %v4051_v45 = vsel %vm1511_vm0, %v12705_v6, 0 }
 0x8ce   : > { %3782 = vadd.xlane.f32.xlu0 %v12856_v48  ;;  %3786 = vadd.xlane.f32.xlu1 %v12853_v26  ;;  %v12860_v34 = vpop.eup %10348  ;;  %v3766_v12 = vmul.f32 1.442695, %v3737_v49 }
 0x8cf   : > { %v12862_v62 = vpop.eup %10350 }
 0x8d0   : > { %v12866_v43 = vpop.eup %10352  ;;  %10362 = vpow2.f32 %v3766_v12 }
 0x8d1   : > { %v12868_v19 = vpop.eup %10354 }
 0x8d2   : > { %3792 = vadd.xlane.f32.xlu1 %v12860_v34  ;;  %3800 = vadd.xlane.f32.xlu0 %v12862_v62  ;;  %v12872_v31 = vpop.eup %10356 }
 0x8d6   : > { %3788 = vadd.xlane.f32.xlu1 %v12866_v43  ;;  %3796 = vadd.xlane.f32.xlu0 %v12868_v19 }
 0x8d9   : > { %v12874_v50 = vpop.eup %10358 }
 0x8da   : > { %3794 = vadd.xlane.f32.xlu1 %v12872_v31  ;;  %3802 = vadd.xlane.f32.xlu0 %v12874_v50  ;;  %v12878_v11 = vpop.eup %10360 }
 0x8dd   : > { %v12881_v17 = vpop.eup %10362 }
 0x8de   : > { %3790 = vadd.xlane.f32.xlu1 %v12878_v11 }
 0x8e2   : > { %3798 = vadd.xlane.f32.xlu1 %v12881_v17 }
 0x8f0   : > { %3991 = vrot.lane.b32.xlu0 %v12685_v4, %s10845_s1 }
 0x8f3   : > { %3993 = vrot.lane.b32.xlu1 %v12675_v61, %s10845_s1 }
 0x8f4   : > { %3989 = vrot.lane.b32.xlu0 %v12695_v63, %s10845_s1 }
 0x8f7   : > { %3965 = vrot.lane.b32.xlu1 %v15615_v39, %s10845_s1 }
 0x8f8   : > { %3967 = vrot.lane.b32.xlu0 %v15616_v37, %s10845_s1 }
 0x8fb   : > { %3969 = vrot.lane.b32.xlu1 %v15617_v42, %s10845_s1 }
 0x8fc   : > { %3971 = vrot.lane.b32.xlu0 %v15618_v40, %s10845_s1 }
 0x8ff   : > { %3973 = vrot.lane.b32.xlu1 %v15619_v38, %s10845_s1 }
 0x900   : > { %3975 = vrot.lane.b32.xlu0 %v15620_v3, %s10845_s1 }
 0x903   : > { %3977 = vrot.lane.b32.xlu1 %v15621_v25, %s10845_s1 }
 0x904   : > { %3979 = vrot.lane.b32.xlu0 %v15622_v28, %s10845_s1 }
 0x907   : > { %4322 = vrot.lane.b32.xlu1 %v12394_v21, %s10845_s1 }
 0x908   : > { %4324 = vrot.lane.b32.xlu0 %v15548_v47, %s10845_s1 }
 0x90c   : > { %4320 = vrot.lane.b32.xlu0 %v15554_v60, %s10845_s1 }
 0x910   : > { %4318 = vrot.lane.b32.xlu0 %v12406_v53, %s10845_s1 }
 0x914   : > { %4316 = vrot.lane.b32.xlu0 %v15557_v15, %s10845_s1 }
 0x916   : > { %v3777_v58 = vpop.xlane.xlu0 %3776 }
 0x91a   : > { %v3779_v44 = vpop.xlane.xlu1 %3778 }
 0x91b   : > { %v3773_v33 = vpop.xlane.xlu0 %3772  ;;  %10364 = vrcp.f32 %v3779_v44 }
 0x91c   : > { %10366 = vrcp.f32 %v3773_v33 }
 0x91d   : > { %10368 = vrcp.f32 %v3777_v58 }
 0x91e   : > { %v3775_v20 = vpop.xlane.xlu1 %3774 }
 0x91f   : > { %10370 = vrcp.f32 %v3775_v20  ;;  %v3996_v49 = vpop.permute.xlu0 %3995 }
 0x920   : > { %v4039_v6 = vsel %vm1511_vm0, %v3996_v49, 0 }
 0x928   : > { %v10365_v24 = vpop.eup %10364 }
 0x929   : > { %v10367_v30 = vpop.eup %10366  ;;  %v3823_v0 = vmul.f32 %v10365_v24, %v12823_v5  ;;  %v4048_v5 = vsel %vm1511_vm0, %v12837_v35, 0 }
 0x92a   : > { %v10369_v54 = vpop.eup %10368  ;;  %v3820_v16 = vmul.f32 %v10367_v30, %v12825_v59  ;;  %v4045_v59 = vsel %vm1511_vm0, %v4000_v7, 0 }
 0x92b   : > { %v3822_v29 = vmul.f32 %v10369_v54, %v12820_v36  ;;  %v3998_v36 = vpop.permute.xlu1 %3997 }
 0x92c   : > { %v10371_v56 = vpop.eup %10370 }
 0x92d   : > { %v3821_v8 = vmul.f32 %v10371_v56, %v12829_v46  ;;  %v3837_v22 = vpack.c.bf16 %v3823_v0, %v3822_v29  ;;  %v4042_v46 = vsel %vm1511_vm0, %v3998_v36, 0 }
 0x92f   : > { %v3836_v51 = vpack.c.bf16 %v3821_v8, %v3820_v16 }
 0x931   : > { %9541 = vmatprep.mubr.bf16.mxu1 %v3836_v51 }
 0x932   : > { %9542 = vmatmul.mubr.bf16.vlgmr.msra.gmra.mxu1 %v3837_v22 }
 0x933   : > { %9558 = vmatpush3.bf16.xpose.msra.mxu1 %v4051_v45 }
 0x934   : > { %9854 = vmatprep.subr.msk.bf16.mxu1 %vm1511_vm0, %v12837_v35 }
 0x93b   : > { %9560 = vmatpush3.bf16.xpose.msra.mxu1 %v4048_v5 }
 0x93c   : > { %9855 = vmatprep.subr.msk.bf16.mxu1 %vm1511_vm0, %v4000_v7 }
 0x943   : > { %9562 = vmatpush3.bf16.xpose.msra.mxu1 %v4045_v59 }
 0x944   : > { %9856 = vmatprep.subr.msk.bf16.mxu1 %vm1511_vm0, %v3998_v36 }
 0x94b   : > { %9564 = vmatpush3.bf16.xpose.msra.mxu1 %v4042_v46 }
 0x94c   : > { %9857 = vmatprep.subr.msk.bf16.mxu1 %vm1511_vm0, %v3996_v49 }
 0x950   : > { %v3785_v12 = vpop.xlane.xlu0 %3784 }
 0x951   : > { %10372 = vrcp.f32 %v3785_v12 }
 0x953   : > { %9566 = vmatpush3.bf16.xpose.msra.mxu1 %v4039_v6  ;;  %v3781_v35 = vpop.xlane.xlu1 %3780 }
 0x954   : > { %10374 = vrcp.f32 %v3781_v35 }
 0x957   : > { %v3787_v58 = vpop.xlane.xlu1 %3786  ;;  %v3783_v44 = vpop.xlane.xlu0 %3782 }
 0x958   : > { %10376 = vrcp.f32 %v3787_v58 }
 0x959   : > { %10378 = vrcp.f32 %v3783_v44 }
 0x95b   : > { %v3793_v7 = vpop.xlane.xlu1 %3792  ;;  %v3801_v33 = vpop.xlane.xlu0 %3800 }
 0x95e   : > { %v10373_v30 = vpop.eup %10372 }
 0x95f   : > { %v3789_v20 = vpop.xlane.xlu1 %3788  ;;  %v3797_v24 = vpop.xlane.xlu0 %3796  ;;  %v3826_v29 = vmul.f32 %v10373_v30, %v12845_v27 }
 0x961   : > { %v10375_v0 = vpop.eup %10374 }
 0x962   : > { %v3824_v5 = vmul.f32 %v10375_v0, %v12850_v23 }
 0x963   : > { %v3795_v54 = vpop.xlane.xlu1 %3794  ;;  %v3803_v56 = vpop.xlane.xlu0 %3802 }
 0x964   : > { %10380 = vrcp.f32 %v3795_v54 }
 0x965   : > { %v10377_v16 = vpop.eup %10376  ;;  %10382 = vrcp.f32 %v3789_v20 }
 0x966   : > { %v10379_v8 = vpop.eup %10378  ;;  %v3827_v51 = vmul.f32 %v10377_v16, %v12853_v26  ;;  %10384 = vrcp.f32 %v3793_v7 }
 0x967   : > { %v3791_v22 = vpop.xlane.xlu1 %3790  ;;  %v3992_v45 = vpop.permute.xlu0 %3991  ;;  %v3825_v59 = vmul.f32 %v10379_v8, %v12856_v48 }
 0x968   : > { %10386 = vrcp.f32 %v3791_v22  ;;  %v3839_v36 = vpack.c.bf16 %v3827_v51, %v3826_v29  ;;  %v4033_v16 = vsel %vm1511_vm0, %v3992_v45, 0 }
 0x969   : > { %v3838_v46 = vpack.c.bf16 %v3825_v59, %v3824_v5  ;;  %10388 = vrcp.f32 %v3797_v24 }
 0x96b   : > { %9545 = vmatprep.mubr.bf16.mxu1 %v3838_v46  ;;  %v3799_v49 = vpop.xlane.xlu1 %3798  ;;  %v3990_v6 = vpop.permute.xlu0 %3989 }
 0x96c   : > { %10390 = vrcp.f32 %v3799_v49  ;;  %9546 = vmatmul.mubr.bf16.gmra.mxu1 %v3839_v36 }
 0x96d   : > { %10392 = vrcp.f32 %v3803_v56 }
 0x96e   : > { %10394 = vrcp.f32 %v3801_v33 }
 0x96f   : > { %v3994_v27 = vpop.permute.xlu1 %3993  ;;  %v3968_v26 = vpop.permute.xlu0 %3967 }
 0x970   : > { %9858 = vmatprep.subr.msk.bf16.mxu1 %vm1511_vm0, %v3994_v27  ;;  %v4036_v12 = vsel %vm1511_vm0, %v3994_v27, 0  ;;  %v4030_v27 = vsel %vm1511_vm0, %v3990_v6, 0 }
 0x971   : > { %9568 = vmatpush3.bf16.xpose.msra.mxu1 %v4036_v12  ;;  %v10381_v23 = vpop.eup %10380 }
 0x972   : > { %9859 = vmatprep.subr.msk.bf16.mxu1 %vm1511_vm0, %v3992_v45  ;;  %v10383_v48 = vpop.eup %10382  ;;  %v3831_v20 = vmul.f32 %v10381_v23, %v12872_v31 }
 0x973   : > { %v3966_v35 = vpop.permute.xlu1 %3965  ;;  %v3972_v58 = vpop.permute.xlu0 %3971  ;;  %v3828_v24 = vmul.f32 %v10383_v48, %v12866_v43 }
 0x974   : > { %v10385_v44 = vpop.eup %10384 }
 0x975   : > { %v10387_v7 = vpop.eup %10386  ;;  %v3830_v0 = vmul.f32 %v10385_v44, %v12860_v34 }
 0x976   : > { %v3829_v33 = vmul.f32 %v10387_v7, %v12878_v11  ;;  %v10389_v30 = vpop.eup %10388 }
 0x977   : > { %v3970_v54 = vpop.permute.xlu1 %3969  ;;  %v3976_v56 = vpop.permute.xlu0 %3975  ;;  %v3841_v51 = vpack.c.bf16 %v3831_v20, %v3830_v0  ;;  %v3832_v31 = vmul.f32 %v10389_v30, %v12868_v19 }
 0x978   : > { %v3840_v8 = vpack.c.bf16 %v3829_v33, %v3828_v24 }
 0x979   : > { %v10391_v29 = vpop.eup %10390  ;;  %9570 = vmatpush3.bf16.xpose.msra.mxu1 %v4033_v16 }
 0x97a   : > { %v10393_v22 = vpop.eup %10392  ;;  %9549 = vmatprep.mubr.bf16.mxu1 %v3840_v8  ;;  %9860 = vmatprep.subr.msk.bf16.mxu1 %vm1511_vm0, %v3990_v6  ;;  %v3833_v43 = vmul.f32 %v10391_v29, %v12881_v17 }
 0x97b   : > { %v3974_v11 = vpop.permute.xlu1 %3973  ;;  %9550 = vmatmul.mubr.bf16.gmra.mxu1 %v3841_v51  ;;  %v3980_v5 = vpop.permute.xlu0 %3979  ;;  %v3835_v34 = vmul.f32 %v10393_v22, %v12874_v50 }
 0x97c   : > { %v10395_v59 = vpop.eup %10394  ;;  %v3842_v36 = vpack.c.bf16 %v3833_v43, %v3832_v31 }
 0x97d   : > { %v3834_v49 = vmul.f32 %v10395_v59, %v12862_v62 }
 0x97e   : > { %9553 = vmatprep.mubr.bf16.mxu1 %v3842_v36 }
 0x97f   : > { %v3978_v45 = vpop.permute.xlu1 %3977  ;;  %v4325_v46 = vpop.permute.xlu0 %4324  ;;  %v3843_v19 = vpack.c.bf16 %v3835_v34, %v3834_v49 }
 0x980   : > { %9589 = vmatprep.subr.bf16.mxu0 %v4325_v46 }
 0x981   : > { %9572 = vmatpush3.bf16.xpose.msra.mxu1 %v4030_v27  ;;  %9590 = vmatpush3.bf16.msra.mxu0 %v4325_v46 }
 0x983   : > { %v4323_v12 = vpop.permute.xlu1 %4322  ;;  %9554 = vmatmul.mubr.bf16.gmra.mxu1 %v3843_v19  ;;  %v4321_v17 = vpop.permute.xlu0 %4320 }
 0x984   : > { %9573 = vmatprep.mubr.msk.bf16.mxu1 %vm1511_vm0, %v3966_v35  ;;  %9591 = vmatprep.subr.bf16.mxu0 %v4323_v12 }
 0x985   : > { %9592 = vmatpush3.bf16.msra.mxu0 %v4323_v12 }
 0x986   : > { %9593 = vmatprep.subr.bf16.mxu0 %v4321_v17 }
 0x987   : > { %v4319_v50 = vpop.permute.xlu0 %4318 }
 0x989   : > { %9594 = vmatpush3.bf16.msra.mxu0 %v4321_v17 }
 0x98a   : > { %9595 = vmatprep.subr.bf16.mxu0 %v4319_v50 }
 0x98b   : > { %9574 = vmatmul.mubr.msk.bf16.vlgmr.msra.gmra.mxu1 %vm1511_vm0, %v3968_v26  ;;  %v4317_v62 = vpop.permute.xlu0 %4316 }
 0x98c   : > { %9577 = vmatprep.mubr.msk.bf16.mxu1 %vm1511_vm0, %v3970_v54 }
 0x98d   : > { %9596 = vmatpush3.bf16.msra.mxu0 %v4319_v50 }
 0x98e   : > { %9597 = vmatprep.subr.bf16.mxu0 %v4317_v62 }
 0x991   : > { %9598 = vmatpush3.bf16.msra.mxu0 %v4317_v62 }
 0x993   : > { %9578 = vmatmul.mubr.msk.bf16.gmra.mxu1 %vm1511_vm0, %v3972_v58 }
 0x994   : > { %9581 = vmatprep.mubr.msk.bf16.mxu1 %vm1511_vm0, %v3974_v11 }
 0x99b   : > { %9582 = vmatmul.mubr.msk.bf16.gmra.mxu1 %vm1511_vm0, %v3976_v56 }
 0x99c   : > { %9585 = vmatprep.mubr.msk.bf16.mxu1 %vm1511_vm0, %v3978_v45 }
 0x9a3   : > { %9586 = vmatmul.mubr.msk.bf16.gmra.mxu1 %vm1511_vm0, %v3980_v5 }
 0x9f2   : > { %v9543_v6 = vpop.f32.mrf.mxu1 }
 0x9f3   : > { %3943 = vst.msk [vmem:[#allocation3 + $0x90] sm:$0xff] %vm1511_vm0, %v9543_v6 }
 0x9f4   : > { %v3878_v26 = vpop.f32.mrf.mxu1 }
 0x9f5   : > { %3941 = vst.msk [vmem:[#allocation3 + $0x80] sm:$0xff] %vm1511_vm0, %v3878_v26 }
 0x9f6   : > { %v9544_v23 = vpop.f32.mrf.mxu1 }
 0x9f7   : > { %3944 = vst.msk [vmem:[#allocation3 + $0x98] sm:$0xff] %vm1511_vm0, %v9544_v23 }
 0x9f8   : > { %v3881_v48 = vpop.f32.mrf.mxu1 }
 0x9f9   : > { %3942 = vst.msk [vmem:[#allocation3 + $0x88] sm:$0xff] %vm1511_vm0, %v3881_v48 }
 0xa2c   : > { %v9547_v35 = vpop.f32.mrf.mxu1 }
 0xa2d   : > { %3947 = vst.msk [vmem:[#allocation3 + $0xb0] sm:$0xff] %vm1511_vm0, %v9547_v35 }
 0xa2e   : > { %v3894_v58 = vpop.f32.mrf.mxu1 }
 0xa2f   : > { %3945 = vst.msk [vmem:[#allocation3 + $0xa0] sm:$0xff] %vm1511_vm0, %v3894_v58 }
 0xa30   : > { %v9548_v44 = vpop.f32.mrf.mxu1 }
 0xa31   : > { %3948 = vst.msk [vmem:[#allocation3 + $0xb8] sm:$0xff] %vm1511_vm0, %v9548_v44 }
 0xa32   : > { %v3897_v7 = vpop.f32.mrf.mxu1 }
 0xa33   : > { %3946 = vst.msk [vmem:[#allocation3 + $0xa8] sm:$0xff] %vm1511_vm0, %v3897_v7 }
 0xa3b   : > { %v9551_v20 = vpop.f32.mrf.mxu1 }
 0xa3c   : > { %3951 = vst.msk [vmem:[#allocation3 + $0xd0] sm:$0xff] %vm1511_vm0, %v9551_v20 }
 0xa3d   : > { %v3910_v24 = vpop.f32.mrf.mxu1 }
 0xa3e   : > { %3949 = vst.msk [vmem:[#allocation3 + $0xc0] sm:$0xff] %vm1511_vm0, %v3910_v24 }
 0xa3f   : > { %v9552_v33 = vpop.f32.mrf.mxu1 }
 0xa40   : > { %3952 = vst.msk [vmem:[#allocation3 + $0xd8] sm:$0xff] %vm1511_vm0, %v9552_v33 }
 0xa41   : > { %v3913_v30 = vpop.f32.mrf.mxu1 }
 0xa42   : > { %3950 = vst.msk [vmem:[#allocation3 + $0xc8] sm:$0xff] %vm1511_vm0, %v3913_v30 }
 0xa43   : > { %v9555_v54 = vpop.f32.mrf.mxu1 }
 0xa44   : > { %3955 = vst.msk [vmem:[#allocation3 + $0xf0] sm:$0xff] %vm1511_vm0, %v9555_v54 }
 0xa45   : > { %v3926_v56 = vpop.f32.mrf.mxu1 }
 0xa46   : > { %3953 = vst.msk [vmem:[#allocation3 + $0xe0] sm:$0xff] %vm1511_vm0, %v3926_v56 }
 0xa47   : > { %v9556_v0 = vpop.f32.mrf.mxu1 }
 0xa48   : > { %3956 = vst.msk [vmem:[#allocation3 + $0xf8] sm:$0xff] %vm1511_vm0, %v9556_v0 }
 0xa49   : > { %v3929_v16 = vpop.f32.mrf.mxu1 }
 0xa4a   : > { %3954 = vst.msk [vmem:[#allocation3 + $0xe8] sm:$0xff] %vm1511_vm0, %v3929_v16 }
 0xa4b   : > { %v9575_v8 = vpop.f32.mrf.mxu1 }
 0xa4c   : > { %v4096_v29 = vadd.f32 %v9575_v8, %v12768_v55 }
 0xa4d   : > { %v4087_v51 = vpop.f32.mrf.mxu1 }
 0xa4e   : > { %v4088_v22 = vadd.f32 %v12768_v55, %v4087_v51  ;;  %4154 = vmax.xlane.f32.xlu0 %v4096_v29 }
 0xa4f   : > { %v9576_v31 = vpop.f32.mrf.mxu1 }
 0xa50   : > { %4150 = vmax.xlane.f32.xlu1 %v4088_v22  ;;  %v4099_v11 = vadd.f32 %v9576_v31, %v12768_v55 }
 0xa51   : > { %v4090_v43 = vpop.f32.mrf.mxu1 }
 0xa52   : > { %v12978_v5 = vadd.f32 %v12768_v55, %v4090_v43 }
 0xa53   : > { %v9579_v59 = vpop.f32.mrf.mxu1 }
 0xa54   : > { %4152 = vmax.xlane.f32.xlu0 %v12978_v5  ;;  %4156 = vmax.xlane.f32.xlu1 %v4099_v11  ;;  %v12986_v49 = vadd.f32 %v9579_v59, %v12768_v55 }
 0xa55   : > { %v4103_v36 = vpop.f32.mrf.mxu1 }
 0xa56   : > { %v12994_v12 = vadd.f32 %v12768_v55, %v4103_v36 }
 0xa57   : > { %v9580_v34 = vpop.f32.mrf.mxu1 }
 0xa58   : > { %v12989_v27 = vadd.f32 %v9580_v34, %v12768_v55 }
 0xa59   : > { %v4106_v45 = vpop.f32.mrf.mxu1 }
 0xa5a   : > { %v12997_v17 = vadd.f32 %v12768_v55, %v4106_v45 }
 0xa5b   : > { %v9583_v46 = vpop.f32.mrf.mxu1 }
 0xa5c   : > { %v13002_v62 = vadd.f32 %v9583_v46, %v12768_v55 }
 0xa5d   : > { %v4119_v19 = vpop.f32.mrf.mxu1 }
 0xa5e   : > { %v13010_v23 = vadd.f32 %v12768_v55, %v4119_v19 }
 0xa5f   : > { %v9584_v50 = vpop.f32.mrf.mxu1 }
 0xa60   : > { %v13005_v6 = vadd.f32 %v9584_v50, %v12768_v55 }
 0xa61   : > { %v4122_v26 = vpop.f32.mrf.mxu1 }
 0xa62   : > { %v13013_v48 = vadd.f32 %v12768_v55, %v4122_v26 }
 0xa63   : > { %v9587_v35 = vpop.f32.mrf.mxu1 }
 0xa64   : > { %v13018_v58 = vadd.f32 %v9587_v35, %v12768_v55 }
 0xa65   : > { %4312 = vrot.lane.b32.xlu1 %v15560_v2, %s10845_s1  ;;  %v4135_v44 = vpop.f32.mrf.mxu1 }
 0xa66   : > { %v13022_v7 = vadd.f32 %v12768_v55, %v4135_v44 }
 0xa67   : > { %v9588_v20 = vpop.f32.mrf.mxu1 }
 0xa68   : > { %v13036_v24 = vadd.f32 %v9588_v20, %v12768_v55 }
 0xa69   : > { %v4138_v33 = vpop.f32.mrf.mxu1 }
 0xa6a   : > { %4314 = vrot.lane.b32.xlu0 %v12418_v10, %s10845_s1  ;;  %v13040_v30 = vadd.f32 %v12768_v55, %v4138_v33 }
 0xa89   : > { %4162 = vmax.xlane.f32.xlu0 %v12986_v49  ;;  %4164 = vmax.xlane.f32.xlu1 %v12989_v27 }
 0xa8d   : > { %4160 = vmax.xlane.f32.xlu1 %v12997_v17  ;;  %4158 = vmax.xlane.f32.xlu0 %v12994_v12 }
 0xa91   : > { %4170 = vmax.xlane.f32.xlu0 %v13002_v62  ;;  %4172 = vmax.xlane.f32.xlu1 %v13005_v6 }
 0xa95   : > { %4168 = vmax.xlane.f32.xlu1 %v13013_v48  ;;  %4166 = vmax.xlane.f32.xlu0 %v13010_v23 }
 0xa99   : > { %4178 = vmax.xlane.f32.xlu0 %v13018_v58 }
 0xa9d   : > { %4174 = vmax.xlane.f32.xlu0 %v13022_v7 }
 0xaa6   : > { %4541 = vrot.lane.b32.xlu1 %v12621_v52, %s10846_s27 }
 0xab3   : > { %4310 = vrot.lane.b32.xlu0 %v12430_v9, %s10845_s1 }
 0xab7   : > { %4539 = vrot.lane.b32.xlu0 %v12635_v14, %s10846_s27 }
 0xabb   : > { %4537 = vrot.lane.b32.xlu0 %v12645_v18, %s10846_s27 }
 0xabf   : > { %4533 = vrot.lane.b32.xlu0 %v12665_v1, %s10846_s27 }
 0xaca   : > { %4180 = vmax.xlane.f32.xlu1 %v13036_v24 }
 0xace   : > { %4176 = vmax.xlane.f32.xlu1 %v13040_v30 }
 0xad7   : > { %v4155_v54 = vpop.xlane.xlu0 %4154 }
 0xad8   : > { %v4184_v56 = vsub.f32 %v4096_v29, %v4155_v54 }
 0xad9   : > { %v4151_v0 = vpop.xlane.xlu1 %4150 }
 0xada   : > { %v4202_v16 = vmul.f32 1.442695, %v4184_v56  ;;  %v4182_v8 = vsub.f32 %v4088_v22, %v4151_v0 }
 0xadc   : > { %10396 = vpow2.f32 %v4202_v16  ;;  %v4198_v51 = vmul.f32 1.442695, %v4182_v8 }
 0xadd   : > { %v4157_v31 = vpop.xlane.xlu1 %4156  ;;  %v4153_v43 = vpop.xlane.xlu0 %4152 }
 0xade   : > { %v4185_v59 = vsub.f32 %v4099_v11, %v4157_v31  ;;  %10398 = vpow2.f32 %v4198_v51  ;;  %v4183_v34 = vsub.f32 %v12978_v5, %v4153_v43 }
 0xae0   : > { %v4204_v36 = vmul.f32 1.442695, %v4185_v59  ;;  %v4200_v46 = vmul.f32 1.442695, %v4183_v34 }
 0xae1   : > { %v4315_v45 = vpop.permute.xlu0 %4314  ;;  %v4313_v55 = vpop.permute.xlu1 %4312 }
 0xae2   : > { %9599 = vmatprep.subr.bf16.mxu0 %v4315_v45  ;;  %10400 = vpow2.f32 %v4204_v36 }
 0xae3   : > { %9600 = vmatpush3.bf16.msra.mxu0 %v4315_v45  ;;  %10402 = vpow2.f32 %v4200_v46 }
 0xae4   : > { %9601 = vmatprep.subr.bf16.mxu0 %v4313_v55 }
 0xae7   : > { %9602 = vmatpush3.bf16.msra.mxu0 %v4313_v55 }
 0xae9   : > { %v13044_v29 = vpop.eup %10396 }
 0xaea   : > { %4234 = vadd.xlane.f32.xlu1 %v13044_v29 }
 0xaeb   : > { %v13047_v22 = vpop.eup %10398 }
 0xaee   : > { %4230 = vadd.xlane.f32.xlu1 %v13047_v22 }
 0xaef   : > { %v13050_v11 = vpop.eup %10400 }
 0xaf0   : > { %v13053_v5 = vpop.eup %10402 }
 0xaf2   : > { %4236 = vadd.xlane.f32.xlu1 %v13050_v11 }
 0xaf6   : > { %4232 = vadd.xlane.f32.xlu1 %v13053_v5 }
 0xb07   : > { %4535 = vrot.lane.b32.xlu1 %v12655_v32, %s10846_s27 }
 0xb12   : > { %v4165_v19 = vpop.xlane.xlu1 %4164  ;;  %v4163_v50 = vpop.xlane.xlu0 %4162 }
 0xb13   : > { %v4188_v26 = vsub.f32 %v12986_v49, %v4163_v50  ;;  %v4189_v56 = vsub.f32 %v12989_v27, %v4165_v19 }
 0xb15   : > { %v4210_v35 = vmul.f32 1.442695, %v4188_v26  ;;  %v4212_v51 = vmul.f32 1.442695, %v4189_v56 }
 0xb16   : > { %v4161_v44 = vpop.xlane.xlu1 %4160  ;;  %v4159_v20 = vpop.xlane.xlu0 %4158 }
 0xb17   : > { %v4187_v33 = vsub.f32 %v12997_v17, %v4161_v44  ;;  %v4186_v54 = vsub.f32 %v12994_v12, %v4159_v20  ;;  %10404 = vpow2.f32 %v4210_v35 }
 0xb19   : > { %v4208_v0 = vmul.f32 1.442695, %v4187_v33  ;;  %v4206_v16 = vmul.f32 1.442695, %v4186_v54 }
 0xb1a   : > { %v4171_v8 = vpop.xlane.xlu0 %4170  ;;  %v4173_v49 = vpop.xlane.xlu1 %4172 }
 0xb1b   : > { %10406 = vpow2.f32 %v4208_v0  ;;  %v4192_v31 = vsub.f32 %v13002_v62, %v4171_v8  ;;  %v4193_v27 = vsub.f32 %v13005_v6, %v4173_v49 }
 0xb1c   : > { %10408 = vpow2.f32 %v4206_v16 }
 0xb1d   : > { %10410 = vpow2.f32 %v4212_v51  ;;  %v4218_v59 = vmul.f32 1.442695, %v4192_v31 }
 0xb1e   : > { %v4167_v43 = vpop.xlane.xlu0 %4166  ;;  %v4169_v46 = vpop.xlane.xlu1 %4168 }
 0xb1f   : > { %v4190_v36 = vsub.f32 %v13010_v23, %v4167_v43  ;;  %10412 = vpow2.f32 %v4218_v59  ;;  %v4220_v23 = vmul.f32 1.442695, %v4193_v27  ;;  %v4191_v26 = vsub.f32 %v13013_v48, %v4169_v46 }
 0xb21   : > { %v4214_v45 = vmul.f32 1.442695, %v4190_v36 }
 0xb22   : > { %v4179_v17 = vpop.xlane.xlu0 %4178  ;;  %v13077_v44 = vpop.permute.xlu1 %4541 }
 0xb23   : > { %v4196_v12 = vsub.f32 %v13018_v58, %v4179_v17 }
 0xb24   : > { %v13065_v34 = vpop.eup %10404 }
 0xb25   : > { %v4226_v55 = vmul.f32 1.442695, %v4196_v12  ;;  %4242 = vadd.xlane.f32.xlu0 %v13065_v34 }
 0xb26   : > { %v4175_v62 = vpop.xlane.xlu0 %4174 }
 0xb27   : > { %10414 = vpow2.f32 %v4226_v55  ;;  %v4194_v19 = vsub.f32 %v13022_v7, %v4175_v62  ;;  %v4216_v7 = vmul.f32 1.442695, %v4191_v26 }
 0xb28   : > { %v13070_v50 = vpop.eup %10406  ;;  %10416 = vpow2.f32 %v4214_v45 }
 0xb29   : > { %v4222_v58 = vmul.f32 1.442695, %v4194_v19  ;;  %v13073_v35 = vpop.eup %10408  ;;  %4240 = vadd.xlane.f32.xlu0 %v13070_v50 }
 0xb2a   : > { %v4311_v6 = vpop.permute.xlu0 %4310  ;;  %v13081_v48 = vpop.eup %10410 }
 0xb2b   : > { %10418 = vpow2.f32 %v4222_v58  ;;  %4238 = vadd.xlane.f32.xlu1 %v13073_v35  ;;  %9603 = vmatprep.subr.bf16.mxu0 %v4311_v6 }
 0xb2c   : > { %9604 = vmatpush3.bf16.msra.mxu0 %v4311_v6  ;;  %10420 = vpow2.f32 %v4220_v23  ;;  %v13084_v20 = vpop.eup %10412 }
 0xb2d   : > { %9861 = vmatprep.subr.msk.bf16.mxu0 %vm1511_vm0, %v13077_v44  ;;  %10422 = vpow2.f32 %v4216_v7 }
 0xb2f   : > { %4244 = vadd.xlane.f32.xlu1 %v13081_v48 }
 0xb33   : > { %4250 = vadd.xlane.f32.xlu1 %v13084_v20 }
 0xb34   : > { %v13087_v33 = vpop.eup %10414 }
 0xb35   : > { %4258 = vadd.xlane.f32.xlu0 %v13087_v33  ;;  %v13090_v54 = vpop.eup %10416 }
 0xb37   : > { %4246 = vadd.xlane.f32.xlu1 %v13090_v54 }
 0xb38   : > { %v13093_v56 = vpop.eup %10418 }
 0xb39   : > { %4254 = vadd.xlane.f32.xlu0 %v13093_v56  ;;  %v13096_v0 = vpop.eup %10420 }
 0xb3a   : > { %v13099_v16 = vpop.eup %10422 }
 0xb3b   : > { %4252 = vadd.xlane.f32.xlu1 %v13096_v0 }
 0xb3f   : > { %4248 = vadd.xlane.f32.xlu1 %v13099_v16 }
 0xb53   : > { %v4181_v8 = vpop.xlane.xlu1 %4180 }
 0xb54   : > { %v4197_v51 = vsub.f32 %v13036_v24, %v4181_v8  ;;  %v4589_v8 = vsel %vm1511_vm0, %v13077_v44, 0 }
 0xb56   : > { %v4228_v31 = vmul.f32 1.442695, %v4197_v51 }
 0xb57   : > { %v4177_v43 = vpop.xlane.xlu1 %4176 }
 0xb58   : > { %10424 = vpow2.f32 %v4228_v31  ;;  %v4195_v49 = vsub.f32 %v13040_v30, %v4177_v43 }
 0xb5a   : > { %v4224_v59 = vmul.f32 1.442695, %v4195_v49 }
 0xb5c   : > { %10426 = vpow2.f32 %v4224_v59 }
 0xb65   : > { %v13104_v36 = vpop.eup %10424 }
 0xb66   : > { %4260 = vadd.xlane.f32.xlu0 %v13104_v36 }
 0xb69   : > { %v13107_v17 = vpop.eup %10426 }
 0xb6a   : > { %4256 = vadd.xlane.f32.xlu1 %v13107_v17 }
 0xb73   : > { %v4235_v12 = vpop.xlane.xlu1 %4234 }
 0xb77   : > { %v4231_v27 = vpop.xlane.xlu1 %4230 }
 0xb7b   : > { %v4237_v45 = vpop.xlane.xlu1 %4236  ;;  %4531 = vrot.lane.b32.xlu1 %v12675_v61, %s10846_s27 }
 0xb7c   : > { %4529 = vrot.lane.b32.xlu0 %v12685_v4, %s10846_s27  ;;  %10428 = vrcp.f32 %v4237_v45 }
 0xb7d   : > { %10430 = vrcp.f32 %v4231_v27 }
 0xb7e   : > { %10432 = vrcp.f32 %v4235_v12 }
 0xb7f   : > { %v4233_v24 = vpop.xlane.xlu1 %4232  ;;  %4511 = vrot.lane.b32.xlu1 %v15615_v39, %s10846_s27 }
 0xb80   : > { %10434 = vrcp.f32 %v4233_v24  ;;  %4527 = vrot.lane.b32.xlu0 %v12695_v63, %s10846_s27 }
 0xb83   : > { %4515 = vrot.lane.b32.xlu1 %v15617_v42, %s10846_s27  ;;  %v4536_v44 = vpop.permute.xlu1 %4535 }
 0xb84   : > { %4513 = vrot.lane.b32.xlu0 %v15616_v37, %s10846_s27  ;;  %v4580_v31 = vsel %vm1511_vm0, %v4536_v44, 0 }
 0xb87   : > { %4519 = vrot.lane.b32.xlu1 %v15619_v38, %s10846_s27 }
 0xb88   : > { %4517 = vrot.lane.b32.xlu0 %v15618_v40, %s10846_s27 }
 0xb89   : > { %v10429_v30 = vpop.eup %10428 }
 0xb8a   : > { %v10431_v55 = vpop.eup %10430  ;;  %v4281_v19 = vmul.f32 %v10429_v30, %v13050_v11  ;;  %v4540_v11 = vpop.permute.xlu0 %4539 }
 0xb8b   : > { %4523 = vrot.lane.b32.xlu1 %v15621_v25, %s10846_s27  ;;  %v10433_v46 = vpop.eup %10432  ;;  %v4278_v23 = vmul.f32 %v10431_v55, %v13047_v22 }
 0xb8c   : > { %4521 = vrot.lane.b32.xlu0 %v15620_v3, %s10846_s27  ;;  %v4280_v58 = vmul.f32 %v10433_v46, %v13044_v29  ;;  %v4586_v29 = vsel %vm1511_vm0, %v4540_v11, 0 }
 0xb8d   : > { %v10435_v62 = vpop.eup %10434 }
 0xb8e   : > { %v4279_v26 = vmul.f32 %v10435_v62, %v13053_v5  ;;  %v4295_v7 = vpack.c.bf16 %v4281_v19, %v4280_v58  ;;  %v4538_v22 = vpop.permute.xlu0 %4537 }
 0xb8f   : > { %4852 = vrot.lane.b32.xlu1 %v12394_v21, %s10846_s27  ;;  %v4583_v5 = vsel %vm1511_vm0, %v4538_v22, 0 }
 0xb90   : > { %4525 = vrot.lane.b32.xlu0 %v15622_v28, %s10846_s27  ;;  %v4294_v6 = vpack.c.bf16 %v4279_v26, %v4278_v23 }
 0xb92   : > { %9605 = vmatprep.mubr.bf16.mxu0 %v4294_v6  ;;  %v4534_v51 = vpop.permute.xlu0 %4533 }
 0xb93   : > { %9606 = vmatmul.mubr.bf16.vlgmr.msra.gmra.mxu0 %v4295_v7  ;;  %v4577_v59 = vsel %vm1511_vm0, %v4534_v51, 0 }
 0xb94   : > { %9622 = vmatpush3.bf16.xpose.msra.mxu0 %v4589_v8  ;;  %4854 = vrot.lane.b32.xlu0 %v15548_v47, %s10846_s27 }
 0xb95   : > { %9862 = vmatprep.subr.msk.bf16.mxu0 %vm1511_vm0, %v4540_v11 }
 0xb98   : > { %4850 = vrot.lane.b32.xlu0 %v15554_v60, %s10846_s27 }
 0xb9c   : > { %9624 = vmatpush3.bf16.xpose.msra.mxu0 %v4586_v29  ;;  %4848 = vrot.lane.b32.xlu0 %v12406_v53, %s10846_s27 }
 0xb9d   : > { %9863 = vmatprep.subr.msk.bf16.mxu0 %vm1511_vm0, %v4538_v22 }
 0xba0   : > { %4846 = vrot.lane.b32.xlu0 %v15557_v15, %s10846_s27 }
 0xba4   : > { %9626 = vmatpush3.bf16.xpose.msra.mxu0 %v4583_v5 }
 0xba5   : > { %9864 = vmatprep.subr.msk.bf16.mxu0 %vm1511_vm0, %v4536_v44 }
 0xbac   : > { %9628 = vmatpush3.bf16.xpose.msra.mxu0 %v4580_v31 }
 0xbad   : > { %9865 = vmatprep.subr.msk.bf16.mxu0 %vm1511_vm0, %v4534_v51 }
 0xbae   : > { %v4243_v43 = vpop.xlane.xlu0 %4242 }
 0xbb2   : > { %v4241_v49 = vpop.xlane.xlu0 %4240 }
 0xbb3   : > { %10436 = vrcp.f32 %v4241_v49 }
 0xbb4   : > { %9630 = vmatpush3.bf16.xpose.msra.mxu0 %v4577_v59  ;;  %v4239_v12 = vpop.xlane.xlu1 %4238 }
 0xbb5   : > { %10438 = vrcp.f32 %v4239_v12 }
 0xbb6   : > { %10440 = vrcp.f32 %v4243_v43 }
 0xbb8   : > { %v4245_v27 = vpop.xlane.xlu1 %4244 }
 0xbb9   : > { %10442 = vrcp.f32 %v4245_v27 }
 0xbbc   : > { %v4251_v45 = vpop.xlane.xlu1 %4250 }
 0xbc0   : > { %v4247_v24 = vpop.xlane.xlu1 %4246  ;;  %v10437_v30 = vpop.eup %10436 }
 0xbc1   : > { %v4283_v62 = vmul.f32 %v10437_v30, %v13070_v50 }
 0xbc2   : > { %v10439_v55 = vpop.eup %10438 }
 0xbc3   : > { %v4282_v46 = vmul.f32 %v10439_v55, %v13073_v35  ;;  %v10441_v19 = vpop.eup %10440 }
 0xbc4   : > { %v4253_v23 = vpop.xlane.xlu1 %4252  ;;  %v4284_v6 = vmul.f32 %v10441_v19, %v13065_v34 }
 0xbc5   : > { %v4296_v26 = vpack.c.bf16 %v4283_v62, %v4282_v46  ;;  %10444 = vrcp.f32 %v4253_v23 }
 0xbc6   : > { %v10443_v58 = vpop.eup %10442  ;;  %10446 = vrcp.f32 %v4247_v24 }
 0xbc7   : > { %9609 = vmatprep.mubr.bf16.mxu0 %v4296_v26  ;;  %v4285_v7 = vmul.f32 %v10443_v58, %v13081_v48  ;;  %10448 = vrcp.f32 %v4251_v45  ;;  %v4259_v48 = vpop.xlane.xlu0 %4258 }
 0xbc8   : > { %v4249_v8 = vpop.xlane.xlu1 %4248 }
 0xbc9   : > { %10450 = vrcp.f32 %v4249_v8  ;;  %v4297_v11 = vpack.c.bf16 %v4285_v7, %v4284_v6 }
 0xbcb   : > { %9610 = vmatmul.mubr.bf16.gmra.mxu0 %v4297_v11  ;;  %v4255_v49 = vpop.xlane.xlu0 %4254 }
 0xbd2   : > { %v10445_v29 = vpop.eup %10444 }
 0xbd3   : > { %v10447_v35 = vpop.eup %10446  ;;  %v4289_v5 = vmul.f32 %v10445_v29, %v13096_v0 }
 0xbd4   : > { %v10449_v22 = vpop.eup %10448  ;;  %v4286_v44 = vmul.f32 %v10447_v35, %v13090_v54 }
 0xbd5   : > { %v4288_v31 = vmul.f32 %v10449_v22, %v13084_v20 }
 0xbd6   : > { %v10451_v50 = vpop.eup %10450 }
 0xbd7   : > { %v4287_v51 = vmul.f32 %v10451_v50, %v13099_v16  ;;  %v4299_v43 = vpack.c.bf16 %v4289_v5, %v4288_v31 }
 0xbd9   : > { %v4298_v34 = vpack.c.bf16 %v4287_v51, %v4286_v44 }
 0xbdb   : > { %9613 = vmatprep.mubr.bf16.mxu0 %v4298_v34 }
 0xbdc   : > { %9614 = vmatmul.mubr.bf16.gmra.mxu0 %v4299_v43 }
 0xbef   : > { %v4261_v59 = vpop.xlane.xlu0 %4260 }
 0xbf0   : > { %10452 = vrcp.f32 %v4261_v59 }
 0xbf1   : > { %10454 = vrcp.f32 %v4255_v49 }
 0xbf2   : > { %10456 = vrcp.f32 %v4259_v48 }
 0xbf3   : > { %v4257_v12 = vpop.xlane.xlu1 %4256  ;;  %v4530_v27 = vpop.permute.xlu0 %4529 }
 0xbf4   : > { %10458 = vrcp.f32 %v4257_v12  ;;  %v4571_v19 = vsel %vm1511_vm0, %v4530_v27, 0 }
 0xbf7   : > { %v4532_v0 = vpop.permute.xlu1 %4531  ;;  %v4528_v45 = vpop.permute.xlu0 %4527 }
 0xbf8   : > { %9866 = vmatprep.subr.msk.bf16.mxu0 %vm1511_vm0, %v4532_v0  ;;  %v4574_v54 = vsel %vm1511_vm0, %v4532_v0, 0 }
 0xbf9   : > { %9632 = vmatpush3.bf16.xpose.msra.mxu0 %v4574_v54 }
 0xbfa   : > { %9867 = vmatprep.subr.msk.bf16.mxu0 %vm1511_vm0, %v4530_v27 }
 0xbfb   : > { %v4512_v20 = vpop.permute.xlu1 %4511  ;;  %v4514_v16 = vpop.permute.xlu0 %4513 }
 0xbfd   : > { %v10453_v24 = vpop.eup %10452 }
 0xbfe   : > { %v10455_v30 = vpop.eup %10454  ;;  %v4293_v26 = vmul.f32 %v10453_v24, %v13104_v36  ;;  %v4568_v36 = vsel %vm1511_vm0, %v4528_v45, 0 }
 0xbff   : > { %v4516_v55 = vpop.permute.xlu1 %4515  ;;  %v4518_v46 = vpop.permute.xlu0 %4517  ;;  %v4290_v58 = vmul.f32 %v10455_v30, %v13093_v56 }
 0xc00   : > { %v10457_v62 = vpop.eup %10456 }
 0xc01   : > { %v10459_v23 = vpop.eup %10458  ;;  %9634 = vmatpush3.bf16.xpose.msra.mxu0 %v4571_v19  ;;  %v4292_v11 = vmul.f32 %v10457_v62, %v13087_v33 }
 0xc02   : > { %9868 = vmatprep.subr.msk.bf16.mxu0 %vm1511_vm0, %v4528_v45  ;;  %v4291_v6 = vmul.f32 %v10459_v23, %v13107_v17 }
 0xc03   : > { %v4520_v7 = vpop.permute.xlu1 %4519  ;;  %v4522_v8 = vpop.permute.xlu0 %4521  ;;  %v4301_v35 = vpack.c.bf16 %v4293_v26, %v4292_v11 }
 0xc04   : > { %v4300_v29 = vpack.c.bf16 %v4291_v6, %v4290_v58 }
 0xc06   : > { %9617 = vmatprep.mubr.bf16.mxu0 %v4300_v29 }
 0xc07   : > { %v4524_v22 = vpop.permute.xlu1 %4523  ;;  %9618 = vmatmul.mubr.bf16.gmra.mxu0 %v4301_v35  ;;  %v4526_v50 = vpop.permute.xlu0 %4525 }
 0xc08   : > { %9637 = vmatprep.mubr.msk.bf16.mxu0 %vm1511_vm0, %v4512_v20 }
 0xc09   : > { %9636 = vmatpush3.bf16.xpose.msra.mxu0 %v4568_v36 }
 0xc0b   : > { %v4855_v5 = vpop.permute.xlu0 %4854  ;;  %v4853_v56 = vpop.permute.xlu1 %4852 }
 0xc0c   : > { %9653 = vmatprep.subr.bf16.mxu1 %v4855_v5 }
 0xc0d   : > { %9654 = vmatpush3.bf16.msra.mxu1 %v4855_v5 }
 0xc0e   : > { %9655 = vmatprep.subr.bf16.mxu1 %v4853_v56 }
 0xc0f   : > { %v4851_v17 = vpop.permute.xlu0 %4850 }
 0xc10   : > { %9638 = vmatmul.mubr.msk.bf16.vlgmr.msra.gmra.mxu0 %vm1511_vm0, %v4514_v16 }
 0xc11   : > { %9641 = vmatprep.mubr.msk.bf16.mxu0 %vm1511_vm0, %v4516_v55  ;;  %9656 = vmatpush3.bf16.msra.mxu1 %v4853_v56 }
 0xc12   : > { %9657 = vmatprep.subr.bf16.mxu1 %v4851_v17 }
 0xc13   : > { %v4849_v33 = vpop.permute.xlu0 %4848 }
 0xc15   : > { %9658 = vmatpush3.bf16.msra.mxu1 %v4851_v17 }
 0xc16   : > { %9659 = vmatprep.subr.bf16.mxu1 %v4849_v33 }
 0xc17   : > { %v4847_v44 = vpop.permute.xlu0 %4846 }
 0xc18   : > { %9642 = vmatmul.mubr.msk.bf16.gmra.mxu0 %vm1511_vm0, %v4518_v46  ;;  %v13215_v46 = vld [vmem:[%s15488_s3 + $0x1] ss:$0 sm:$0xff] }
 0xc19   : > { %9645 = vmatprep.mubr.msk.bf16.mxu0 %vm1511_vm0, %v4520_v7  ;;  %9660 = vmatpush3.bf16.msra.mxu1 %v4849_v33 }
 0xc1a   : > { %9661 = vmatprep.subr.bf16.mxu1 %v4847_v44 }
 0xc1d   : > { %9662 = vmatpush3.bf16.msra.mxu1 %v4847_v44 }
 0xc20   : > { %9646 = vmatmul.mubr.msk.bf16.gmra.mxu0 %vm1511_vm0, %v4522_v8 }
 0xc21   : > { %9649 = vmatprep.mubr.msk.bf16.mxu0 %vm1511_vm0, %v4524_v22 }
 0xc28   : > { %9650 = vmatmul.mubr.msk.bf16.gmra.mxu0 %vm1511_vm0, %v4526_v50 }
 0xc53   : > { %v13182_v51 = vpop.f32.mrf.mxu0 }
 0xc55   : > { %v13184_v31 = vpop.f32.mrf.mxu0 }
 0xc57   : > { %v13186_v34 = vpop.f32.mrf.mxu0 }
 0xc59   : > { %v13188_v43 = vpop.f32.mrf.mxu0 }
 0xc8b   : > { %v13190_v48 = vpop.f32.mrf.mxu0 }
 0xc8d   : > { %v13192_v49 = vpop.f32.mrf.mxu0 }
 0xc8f   : > { %v13194_v59 = vpop.f32.mrf.mxu0 }
 0xc91   : > { %v13196_v12 = vpop.f32.mrf.mxu0 }
 0xc9c   : > { %v13198_v27 = vpop.f32.mrf.mxu0 }
 0xc9d   : > { %15639 = vst [vmem:[#allocation57_spill] sm:$0xff] %v13198_v27 }
 0xc9e   : > { %v13200_v0 = vpop.f32.mrf.mxu0 }
 0xca0   : > { %v13202_v45 = vpop.f32.mrf.mxu0 }
 0xca1   : > { %15640 = vst [vmem:[#allocation58_spill] sm:$0xff] %v13202_v45 }
 0xca2   : > { %v13204_v54 = vpop.f32.mrf.mxu0 }
 0xcc7   : > { %v13206_v20 = vpop.f32.mrf.mxu0 }
 0xcc8   : > { %15641 = vst [vmem:[#allocation53_spill] sm:$0xff] %v13206_v20 }
 0xcc9   : > { %v13208_v16 = vpop.f32.mrf.mxu0 }
 0xcca   : > { %15642 = vst [vmem:[#allocation48_spill] sm:$0xff] %v13208_v16 }
 0xccb   : > { %v13210_v24 = vpop.f32.mrf.mxu0 }
 0xccc   : > { %15643 = vst [vmem:[#allocation52_spill] sm:$0xff] %v13210_v24 }
 0xccd   : > { %v13212_v30 = vpop.f32.mrf.mxu0 }
 0xcce   : > { %15644 = vst [vmem:[#allocation49_spill] sm:$0xff] %v13212_v30 }
 0xcd0   : > { %v9639_v55 = vpop.f32.mrf.mxu0 }
 0xcd1   : > { %v4634_v62 = vadd.f32 %v13215_v46, %v9639_v55 }
 0xcd2   : > { %v4625_v19 = vpop.f32.mrf.mxu0 }
 0xcd3   : > { %v4626_v23 = vadd.f32 %v13215_v46, %v4625_v19  ;;  %4692 = vmax.xlane.f32.xlu0 %v4634_v62 }
 0xcd4   : > { %v9640_v26 = vpop.f32.mrf.mxu0 }
 0xcd5   : > { %4688 = vmax.xlane.f32.xlu1 %v4626_v23  ;;  %v4637_v6 = vadd.f32 %v13215_v46, %v9640_v26 }
 0xcd6   : > { %v4628_v58 = vpop.f32.mrf.mxu0 }
 0xcd7   : > { %v13221_v7 = vadd.f32 %v13215_v46, %v4628_v58 }
 0xcd8   : > { %v9643_v8 = vpop.f32.mrf.mxu0 }
 0xcd9   : > { %4690 = vmax.xlane.f32.xlu0 %v13221_v7  ;;  %4694 = vmax.xlane.f32.xlu1 %v4637_v6  ;;  %v13229_v50 = vadd.f32 %v13215_v46, %v9643_v8 }
 0xcda   : > { %v4641_v11 = vpop.f32.mrf.mxu0 }
 0xcdb   : > { %v13237_v56 = vadd.f32 %v13215_v46, %v4641_v11 }
 0xcdc   : > { %v9644_v29 = vpop.f32.mrf.mxu0 }
 0xcdd   : > { %v13232_v36 = vadd.f32 %v13215_v46, %v9644_v29 }
 0xcde   : > { %v4644_v35 = vpop.f32.mrf.mxu0 }
 0xcdf   : > { %v13240_v17 = vadd.f32 %v13215_v46, %v4644_v35 }
 0xce0   : > { %v9647_v22 = vpop.f32.mrf.mxu0 }
 0xce1   : > { %v13245_v44 = vadd.f32 %v13215_v46, %v9647_v22 }
 0xce2   : > { %v4657_v5 = vpop.f32.mrf.mxu0 }
 0xce3   : > { %v13253_v26 = vadd.f32 %v13215_v46, %v4657_v5 }
 0xce4   : > { %v9648_v33 = vpop.f32.mrf.mxu0 }
 0xce5   : > { %v13248_v55 = vadd.f32 %v13215_v46, %v9648_v33 }
 0xce6   : > { %v4660_v19 = vpop.f32.mrf.mxu0 }
 0xce7   : > { %v13256_v58 = vadd.f32 %v13215_v46, %v4660_v19 }
 0xce8   : > { %v9651_v8 = vpop.f32.mrf.mxu0 }
 0xce9   : > { %v13261_v11 = vadd.f32 %v13215_v46, %v9651_v8 }
 0xcea   : > { %4842 = vrot.lane.b32.xlu1 %v15560_v2, %s10846_s27  ;;  %v4673_v29 = vpop.f32.mrf.mxu0 }
 0xceb   : > { %v13265_v35 = vadd.f32 %v13215_v46, %v4673_v29 }
 0xcec   : > { %v9652_v22 = vpop.f32.mrf.mxu0 }
 0xced   : > { %v13279_v5 = vadd.f32 %v13215_v46, %v9652_v22 }
 0xcee   : > { %v4676_v33 = vpop.f32.mrf.mxu0 }
 0xcef   : > { %4844 = vrot.lane.b32.xlu0 %v12418_v10, %s10846_s27 }
 0xd0e   : > { %4700 = vmax.xlane.f32.xlu0 %v13229_v50  ;;  %4702 = vmax.xlane.f32.xlu1 %v13232_v36 }
 0xd12   : > { %4698 = vmax.xlane.f32.xlu1 %v13240_v17  ;;  %4696 = vmax.xlane.f32.xlu0 %v13237_v56 }
 0xd16   : > { %4708 = vmax.xlane.f32.xlu0 %v13245_v44  ;;  %4710 = vmax.xlane.f32.xlu1 %v13248_v55 }
 0xd1a   : > { %4706 = vmax.xlane.f32.xlu1 %v13256_v58  ;;  %4704 = vmax.xlane.f32.xlu0 %v13253_v26 }
 0xd1e   : > { %4716 = vmax.xlane.f32.xlu0 %v13261_v11 }
 0xd22   : > { %4712 = vmax.xlane.f32.xlu0 %v13265_v35 }
 0xd2b   : > { %5071 = vrot.lane.b32.xlu1 %v12621_v52, %s10847_s2  ;;  %v13283_v52 = vadd.f32 %v13215_v46, %v4676_v33 }
 0xd38   : > { %4840 = vrot.lane.b32.xlu0 %v12430_v9, %s10846_s27 }
 0xd3c   : > { %5069 = vrot.lane.b32.xlu0 %v12635_v14, %s10847_s2 }
 0xd40   : > { %5067 = vrot.lane.b32.xlu0 %v12645_v18, %s10847_s2 }
 0xd44   : > { %5063 = vrot.lane.b32.xlu0 %v12665_v1, %s10847_s2 }
 0xd4f   : > { %4718 = vmax.xlane.f32.xlu1 %v13279_v5 }
 0xd53   : > { %4714 = vmax.xlane.f32.xlu1 %v13283_v52 }
 0xd5c   : > { %v4693_v19 = vpop.xlane.xlu0 %4692 }
 0xd5d   : > { %v4722_v14 = vsub.f32 %v4634_v62, %v4693_v19 }
 0xd5e   : > { %v4689_v8 = vpop.xlane.xlu1 %4688 }
 0xd5f   : > { %v4740_v29 = vmul.f32 1.442695, %v4722_v14  ;;  %v4720_v18 = vsub.f32 %v4626_v23, %v4689_v8 }
 0xd61   : > { %10460 = vpow2.f32 %v4740_v29  ;;  %v4736_v24 = vmul.f32 1.442695, %v4720_v18 }
 0xd62   : > { %v4695_v1 = vpop.xlane.xlu1 %4694  ;;  %v4691_v20 = vpop.xlane.xlu0 %4690 }
 0xd63   : > { %v4723_v30 = vsub.f32 %v4637_v6, %v4695_v1  ;;  %10462 = vpow2.f32 %v4736_v24  ;;  %v4721_v16 = vsub.f32 %v13221_v7, %v4691_v20 }
 0xd65   : > { %v4742_v22 = vmul.f32 1.442695, %v4723_v30  ;;  %v4738_v27 = vmul.f32 1.442695, %v4721_v16 }
 0xd66   : > { %v4845_v45 = vpop.permute.xlu0 %4844  ;;  %v4843_v33 = vpop.permute.xlu1 %4842 }
 0xd67   : > { %9663 = vmatprep.subr.bf16.mxu1 %v4845_v45  ;;  %10464 = vpow2.f32 %v4742_v22 }
 0xd68   : > { %9664 = vmatpush3.bf16.msra.mxu1 %v4845_v45  ;;  %10466 = vpow2.f32 %v4738_v27 }
 0xd69   : > { %9665 = vmatprep.subr.bf16.mxu1 %v4843_v33 }
 0xd6c   : > { %9666 = vmatpush3.bf16.msra.mxu1 %v4843_v33 }
 0xd6e   : > { %v13287_v62 = vpop.eup %10460 }
 0xd6f   : > { %4772 = vadd.xlane.f32.xlu1 %v13287_v62 }
 0xd70   : > { %v13290_v23 = vpop.eup %10462 }
 0xd73   : > { %4768 = vadd.xlane.f32.xlu1 %v13290_v23 }
 0xd74   : > { %v13293_v24 = vpop.eup %10464 }
 0xd75   : > { %v13296_v20 = vpop.eup %10466 }
 0xd77   : > { %4774 = vadd.xlane.f32.xlu1 %v13293_v24 }
 0xd7b   : > { %4770 = vadd.xlane.f32.xlu1 %v13296_v20 }
 0xd8c   : > { %5065 = vrot.lane.b32.xlu1 %v12655_v32, %s10847_s2 }
 0xd97   : > { %v4703_v27 = vpop.xlane.xlu1 %4702  ;;  %v4701_v45 = vpop.xlane.xlu0 %4700 }
 0xd98   : > { %v4726_v16 = vsub.f32 %v13229_v50, %v4701_v45  ;;  %v4727_v8 = vsub.f32 %v13232_v36, %v4703_v27 }
 0xd9a   : > { %v4748_v30 = vmul.f32 1.442695, %v4726_v16  ;;  %v4750_v22 = vmul.f32 1.442695, %v4727_v8 }
 0xd9b   : > { %v4699_v6 = vpop.xlane.xlu1 %4698  ;;  %v4697_v7 = vpop.xlane.xlu0 %4696 }
 0xd9c   : > { %v4725_v19 = vsub.f32 %v13240_v17, %v4699_v6  ;;  %v4724_v14 = vsub.f32 %v13237_v56, %v4697_v7  ;;  %10468 = vpow2.f32 %v4748_v30 }
 0xd9e   : > { %v4746_v29 = vmul.f32 1.442695, %v4725_v19  ;;  %v4744_v18 = vmul.f32 1.442695, %v4724_v14 }
 0xd9f   : > { %v4709_v1 = vpop.xlane.xlu0 %4708  ;;  %v4711_v50 = vpop.xlane.xlu1 %4710 }
 0xda0   : > { %10470 = vpow2.f32 %v4746_v29  ;;  %v4730_v32 = vsub.f32 %v13245_v44, %v4709_v1  ;;  %v4731_v36 = vsub.f32 %v13248_v55, %v4711_v50 }
 0xda1   : > { %10472 = vpow2.f32 %v4744_v18 }
 0xda2   : > { %10474 = vpow2.f32 %v4750_v22  ;;  %v4756_v45 = vmul.f32 1.442695, %v4730_v32 }
 0xda3   : > { %v4705_v33 = vpop.xlane.xlu0 %4704  ;;  %v4707_v7 = vpop.xlane.xlu1 %4706 }
 0xda4   : > { %v4728_v16 = vsub.f32 %v13253_v26, %v4705_v33  ;;  %10476 = vpow2.f32 %v4756_v45  ;;  %v4758_v26 = vmul.f32 1.442695, %v4731_v36  ;;  %v4729_v8 = vsub.f32 %v13256_v58, %v4707_v7 }
 0xda6   : > { %v4752_v27 = vmul.f32 1.442695, %v4728_v16 }
 0xda7   : > { %v4717_v17 = vpop.xlane.xlu0 %4716  ;;  %v13320_v18 = vpop.permute.xlu1 %5071 }
 0xda8   : > { %v4734_v56 = vsub.f32 %v13261_v11, %v4717_v17 }
 0xda9   : > { %v13308_v30 = vpop.eup %10468 }
 0xdaa   : > { %v4764_v6 = vmul.f32 1.442695, %v4734_v56  ;;  %4780 = vadd.xlane.f32.xlu0 %v13308_v30 }
 0xdab   : > { %v4713_v44 = vpop.xlane.xlu0 %4712 }
 0xdac   : > { %10478 = vpow2.f32 %v4764_v6  ;;  %v4732_v19 = vsub.f32 %v13265_v35, %v4713_v44  ;;  %v4754_v35 = vmul.f32 1.442695, %v4729_v8 }
 0xdad   : > { %v13313_v14 = vpop.eup %10470  ;;  %10480 = vpow2.f32 %v4752_v27 }
 0xdae   : > { %v4760_v11 = vmul.f32 1.442695, %v4732_v19  ;;  %v13316_v29 = vpop.eup %10472  ;;  %4778 = vadd.xlane.f32.xlu0 %v13313_v14 }
 0xdaf   : > { %v4841_v55 = vpop.permute.xlu0 %4840  ;;  %v13324_v58 = vpop.eup %10474 }
 0xdb0   : > { %10482 = vpow2.f32 %v4760_v11  ;;  %4776 = vadd.xlane.f32.xlu1 %v13316_v29  ;;  %9667 = vmatprep.subr.bf16.mxu1 %v4841_v55 }
 0xdb1   : > { %9668 = vmatpush3.bf16.msra.mxu1 %v4841_v55  ;;  %10484 = vpow2.f32 %v4758_v26  ;;  %v13327_v1 = vpop.eup %10476 }
 0xdb2   : > { %9869 = vmatprep.subr.msk.bf16.mxu1 %vm1511_vm0, %v13320_v18  ;;  %10486 = vpow2.f32 %v4754_v35 }
 0xdb4   : > { %4782 = vadd.xlane.f32.xlu1 %v13324_v58 }
 0xdb8   : > { %4788 = vadd.xlane.f32.xlu1 %v13327_v1 }
 0xdb9   : > { %v13330_v22 = vpop.eup %10478 }
 0xdba   : > { %4796 = vadd.xlane.f32.xlu0 %v13330_v22  ;;  %v13333_v32 = vpop.eup %10480 }
 0xdbc   : > { %4784 = vadd.xlane.f32.xlu1 %v13333_v32 }
 0xdbd   : > { %v13336_v33 = vpop.eup %10482 }
 0xdbe   : > { %4792 = vadd.xlane.f32.xlu0 %v13336_v33  ;;  %v13339_v50 = vpop.eup %10484 }
 0xdbf   : > { %v13342_v45 = vpop.eup %10486 }
 0xdc0   : > { %4790 = vadd.xlane.f32.xlu1 %v13339_v50 }
 0xdc4   : > { %4786 = vadd.xlane.f32.xlu1 %v13342_v45 }
 0xdd8   : > { %v4719_v16 = vpop.xlane.xlu1 %4718 }
 0xdd9   : > { %v4735_v17 = vsub.f32 %v13279_v5, %v4719_v16 }
 0xddb   : > { %v4766_v56 = vmul.f32 1.442695, %v4735_v17 }
 0xddc   : > { %v4715_v36 = vpop.xlane.xlu1 %4714 }
 0xddd   : > { %10488 = vpow2.f32 %v4766_v56  ;;  %v4733_v27 = vsub.f32 %v13283_v52, %v4715_v36 }
 0xddf   : > { %v4762_v6 = vmul.f32 1.442695, %v4733_v27 }
 0xde1   : > { %10490 = vpow2.f32 %v4762_v6 }
 0xdea   : > { %v13347_v7 = vpop.eup %10488 }
 0xdeb   : > { %4798 = vadd.xlane.f32.xlu0 %v13347_v7 }
 0xdee   : > { %v13350_v44 = vpop.eup %10490 }
 0xdef   : > { %4794 = vadd.xlane.f32.xlu1 %v13350_v44 }
 0xdf8   : > { %v4773_v19 = vpop.xlane.xlu1 %4772 }
 0xdfc   : > { %v4769_v26 = vpop.xlane.xlu1 %4768 }
 0xe00   : > { %v4775_v8 = vpop.xlane.xlu1 %4774  ;;  %5061 = vrot.lane.b32.xlu1 %v12675_v61, %s10847_s2 }
 0xe01   : > { %5059 = vrot.lane.b32.xlu0 %v12685_v4, %s10847_s2  ;;  %10492 = vrcp.f32 %v4775_v8 }
 0xe02   : > { %10494 = vrcp.f32 %v4769_v26 }
 0xe03   : > { %10496 = vrcp.f32 %v4773_v19 }
 0xe04   : > { %v4771_v5 = vpop.xlane.xlu1 %4770  ;;  %5041 = vrot.lane.b32.xlu1 %v15615_v39, %s10847_s2 }
 0xe05   : > { %10498 = vrcp.f32 %v4771_v5  ;;  %5057 = vrot.lane.b32.xlu0 %v12695_v63, %s10847_s2 }
 0xe08   : > { %5045 = vrot.lane.b32.xlu1 %v15617_v42, %s10847_s2 }
 0xe09   : > { %5043 = vrot.lane.b32.xlu0 %v15616_v37, %s10847_s2 }
 0xe0c   : > { %5049 = vrot.lane.b32.xlu1 %v15619_v38, %s10847_s2 }
 0xe0d   : > { %5047 = vrot.lane.b32.xlu0 %v15618_v40, %s10847_s2 }
 0xe0e   : > { %v10493_v61 = vpop.eup %10492 }
 0xe0f   : > { %v10495_v4 = vpop.eup %10494  ;;  %v4819_v42 = vmul.f32 %v10493_v61, %v13293_v24  ;;  %v5070_v24 = vpop.permute.xlu0 %5069 }
 0xe10   : > { %5053 = vrot.lane.b32.xlu1 %v15621_v25, %s10847_s2  ;;  %v10497_v39 = vpop.eup %10496  ;;  %v4816_v37 = vmul.f32 %v10495_v4, %v13290_v23  ;;  %v5066_v23 = vpop.permute.xlu1 %5065 }
 0xe11   : > { %5051 = vrot.lane.b32.xlu0 %v15620_v3, %s10847_s2  ;;  %v4818_v38 = vmul.f32 %v10497_v39, %v13287_v62  ;;  %v5119_v3 = vsel %vm1511_vm0, %v13320_v18, 0 }
 0xe12   : > { %v10499_v63 = vpop.eup %10498 }
 0xe13   : > { %v4817_v52 = vmul.f32 %v10499_v63, %v13296_v20  ;;  %v4833_v25 = vpack.c.bf16 %v4819_v42, %v4818_v38  ;;  %v5110_v20 = vsel %vm1511_vm0, %v5066_v23, 0 }
 0xe14   : > { %5382 = vrot.lane.b32.xlu1 %v12394_v21, %s10847_s2  ;;  %v5116_v21 = vsel %vm1511_vm0, %v5070_v24, 0 }
 0xe15   : > { %5055 = vrot.lane.b32.xlu0 %v15622_v28, %s10847_s2  ;;  %v4832_v40 = vpack.c.bf16 %v4817_v52, %v4816_v37  ;;  %v5068_v28 = vpop.permute.xlu0 %5067 }
 0xe16   : > { %v5113_v62 = vsel %vm1511_vm0, %v5068_v28, 0 }
 0xe17   : > { %9669 = vmatprep.mubr.bf16.mxu1 %v4832_v40 }
 0xe18   : > { %9670 = vmatmul.mubr.bf16.vlgmr.msra.gmra.mxu1 %v4833_v25 }
 0xe19   : > { %9686 = vmatpush3.bf16.xpose.msra.mxu1 %v5119_v3  ;;  %5384 = vrot.lane.b32.xlu0 %v15548_v47, %s10847_s2  ;;  %v5064_v47 = vpop.permute.xlu0 %5063 }
 0xe1a   : > { %9870 = vmatprep.subr.msk.bf16.mxu1 %vm1511_vm0, %v5070_v24  ;;  %v5107_v55 = vsel %vm1511_vm0, %v5064_v47, 0 }
 0xe1d   : > { %5380 = vrot.lane.b32.xlu0 %v15554_v60, %s10847_s2 }
 0xe21   : > { %9688 = vmatpush3.bf16.xpose.msra.mxu1 %v5116_v21  ;;  %5378 = vrot.lane.b32.xlu0 %v12406_v53, %s10847_s2 }
 0xe22   : > { %9871 = vmatprep.subr.msk.bf16.mxu1 %vm1511_vm0, %v5068_v28 }
 0xe29   : > { %9690 = vmatpush3.bf16.xpose.msra.mxu1 %v5113_v62 }
 0xe2a   : > { %9872 = vmatprep.subr.msk.bf16.mxu1 %vm1511_vm0, %v5066_v23 }
 0xe31   : > { %9692 = vmatpush3.bf16.xpose.msra.mxu1 %v5110_v20 }
 0xe32   : > { %9873 = vmatprep.subr.msk.bf16.mxu1 %vm1511_vm0, %v5064_v47 }
 0xe33   : > { %v4781_v60 = vpop.xlane.xlu0 %4780 }
 0xe37   : > { %v4779_v11 = vpop.xlane.xlu0 %4778 }
 0xe38   : > { %10500 = vrcp.f32 %v4779_v11 }
 0xe39   : > { %9694 = vmatpush3.bf16.xpose.msra.mxu1 %v5107_v55  ;;  %v4777_v53 = vpop.xlane.xlu1 %4776 }
 0xe3a   : > { %10502 = vrcp.f32 %v4777_v53 }
 0xe3b   : > { %10504 = vrcp.f32 %v4781_v60 }
 0xe3d   : > { %v4783_v18 = vpop.xlane.xlu1 %4782 }
 0xe3e   : > { %10506 = vrcp.f32 %v4783_v18 }
 0xe41   : > { %v4789_v35 = vpop.xlane.xlu1 %4788 }
 0xe45   : > { %v4785_v16 = vpop.xlane.xlu1 %4784  ;;  %v10501_v17 = vpop.eup %10500 }
 0xe46   : > { %v4821_v27 = vmul.f32 %v10501_v17, %v13313_v14 }
 0xe47   : > { %v10503_v56 = vpop.eup %10502 }
 0xe48   : > { %v4820_v36 = vmul.f32 %v10503_v56, %v13316_v29  ;;  %v10505_v6 = vpop.eup %10504 }
 0xe49   : > { %v4791_v19 = vpop.xlane.xlu1 %4790  ;;  %v4822_v5 = vmul.f32 %v10505_v6, %v13308_v30 }
 0xe4a   : > { %v4834_v26 = vpack.c.bf16 %v4821_v27, %v4820_v36  ;;  %10508 = vrcp.f32 %v4791_v19 }
 0xe4b   : > { %v10507_v8 = vpop.eup %10506  ;;  %10510 = vrcp.f32 %v4785_v16 }
 0xe4c   : > { %9673 = vmatprep.mubr.bf16.mxu1 %v4834_v26  ;;  %v4823_v61 = vmul.f32 %v10507_v8, %v13324_v58  ;;  %10512 = vrcp.f32 %v4789_v35  ;;  %v4797_v58 = vpop.xlane.xlu0 %4796 }
 0xe4d   : > { %v4787_v4 = vpop.xlane.xlu1 %4786 }
 0xe4e   : > { %10514 = vrcp.f32 %v4787_v4  ;;  %v4835_v39 = vpack.c.bf16 %v4823_v61, %v4822_v5  ;;  %v15645_v5 = vmov 0  }
 0xe50   : > { %9674 = vmatmul.mubr.bf16.gmra.mxu1 %v4835_v39  ;;  %v4793_v3 = vpop.xlane.xlu0 %4792 }
 0xe57   : > { %v10509_v63 = vpop.eup %10508 }
 0xe58   : > { %v10511_v29 = vpop.eup %10510  ;;  %v4827_v37 = vmul.f32 %v10509_v63, %v13339_v50 }
 0xe59   : > { %v10513_v42 = vpop.eup %10512  ;;  %v4824_v52 = vmul.f32 %v10511_v29, %v13333_v32 }
 0xe5a   : > { %v4826_v40 = vmul.f32 %v10513_v42, %v13327_v1 }
 0xe5b   : > { %v10515_v14 = vpop.eup %10514 }
 0xe5c   : > { %v4825_v38 = vmul.f32 %v10515_v14, %v13342_v45  ;;  %v4837_v25 = vpack.c.bf16 %v4827_v37, %v4826_v40 }
 0xe5e   : > { %v4836_v30 = vpack.c.bf16 %v4825_v38, %v4824_v52 }
 0xe60   : > { %9677 = vmatprep.mubr.bf16.mxu1 %v4836_v30 }
 0xe61   : > { %9678 = vmatmul.mubr.bf16.gmra.mxu1 %v4837_v25 }
 0xe74   : > { %v4799_v24 = vpop.xlane.xlu0 %4798 }
 0xe75   : > { %10516 = vrcp.f32 %v4799_v24 }
 0xe76   : > { %10518 = vrcp.f32 %v4793_v3 }
 0xe77   : > { %10520 = vrcp.f32 %v4797_v58 }
 0xe78   : > { %v4795_v21 = vpop.xlane.xlu1 %4794  ;;  %v5060_v28 = vpop.permute.xlu0 %5059 }
 0xe79   : > { %10522 = vrcp.f32 %v4795_v21  ;;  %v5101_v55 = vsel %vm1511_vm0, %v5060_v28, 0 }
 0xe7c   : > { %v5062_v50 = vpop.permute.xlu1 %5061  ;;  %v5058_v62 = vpop.permute.xlu0 %5057 }
 0xe7d   : > { %9874 = vmatprep.subr.msk.bf16.mxu1 %vm1511_vm0, %v5062_v50  ;;  %v5104_v32 = vsel %vm1511_vm0, %v5062_v50, 0 }
 0xe7e   : > { %9696 = vmatpush3.bf16.xpose.msra.mxu1 %v5104_v32 }
 0xe7f   : > { %9875 = vmatprep.subr.msk.bf16.mxu1 %vm1511_vm0, %v5060_v28 }
 0xe80   : > { %v5042_v1 = vpop.permute.xlu1 %5041  ;;  %v5044_v45 = vpop.permute.xlu0 %5043 }
 0xe82   : > { %v10517_v23 = vpop.eup %10516 }
 0xe83   : > { %v10519_v47 = vpop.eup %10518  ;;  %v4831_v18 = vmul.f32 %v10517_v23, %v13347_v7  ;;  %v5098_v7 = vsel %vm1511_vm0, %v5058_v62, 0 }
 0xe84   : > { %v5046_v20 = vpop.permute.xlu1 %5045  ;;  %v5048_v60 = vpop.permute.xlu0 %5047  ;;  %v4828_v35 = vmul.f32 %v10519_v47, %v13336_v33 }
 0xe85   : > { %v10521_v11 = vpop.eup %10520 }
 0xe86   : > { %v10523_v53 = vpop.eup %10522  ;;  %9698 = vmatpush3.bf16.xpose.msra.mxu1 %v5101_v55  ;;  %v4830_v36 = vmul.f32 %v10521_v11, %v13330_v22 }
 0xe87   : > { %9876 = vmatprep.subr.msk.bf16.mxu1 %vm1511_vm0, %v5058_v62  ;;  %v4829_v16 = vmul.f32 %v10523_v53, %v13350_v44 }
 0xe88   : > { %v5050_v17 = vpop.permute.xlu1 %5049  ;;  %v5052_v56 = vpop.permute.xlu0 %5051  ;;  %v4839_v6 = vpack.c.bf16 %v4831_v18, %v4830_v36 }
 0xe89   : > { %v4838_v27 = vpack.c.bf16 %v4829_v16, %v4828_v35 }
 0xe8b   : > { %9681 = vmatprep.mubr.bf16.mxu1 %v4838_v27 }
 0xe8c   : > { %v5054_v19 = vpop.permute.xlu1 %5053  ;;  %9682 = vmatmul.mubr.bf16.gmra.mxu1 %v4839_v6  ;;  %v5056_v26 = vpop.permute.xlu0 %5055 }
 0xe8d   : > { %9701 = vmatprep.mubr.msk.bf16.mxu1 %vm1511_vm0, %v5042_v1 }
 0xe8e   : > { %9700 = vmatpush3.bf16.xpose.msra.mxu1 %v5098_v7 }
 0xe90   : > { %v5385_v8 = vpop.permute.xlu0 %5384  ;;  %v5383_v33 = vpop.permute.xlu1 %5382 }
 0xe91   : > { %9717 = vmatprep.subr.bf16.mxu0 %v5385_v8 }
 0xe92   : > { %9718 = vmatpush3.bf16.msra.mxu0 %v5385_v8 }
 0xe93   : > { %9719 = vmatprep.subr.bf16.mxu0 %v5383_v33 }
 0xe94   : > { %v5381_v44 = vpop.permute.xlu0 %5380 }
 0xe95   : > { %9702 = vmatmul.mubr.msk.bf16.vlgmr.msra.gmra.mxu1 %vm1511_vm0, %v5044_v45 }
 0xe96   : > { %9705 = vmatprep.mubr.msk.bf16.mxu1 %vm1511_vm0, %v5046_v20  ;;  %9720 = vmatpush3.bf16.msra.mxu0 %v5383_v33 }
 0xe97   : > { %9721 = vmatprep.subr.bf16.mxu0 %v5381_v44 }
 0xe98   : > { %v5379_v22 = vpop.permute.xlu0 %5378 }
 0xe9a   : > { %9722 = vmatpush3.bf16.msra.mxu0 %v5381_v44 }
 0xe9b   : > { %9723 = vmatprep.subr.bf16.mxu0 %v5379_v22 }
 0xe9d   : > { %9706 = vmatmul.mubr.msk.bf16.gmra.mxu1 %vm1511_vm0, %v5048_v60 }
 0xe9e   : > { %9709 = vmatprep.mubr.msk.bf16.mxu1 %vm1511_vm0, %v5050_v17  ;;  %9724 = vmatpush3.bf16.msra.mxu0 %v5379_v22 }
 0xea5   : > { %9710 = vmatmul.mubr.msk.bf16.gmra.mxu1 %vm1511_vm0, %v5052_v56 }
 0xea6   : > { %9713 = vmatprep.mubr.msk.bf16.mxu1 %vm1511_vm0, %v5054_v19 }
 0xead   : > { %9714 = vmatmul.mubr.msk.bf16.gmra.mxu1 %vm1511_vm0, %v5056_v26 }
 0xeae   : > { %6576 = vmatprep.mubr.bf16.mxu1 %v15645_v5 }
 0xed8   : > { %v13424_v61 = vpop.f32.mrf.mxu1 }
 0xeda   : > { %v13426_v4 = vpop.f32.mrf.mxu1 }
 0xedc   : > { %v13428_v39 = vpop.f32.mrf.mxu1 }
 0xede   : > { %v13430_v63 = vpop.f32.mrf.mxu1 }
 0xf10   : > { %v13432_v29 = vpop.f32.mrf.mxu1 }
 0xf12   : > { %v13434_v42 = vpop.f32.mrf.mxu1 }
 0xf14   : > { %v13436_v14 = vpop.f32.mrf.mxu1 }
 0xf16   : > { %v13438_v37 = vpop.f32.mrf.mxu1 }
 0xf21   : > { %v13440_v52 = vpop.f32.mrf.mxu1 }
 0xf23   : > { %v13442_v38 = vpop.f32.mrf.mxu1 }
 0xf25   : > { %v13444_v40 = vpop.f32.mrf.mxu1 }
 0xf27   : > { %v13446_v30 = vpop.f32.mrf.mxu1 }
 0xf4c   : > { %v13448_v25 = vpop.f32.mrf.mxu1 }
 0xf4e   : > { %v13450_v58 = vpop.f32.mrf.mxu1 }
 0xf50   : > { %v13452_v3 = vpop.f32.mrf.mxu1 }
 0xf52   : > { %v13454_v24 = vpop.f32.mrf.mxu1 }
 0xf55   : > { %v9703_v21 = vpop.f32.mrf.mxu1 }
 0xf56   : > { %v5164_v28 = vadd.f32 %v13215_v46, %v9703_v21 }
 0xf57   : > { %v5155_v50 = vpop.f32.mrf.mxu1 }
 0xf58   : > { %v5156_v62 = vadd.f32 %v13215_v46, %v5155_v50  ;;  %5222 = vmax.xlane.f32.xlu0 %v5164_v28 }
 0xf59   : > { %v9704_v32 = vpop.f32.mrf.mxu1 }
 0xf5a   : > { %5218 = vmax.xlane.f32.xlu1 %v5156_v62  ;;  %v5167_v45 = vadd.f32 %v13215_v46, %v9704_v32 }
 0xf5b   : > { %v5158_v1 = vpop.f32.mrf.mxu1 }
 0xf5c   : > { %v5159_v23 = vadd.f32 %v13215_v46, %v5158_v1 }
 0xf5d   : > { %v9707_v47 = vpop.f32.mrf.mxu1 }
 0xf5e   : > { %5220 = vmax.xlane.f32.xlu0 %v5159_v23  ;;  %5224 = vmax.xlane.f32.xlu1 %v5167_v45  ;;  %v5180_v60 = vadd.f32 %v13215_v46, %v9707_v47 }
 0xf5f   : > { %v5171_v20 = vpop.f32.mrf.mxu1 }
 0xf60   : > { %v5172_v18 = vadd.f32 %v13215_v46, %v5171_v20 }
 0xf61   : > { %v9708_v11 = vpop.f32.mrf.mxu1 }
 0xf62   : > { %v13462_v55 = vadd.f32 %v13215_v46, %v9708_v11  ;;  %5230 = vmax.xlane.f32.xlu0 %v5180_v60 }
 0xf63   : > { %v5174_v53 = vpop.f32.mrf.mxu1 }
 0xf64   : > { %5232 = vmax.xlane.f32.xlu1 %v13462_v55  ;;  %v5175_v16 = vadd.f32 %v13215_v46, %v5174_v53 }
 0xf65   : > { %v9711_v35 = vpop.f32.mrf.mxu1 }
 0xf66   : > { %5226 = vmax.xlane.f32.xlu0 %v5172_v18  ;;  %v13468_v56 = vadd.f32 %v13215_v46, %v9711_v35 }
 0xf67   : > { %v5187_v17 = vpop.f32.mrf.mxu1 }
 0xf68   : > { %5228 = vmax.xlane.f32.xlu1 %v5175_v16  ;;  %v13475_v19 = vadd.f32 %v13215_v46, %v5187_v17 }
 0xf69   : > { %v9712_v36 = vpop.f32.mrf.mxu1 }
 0xf6a   : > { %v13471_v27 = vadd.f32 %v13215_v46, %v9712_v36  ;;  %5238 = vmax.xlane.f32.xlu0 %v13468_v56 }
 0xf6b   : > { %v5190_v6 = vpop.f32.mrf.mxu1 }
 0xf6c   : > { %5240 = vmax.xlane.f32.xlu1 %v13471_v27  ;;  %v13479_v7 = vadd.f32 %v13215_v46, %v5190_v6 }
 0xf6d   : > { %v9715_v26 = vpop.f32.mrf.mxu1 }
 0xf6e   : > { %5234 = vmax.xlane.f32.xlu0 %v13475_v19  ;;  %v13483_v8 = vadd.f32 %v13215_v46, %v9715_v26 }
 0xf6f   : > { %v5203_v33 = vpop.f32.mrf.mxu1 }
 0xf70   : > { %5236 = vmax.xlane.f32.xlu1 %v13479_v7  ;;  %v13488_v44 = vadd.f32 %v13215_v46, %v5203_v33 }
 0xf71   : > { %v9716_v22 = vpop.f32.mrf.mxu1 }
 0xf72   : > { %5246 = vmax.xlane.f32.xlu0 %v13483_v8  ;;  %v13496_v21 = vadd.f32 %v13215_v46, %v9716_v22 }
 0xf73   : > { %v5206_v50 = vpop.f32.mrf.mxu1 }
 0xf74   : > { %v13500_v32 = vadd.f32 %v13215_v46, %v5206_v50 }
 0xf76   : > { %5242 = vmax.xlane.f32.xlu0 %v13488_v44 }
 0xf81   : > { %5374 = vrot.lane.b32.xlu1 %v12418_v10, %s10847_s2 }
 0xf8c   : > { %5376 = vrot.lane.b32.xlu0 %v15557_v15, %s10847_s2 }
 0xfa5   : > { %5248 = vmax.xlane.f32.xlu1 %v13496_v21 }
 0xfa9   : > { %5244 = vmax.xlane.f32.xlu1 %v13500_v32 }
 0xfe1   : > { %v5223_v1 = vpop.xlane.xlu0 %5222 }
 0xfe2   : > { %v5252_v47 = vsub.f32 %v5164_v28, %v5223_v1 }
 0xfe3   : > { %v5219_v20 = vpop.xlane.xlu1 %5218 }
 0xfe4   : > { %v5270_v11 = vmul.f32 1.442695, %v5252_v47  ;;  %v5250_v10 = vsub.f32 %v5156_v62, %v5219_v20 }
 0xfe6   : > { %10524 = vpow2.f32 %v5270_v11  ;;  %v5266_v53 = vmul.f32 1.442695, %v5250_v10 }
 0xfe7   : > { %v5225_v15 = vpop.xlane.xlu1 %5224  ;;  %v5221_v35 = vpop.xlane.xlu0 %5220 }
 0xfe8   : > { %v5253_v17 = vsub.f32 %v5167_v45, %v5225_v15  ;;  %10526 = vpow2.f32 %v5266_v53  ;;  %v5251_v6 = vsub.f32 %v5159_v23, %v5221_v35 }
 0xfea   : > { %v5272_v36 = vmul.f32 1.442695, %v5253_v17  ;;  %v5268_v46 = vmul.f32 1.442695, %v5251_v6 }
 0xfeb   : > { %v5231_v26 = vpop.xlane.xlu0 %5230 }
 0xfec   : > { %v5256_v33 = vsub.f32 %v5180_v60, %v5231_v26  ;;  %10528 = vpow2.f32 %v5272_v36 }
 0xfed   : > { %v5233_v22 = vpop.xlane.xlu1 %5232 }
 0xfee   : > { %v5278_v50 = vmul.f32 1.442695, %v5256_v33  ;;  %v5257_v28 = vsub.f32 %v13462_v55, %v5233_v22 }
 0xfef   : > { %v5227_v5 = vpop.xlane.xlu0 %5226 }
 0xff0   : > { %10530 = vpow2.f32 %v5278_v50  ;;  %v5254_v1 = vsub.f32 %v5172_v18, %v5227_v5  ;;  %v5280_v10 = vmul.f32 1.442695, %v5257_v28 }
 0xff1   : > { %v5229_v62 = vpop.xlane.xlu1 %5228  ;;  %10532 = vpow2.f32 %v5268_v46 }
 0xff2   : > { %v5274_v47 = vmul.f32 1.442695, %v5254_v1  ;;  %v5255_v20 = vsub.f32 %v5175_v16, %v5229_v62 }
 0xff3   : > { %v13504_v11 = vpop.eup %10524  ;;  %v5239_v45 = vpop.xlane.xlu0 %5238 }
 0xff4   : > { %10534 = vpow2.f32 %v5274_v47  ;;  %v5276_v23 = vmul.f32 1.442695, %v5255_v20  ;;  %5302 = vadd.xlane.f32.xlu1 %v13504_v11  ;;  %v5260_v62 = vsub.f32 %v13468_v56, %v5239_v45 }
 0xff5   : > { %v13507_v60 = vpop.eup %10526  ;;  %v5241_v5 = vpop.xlane.xlu1 %5240 }
 0xff6   : > { %10536 = vpow2.f32 %v5276_v23  ;;  %v5261_v28 = vsub.f32 %v13471_v27, %v5241_v5 }
 0xff7   : > { %v5235_v53 = vpop.xlane.xlu0 %5234  ;;  %10538 = vpow2.f32 %v5280_v10  ;;  %v5286_v10 = vmul.f32 1.442695, %v5260_v62  ;;  %v15654_v62 = vld [vmem:[#allocation89_spill] sm:$0xff] }
 0xff8   : > { %5298 = vadd.xlane.f32.xlu1 %v13507_v60  ;;  %v5258_v46 = vsub.f32 %v13475_v19, %v5235_v53  ;;  %v5288_v20 = vmul.f32 1.442695, %v5261_v28  ;;  %v15649_v28 = vld [vmem:[#allocation79_spill] sm:$0xff] }
 0xff9   : > { %v13510_v55 = vpop.eup %10528  ;;  %v5237_v35 = vpop.xlane.xlu1 %5236 }
 0xffa   : > { %v5259_v50 = vsub.f32 %v13479_v7, %v5237_v35  ;;  %v5282_v1 = vmul.f32 1.442695, %v5258_v46  ;;  %v15647_v46 = vld [vmem:[#allocation40_spill] sm:$0xff] }
 0xffb   : > { %v5247_v18 = vpop.xlane.xlu0 %5246 }
 0xffc   : > { %5304 = vadd.xlane.f32.xlu1 %v13510_v55  ;;  %v5284_v47 = vmul.f32 1.442695, %v5259_v50  ;;  %10540 = vpow2.f32 %v5282_v1  ;;  %v15648_v50 = vld [vmem:[#allocation87_spill] sm:$0xff] }
 0xffd   : > { %v13513_v16 = vpop.eup %10530  ;;  %v5375_v22 = vpop.permute.xlu1 %5374  ;;  %v15653_v1 = vld [vmem:[#allocation47_spill] sm:$0xff] }
 0xffe   : > { %5310 = vadd.xlane.f32.xlu0 %v13513_v16  ;;  %v13516_v15 = vpop.eup %10532  ;;  %10542 = vpow2.f32 %v5284_v47  ;;  %v15655_v47 = vld [vmem:[#allocation92_spill] sm:$0xff] }
 0xfff   : > { %v5243_v17 = vpop.xlane.xlu0 %5242  ;;  %10544 = vpow2.f32 %v5288_v20  ;;  %v15656_v20 = vld [vmem:[#allocation93_spill] sm:$0xff] }
0x1000   : > { %5300 = vadd.xlane.f32.xlu1 %v13516_v15  ;;  %v5262_v23 = vsub.f32 %v13488_v44, %v5243_v17  ;;  %10546 = vpow2.f32 %v5286_v10  ;;  %v15657_v10 = vld [vmem:[#allocation91_spill] sm:$0xff] }
0x1001   : > { %v13519_v36 = vpop.eup %10534 }
0x1002   : > { %5306 = vadd.xlane.f32.xlu0 %v13519_v36  ;;  %v5290_v19 = vmul.f32 1.442695, %v5262_v23  ;;  %v15658_v23 = vld [vmem:[#allocation94_spill] sm:$0xff] }
0x1003   : > { %v13522_v6 = vpop.eup %10536  ;;  %v5377_v26 = vpop.permute.xlu0 %5376 }
0x1004   : > { %5308 = vadd.xlane.f32.xlu1 %v13522_v6  ;;  %9725 = vmatprep.subr.bf16.mxu0 %v5377_v26  ;;  %v13525_v33 = vpop.eup %10538  ;;  %10548 = vpow2.f32 %v5290_v19  ;;  %v15660_v19 = vld [vmem:[#allocation35_spill] sm:$0xff] }
0x1005   : > { %9726 = vmatpush3.bf16.msra.mxu0 %v5377_v26 }
0x1006   : > { %5312 = vadd.xlane.f32.xlu0 %v13525_v33  ;;  %9727 = vmatprep.subr.bf16.mxu0 %v5375_v22 }
0x1009   : > { %9728 = vmatpush3.bf16.msra.mxu0 %v5375_v22  ;;  %v13540_v35 = vpop.eup %10540  ;;  %v15646_v22 = vld [vmem:[#allocation90_spill] sm:$0xff] }
0x100b   : > { %v13543_v44 = vpop.eup %10542 }
0x1015   : > { %5370 = vrot.lane.b32.xlu1 %v12430_v9, %s10847_s2 }
0x101c   : > { %5372 = vrot.lane.b32.xlu0 %v15560_v2, %s10847_s2  ;;  %v5264_v2 = vsub.f32 %v13483_v8, %v5247_v18  ;;  %v13546_v8 = vpop.eup %10544 }
0x101e   : > { %v5294_v5 = vmul.f32 1.442695, %v5264_v2 }
0x102e   : > { %v5249_v9 = vpop.xlane.xlu1 %5248 }
0x102f   : > { %v5265_v7 = vsub.f32 %v13496_v21, %v5249_v9  ;;  %v13549_v21 = vpop.eup %10546  ;;  %v15659_v9 = vld [vmem:[#allocation45_spill] sm:$0xff] }
0x1031   : > { %v5296_v45 = vmul.f32 1.442695, %v5265_v7 }
0x1032   : > { %v5245_v53 = vpop.xlane.xlu1 %5244 }
0x1033   : > { %v5263_v27 = vsub.f32 %v13500_v32, %v5245_v53  ;;  %v13552_v32 = vpop.eup %10548  ;;  %v15661_v53 = vld [vmem:[#allocation29_spill] sm:$0xff] }
0x1035   : > { %v5292_v56 = vmul.f32 1.442695, %v5263_v27  ;;  %v15662_v27 = vld [vmem:[#allocation80_spill] sm:$0xff] }
0x1037   : > { %10550 = vpow2.f32 %v5292_v56 }
0x1038   : > { %10552 = vpow2.f32 %v5294_v5  ;;  %v15663_v5 = vld [vmem:[#allocation66_spill] sm:$0xff] }
0x1039   : > { %5314 = vadd.xlane.f32.xlu1 %v13540_v35  ;;  %10554 = vpow2.f32 %v5296_v45  ;;  %v15664_v45 = vld [vmem:[#allocation65_spill] sm:$0xff] }
0x103b   : > { %5316 = vadd.xlane.f32.xlu0 %v13543_v44 }
0x103d   : > { %5320 = vadd.xlane.f32.xlu1 %v13546_v8 }
0x103f   : > { %5318 = vadd.xlane.f32.xlu0 %v13549_v21 }
0x1043   : > { %5322 = vadd.xlane.f32.xlu0 %v13552_v32 }
0x1044   : > { %v13555_v18 = vpop.eup %10550 }
0x1045   : > { %5324 = vadd.xlane.f32.xlu1 %v13555_v18  ;;  %v13558_v17 = vpop.eup %10552 }
0x1046   : > { %v13561_v26 = vpop.eup %10554 }
0x1047   : > { %5326 = vadd.xlane.f32.xlu0 %v13558_v17 }
0x1049   : > { %5328 = vadd.xlane.f32.xlu1 %v13561_v26 }
0x105a   : > { %2414 = vrot.lane.b32.xlu1 %v12442_v13, %s10847_s2  ;;  %v15650_v13 = vld [vmem:[#allocation42_spill] sm:$0xff] }
0x105d   : > { %2412 = vrot.lane.b32.xlu0 %v12438_v41, %s10847_s2  ;;  %v15651_v41 = vld [vmem:[#allocation84_spill] sm:$0xff] }
0x105e   : > { %2416 = vrot.lane.b32.xlu1 %v12436_v57, %s10847_s2  ;;  %v15652_v57 = vld [vmem:[#allocation85_spill] sm:$0xff] }
0x1061   : > { %2418 = vrot.lane.b32.xlu0 %v15646_v22, %s10847_s2  ;;  %v15665_v22 = vld [vmem:[#allocation86_spill] sm:$0xff] }
0x1062   : > { %2943 = vrot.lane.b32.xlu1 %v15647_v46, %s10846_s27 }
0x1065   : > { %2945 = vrot.lane.b32.xlu0 %v15648_v50, %s10846_s27 }
0x1066   : > { %2947 = vrot.lane.b32.xlu1 %v15649_v28, %s10846_s27  ;;  %v15666_v28 = vld [vmem:[#allocation46_spill] sm:$0xff] }
0x1069   : > { %2949 = vrot.lane.b32.xlu0 %v15650_v13, %s10846_s27  ;;  %v15667_v13 = vld [vmem:[#allocation95_spill] sm:$0xff] }
0x106a   : > { %3474 = vrot.lane.b32.xlu1 %v15651_v41, %s10845_s1 }
0x106d   : > { %3476 = vrot.lane.b32.xlu0 %v15652_v57, %s10845_s1 }
0x106e   : > { %3478 = vrot.lane.b32.xlu1 %v15653_v1, %s10845_s1  ;;  %v15668_v1 = vld [vmem:[#allocation98_spill] sm:$0xff] }
0x1071   : > { %3480 = vrot.lane.b32.xlu0 %v15654_v62, %s10845_s1  ;;  %v15669_v62 = vld [vmem:[#allocation96_spill] sm:$0xff] }
0x1072   : > { %2420 = vrot.lane.b32.xlu1 %v15655_v47, %s10847_s2 }
0x1075   : > { %2422 = vrot.lane.b32.xlu0 %v15656_v20, %s10847_s2  ;;  %v15670_v20 = vld [vmem:[#allocation97_spill] sm:$0xff] }
0x1076   : > { %2424 = vrot.lane.b32.xlu1 %v15657_v10, %s10847_s2  ;;  %v15671_v10 = vld [vmem:[#allocation100_spill] sm:$0xff] }
0x1079   : > { %2426 = vrot.lane.b32.xlu0 %v15658_v23, %s10847_s2 }
0x107a   : > { %2951 = vrot.lane.b32.xlu1 %v15659_v9, %s10846_s27 }
0x107d   : > { %v5303_v2 = vpop.xlane.xlu1 %5302  ;;  %2953 = vrot.lane.b32.xlu0 %v15660_v19, %s10846_s27 }
0x107e   : > { %2955 = vrot.lane.b32.xlu1 %v15661_v53, %s10846_s27  ;;  %v15672_v53 = vld [vmem:[#allocation81_spill] sm:$0xff] }
0x1081   : > { %v5299_v7 = vpop.xlane.xlu1 %5298  ;;  %2957 = vrot.lane.b32.xlu0 %v15662_v27, %s10846_s27  ;;  %v15673_v27 = vld [vmem:[#allocation44_spill] sm:$0xff] }
0x1082   : > { %3482 = vrot.lane.b32.xlu1 %v15663_v5, %s10845_s1  ;;  %v9988_v5 = vld [vmem:[%s11029_s23 + $0x38] sm:$0xff]  }
0x1085   : > { %v5305_v56 = vpop.xlane.xlu1 %5304  ;;  %3484 = vrot.lane.b32.xlu0 %v15664_v45, %s10845_s1 }
0x1086   : > { %3486 = vrot.lane.b32.xlu1 %v15665_v22, %s10845_s1  ;;  %10556 = vrcp.f32 %v5305_v56 }
0x1087   : > { %v5311_v46 = vpop.xlane.xlu0 %5310  ;;  %10558 = vrcp.f32 %v5299_v7 }
0x1088   : > { %10560 = vrcp.f32 %v5303_v2 }
0x1089   : > { %v5301_v50 = vpop.xlane.xlu1 %5300  ;;  %3488 = vrot.lane.b32.xlu0 %v15666_v28, %s10845_s1 }
0x108a   : > { %10562 = vrcp.f32 %v5301_v50  ;;  %2428 = vrot.lane.b32.xlu1 %v15667_v13, %s10847_s2  ;;  %v15674_v13 = vld [vmem:[#allocation102_spill] sm:$0xff] }
0x108b   : > { %v5307_v41 = vpop.xlane.xlu0 %5306 }
0x108c   : > { %10564 = vrcp.f32 %v5307_v41  ;;  %v15675_v41 = vld [vmem:[#allocation62_spill] sm:$0xff] }
0x108d   : > { %v5309_v57 = vpop.xlane.xlu1 %5308  ;;  %2430 = vrot.lane.b32.xlu0 %v15668_v1, %s10847_s2 }
0x108e   : > { %10566 = vrcp.f32 %v5309_v57  ;;  %2432 = vrot.lane.b32.xlu1 %v15669_v62, %s10847_s2 }
0x108f   : > { %v5313_v47 = vpop.xlane.xlu0 %5312 }
0x1090   : > { %10568 = vrcp.f32 %v5313_v47 }
0x1091   : > { %10570 = vrcp.f32 %v5311_v46  ;;  %2434 = vrot.lane.b32.xlu0 %v15670_v20, %s10847_s2  ;;  %v5371_v19 = vpop.permute.xlu1 %5370 }
0x1092   : > { %2959 = vrot.lane.b32.xlu1 %v15671_v10, %s10846_s27  ;;  %v15677_v10 = vld [vmem:[#allocation78_spill] sm:$0xff] }
0x1093   : > { %v5373_v23 = vpop.permute.xlu0 %5372  ;;  %v10557_v9 = vpop.eup %10556 }
0x1094   : > { %9729 = vmatprep.subr.bf16.mxu0 %v5373_v23  ;;  %v10559_v2 = vpop.eup %10558  ;;  %v5349_v45 = vmul.f32 %v10557_v9, %v13510_v55  ;;  %v9989_v55 = vld [vmem:[%s11029_s23 + $0x30] sm:$0xff]  }
0x1095   : > { %2961 = vrot.lane.b32.xlu0 %v15672_v53, %s10846_s27  ;;  %9730 = vmatpush3.bf16.msra.mxu0 %v5373_v23  ;;  %v10561_v7 = vpop.eup %10560  ;;  %v5346_v22 = vmul.f32 %v10559_v2, %v13507_v60  ;;  %v9990_v2 = vld [vmem:[%s11029_s23 + $0x28] sm:$0xff]  }
0x1096   : > { %2963 = vrot.lane.b32.xlu1 %v15673_v27, %s10846_s27  ;;  %9731 = vmatprep.subr.bf16.mxu0 %v5371_v19  ;;  %v5348_v28 = vmul.f32 %v10561_v7, %v13504_v11  ;;  %v15676_v11 = vld [vmem:[#allocation64_spill] sm:$0xff]  ;;  %v9991_v7 = vld [vmem:[%s11029_s23 + $0x20] sm:$0xff]   ;;  %v15680_v27 = vld [vmem:[#allocation25_spill] sm:$0xff] }
0x1097   : > { %v10563_v56 = vpop.eup %10562 }
0x1098   : > { %v5347_v46 = vmul.f32 %v10563_v56, %v13516_v15  ;;  %v5363_v62 = vpack.c.bf16 %v5349_v45, %v5348_v28  ;;  %v15683_v56 = vld [vmem:[#allocation101_spill] sm:$0xff]  ;;  %v9993_v45 = vld [vmem:[%s11029_s23 + $0x10] sm:$0xff]   ;;  %v15686_v28 = vld [vmem:[#allocation99_spill] sm:$0xff] }
0x1099   : > { %v10565_v50 = vpop.eup %10564  ;;  %2965 = vrot.lane.b32.xlu0 %v15674_v13, %s10846_s27  ;;  %9732 = vmatpush3.bf16.msra.mxu0 %v5371_v19  ;;  %v15679_v19 = vld [vmem:[#allocation88_spill] sm:$0xff] }
0x109a   : > { %3490 = vrot.lane.b32.xlu1 %v15675_v41, %s10845_s1  ;;  %v5362_v57 = vpack.c.bf16 %v5347_v46, %v5346_v22  ;;  %9749 = vmatprep.subr.bf16.mxu0 %v9988_v5  ;;  %v5350_v60 = vmul.f32 %v10565_v50, %v13519_v36  ;;  %v15678_v36 = vld [vmem:[#allocation63_spill] sm:$0xff]  ;;  %v15684_v22 = vld [vmem:[#allocation82_spill] sm:$0xff]  ;;  %v15687_v13 = vld [vmem:[#allocation60_spill] sm:$0xff] }
0x109b   : > { %v10567_v1 = vpop.eup %10566  ;;  %v15685_v46 = vld [vmem:[#allocation43_spill] sm:$0xff]  ;;  %v9995_v41 = vld [vmem:[%s11029_s23] sm:$0xff]  }
0x109c   : > { %9733 = vmatprep.mubr.bf16.mxu0 %v5362_v57  ;;  %v5351_v15 = vmul.f32 %v10567_v1, %v13522_v6  ;;  %v9994_v50 = vld [vmem:[%s11029_s23 + $0x8] sm:$0xff]   ;;  %v15688_v57 = vld [vmem:[#allocation56_spill] sm:$0xff] }
0x109d   : > { %v10569_v47 = vpop.eup %10568  ;;  %3492 = vrot.lane.b32.xlu0 %v15676_v11, %s10845_s1  ;;  %9734 = vmatmul.mubr.bf16.vlgmr.msra.gmra.mxu0 %v5363_v62  ;;  %v15689_v1 = vld [vmem:[#allocation59_spill] sm:$0xff]  ;;  %v15690_v62 = vld [vmem:[#allocation61_spill] sm:$0xff] }
0x109e   : > { %v10571_v20 = vpop.eup %10570  ;;  %3494 = vrot.lane.b32.xlu1 %v15677_v10, %s10845_s1  ;;  %v5364_v23 = vpack.c.bf16 %v5351_v15, %v5350_v60  ;;  %9750 = vmatpush3.bf16.msra.mxu0 %v9988_v5  ;;  %v5353_v9 = vmul.f32 %v10569_v47, %v13525_v33  ;;  %v15681_v33 = vld [vmem:[#allocation39_spill] sm:$0xff]  ;;  %v15682_v5 = vld [vmem:[#allocation41_spill] sm:$0xff] }
0x109f   : > { %9751 = vmatprep.subr.bf16.mxu0 %v9989_v55  ;;  %v5352_v6 = vmul.f32 %v10571_v20, %v13513_v16  ;;  %v9992_v16 = vld [vmem:[%s11029_s23 + $0x18] sm:$0xff]  }
0x10a0   : > { %9737 = vmatprep.mubr.bf16.mxu0 %v5364_v23 }
0x10a1   : > { %3496 = vrot.lane.b32.xlu0 %v15678_v36, %s10845_s1  ;;  %v5365_v53 = vpack.c.bf16 %v5353_v9, %v5352_v6 }
0x10a2   : > { %2436 = vrot.lane.b32.xlu1 %v15679_v19, %s10847_s2  ;;  %9752 = vmatpush3.bf16.msra.mxu0 %v9989_v55 }
0x10a3   : > { %9753 = vmatprep.subr.bf16.mxu0 %v9990_v2 }
0x10a5   : > { %2438 = vrot.lane.b32.xlu0 %v15680_v27, %s10847_s2  ;;  %9738 = vmatmul.mubr.bf16.gmra.mxu0 %v5365_v53 }
0x10a6   : > { %2440 = vrot.lane.b32.xlu1 %v15681_v33, %s10847_s2  ;;  %9754 = vmatpush3.bf16.msra.mxu0 %v9990_v2 }
0x10a7   : > { %9755 = vmatprep.subr.bf16.mxu0 %v9991_v7 }
0x10a9   : > { %2442 = vrot.lane.b32.xlu0 %v15682_v5, %s10847_s2 }
0x10aa   : > { %2967 = vrot.lane.b32.xlu1 %v15683_v56, %s10846_s27  ;;  %9756 = vmatpush3.bf16.msra.mxu0 %v9991_v7 }
0x10ab   : > { %9757 = vmatprep.subr.bf16.mxu0 %v9992_v16 }
0x10ad   : > { %2969 = vrot.lane.b32.xlu0 %v15684_v22, %s10846_s27 }
0x10ae   : > { %2971 = vrot.lane.b32.xlu1 %v15685_v46, %s10846_s27  ;;  %9758 = vmatpush3.bf16.msra.mxu0 %v9992_v16 }
0x10af   : > { %9759 = vmatprep.subr.bf16.mxu0 %v9993_v45 }
0x10b1   : > { %2973 = vrot.lane.b32.xlu0 %v15686_v28, %s10846_s27 }
0x10b2   : > { %3498 = vrot.lane.b32.xlu1 %v15687_v13, %s10845_s1  ;;  %9760 = vmatpush3.bf16.msra.mxu0 %v9993_v45 }
0x10b3   : > { %9761 = vmatprep.subr.bf16.mxu0 %v9994_v50 }
0x10b5   : > { %3500 = vrot.lane.b32.xlu0 %v15688_v57, %s10845_s1 }
0x10b6   : > { %3502 = vrot.lane.b32.xlu1 %v15689_v1, %s10845_s1  ;;  %9762 = vmatpush3.bf16.msra.mxu0 %v9994_v50 }
0x10b7   : > { %9763 = vmatprep.subr.bf16.mxu0 %v9995_v41 }
0x10b9   : > { %3504 = vrot.lane.b32.xlu0 %v15690_v62, %s10845_s1 }
0x10ba   : > { %4447 = vrot.lane.b32.xlu1 %v13184_v31, %s10847_s2  ;;  %9764 = vmatpush3.bf16.msra.mxu0 %v9995_v41 }
0x10bd   : > { %4449 = vrot.lane.b32.xlu0 %v13188_v43, %s10847_s2 }
0x10be   : > { %4451 = vrot.lane.b32.xlu1 %v13182_v51, %s10847_s2 }
0x10c1   : > { %4453 = vrot.lane.b32.xlu0 %v13186_v34, %s10847_s2 }
0x10c2   : > { %4977 = vrot.lane.b32.xlu1 %v13426_v4, %s10846_s27  ;;  %v5315_v55 = vpop.xlane.xlu1 %5314 }
0x10c3   : > { %10572 = vrcp.f32 %v5315_v55 }
0x10c4   : > { %v5317_v60 = vpop.xlane.xlu0 %5316 }
0x10c5   : > { %10574 = vrcp.f32 %v5317_v60  ;;  %4979 = vrot.lane.b32.xlu0 %v13430_v63, %s10846_s27 }
0x10c6   : > { %4981 = vrot.lane.b32.xlu1 %v13424_v61, %s10846_s27  ;;  %v5321_v31 = vpop.xlane.xlu1 %5320 }
0x10c7   : > { %10576 = vrcp.f32 %v5321_v31 }
0x10c8   : > { %v5319_v43 = vpop.xlane.xlu0 %5318 }
0x10c9   : > { %10578 = vrcp.f32 %v5319_v43  ;;  %4983 = vrot.lane.b32.xlu0 %v13428_v39, %s10846_s27 }
0x10ca   : > { %4455 = vrot.lane.b32.xlu1 %v13192_v49, %s10847_s2 }
0x10cc   : > { %v5323_v51 = vpop.xlane.xlu0 %5322 }
0x10cd   : > { %10580 = vrcp.f32 %v5323_v51  ;;  %4457 = vrot.lane.b32.xlu0 %v13196_v12, %s10847_s2 }
0x10ce   : > { %4459 = vrot.lane.b32.xlu1 %v13190_v48, %s10847_s2  ;;  %v5325_v34 = vpop.xlane.xlu1 %5324 }
0x10cf   : > { %10582 = vrcp.f32 %v5325_v34 }
0x10d0   : > { %v10573_v61 = vpop.eup %10572  ;;  %v5327_v4 = vpop.xlane.xlu0 %5326 }
0x10d1   : > { %10584 = vrcp.f32 %v5327_v4  ;;  %4461 = vrot.lane.b32.xlu0 %v13194_v59, %s10847_s2  ;;  %v5354_v12 = vmul.f32 %v10573_v61, %v13540_v35 }
0x10d2   : > { %v10575_v39 = vpop.eup %10574  ;;  %4985 = vrot.lane.b32.xlu1 %v13434_v42, %s10846_s27  ;;  %v5329_v49 = vpop.xlane.xlu1 %5328 }
0x10d3   : > { %10586 = vrcp.f32 %v5329_v49  ;;  %v5355_v63 = vmul.f32 %v10575_v39, %v13543_v44 }
0x10d4   : > { %v10577_v48 = vpop.eup %10576  ;;  %v2413_v15 = vpop.permute.xlu0 %2412 }
0x10d5   : > { %2461 = vst.msk [vmem:[#allocation3] sm:$0xff] %vm2460_vm1, %v2413_v15  ;;  %4987 = vrot.lane.b32.xlu0 %v13438_v37, %s10846_s27  ;;  %v5366_v47 = vpack.c.bf16 %v5355_v63, %v5354_v12  ;;  %v5357_v44 = vmul.f32 %v10577_v48, %v13546_v8 }
0x10d6   : > { %v10579_v59 = vpop.eup %10578  ;;  %4989 = vrot.lane.b32.xlu1 %v13432_v29, %s10846_s27  ;;  %v2415_v42 = vpop.permute.xlu1 %2414 }
0x10d7   : > { %2462 = vst.msk [vmem:[#allocation3 + $0x8] sm:$0xff] %vm2460_vm1, %v2415_v42  ;;  %9741 = vmatprep.mubr.bf16.mxu0 %v5366_v47  ;;  %v5356_v35 = vmul.f32 %v10579_v59, %v13549_v21 }
0x10d8   : > { %v2419_v11 = vpop.permute.xlu0 %2418 }
0x10d9   : > { %2464 = vst.msk [vmem:[#allocation3 + $0x18] sm:$0xff] %vm2460_vm1, %v2419_v11  ;;  %4991 = vrot.lane.b32.xlu0 %v13436_v14, %s10846_s27  ;;  %v5367_v37 = vpack.c.bf16 %v5357_v44, %v5356_v35 }
0x10da   : > { %v10581_v20 = vpop.eup %10580  ;;  %4463 = vrot.lane.b32.xlu1 %v13200_v0, %s10847_s2  ;;  %v2417_v29 = vpop.permute.xlu1 %2416 }
0x10db   : > { %2463 = vst.msk [vmem:[#allocation3 + $0x10] sm:$0xff] %vm2460_vm1, %v2417_v29  ;;  %9742 = vmatmul.mubr.bf16.gmra.mxu0 %v5367_v37  ;;  %v5358_v8 = vmul.f32 %v10581_v20, %v13552_v32 }
0x10dc   : > { %v10583_v10 = vpop.eup %10582  ;;  %v2946_v21 = vpop.permute.xlu0 %2945 }
0x10dd   : > { %2993 = vst.msk [vmem:[#allocation3 + $0x8] sm:$0xff] %vm2991_vm2, %v2946_v21  ;;  %4465 = vrot.lane.b32.xlu0 %v13204_v54, %s10847_s2  ;;  %v5359_v14 = vmul.f32 %v10583_v10, %v13555_v18 }
0x10de   : > { %v10585_v23 = vpop.eup %10584  ;;  %v2944_v9 = vpop.permute.xlu1 %2943 }
0x10df   : > { %2992 = vst.msk [vmem:[#allocation3] sm:$0xff] %vm2991_vm2, %v2944_v9  ;;  %v5368_v0 = vpack.c.bf16 %v5359_v14, %v5358_v8  ;;  %v5360_v6 = vmul.f32 %v10585_v23, %v13558_v17 }
0x10e0   : > { %v10587_v2 = vpop.eup %10586  ;;  %v2950_v36 = vpop.permute.xlu0 %2949 }
0x10e1   : > { %2995 = vst.msk [vmem:[#allocation3 + $0x18] sm:$0xff] %vm2991_vm2, %v2950_v36  ;;  %9745 = vmatprep.mubr.bf16.mxu0 %v5368_v0  ;;  %v5361_v19 = vmul.f32 %v10587_v2, %v13561_v26 }
0x10e2   : > { %v2948_v53 = vpop.permute.xlu1 %2947 }
0x10e3   : > { %2994 = vst.msk [vmem:[#allocation3 + $0x10] sm:$0xff] %vm2991_vm2, %v2948_v53  ;;  %v5369_v54 = vpack.c.bf16 %v5361_v19, %v5360_v6 }
0x10e4   : > { %v3477_v32 = vpop.permute.xlu0 %3476 }
0x10e5   : > { %3524 = vst.msk [vmem:[#allocation3 + $0x8] sm:$0xff] %vm3522_vm3, %v3477_v32  ;;  %9746 = vmatmul.mubr.bf16.gmra.mxu0 %v5369_v54 }
0x10e6   : > { %v3475_v18 = vpop.permute.xlu1 %3474 }
0x10e7   : > { %3523 = vst.msk [vmem:[#allocation3] sm:$0xff] %vm3522_vm3, %v3475_v18 }
0x10e8   : > { %v3481_v7 = vpop.permute.xlu0 %3480 }
0x10e9   : > { %3526 = vst.msk [vmem:[#allocation3 + $0x18] sm:$0xff] %vm3522_vm3, %v3481_v7 }
0x10ea   : > { %v3479_v27 = vpop.permute.xlu1 %3478 }
0x10eb   : > { %3525 = vst.msk [vmem:[#allocation3 + $0x10] sm:$0xff] %vm3522_vm3, %v3479_v27 }
0x10ec   : > { %v2423_v17 = vpop.permute.xlu0 %2422  ;;  %v5572_v16 = vld [vmem:[#allocation3 + $0x8] sm:$0xff] }
0x10ed   : > { %2466 = vst.msk [vmem:[#allocation3 + $0x28] sm:$0xff] %vm2460_vm1, %v2423_v17 }
0x10ee   : > { %v2421_v26 = vpop.permute.xlu1 %2420  ;;  %v5571_v33 = vld [vmem:[#allocation3] sm:$0xff] }
0x10ef   : > { %2465 = vst.msk [vmem:[#allocation3 + $0x20] sm:$0xff] %vm2460_vm1, %v2421_v26  ;;  %v5603_v5 = vpack.c.bf16 %v5572_v16, %v5571_v33 }
0x10f0   : > { %v2427_v56 = vpop.permute.xlu0 %2426  ;;  %v5574_v46 = vld [vmem:[#allocation3 + $0x18] sm:$0xff] }
0x10f1   : > { %2468 = vst.msk [vmem:[#allocation3 + $0x38] sm:$0xff] %vm2460_vm1, %v2427_v56  ;;  %9765 = vmatprep.mubr.bf16.mxu0 %v5603_v5 }
0x10f2   : > { %v2425_v45 = vpop.permute.xlu1 %2424  ;;  %v5573_v22 = vld [vmem:[#allocation3 + $0x10] sm:$0xff] }
0x10f3   : > { %2467 = vst.msk [vmem:[#allocation3 + $0x30] sm:$0xff] %vm2460_vm1, %v2425_v45  ;;  %v5604_v50 = vpack.c.bf16 %v5574_v46, %v5573_v22 }
0x10f4   : > { %v2954_v28 = vpop.permute.xlu0 %2953 }
0x10f5   : > { %2997 = vst.msk [vmem:[#allocation3 + $0x28] sm:$0xff] %vm2991_vm2, %v2954_v28  ;;  %9766 = vmatmul.mubr.bf16.vlgmr.msra.gmra.mxu0 %v5604_v50 }
0x10f6   : > { %v2952_v13 = vpop.permute.xlu1 %2951 }
0x10f7   : > { %2996 = vst.msk [vmem:[#allocation3 + $0x20] sm:$0xff] %vm2991_vm2, %v2952_v13 }
0x10f8   : > { %v2958_v41 = vpop.permute.xlu0 %2957 }
0x10f9   : > { %2999 = vst.msk [vmem:[#allocation3 + $0x38] sm:$0xff] %vm2991_vm2, %v2958_v41 }
0x10fa   : > { %v2956_v57 = vpop.permute.xlu1 %2955 }
0x10fb   : > { %2998 = vst.msk [vmem:[#allocation3 + $0x30] sm:$0xff] %vm2991_vm2, %v2956_v57 }
0x10fc   : > { %v3485_v1 = vpop.permute.xlu0 %3484 }
0x10fd   : > { %3528 = vst.msk [vmem:[#allocation3 + $0x28] sm:$0xff] %vm3522_vm3, %v3485_v1 }
0x10fe   : > { %v3483_v62 = vpop.permute.xlu1 %3482 }
0x10ff   : > { %3527 = vst.msk [vmem:[#allocation3 + $0x20] sm:$0xff] %vm3522_vm3, %v3483_v62 }
0x1100   : > { %v3489_v55 = vpop.permute.xlu0 %3488 }
0x1101   : > { %3530 = vst.msk [vmem:[#allocation3 + $0x38] sm:$0xff] %vm3522_vm3, %v3489_v55 }
0x1102   : > { %v3487_v60 = vpop.permute.xlu1 %3486 }
0x1103   : > { %3529 = vst.msk [vmem:[#allocation3 + $0x30] sm:$0xff] %vm3522_vm3, %v3487_v60 }
0x1104   : > { %v2431_v31 = vpop.permute.xlu0 %2430  ;;  %v5576_v34 = vld [vmem:[#allocation3 + $0x28] sm:$0xff] }
0x1105   : > { %2470 = vst.msk [vmem:[#allocation3 + $0x48] sm:$0xff] %vm2460_vm1, %v2431_v31 }
0x1106   : > { %v2429_v43 = vpop.permute.xlu1 %2428  ;;  %v5575_v51 = vld [vmem:[#allocation3 + $0x20] sm:$0xff] }
0x1107   : > { %2469 = vst.msk [vmem:[#allocation3 + $0x40] sm:$0xff] %vm2460_vm1, %v2429_v43  ;;  %v5605_v61 = vpack.c.bf16 %v5576_v34, %v5575_v51 }
0x1108   : > { %v2435_v4 = vpop.permute.xlu0 %2434  ;;  %v5578_v12 = vld [vmem:[#allocation3 + $0x38] sm:$0xff] }
0x1109   : > { %2472 = vst.msk [vmem:[#allocation3 + $0x58] sm:$0xff] %vm2460_vm1, %v2435_v4  ;;  %9769 = vmatprep.mubr.bf16.mxu0 %v5605_v61 }
0x110a   : > { %v2433_v39 = vpop.permute.xlu1 %2432  ;;  %v5577_v49 = vld [vmem:[#allocation3 + $0x30] sm:$0xff] }
0x110b   : > { %2471 = vst.msk [vmem:[#allocation3 + $0x50] sm:$0xff] %vm2460_vm1, %v2433_v39  ;;  %v5606_v63 = vpack.c.bf16 %v5578_v12, %v5577_v49  ;;  %v15691_v12 = vld [vmem:[#allocation57_spill] sm:$0xff] }
0x110c   : > { %v2962_v48 = vpop.permute.xlu0 %2961 }
0x110d   : > { %3001 = vst.msk [vmem:[#allocation3 + $0x48] sm:$0xff] %vm2991_vm2, %v2962_v48  ;;  %9770 = vmatmul.mubr.bf16.gmra.mxu0 %v5606_v63  ;;  %v15692_v48 = vld [vmem:[#allocation58_spill] sm:$0xff] }
0x110e   : > { %v2960_v15 = vpop.permute.xlu1 %2959 }
0x110f   : > { %3000 = vst.msk [vmem:[#allocation3 + $0x40] sm:$0xff] %vm2991_vm2, %v2960_v15 }
0x1110   : > { %v2966_v47 = vpop.permute.xlu0 %2965 }
0x1111   : > { %3003 = vst.msk [vmem:[#allocation3 + $0x58] sm:$0xff] %vm2991_vm2, %v2966_v47 }
0x1112   : > { %v2964_v59 = vpop.permute.xlu1 %2963 }
0x1113   : > { %3002 = vst.msk [vmem:[#allocation3 + $0x50] sm:$0xff] %vm2991_vm2, %v2964_v59 }
0x1114   : > { %v3493_v42 = vpop.permute.xlu0 %3492 }
0x1115   : > { %3532 = vst.msk [vmem:[#allocation3 + $0x48] sm:$0xff] %vm3522_vm3, %v3493_v42 }
0x1116   : > { %v3491_v35 = vpop.permute.xlu1 %3490 }
0x1117   : > { %3531 = vst.msk [vmem:[#allocation3 + $0x40] sm:$0xff] %vm3522_vm3, %v3491_v35 }
0x1118   : > { %v3497_v44 = vpop.permute.xlu0 %3496 }
0x1119   : > { %3534 = vst.msk [vmem:[#allocation3 + $0x58] sm:$0xff] %vm3522_vm3, %v3497_v44 }
0x111a   : > { %v3495_v11 = vpop.permute.xlu1 %3494 }
0x111b   : > { %3533 = vst.msk [vmem:[#allocation3 + $0x50] sm:$0xff] %vm3522_vm3, %v3495_v11  ;;  %v15695_v11 = vld [vmem:[#allocation53_spill] sm:$0xff] }
0x111c   : > { %v2439_v37 = vpop.permute.xlu0 %2438  ;;  %v5580_v10 = vld [vmem:[#allocation3 + $0x48] sm:$0xff] }
0x111d   : > { %2474 = vst.msk [vmem:[#allocation3 + $0x68] sm:$0xff] %vm2460_vm1, %v2439_v37 }
0x111e   : > { %v2437_v20 = vpop.permute.xlu1 %2436  ;;  %v5579_v29 = vld [vmem:[#allocation3 + $0x40] sm:$0xff] }
0x111f   : > { %2473 = vst.msk [vmem:[#allocation3 + $0x60] sm:$0xff] %vm2460_vm1, %v2437_v20  ;;  %v5607_v21 = vpack.c.bf16 %v5580_v10, %v5579_v29 }
0x1120   : > { %v2443_v8 = vpop.permute.xlu0 %2442  ;;  %v5582_v9 = vld [vmem:[#allocation3 + $0x58] sm:$0xff] }
0x1121   : > { %2476 = vst.msk [vmem:[#allocation3 + $0x78] sm:$0xff] %vm2460_vm1, %v2443_v8  ;;  %9773 = vmatprep.mubr.bf16.mxu0 %v5607_v21 }
0x1122   : > { %v2441_v14 = vpop.permute.xlu1 %2440  ;;  %v5581_v23 = vld [vmem:[#allocation3 + $0x50] sm:$0xff] }
0x1123   : > { %2475 = vst.msk [vmem:[#allocation3 + $0x70] sm:$0xff] %vm2460_vm1, %v2441_v14  ;;  %v5608_v0 = vpack.c.bf16 %v5582_v9, %v5581_v23 }
0x1124   : > { %v2970_v2 = vpop.permute.xlu0 %2969 }
0x1125   : > { %3005 = vst.msk [vmem:[#allocation3 + $0x68] sm:$0xff] %vm2991_vm2, %v2970_v2  ;;  %9774 = vmatmul.mubr.bf16.gmra.mxu0 %v5608_v0 }
0x1126   : > { %v2968_v36 = vpop.permute.xlu1 %2967 }
0x1127   : > { %3004 = vst.msk [vmem:[#allocation3 + $0x60] sm:$0xff] %vm2991_vm2, %v2968_v36 }
0x1128   : > { %v2974_v6 = vpop.permute.xlu0 %2973 }
0x1129   : > { %3007 = vst.msk [vmem:[#allocation3 + $0x78] sm:$0xff] %vm2991_vm2, %v2974_v6 }
0x112a   : > { %v2972_v19 = vpop.permute.xlu1 %2971 }
0x112b   : > { %3006 = vst.msk [vmem:[#allocation3 + $0x70] sm:$0xff] %vm2991_vm2, %v2972_v19 }
0x112c   : > { %v3501_v53 = vpop.permute.xlu0 %3500 }
0x112d   : > { %3536 = vst.msk [vmem:[#allocation3 + $0x68] sm:$0xff] %vm3522_vm3, %v3501_v53 }
0x112e   : > { %v3499_v54 = vpop.permute.xlu1 %3498 }
0x112f   : > { %3535 = vst.msk [vmem:[#allocation3 + $0x60] sm:$0xff] %vm3522_vm3, %v3499_v54 }
0x1130   : > { %v3505_v32 = vpop.permute.xlu0 %3504 }
0x1131   : > { %3538 = vst.msk [vmem:[#allocation3 + $0x78] sm:$0xff] %vm3522_vm3, %v3505_v32 }
0x1132   : > { %v3503_v18 = vpop.permute.xlu1 %3502 }
0x1133   : > { %3537 = vst.msk [vmem:[#allocation3 + $0x70] sm:$0xff] %vm3522_vm3, %v3503_v18 }
0x1134   : > { %v4450_v7 = vpop.permute.xlu0 %4449  ;;  %v5584_v26 = vld [vmem:[#allocation3 + $0x68] sm:$0xff] }
0x1135   : > { %4496 = vst.msk [vmem:[#allocation3 + $0x88] sm:$0xff] %vm2460_vm1, %v4450_v7 }
0x1136   : > { %v4448_v27 = vpop.permute.xlu1 %4447  ;;  %v5583_v17 = vld [vmem:[#allocation3 + $0x60] sm:$0xff] }
0x1137   : > { %4495 = vst.msk [vmem:[#allocation3 + $0x80] sm:$0xff] %vm2460_vm1, %v4448_v27  ;;  %v5609_v33 = vpack.c.bf16 %v5584_v26, %v5583_v17 }
0x1138   : > { %v4454_v16 = vpop.permute.xlu0 %4453  ;;  %v5586_v45 = vld [vmem:[#allocation3 + $0x78] sm:$0xff] }
0x1139   : > { %4498 = vst.msk [vmem:[#allocation3 + $0x98] sm:$0xff] %vm2460_vm1, %v4454_v16  ;;  %9777 = vmatprep.mubr.bf16.mxu0 %v5609_v33 }
0x113a   : > { %v4452_v5 = vpop.permute.xlu1 %4451  ;;  %v5585_v56 = vld [vmem:[#allocation3 + $0x70] sm:$0xff] }
0x113b   : > { %4497 = vst.msk [vmem:[#allocation3 + $0x90] sm:$0xff] %vm2460_vm1, %v4452_v5  ;;  %v5610_v22 = vpack.c.bf16 %v5586_v45, %v5585_v56 }
0x113c   : > { %v4980_v46 = vpop.permute.xlu0 %4979 }
0x113d   : > { %5026 = vst.msk [vmem:[#allocation3 + $0x88] sm:$0xff] %vm2991_vm2, %v4980_v46  ;;  %9778 = vmatmul.mubr.bf16.gmra.mxu0 %v5610_v22 }
0x113e   : > { %v4978_v50 = vpop.permute.xlu1 %4977 }
0x113f   : > { %5025 = vst.msk [vmem:[#allocation3 + $0x80] sm:$0xff] %vm2991_vm2, %v4978_v50 }
0x1140   : > { %v4984_v28 = vpop.permute.xlu0 %4983 }
0x1141   : > { %5028 = vst.msk [vmem:[#allocation3 + $0x98] sm:$0xff] %vm2991_vm2, %v4984_v28 }
0x1142   : > { %v4982_v13 = vpop.permute.xlu1 %4981 }
0x1143   : > { %5027 = vst.msk [vmem:[#allocation3 + $0x90] sm:$0xff] %vm2991_vm2, %v4982_v13 }
0x1144   : > { %v4458_v41 = vpop.permute.xlu0 %4457 }
0x1145   : > { %4500 = vst.msk [vmem:[#allocation3 + $0xa8] sm:$0xff] %vm2460_vm1, %v4458_v41 }
0x1146   : > { %v4456_v57 = vpop.permute.xlu1 %4455 }
0x1147   : > { %4499 = vst.msk [vmem:[#allocation3 + $0xa0] sm:$0xff] %vm2460_vm1, %v4456_v57 }
0x1148   : > { %v4462_v1 = vpop.permute.xlu0 %4461 }
0x1149   : > { %4502 = vst.msk [vmem:[#allocation3 + $0xb8] sm:$0xff] %vm2460_vm1, %v4462_v1 }
0x114a   : > { %v4460_v62 = vpop.permute.xlu1 %4459 }
0x114b   : > { %4501 = vst.msk [vmem:[#allocation3 + $0xb0] sm:$0xff] %vm2460_vm1, %v4460_v62 }
0x114c   : > { %v4988_v55 = vpop.permute.xlu0 %4987 }
0x114d   : > { %5030 = vst.msk [vmem:[#allocation3 + $0xa8] sm:$0xff] %vm2991_vm2, %v4988_v55 }
0x114e   : > { %v4986_v60 = vpop.permute.xlu1 %4985 }
0x114f   : > { %5029 = vst.msk [vmem:[#allocation3 + $0xa0] sm:$0xff] %vm2991_vm2, %v4986_v60 }
0x1150   : > { %v4992_v31 = vpop.permute.xlu0 %4991 }
0x1151   : > { %5032 = vst.msk [vmem:[#allocation3 + $0xb8] sm:$0xff] %vm2991_vm2, %v4992_v31 }
0x1152   : > { %v4990_v43 = vpop.permute.xlu1 %4989 }
0x1153   : > { %5031 = vst.msk [vmem:[#allocation3 + $0xb0] sm:$0xff] %vm2991_vm2, %v4990_v43 }
0x1154   : > { %v4466_v51 = vpop.permute.xlu0 %4465 }
0x1155   : > { %4504 = vst.msk [vmem:[#allocation3 + $0xc8] sm:$0xff] %vm2460_vm1, %v4466_v51 }
0x1156   : > { %v4464_v34 = vpop.permute.xlu1 %4463 }
0x1157   : > { %4503 = vst.msk [vmem:[#allocation3 + $0xc0] sm:$0xff] %vm2460_vm1, %v4464_v34 }
0x115d   : > { %v9735_v61 = vpop.f32.mrf.mxu0 }
0x115e   : > { %5511 = vrot.lane.b32.xlu1 %v9735_v61, %s10845_s1 }
0x115f   : > { %v5428_v4 = vpop.f32.mrf.mxu0 }
0x1161   : > { %v9736_v39 = vpop.f32.mrf.mxu0 }
0x1162   : > { %5507 = vrot.lane.b32.xlu1 %v5428_v4, %s10845_s1  ;;  %5513 = vrot.lane.b32.xlu0 %v9736_v39, %s10845_s1 }
0x1163   : > { %v5431_v49 = vpop.f32.mrf.mxu0 }
0x1165   : > { %v9739_v63 = vpop.f32.mrf.mxu0 }
0x1166   : > { %4467 = vrot.lane.b32.xlu1 %v15691_v12, %s10847_s2  ;;  %5509 = vrot.lane.b32.xlu0 %v5431_v49, %s10845_s1 }
0x1167   : > { %v5444_v15 = vpop.f32.mrf.mxu0 }
0x1169   : > { %v9740_v47 = vpop.f32.mrf.mxu0 }
0x116a   : > { %4993 = vrot.lane.b32.xlu1 %v13442_v38, %s10846_s27  ;;  %4469 = vrot.lane.b32.xlu0 %v15692_v48, %s10847_s2  ;;  %v15693_v38 = vld [vmem:[#allocation48_spill] sm:$0xff] }
0x116b   : > { %v5447_v59 = vpop.f32.mrf.mxu0 }
0x116e   : > { %4995 = vrot.lane.b32.xlu0 %v13446_v30, %s10846_s27  ;;  %5519 = vrot.lane.b32.xlu1 %v9739_v63, %s10845_s1  ;;  %v15694_v30 = vld [vmem:[#allocation49_spill] sm:$0xff] }
0x1172   : > { %5515 = vrot.lane.b32.xlu1 %v5444_v15, %s10845_s1  ;;  %5521 = vrot.lane.b32.xlu0 %v9740_v47, %s10845_s1 }
0x1176   : > { %4997 = vrot.lane.b32.xlu1 %v13440_v52, %s10846_s27  ;;  %5517 = vrot.lane.b32.xlu0 %v5447_v59, %s10845_s1 }
0x117a   : > { %4471 = vrot.lane.b32.xlu1 %v15693_v38, %s10847_s2  ;;  %4999 = vrot.lane.b32.xlu0 %v13444_v40, %s10846_s27  ;;  %v15696_v40 = vld [vmem:[#allocation52_spill] sm:$0xff] }
0x117e   : > { %4473 = vrot.lane.b32.xlu0 %v15694_v30, %s10847_s2 }
0x119b   : > { %v9743_v42 = vpop.f32.mrf.mxu0 }
0x119c   : > { %5527 = vrot.lane.b32.xlu1 %v9743_v42, %s10845_s1 }
0x119d   : > { %v5460_v35 = vpop.f32.mrf.mxu0 }
0x119f   : > { %v9744_v44 = vpop.f32.mrf.mxu0 }
0x11a0   : > { %5523 = vrot.lane.b32.xlu1 %v5460_v35, %s10845_s1  ;;  %5529 = vrot.lane.b32.xlu0 %v9744_v44, %s10845_s1 }
0x11a1   : > { %v5463_v52 = vpop.f32.mrf.mxu0 }
0x11a4   : > { %4475 = vrot.lane.b32.xlu1 %v15695_v11, %s10847_s2  ;;  %5525 = vrot.lane.b32.xlu0 %v5463_v52, %s10845_s1 }
0x11a5   : > { %v9747_v37 = vpop.f32.mrf.mxu0 }
0x11a7   : > { %v5476_v20 = vpop.f32.mrf.mxu0 }
0x11a8   : > { %5001 = vrot.lane.b32.xlu1 %v13450_v58, %s10846_s27  ;;  %4477 = vrot.lane.b32.xlu0 %v15696_v40, %s10847_s2 }
0x11a9   : > { %v9748_v29 = vpop.f32.mrf.mxu0 }
0x11ab   : > { %v5479_v10 = vpop.f32.mrf.mxu0 }
0x11ac   : > { %5005 = vrot.lane.b32.xlu1 %v13448_v25, %s10846_s27  ;;  %5003 = vrot.lane.b32.xlu0 %v13454_v24, %s10846_s27 }
0x11b0   : > { %5007 = vrot.lane.b32.xlu0 %v13452_v3, %s10846_s27  ;;  %5531 = vrot.lane.b32.xlu1 %v5476_v20, %s10845_s1  ;;  %v13836_v3 = vld [vmem:[%s15697_s18] ss:$0 sm:$0xff] }
0x11b4   : > { %5535 = vrot.lane.b32.xlu1 %v9747_v37, %s10845_s1  ;;  %5533 = vrot.lane.b32.xlu0 %v5479_v10, %s10845_s1 }
0x11b5   : > { %v9767_v58 = vpop.f32.mrf.mxu0 }
0x11b6   : > { %v13849_v54 = vadd.f32 %v9767_v58, %v13836_v3 }
0x11b7   : > { %v5724_v21 = vpop.f32.mrf.mxu0 }
0x11b8   : > { %5537 = vrot.lane.b32.xlu0 %v9748_v29, %s10845_s1  ;;  %v13844_v36 = vadd.f32 %v13836_v3, %v5724_v21 }
0x11b9   : > { %v9768_v25 = vpop.f32.mrf.mxu0 }
0x11ba   : > { %v13854_v32 = vadd.f32 %v9768_v25, %v13836_v3 }
0x11bb   : > { %v5727_v8 = vpop.f32.mrf.mxu0 }
0x11bc   : > { %v13839_v2 = vadd.f32 %v13836_v3, %v5727_v8 }
0x11cd   : > { %v9771_v14 = vpop.f32.mrf.mxu0 }
0x11ce   : > { %v13869_v22 = vadd.f32 %v9771_v14, %v13836_v3 }
0x11cf   : > { %v5740_v23 = vpop.f32.mrf.mxu0 }
0x11d0   : > { %v5512_v24 = vpop.permute.xlu1 %5511  ;;  %v13859_v17 = vadd.f32 %v13836_v3, %v5740_v23 }
0x11d1   : > { %5557 = vst.msk [vmem:[#allocation3 + $0x90] sm:$0xff] %vm3522_vm3, %v5512_v24  ;;  %v9772_v6 = vpop.f32.mrf.mxu0 }
0x11d2   : > { %v13874_v28 = vadd.f32 %v9772_v6, %v13836_v3 }
0x11d3   : > { %v5743_v18 = vpop.f32.mrf.mxu0 }
0x11d4   : > { %v5508_v9 = vpop.permute.xlu1 %5507  ;;  %v5514_v0 = vpop.permute.xlu0 %5513  ;;  %v13864_v26 = vadd.f32 %v13836_v3, %v5743_v18 }
0x11d5   : > { %5555 = vst.msk [vmem:[#allocation3 + $0x80] sm:$0xff] %vm3522_vm3, %v5508_v9  ;;  %5558 = vst.msk [vmem:[#allocation3 + $0x98] sm:$0xff] %vm3522_vm3, %v5514_v0 }
0x11d7   : > { %5853 = vadd.xlane.f32.xlu0 %v13839_v2 }
0x11d8   : > { %v4468_v19 = vpop.permute.xlu1 %4467  ;;  %5851 = vadd.xlane.f32.xlu1 %v13844_v36  ;;  %v5510_v53 = vpop.permute.xlu0 %5509  ;;  %v5589_v50 = vld [vmem:[#allocation3 + $0x90] sm:$0xff] }
0x11d9   : > { %4505 = vst.msk [vmem:[#allocation3 + $0xd0] sm:$0xff] %vm2460_vm1, %v4468_v19 }
0x11da   : > { %5556 = vst.msk [vmem:[#allocation3 + $0x88] sm:$0xff] %vm3522_vm3, %v5510_v53 }
0x11db   : > { %5855 = vadd.xlane.f32.xlu0 %v13849_v54 }
0x11dc   : > { %v4994_v7 = vpop.permute.xlu1 %4993  ;;  %5857 = vadd.xlane.f32.xlu1 %v13854_v32  ;;  %v4470_v27 = vpop.permute.xlu0 %4469  ;;  %v5590_v33 = vld [vmem:[#allocation3 + $0x98] sm:$0xff]  ;;  %v5587_v56 = vld [vmem:[#allocation3 + $0x80] sm:$0xff] }
0x11dd   : > { %5033 = vst.msk [vmem:[#allocation3 + $0xc0] sm:$0xff] %vm2991_vm2, %v4994_v7  ;;  %v5612_v13 = vpack.c.bf16 %v5590_v33, %v5589_v50 }
0x11de   : > { %4506 = vst.msk [vmem:[#allocation3 + $0xd8] sm:$0xff] %vm2460_vm1, %v4470_v27 }
0x11df   : > { %5859 = vadd.xlane.f32.xlu0 %v13859_v17 }
0x11e0   : > { %v5520_v16 = vpop.permute.xlu1 %5519  ;;  %5861 = vadd.xlane.f32.xlu1 %v13864_v26  ;;  %v4996_v5 = vpop.permute.xlu0 %4995 }
0x11e1   : > { %v5588_v45 = vld [vmem:[#allocation3 + $0x88] sm:$0xff]  ;;  %5561 = vst.msk [vmem:[#allocation3 + $0xb0] sm:$0xff] %vm3522_vm3, %v5520_v16 }
0x11e2   : > { %5034 = vst.msk [vmem:[#allocation3 + $0xc8] sm:$0xff] %vm2991_vm2, %v4996_v5  ;;  %v5611_v46 = vpack.c.bf16 %v5588_v45, %v5587_v56 }
0x11e3   : > { %5863 = vadd.xlane.f32.xlu0 %v13869_v22 }
0x11e4   : > { %9781 = vmatprep.mubr.bf16.mxu0 %v5611_v46  ;;  %v5516_v41 = vpop.permute.xlu1 %5515  ;;  %5865 = vadd.xlane.f32.xlu1 %v13874_v28  ;;  %v5522_v57 = vpop.permute.xlu0 %5521 }
0x11e5   : > { %9782 = vmatmul.mubr.bf16.gmra.mxu0 %v5612_v13  ;;  %5559 = vst.msk [vmem:[#allocation3 + $0xa0] sm:$0xff] %vm3522_vm3, %v5516_v41  ;;  %5562 = vst.msk [vmem:[#allocation3 + $0xb8] sm:$0xff] %vm3522_vm3, %v5522_v57  ;;  %v9775_v1 = vpop.f32.mrf.mxu0  ;;  %v15698_v41 = vmov 0  }
0x11e6   : > { %v13887_v34 = vadd.f32 %v9775_v1, %v13836_v3 }
0x11e7   : > { %v5756_v62 = vpop.f32.mrf.mxu0 }
0x11e8   : > { %v13881_v55 = vadd.f32 %v13836_v3, %v5756_v62  ;;  %v4998_v60 = vpop.permute.xlu1 %4997  ;;  %v5518_v31 = vpop.permute.xlu0 %5517  ;;  %v5593_v59 = vld [vmem:[#allocation3 + $0xb0] sm:$0xff] }
0x11e9   : > { %5035 = vst.msk [vmem:[#allocation3 + $0xd0] sm:$0xff] %vm2991_vm2, %v4998_v60  ;;  %v9776_v43 = vpop.f32.mrf.mxu0 }
0x11ea   : > { %5560 = vst.msk [vmem:[#allocation3 + $0xa8] sm:$0xff] %vm3522_vm3, %v5518_v31  ;;  %5867 = vadd.xlane.f32.xlu0 %v13881_v55  ;;  %v13897_v12 = vadd.f32 %v9776_v43, %v13836_v3 }
0x11eb   : > { %v5759_v51 = vpop.f32.mrf.mxu0 }
0x11ec   : > { %v13890_v61 = vadd.f32 %v13836_v3, %v5759_v51  ;;  %v4472_v4 = vpop.permute.xlu1 %4471  ;;  %v5000_v39 = vpop.permute.xlu0 %4999  ;;  %v5594_v49 = vld [vmem:[#allocation3 + $0xb8] sm:$0xff]  ;;  %v5591_v48 = vld [vmem:[#allocation3 + $0xa0] sm:$0xff] }
0x11ed   : > { %4507 = vst.msk [vmem:[#allocation3 + $0xe0] sm:$0xff] %vm2460_vm1, %v4472_v4  ;;  %v5614_v38 = vpack.c.bf16 %v5594_v49, %v5593_v59 }
0x11ee   : > { %5036 = vst.msk [vmem:[#allocation3 + $0xd8] sm:$0xff] %vm2991_vm2, %v5000_v39  ;;  %5869 = vadd.xlane.f32.xlu1 %v13890_v61  ;;  %5871 = vadd.xlane.f32.xlu0 %v13887_v34 }
0x11f0   : > { %v4474_v63 = vpop.permute.xlu0 %4473 }
0x11f1   : > { %v5592_v15 = vld [vmem:[#allocation3 + $0xa8] sm:$0xff]  ;;  %4508 = vst.msk [vmem:[#allocation3 + $0xe8] sm:$0xff] %vm2460_vm1, %v4474_v63 }
0x11f2   : > { %v5613_v47 = vpack.c.bf16 %v5592_v15, %v5591_v48  ;;  %5873 = vadd.xlane.f32.xlu1 %v13897_v12 }
0x11f4   : > { %9785 = vmatprep.mubr.bf16.mxu0 %v5613_v47 }
0x11f5   : > { %9786 = vmatmul.mubr.bf16.gmra.mxu0 %v5614_v38 }
0x11fd   : > { %v9779_v30 = vpop.f32.mrf.mxu0 }
0x11fe   : > { %v13906_v11 = vadd.f32 %v9779_v30, %v13836_v3 }
0x11ff   : > { %v5772_v42 = vpop.f32.mrf.mxu0 }
0x1200   : > { %v13902_v35 = vadd.f32 %v13836_v3, %v5772_v42 }
0x1201   : > { %v9780_v44 = vpop.f32.mrf.mxu0 }
0x1202   : > { %5875 = vadd.xlane.f32.xlu0 %v13902_v35  ;;  %v13914_v40 = vadd.f32 %v9780_v44, %v13836_v3 }
0x1203   : > { %v5775_v52 = vpop.f32.mrf.mxu0 }
0x1204   : > { %v13909_v37 = vadd.f32 %v13836_v3, %v5775_v52 }
0x1206   : > { %5877 = vadd.xlane.f32.xlu1 %v13909_v37  ;;  %5879 = vadd.xlane.f32.xlu0 %v13906_v11 }
0x120a   : > { %5881 = vadd.xlane.f32.xlu1 %v13914_v40 }
0x120e   : > { %v5528_v20 = vpop.permute.xlu1 %5527 }
0x120f   : > { %5565 = vst.msk [vmem:[#allocation3 + $0xd0] sm:$0xff] %vm3522_vm3, %v5528_v20 }
0x1212   : > { %v5524_v29 = vpop.permute.xlu1 %5523  ;;  %v5530_v10 = vpop.permute.xlu0 %5529 }
0x1213   : > { %5563 = vst.msk [vmem:[#allocation3 + $0xc0] sm:$0xff] %vm3522_vm3, %v5524_v29  ;;  %5566 = vst.msk [vmem:[#allocation3 + $0xd8] sm:$0xff] %vm3522_vm3, %v5530_v10 }
0x1216   : > { %v4476_v58 = vpop.permute.xlu1 %4475  ;;  %v5526_v21 = vpop.permute.xlu0 %5525  ;;  %v5597_v19 = vld [vmem:[#allocation3 + $0xd0] sm:$0xff] }
0x1217   : > { %4509 = vst.msk [vmem:[#allocation3 + $0xf0] sm:$0xff] %vm2460_vm1, %v4476_v58 }
0x1218   : > { %5564 = vst.msk [vmem:[#allocation3 + $0xc8] sm:$0xff] %vm3522_vm3, %v5526_v21 }
0x121a   : > { %v5002_v25 = vpop.permute.xlu1 %5001  ;;  %v4478_v8 = vpop.permute.xlu0 %4477  ;;  %v5598_v14 = vld [vmem:[#allocation3 + $0xd8] sm:$0xff]  ;;  %v5595_v9 = vld [vmem:[#allocation3 + $0xc0] sm:$0xff] }
0x121b   : > { %5037 = vst.msk [vmem:[#allocation3 + $0xe0] sm:$0xff] %vm2991_vm2, %v5002_v25  ;;  %v5616_v53 = vpack.c.bf16 %v5598_v14, %v5597_v19 }
0x121c   : > { %4510 = vst.msk [vmem:[#allocation3 + $0xf8] sm:$0xff] %vm2460_vm1, %v4478_v8 }
0x121e   : > { %v5006_v24 = vpop.permute.xlu1 %5005  ;;  %v5004_v23 = vpop.permute.xlu0 %5003 }
0x121f   : > { %v5596_v0 = vld [vmem:[#allocation3 + $0xc8] sm:$0xff]  ;;  %5039 = vst.msk [vmem:[#allocation3 + $0xf0] sm:$0xff] %vm2991_vm2, %v5006_v24  ;;  %5038 = vst.msk [vmem:[#allocation3 + $0xe8] sm:$0xff] %vm2991_vm2, %v5004_v23  ;;  %v9998_v24 = vld [vmem:[%s11053_s26 + $0xe4] ss:$16 sps:$4 sm:$0xff]  }
0x1220   : > { %v5615_v6 = vpack.c.bf16 %v5596_v0, %v5595_v9  ;;  %v10001_v23 = vld [vmem:[%s11053_s26 + $0xec] ss:$16 sps:$4 sm:$0xff]   ;;  %v9996_v0 = vld [vmem:[%s11053_s26 + $0xe0] ss:$16 sps:$4 sm:$0xff]   ;;  %6544 = vmatprep.subr.bf16.mxu1 %v9998_v24 }
0x1221   : > { %6737 = vmatprep.subr.bf16.mxu0 %v10001_v23  ;;  %6545 = vmatpush1.bf16.msra.mxu1 %v9996_v0 }
0x1222   : > { %9789 = vmatprep.mubr.bf16.mxu0 %v5615_v6  ;;  %v5532_v18 = vpop.permute.xlu1 %5531  ;;  %v5008_v7 = vpop.permute.xlu0 %5007  ;;  %v9999_v6 = vld [vmem:[%s11053_s26 + $0xe8] ss:$16 sps:$4 sm:$0xff]  }
0x1223   : > { %9790 = vmatmul.mubr.bf16.gmra.mxu0 %v5616_v53  ;;  %5567 = vst.msk [vmem:[#allocation3 + $0xe0] sm:$0xff] %vm3522_vm3, %v5532_v18 }
0x1224   : > { %5040 = vst.msk [vmem:[#allocation3 + $0xf8] sm:$0xff] %vm2991_vm2, %v5008_v7  ;;  %6738 = vmatpush1.bf16.msra.mxu0 %v9999_v6  ;;  %v10004_v7 = vld [vmem:[%s11053_s26 + $0xc4] ss:$16 sps:$4 sm:$0xff]  }
0x1225   : > { %6546 = vmatprep.subr.bf16.mxu1 %v10004_v7 }
0x1226   : > { %v5536_v27 = vpop.permute.xlu1 %5535  ;;  %v5534_v33 = vpop.permute.xlu0 %5533 }
0x1227   : > { %5569 = vst.msk [vmem:[#allocation3 + $0xf0] sm:$0xff] %vm3522_vm3, %v5536_v27  ;;  %5568 = vst.msk [vmem:[#allocation3 + $0xe8] sm:$0xff] %vm3522_vm3, %v5534_v33  ;;  %v10007_v27 = vld [vmem:[%s11053_s26 + $0xcc] ss:$16 sps:$4 sm:$0xff]   ;;  %v10002_v33 = vld [vmem:[%s11053_s26 + $0xc0] ss:$16 sps:$4 sm:$0xff]  }
0x1228   : > { %6739 = vmatprep.subr.bf16.mxu0 %v10007_v27  ;;  %6547 = vmatpush1.bf16.msra.mxu1 %v10002_v33 }
0x122a   : > { %v5538_v16 = vpop.permute.xlu0 %5537  ;;  %v5599_v5 = vld [vmem:[#allocation3 + $0xe0] sm:$0xff] }
0x122b   : > { %5570 = vst.msk [vmem:[#allocation3 + $0xf8] sm:$0xff] %vm3522_vm3, %v5538_v16  ;;  %v10005_v16 = vld [vmem:[%s11053_s26 + $0xc8] ss:$16 sps:$4 sm:$0xff]  }
0x122c   : > { %6740 = vmatpush1.bf16.msra.mxu0 %v10005_v16 }
0x122e   : > { %v5600_v56 = vld [vmem:[#allocation3 + $0xe8] sm:$0xff]  ;;  %v5601_v46 = vld [vmem:[#allocation3 + $0xf0] sm:$0xff] }
0x122f   : > { %v5617_v45 = vpack.c.bf16 %v5600_v56, %v5599_v5 }
0x1231   : > { %9793 = vmatprep.mubr.bf16.mxu0 %v5617_v45  ;;  %v10010_v45 = vld [vmem:[%s11053_s26 + $0xa4] ss:$16 sps:$4 sm:$0xff]  }
0x1232   : > { %v5602_v50 = vld [vmem:[#allocation3 + $0xf8] sm:$0xff]  ;;  %6548 = vmatprep.subr.bf16.mxu1 %v10010_v45 }
0x1233   : > { %v5618_v13 = vpack.c.bf16 %v5602_v50, %v5601_v46  ;;  %v10013_v46 = vld [vmem:[%s11053_s26 + $0xac] ss:$16 sps:$4 sm:$0xff]   ;;  %v10008_v50 = vld [vmem:[%s11053_s26 + $0xa0] ss:$16 sps:$4 sm:$0xff]  }
0x1234   : > { %6741 = vmatprep.subr.bf16.mxu0 %v10013_v46  ;;  %6549 = vmatpush1.bf16.msra.mxu1 %v10008_v50 }
0x1235   : > { %9794 = vmatmul.mubr.bf16.gmra.mxu0 %v5618_v13  ;;  %v10011_v13 = vld [vmem:[%s11053_s26 + $0xa8] ss:$16 sps:$4 sm:$0xff]  }
0x1236   : > { %6769 = vmatprep.mubr.bf16.mxu0 %v15698_v41  ;;  %6742 = vmatpush1.bf16.msra.mxu0 %v10011_v13 }
0x1260   : > { %v5854_v43 = vpop.xlane.xlu0 %5853 }
0x1261   : > { %v5852_v57 = vpop.xlane.xlu1 %5851  ;;  %v5917_v39 = vmul.f32 0.0078125, %v5854_v43  ;;  %v10022_v43 = vld [vmem:[%s11053_s26 + $0x64] ss:$16 sps:$4 sm:$0xff]  }
0x1262   : > { %v5916_v60 = vmul.f32 0.0078125, %v5852_v57  ;;  %v10016_v57 = vld [vmem:[%s11053_s26 + $0x84] ss:$16 sps:$4 sm:$0xff]  }
0x1263   : > { %v13948_v15 = vsub.f32 %v13839_v2, %v5917_v39  ;;  %6550 = vmatprep.subr.bf16.mxu1 %v10016_v57  ;;  %v10023_v39 = vld [vmem:[%s11053_s26 + $0x68] ss:$16 sps:$4 sm:$0xff]  }
0x1264   : > { %v13937_v49 = vsub.f32 %v13844_v36, %v5916_v60  ;;  %v5856_v59 = vpop.xlane.xlu0 %5855  ;;  %v10017_v60 = vld [vmem:[%s11053_s26 + $0x88] ss:$16 sps:$4 sm:$0xff]  }
0x1265   : > { %v5918_v38 = vmul.f32 0.0078125, %v5856_v59  ;;  %v5981_v30 = vmul.f32 %v13948_v15, %v13948_v15  ;;  %v5858_v42 = vpop.xlane.xlu1 %5857  ;;  %v10031_v59 = vld [vmem:[%s11053_s26 + $0x4c] ss:$16 sps:$4 sm:$0xff]  }
0x1266   : > { %v5980_v36 = vmul.f32 %v13937_v49, %v13937_v49  ;;  %v5919_v20 = vmul.f32 0.0078125, %v5858_v42  ;;  %v10034_v42 = vld [vmem:[%s11053_s26 + $0x24] ss:$16 sps:$4 sm:$0xff]  }
0x1267   : > { %v13959_v52 = vsub.f32 %v13849_v54, %v5918_v38  ;;  %v10026_v38 = vld [vmem:[%s11053_s26 + $0x40] ss:$16 sps:$4 sm:$0xff]  }
0x1268   : > { %v5860_v10 = vpop.xlane.xlu0 %5859  ;;  %v13966_v25 = vsub.f32 %v13854_v32, %v5919_v20  ;;  %v10035_v20 = vld [vmem:[%s11053_s26 + $0x28] ss:$16 sps:$4 sm:$0xff]  }
0x1269   : > { %v5920_v8 = vmul.f32 0.0078125, %v5860_v10  ;;  %v5982_v54 = vmul.f32 %v13959_v52, %v13959_v52  ;;  %v5862_v9 = vpop.xlane.xlu1 %5861  ;;  %v10038_v10 = vld [vmem:[%s11053_s26] ss:$16 sps:$4 sm:$0xff]  }
0x126a   : > { %v5921_v19 = vmul.f32 0.0078125, %v5862_v9  ;;  %v5983_v18 = vmul.f32 %v13966_v25, %v13966_v25 }
0x126b   : > { %v13979_v32 = vsub.f32 %v13859_v17, %v5920_v8  ;;  %v10043_v8 = vld [vmem:[%s11053_s26 + $0xc] ss:$16 sps:$4 sm:$0xff]  }
0x126c   : > { %v13992_v17 = vsub.f32 %v13864_v26, %v5921_v19 }
0x126d   : > { %v5984_v56 = vmul.f32 %v13979_v32, %v13979_v32  ;;  %v5866_v23 = vpop.xlane.xlu1 %5865 }
0x126e   : > { %v5985_v26 = vmul.f32 %v13992_v17, %v13992_v17  ;;  %v5923_v19 = vmul.f32 0.0078125, %v5866_v23 }
0x1270   : > { %v14034_v16 = vsub.f32 %v13874_v28, %v5923_v19 }
0x1272   : > { %v5987_v28 = vmul.f32 %v14034_v16, %v14034_v16 }
0x1277   : > { %v5870_v46 = vpop.xlane.xlu1 %5869 }
0x1278   : > { %v5925_v13 = vmul.f32 0.0078125, %v5870_v46 }
0x127a   : > { %v14052_v57 = vsub.f32 %v13890_v61, %v5925_v13 }
0x12a5   : > { %v9783_v1 = vpop.f32.mrf.mxu0 }
0x12a6   : > { %v13940_v63 = vadd.f32 %v9783_v1, %v13836_v3  ;;  %v10019_v1 = vld [vmem:[%s11053_s26 + $0x8c] ss:$16 sps:$4 sm:$0xff]  }
0x12a7   : > { %v5788_v62 = vpop.f32.mrf.mxu0  ;;  %6743 = vmatprep.subr.bf16.mxu0 %v10019_v1 }
0x12a8   : > { %v13933_v31 = vadd.f32 %v13836_v3, %v5788_v62  ;;  %v10014_v62 = vld [vmem:[%s11053_s26 + $0x80] ss:$16 sps:$4 sm:$0xff]   ;;  %6744 = vmatpush1.bf16.msra.mxu0 %v10017_v60 }
0x12a9   : > { %v9784_v51 = vpop.f32.mrf.mxu0  ;;  %6551 = vmatpush1.bf16.msra.mxu1 %v10014_v62 }
0x12aa   : > { %5883 = vadd.xlane.f32.xlu0 %v13933_v31  ;;  %v13951_v47 = vadd.f32 %v9784_v51, %v13836_v3  ;;  %v10025_v51 = vld [vmem:[%s11053_s26 + $0x6c] ss:$16 sps:$4 sm:$0xff]   ;;  %6552 = vmatprep.subr.bf16.mxu1 %v10022_v43  ;;  %v5874_v43 = vpop.xlane.xlu1 %5873 }
0x12ab   : > { %v5791_v4 = vpop.f32.mrf.mxu0  ;;  %6745 = vmatprep.subr.bf16.mxu0 %v10025_v51 }
0x12ac   : > { %v13943_v48 = vadd.f32 %v13836_v3, %v5791_v4  ;;  %v10020_v4 = vld [vmem:[%s11053_s26 + $0x60] ss:$16 sps:$4 sm:$0xff]   ;;  %6746 = vmatpush1.bf16.msra.mxu0 %v10023_v39 }
0x12ad   : > { %6553 = vmatpush1.bf16.msra.mxu1 %v10020_v4  ;;  %6747 = vmatprep.subr.bf16.mxu0 %v10031_v59  ;;  %v5989_v4 = vmul.f32 %v14052_v57, %v14052_v57  ;;  %v5927_v59 = vmul.f32 0.0078125, %v5874_v43 }
0x12ae   : > { %5885 = vadd.xlane.f32.xlu1 %v13943_v48  ;;  %5887 = vadd.xlane.f32.xlu0 %v13940_v63 }
0x12b2   : > { %5889 = vadd.xlane.f32.xlu1 %v13951_v47  ;;  %6012 = vadd.xlane.f32.xlu0 %v5980_v36  ;;  %v10028_v36 = vld [vmem:[%s11053_s26 + $0x44] ss:$16 sps:$4 sm:$0xff]  }
0x12b3   : > { %6554 = vmatprep.subr.bf16.mxu1 %v10028_v36 }
0x12b4   : > { %6555 = vmatpush1.bf16.msra.mxu1 %v10026_v38 }
0x12b5   : > { %v9787_v44 = vpop.f32.mrf.mxu0  ;;  %6556 = vmatprep.subr.bf16.mxu1 %v10034_v42 }
0x12b6   : > { %6014 = vadd.xlane.f32.xlu1 %v5981_v30  ;;  %v13982_v53 = vadd.f32 %v9787_v44, %v13836_v3  ;;  %v10029_v30 = vld [vmem:[%s11053_s26 + $0x48] ss:$16 sps:$4 sm:$0xff]   ;;  %v10037_v44 = vld [vmem:[%s11053_s26 + $0x2c] ss:$16 sps:$4 sm:$0xff]  }
0x12b7   : > { %v5804_v2 = vpop.f32.mrf.mxu0  ;;  %6748 = vmatpush1.bf16.msra.mxu0 %v10029_v30 }
0x12b8   : > { %v13962_v29 = vadd.f32 %v13836_v3, %v5804_v2  ;;  %v10032_v2 = vld [vmem:[%s11053_s26 + $0x20] ss:$16 sps:$4 sm:$0xff]   ;;  %6749 = vmatprep.subr.bf16.mxu0 %v10037_v44  ;;  %v5878_v44 = vpop.xlane.xlu1 %5877 }
0x12b9   : > { %v9788_v58 = vpop.f32.mrf.mxu0  ;;  %6557 = vmatpush1.bf16.msra.mxu1 %v10032_v2 }
0x12ba   : > { %5891 = vadd.xlane.f32.xlu0 %v13962_v29  ;;  %v13995_v5 = vadd.f32 %v9788_v58, %v13836_v3  ;;  %v10040_v58 = vld [vmem:[%s11053_s26 + $0x4] ss:$16 sps:$4 sm:$0xff]  }
0x12bb   : > { %v5807_v21 = vpop.f32.mrf.mxu0  ;;  %6750 = vmatpush1.bf16.msra.mxu0 %v10035_v20  ;;  %6558 = vmatprep.subr.bf16.mxu1 %v10040_v58  ;;  %v14070_v20 = vsub.f32 %v13897_v12, %v5927_v59 }
0x12bc   : > { %v13969_v14 = vadd.f32 %v13836_v3, %v5807_v21  ;;  %v10041_v21 = vld [vmem:[%s11053_s26 + $0x8] ss:$16 sps:$4 sm:$0xff]   ;;  %6751 = vmatprep.subr.bf16.mxu0 %v10043_v8  ;;  %v5929_v8 = vmul.f32 0.0078125, %v5878_v44  ;;  %v5882_v23 = vpop.xlane.xlu1 %5881 }
0x12bd   : > { %6559 = vmatpush1.bf16.msra.mxu1 %v10038_v10  ;;  %v5991_v12 = vmul.f32 %v14070_v20, %v14070_v20  ;;  %v5931_v19 = vmul.f32 0.0078125, %v5882_v23 }
0x12be   : > { %5893 = vadd.xlane.f32.xlu1 %v13969_v14  ;;  %6016 = vadd.xlane.f32.xlu0 %v5982_v54  ;;  %v5864_v54 = vpop.xlane.xlu0 %5863 }
0x12bf   : > { %6752 = vmatpush1.bf16.msra.mxu0 %v10041_v21  ;;  %v5922_v24 = vmul.f32 0.0078125, %v5864_v54 }
0x12c1   : > { %v14027_v6 = vsub.f32 %v13869_v22, %v5922_v24 }
0x12c2   : > { %6018 = vadd.xlane.f32.xlu1 %v5983_v18  ;;  %5895 = vadd.xlane.f32.xlu0 %v13982_v53  ;;  %v5868_v7 = vpop.xlane.xlu0 %5867 }
0x12c3   : > { %v5986_v22 = vmul.f32 %v14027_v6, %v14027_v6 }
0x12c6   : > { %5897 = vadd.xlane.f32.xlu1 %v13995_v5  ;;  %6020 = vadd.xlane.f32.xlu0 %v5984_v56  ;;  %v5924_v56 = vmul.f32 0.0078125, %v5868_v7  ;;  %v5872_v1 = vpop.xlane.xlu0 %5871 }
0x12c7   : > { %v5926_v60 = vmul.f32 0.0078125, %v5872_v1 }
0x12c8   : > { %v14043_v50 = vsub.f32 %v13881_v55, %v5924_v56 }
0x12c9   : > { %v14063_v61 = vsub.f32 %v13887_v34, %v5926_v60 }
0x12ca   : > { %6022 = vadd.xlane.f32.xlu1 %v5985_v26  ;;  %v5988_v55 = vmul.f32 %v14043_v50, %v14043_v50  ;;  %v5876_v39 = vpop.xlane.xlu0 %5875 }
0x12cb   : > { %v5928_v42 = vmul.f32 0.0078125, %v5876_v39  ;;  %v5990_v34 = vmul.f32 %v14063_v61, %v14063_v61 }
0x12cd   : > { %v14079_v21 = vsub.f32 %v13902_v35, %v5928_v42 }
0x12ce   : > { %v5880_v58 = vpop.xlane.xlu0 %5879 }
0x12cf   : > { %v5930_v54 = vmul.f32 0.0078125, %v5880_v58 }
0x12d1   : > { %v14093_v35 = vsub.f32 %v13906_v11, %v5930_v54 }
0x12e3   : > { %v9791_v9 = vpop.f32.mrf.mxu0 }
0x12e4   : > { %v14046_v26 = vadd.f32 %v9791_v9, %v13836_v3  ;;  %v5992_v9 = vmul.f32 %v14079_v21, %v14079_v21 }
0x12e5   : > { %v5820_v0 = vpop.f32.mrf.mxu0 }
0x12e6   : > { %v14030_v18 = vadd.f32 %v13836_v3, %v5820_v0  ;;  %v14090_v0 = vsub.f32 %v13909_v37, %v5929_v8  ;;  %v5994_v37 = vmul.f32 %v14093_v35, %v14093_v35 }
0x12e7   : > { %v9792_v27 = vpop.f32.mrf.mxu0 }
0x12e8   : > { %5899 = vadd.xlane.f32.xlu0 %v14030_v18  ;;  %v14055_v62 = vadd.f32 %v9792_v27, %v13836_v3  ;;  %v14100_v27 = vsub.f32 %v13914_v40, %v5931_v19 }
0x12e9   : > { %v5823_v33 = vpop.f32.mrf.mxu0 }
0x12ea   : > { %v14037_v45 = vadd.f32 %v13836_v3, %v5823_v33  ;;  %v5993_v33 = vmul.f32 %v14090_v0, %v14090_v0  ;;  %v5995_v11 = vmul.f32 %v14100_v27, %v14100_v27 }
0x12ec   : > { %5901 = vadd.xlane.f32.xlu1 %v14037_v45  ;;  %6024 = vadd.xlane.f32.xlu0 %v5986_v22 }
0x12f0   : > { %6026 = vadd.xlane.f32.xlu1 %v5987_v28  ;;  %5903 = vadd.xlane.f32.xlu0 %v14046_v26 }
0x12f4   : > { %5905 = vadd.xlane.f32.xlu1 %v14055_v62  ;;  %6028 = vadd.xlane.f32.xlu0 %v5988_v55 }
0x12f5   : > { %v9795_v51 = vpop.f32.mrf.mxu0 }
0x12f6   : > { %v14082_v24 = vadd.f32 %v9795_v51, %v13836_v3 }
0x12f7   : > { %v5836_v36 = vpop.f32.mrf.mxu0 }
0x12f8   : > { %6030 = vadd.xlane.f32.xlu1 %v5989_v4  ;;  %v14066_v38 = vadd.f32 %v13836_v3, %v5836_v36 }
0x12f9   : > { %v9796_v30 = vpop.f32.mrf.mxu0 }
0x12fa   : > { %5907 = vadd.xlane.f32.xlu0 %v14066_v38  ;;  %v14096_v7 = vadd.f32 %v9796_v30, %v13836_v3 }
0x12fb   : > { %v5839_v2 = vpop.f32.mrf.mxu0 }
0x12fc   : > { %v14073_v10 = vadd.f32 %v13836_v3, %v5839_v2 }
0x12fe   : > { %5909 = vadd.xlane.f32.xlu1 %v14073_v10  ;;  %6032 = vadd.xlane.f32.xlu0 %v5990_v34 }
0x1302   : > { %6034 = vadd.xlane.f32.xlu1 %v5991_v12  ;;  %5911 = vadd.xlane.f32.xlu0 %v14082_v24 }
0x1306   : > { %5913 = vadd.xlane.f32.xlu1 %v14096_v7  ;;  %6036 = vadd.xlane.f32.xlu0 %v5992_v9 }
0x130a   : > { %6038 = vadd.xlane.f32.xlu1 %v5993_v33  ;;  %6040 = vadd.xlane.f32.xlu0 %v5994_v37 }
0x130e   : > { %6042 = vadd.xlane.f32.xlu1 %v5995_v11 }
0x1333   : > { %v5884_v3 = vpop.xlane.xlu0 %5883 }
0x1334   : > { %v5932_v56 = vmul.f32 0.0078125, %v5884_v3 }
0x1336   : > { %v14109_v22 = vsub.f32 %v13933_v31, %v5932_v56 }
0x1337   : > { %v5886_v46 = vpop.xlane.xlu1 %5885  ;;  %v5888_v40 = vpop.xlane.xlu0 %5887 }
0x1338   : > { %v5933_v13 = vmul.f32 0.0078125, %v5886_v46  ;;  %v5934_v28 = vmul.f32 0.0078125, %v5888_v40  ;;  %v5996_v1 = vmul.f32 %v14109_v22, %v14109_v22  ;;  %v14143_v46 = vld [vmem:[%s15699_s24] ss:$0 sm:$0xff] }
0x133a   : > { %v14114_v55 = vsub.f32 %v13943_v48, %v5933_v13  ;;  %v14117_v60 = vsub.f32 %v13940_v63, %v5934_v28  ;;  %6044 = vadd.xlane.f32.xlu0 %v5996_v1 }
0x133b   : > { %v5890_v43 = vpop.xlane.xlu1 %5889  ;;  %v6013_v51 = vpop.xlane.xlu0 %6012 }
0x133c   : > { %v5935_v4 = vmul.f32 0.0078125, %v5890_v43  ;;  %v6076_v39 = vmul.f32 0.0078125, %v6013_v51  ;;  %v5997_v31 = vmul.f32 %v14114_v55, %v14114_v55  ;;  %v5998_v36 = vmul.f32 %v14117_v60, %v14117_v60  ;;  %v14154_v43 = vld [vmem:[%s15700_s30] ss:$0 sm:$0xff] }
0x133e   : > { %v14124_v59 = vsub.f32 %v13951_v47, %v5935_v4  ;;  %v6108_v30 = vadd.f32 1e-05, %v6076_v39  ;;  %6046 = vadd.xlane.f32.xlu1 %v5997_v31  ;;  %6048 = vadd.xlane.f32.xlu0 %v5998_v36 }
0x133f   : > { %v6015_v48 = vpop.xlane.xlu1 %6014 }
0x1340   : > { %10588 = vrsqrt.f32 %v6108_v30  ;;  %v6077_v63 = vmul.f32 0.0078125, %v6015_v48  ;;  %v5999_v42 = vmul.f32 %v14124_v59, %v14124_v59 }
0x1342   : > { %v6109_v44 = vadd.f32 1e-05, %v6077_v63  ;;  %6050 = vadd.xlane.f32.xlu1 %v5999_v42 }
0x1343   : > { %v5892_v2 = vpop.xlane.xlu0 %5891 }
0x1344   : > { %10590 = vrsqrt.f32 %v6109_v44  ;;  %v5936_v34 = vmul.f32 0.0078125, %v5892_v2 }
0x1346   : > { %v14129_v58 = vsub.f32 %v13962_v29, %v5936_v34 }
0x1347   : > { %v5894_v47 = vpop.xlane.xlu1 %5893  ;;  %v6017_v8 = vpop.xlane.xlu0 %6016 }
0x1348   : > { %v5937_v54 = vmul.f32 0.0078125, %v5894_v47  ;;  %v6078_v12 = vmul.f32 0.0078125, %v6017_v8  ;;  %v6000_v23 = vmul.f32 %v14129_v58, %v14129_v58  ;;  %v10719_v8 = vld [vmem:[#allocation2] sm:$0xff] }
0x134a   : > { %v14134_v9 = vsub.f32 %v13969_v14, %v5937_v54  ;;  %v6110_v19 = vadd.f32 1e-05, %v6078_v12  ;;  %6052 = vadd.xlane.f32.xlu0 %v6000_v23 }
0x134b   : > { %v6019_v33 = vpop.xlane.xlu1 %6018  ;;  %v5896_v37 = vpop.xlane.xlu0 %5895 }
0x134c   : > { %10592 = vrsqrt.f32 %v6110_v19  ;;  %v6079_v11 = vmul.f32 0.0078125, %v6019_v33  ;;  %v5938_v29 = vmul.f32 0.0078125, %v5896_v37  ;;  %v6001_v3 = vmul.f32 %v14134_v9, %v14134_v9 }
0x134d   : > { %v10589_v56 = vpop.eup %10588 }
0x134e   : > { %v6172_v14 = vmul.f32 %v10589_v56, %v13937_v49  ;;  %v6111_v40 = vadd.f32 1e-05, %v6079_v11  ;;  %v14147_v13 = vsub.f32 %v13982_v53, %v5938_v29  ;;  %6054 = vadd.xlane.f32.xlu1 %v6001_v3 }
0x134f   : > { %v5898_v28 = vpop.xlane.xlu1 %5897  ;;  %v6021_v1 = vpop.xlane.xlu0 %6020 }
0x1350   : > { %v6211_v51 = vmul.f32 %v14143_v46, %v6172_v14  ;;  %10594 = vrsqrt.f32 %v6111_v40  ;;  %v5939_v4 = vmul.f32 0.0078125, %v5898_v28  ;;  %v6080_v39 = vmul.f32 0.0078125, %v6021_v1  ;;  %v10720_v40 = vld [vmem:[#allocation2 + $0xd8] sm:$0xff] }
0x1351   : > { %v10591_v31 = vpop.eup %10590  ;;  %v6002_v49 = vmul.f32 %v14147_v13, %v14147_v13  ;;  %v10721_v1 = vld [vmem:[#allocation2 + $0x18] sm:$0xff] }
0x1352   : > { %v6173_v53 = vmul.f32 %v10591_v31, %v13948_v15  ;;  %v14161_v36 = vsub.f32 %v13995_v5, %v5939_v4  ;;  %v6112_v30 = vadd.f32 1e-05, %v6080_v39  ;;  %v6250_v48 = vadd.f32 %v14154_v43, %v6211_v51  ;;  %v10718_v15 = vld [vmem:[#allocation2 + $0xb0] sm:$0xff] }
0x1353   : > { %6056 = vadd.xlane.f32.xlu0 %v6002_v49  ;;  %v6023_v63 = vpop.xlane.xlu1 %6022 }
0x1354   : > { %v6212_v42 = vmul.f32 %v14143_v46, %v6173_v53  ;;  %10596 = vrsqrt.f32 %v6112_v30  ;;  %v6081_v44 = vmul.f32 0.0078125, %v6023_v63  ;;  %v6003_v2 = vmul.f32 %v14161_v36, %v14161_v36  ;;  %v10722_v30 = vld [vmem:[#allocation2 + $0x50] sm:$0xff]  ;;  %v10723_v63 = vld [vmem:[#allocation2 + $0x68] sm:$0xff] }
0x1355   : > { %v14168_v5 = vadd.f32 %v10718_v15, %v6250_v48 }
0x1356   : > { %v6251_v34 = vadd.f32 %v14154_v43, %v6212_v42  ;;  %v6113_v47 = vadd.f32 1e-05, %v6081_v44  ;;  %6058 = vadd.xlane.f32.xlu1 %v6003_v2 }
0x1358   : > { %10598 = vrsqrt.f32 %v6113_v47  ;;  %v14170_v54 = vadd.f32 %v10719_v8, %v6251_v34 }
0x1359   : > { %v10593_v12 = vpop.eup %10592 }
0x135a   : > { %v6314_v23 = vpack.c.bf16 %v14170_v54, %v14168_v5  ;;  %v6174_v19 = vmul.f32 %v10593_v12, %v13959_v52 }
0x135c   : > { %6577 = vmatmul.mubr.bf16.vlgmr.msra.gmra.mxu1 %v6314_v23  ;;  %6770 = vmatmul.mubr.bf16.vlgmr.msra.gmra.mxu0 %v6314_v23  ;;  %v6213_v33 = vmul.f32 %v14143_v46, %v6174_v19 }
0x135d   : > { %v10595_v37 = vpop.eup %10594  ;;  %6586 = vmatprep.mubr.bf16.mxu1 %v15698_v41  ;;  %6779 = vmatprep.mubr.bf16.mxu0 %v15698_v41 }
0x135e   : > { %v6175_v11 = vmul.f32 %v10595_v37, %v13966_v25  ;;  %v6252_v3 = vadd.f32 %v14154_v43, %v6213_v33 }
0x1360   : > { %v6214_v29 = vmul.f32 %v14143_v46, %v6175_v11  ;;  %v14183_v28 = vadd.f32 %v10720_v40, %v6252_v3 }
0x1361   : > { %v10597_v56 = vpop.eup %10596 }
0x1362   : > { %v6253_v14 = vadd.f32 %v14154_v43, %v6214_v29  ;;  %v6176_v52 = vmul.f32 %v10597_v56, %v13979_v32 }
0x1364   : > { %v14185_v51 = vadd.f32 %v10721_v1, %v6253_v14  ;;  %v6215_v4 = vmul.f32 %v14143_v46, %v6176_v52 }
0x1365   : > { %v10599_v39 = vpop.eup %10598 }
0x1366   : > { %v6315_v25 = vpack.c.bf16 %v14185_v51, %v14183_v28  ;;  %v6177_v31 = vmul.f32 %v10599_v39, %v13992_v17  ;;  %v6254_v32 = vadd.f32 %v14154_v43, %v6215_v4 }
0x1368   : > { %6587 = vmatmul.mubr.bf16.gmra.mxu1 %v6315_v25  ;;  %6780 = vmatmul.mubr.bf16.gmra.mxu0 %v6315_v25  ;;  %v6216_v49 = vmul.f32 %v14143_v46, %v6177_v31  ;;  %v14196_v48 = vadd.f32 %v10722_v30, %v6254_v32 }
0x1369   : > { %6596 = vmatprep.mubr.bf16.mxu1 %v15698_v41  ;;  %6789 = vmatprep.mubr.bf16.mxu0 %v15698_v41 }
0x136a   : > { %v6255_v53 = vadd.f32 %v14154_v43, %v6216_v49 }
0x136c   : > { %v14198_v42 = vadd.f32 %v10723_v63, %v6255_v53 }
0x136e   : > { %v6316_v17 = vpack.c.bf16 %v14198_v42, %v14196_v48 }
0x1370   : > { %6597 = vmatmul.mubr.bf16.gmra.mxu1 %v6316_v17  ;;  %6790 = vmatmul.mubr.bf16.gmra.mxu0 %v6316_v17 }
0x1371   : > { %v5900_v44 = vpop.xlane.xlu0 %5899  ;;  %6606 = vmatprep.mubr.bf16.mxu1 %v15698_v41  ;;  %6799 = vmatprep.mubr.bf16.mxu0 %v15698_v41 }
0x1372   : > { %v5940_v2 = vmul.f32 0.0078125, %v5900_v44 }
0x1374   : > { %v14205_v34 = vsub.f32 %v14030_v18, %v5940_v2 }
0x1375   : > { %v5902_v47 = vpop.xlane.xlu1 %5901  ;;  %v6025_v15 = vpop.xlane.xlu0 %6024 }
0x1376   : > { %v5941_v8 = vmul.f32 0.0078125, %v5902_v47  ;;  %v6082_v12 = vmul.f32 0.0078125, %v6025_v15  ;;  %v6004_v23 = vmul.f32 %v14205_v34, %v14205_v34 }
0x1378   : > { %v14210_v19 = vsub.f32 %v14037_v45, %v5941_v8  ;;  %v6114_v33 = vadd.f32 1e-05, %v6082_v12  ;;  %6060 = vadd.xlane.f32.xlu0 %v6004_v23 }
0x1379   : > { %v6027_v37 = vpop.xlane.xlu1 %6026  ;;  %v5904_v11 = vpop.xlane.xlu0 %5903 }
0x137a   : > { %10600 = vrsqrt.f32 %v6114_v33  ;;  %v6083_v29 = vmul.f32 0.0078125, %v6027_v37  ;;  %v5942_v3 = vmul.f32 0.0078125, %v5904_v11  ;;  %v6005_v18 = vmul.f32 %v14210_v19, %v14210_v19 }
0x137c   : > { %v6115_v56 = vadd.f32 1e-05, %v6083_v29  ;;  %v14215_v14 = vsub.f32 %v14046_v26, %v5942_v3  ;;  %6062 = vadd.xlane.f32.xlu1 %v6005_v18 }
0x137d   : > { %v5906_v52 = vpop.xlane.xlu1 %5905  ;;  %v6029_v40 = vpop.xlane.xlu0 %6028 }
0x137e   : > { %10602 = vrsqrt.f32 %v6115_v56  ;;  %v5943_v45 = vmul.f32 0.0078125, %v5906_v52  ;;  %v6084_v1 = vmul.f32 0.0078125, %v6029_v40  ;;  %v6006_v4 = vmul.f32 %v14215_v14, %v14215_v14 }
0x1380   : > { %v14220_v39 = vsub.f32 %v14055_v62, %v5943_v45  ;;  %v6116_v25 = vadd.f32 1e-05, %v6084_v1  ;;  %6064 = vadd.xlane.f32.xlu0 %v6006_v4 }
0x1381   : > { %v6031_v31 = vpop.xlane.xlu1 %6030 }
0x1382   : > { %10604 = vrsqrt.f32 %v6116_v25  ;;  %v6085_v49 = vmul.f32 0.0078125, %v6031_v31  ;;  %v6007_v26 = vmul.f32 %v14220_v39, %v14220_v39 }
0x1383   : > { %v5908_v53 = vpop.xlane.xlu0 %5907 }
0x1384   : > { %v6117_v32 = vadd.f32 1e-05, %v6085_v49  ;;  %6066 = vadd.xlane.f32.xlu1 %v6007_v26  ;;  %v5944_v30 = vmul.f32 0.0078125, %v5908_v53 }
0x1386   : > { %10606 = vrsqrt.f32 %v6117_v32  ;;  %v14225_v17 = vsub.f32 %v14066_v38, %v5944_v30  ;;  %v10724_v32 = vld [vmem:[#allocation2 + $0x30] sm:$0xff]  ;;  %v10725_v30 = vld [vmem:[#allocation2 + $0x48] sm:$0xff] }
0x1387   : > { %v10601_v63 = vpop.eup %10600  ;;  %v5910_v44 = vpop.xlane.xlu1 %5909 }
0x1388   : > { %v6033_v62 = vpop.xlane.xlu0 %6032  ;;  %v6178_v2 = vmul.f32 %v10601_v63, %v14027_v6  ;;  %v5945_v47 = vmul.f32 0.0078125, %v5910_v44  ;;  %v6008_v8 = vmul.f32 %v14225_v17, %v14225_v17 }
0x1389   : > { %v6086_v15 = vmul.f32 0.0078125, %v6033_v62 }
0x138a   : > { %v6217_v12 = vmul.f32 %v14143_v46, %v6178_v2  ;;  %v14232_v33 = vsub.f32 %v14073_v10, %v5945_v47  ;;  %6068 = vadd.xlane.f32.xlu0 %v6008_v8 }
0x138b   : > { %v10603_v23 = vpop.eup %10602  ;;  %v6118_v37 = vadd.f32 1e-05, %v6086_v15  ;;  %v6035_v11 = vpop.xlane.xlu1 %6034 }
0x138c   : > { %v5912_v38 = vpop.xlane.xlu0 %5911  ;;  %v6179_v29 = vmul.f32 %v10603_v23, %v14034_v16  ;;  %v6087_v3 = vmul.f32 0.0078125, %v6035_v11  ;;  %v6009_v18 = vmul.f32 %v14232_v33, %v14232_v33  ;;  %v6256_v52 = vadd.f32 %v14154_v43, %v6217_v12 }
0x138d   : > { %10608 = vrsqrt.f32 %v6118_v37  ;;  %v5946_v6 = vmul.f32 0.0078125, %v5912_v38 }
0x138e   : > { %v6218_v56 = vmul.f32 %v14143_v46, %v6179_v29  ;;  %v6119_v45 = vadd.f32 1e-05, %v6087_v3  ;;  %6070 = vadd.xlane.f32.xlu1 %v6009_v18  ;;  %v14246_v53 = vadd.f32 %v10724_v32, %v6256_v52 }
0x138f   : > { %v10605_v40 = vpop.eup %10604  ;;  %v14240_v10 = vsub.f32 %v14082_v24, %v5946_v6  ;;  %v5914_v1 = vpop.xlane.xlu1 %5913 }
0x1390   : > { %v6037_v4 = vpop.xlane.xlu0 %6036  ;;  %v6257_v16 = vadd.f32 %v14154_v43, %v6218_v56  ;;  %v6180_v25 = vmul.f32 %v10605_v40, %v14043_v50  ;;  %10610 = vrsqrt.f32 %v6119_v45  ;;  %v5947_v31 = vmul.f32 0.0078125, %v5914_v1  ;;  %v10726_v56 = vld [vmem:[#allocation2 + $0x80] sm:$0xff]  ;;  %v10727_v40 = vld [vmem:[#allocation2 + $0x88] sm:$0xff] }
0x1391   : > { %v6088_v49 = vmul.f32 0.0078125, %v6037_v4  ;;  %v6010_v26 = vmul.f32 %v14240_v10, %v14240_v10 }
0x1392   : > { %v14248_v63 = vadd.f32 %v10725_v30, %v6257_v16  ;;  %v6219_v24 = vmul.f32 %v14143_v46, %v6180_v25  ;;  %v14252_v62 = vsub.f32 %v14096_v7, %v5947_v31 }
0x1393   : > { %v10607_v44 = vpop.eup %10606  ;;  %v6120_v2 = vadd.f32 1e-05, %v6088_v49  ;;  %6072 = vadd.xlane.f32.xlu0 %v6010_v26  ;;  %v6039_v50 = vpop.xlane.xlu1 %6038 }
0x1394   : > { %v6041_v47 = vpop.xlane.xlu0 %6040  ;;  %v6317_v15 = vpack.c.bf16 %v14248_v63, %v14246_v53  ;;  %v6181_v8 = vmul.f32 %v10607_v44, %v14052_v57  ;;  %v6089_v12 = vmul.f32 0.0078125, %v6039_v50  ;;  %v6011_v37 = vmul.f32 %v14252_v62, %v14252_v62  ;;  %v10728_v44 = vld [vmem:[#allocation2 + $0xe8] sm:$0xff]  ;;  %v10729_v50 = vld [vmem:[#allocation2 + $0xb8] sm:$0xff] }
0x1395   : > { %10612 = vrsqrt.f32 %v6120_v2  ;;  %v6090_v23 = vmul.f32 0.0078125, %v6041_v47  ;;  %v6258_v11 = vadd.f32 %v14154_v43, %v6219_v24 }
0x1396   : > { %6607 = vmatmul.mubr.bf16.gmra.mxu1 %v6317_v15  ;;  %6800 = vmatmul.mubr.bf16.gmra.mxu0 %v6317_v15  ;;  %v6220_v7 = vmul.f32 %v14143_v46, %v6181_v8  ;;  %v6121_v38 = vadd.f32 1e-05, %v6089_v12  ;;  %v10044_v8 = vld [vmem:[%s11063_s20 + $0x78] sm:$0xff]  }
0x1397   : > { %v6122_v29 = vadd.f32 1e-05, %v6090_v23  ;;  %6074 = vadd.xlane.f32.xlu1 %v6011_v37  ;;  %6616 = vmatprep.mubr.bf16.mxu1 %v15698_v41  ;;  %v6043_v3 = vpop.xlane.xlu1 %6042  ;;  %v14264_v52 = vadd.f32 %v10726_v56, %v6258_v11  ;;  %v10045_v12 = vld [vmem:[%s11063_s20 + $0xf8] sm:$0xff]   ;;  %v10051_v56 = vld [vmem:[%s11063_s20 + $0xb0] sm:$0xff]  }
0x1398   : > { %6809 = vmatprep.mubr.bf16.mxu0 %v15698_v41  ;;  %v6259_v57 = vadd.f32 %v14154_v43, %v6220_v7  ;;  %10614 = vrsqrt.f32 %v6121_v38  ;;  %v6091_v6 = vmul.f32 0.0078125, %v6043_v3  ;;  %v10046_v23 = vld [vmem:[%s11063_s20 + $0x38] sm:$0xff]   ;;  %8965 = vmatprep.subr.bf16.mxu1 %v10044_v8  ;;  %v10058_v8 = vld [vmem:[%s11063_s20 + $0x20] sm:$0xff]  }
0x1399   : > { %10616 = vrsqrt.f32 %v6122_v29  ;;  %v10047_v37 = vld [vmem:[%s11063_s20 + $0xb8] sm:$0xff]   ;;  %9077 = vmatprep.subr.bf16.mxu0 %v10045_v12  ;;  %8966 = vmatpush3.bf16.msra.mxu1 %v10046_v23  ;;  %v10059_v12 = vld [vmem:[%s11063_s20 + $0xa0] sm:$0xff]  }
0x139a   : > { %v10609_v18 = vpop.eup %10608  ;;  %v14266_v45 = vadd.f32 %v10727_v40, %v6259_v57  ;;  %v6123_v1 = vadd.f32 1e-05, %v6091_v6  ;;  %9078 = vmatpush3.bf16.msra.mxu0 %v10047_v37  ;;  %v10048_v57 = vld [vmem:[%s11063_s20 + $0x70] sm:$0xff]   ;;  %v10733_v37 = vld [vmem:[#allocation2 + $0x8] sm:$0xff] }
0x139b   : > { %v6182_v4 = vmul.f32 %v10609_v18, %v14063_v61  ;;  %v10049_v6 = vld [vmem:[%s11063_s20 + $0xf0] sm:$0xff]   ;;  %8967 = vmatprep.subr.bf16.mxu1 %v10048_v57 }
0x139c   : > { %v6318_v16 = vpack.c.bf16 %v14266_v45, %v14264_v52  ;;  %10618 = vrsqrt.f32 %v6123_v1  ;;  %9079 = vmatprep.subr.bf16.mxu0 %v10049_v6  ;;  %v10064_v57 = vld [vmem:[%s11063_s20 + $0x50] sm:$0xff]  }
0x139d   : > { %v6221_v25 = vmul.f32 %v14143_v46, %v6182_v4  ;;  %v10611_v31 = vpop.eup %10610  ;;  %v10065_v6 = vld [vmem:[%s11063_s20 + $0xd0] sm:$0xff]  }
0x139e   : > { %6617 = vmatmul.mubr.bf16.gmra.mxu1 %v6318_v16  ;;  %6810 = vmatmul.mubr.bf16.gmra.mxu0 %v6318_v16  ;;  %v6183_v49 = vmul.f32 %v10611_v31, %v14070_v20  ;;  %v10731_v16 = vld [vmem:[#allocation2 + $0xf0] sm:$0xff] }
0x139f   : > { %6626 = vmatprep.mubr.bf16.mxu1 %v15698_v41  ;;  %6819 = vmatprep.mubr.bf16.mxu0 %v15698_v41  ;;  %v6260_v26 = vadd.f32 %v14154_v43, %v6221_v25 }
0x13a0   : > { %v6222_v61 = vmul.f32 %v14143_v46, %v6183_v49  ;;  %9080 = vmatpush3.bf16.msra.mxu0 %v10051_v56  ;;  %v10068_v56 = vld [vmem:[%s11063_s20 + $0x48] sm:$0xff]  }
0x13a1   : > { %v14279_v2 = vadd.f32 %v10728_v44, %v6260_v26  ;;  %v10053_v26 = vld [vmem:[%s11063_s20 + $0xe8] sm:$0xff]  }
0x13a2   : > { %v10613_v32 = vpop.eup %10612  ;;  %v6261_v30 = vadd.f32 %v14154_v43, %v6222_v61  ;;  %v10052_v61 = vld [vmem:[%s11063_s20 + $0x68] sm:$0xff]   ;;  %9081 = vmatprep.subr.bf16.mxu0 %v10053_v26 }
0x13a3   : > { %v6184_v24 = vmul.f32 %v10613_v32, %v14079_v21  ;;  %v10055_v32 = vld [vmem:[%s11063_s20 + $0xa8] sm:$0xff]  }
0x13a4   : > { %v14281_v47 = vadd.f32 %v10729_v50, %v6261_v30  ;;  %9082 = vmatpush3.bf16.msra.mxu0 %v10055_v32  ;;  %v10056_v50 = vld [vmem:[%s11063_s20 + $0x60] sm:$0xff]  }
0x13a5   : > { %v6223_v15 = vmul.f32 %v14143_v46, %v6184_v24  ;;  %v10615_v20 = vpop.eup %10614 }
0x13a6   : > { %15701 = vst [vmem:[#allocation50_spill] sm:$0xff] %v14281_v47  ;;  %v10617_v7 = vpop.eup %10616  ;;  %v6319_v11 = vpack.c.bf16 %v14281_v47, %v14279_v2  ;;  %v6185_v21 = vmul.f32 %v10615_v20, %v14090_v0  ;;  %v10050_v0 = vld [vmem:[%s11063_s20 + $0x30] sm:$0xff]   ;;  %v10732_v20 = vld [vmem:[#allocation2 + $0x78] sm:$0xff] }
0x13a7   : > { %v6262_v29 = vadd.f32 %v14154_v43, %v6223_v15  ;;  %v6186_v3 = vmul.f32 %v10617_v7, %v14093_v35  ;;  %8968 = vmatpush3.bf16.msra.mxu1 %v10050_v0  ;;  %v10730_v35 = vld [vmem:[#allocation2 + $0x60] sm:$0xff]  ;;  %v10067_v0 = vld [vmem:[%s11063_s20 + $0x90] sm:$0xff]  }
0x13a8   : > { %6627 = vmatmul.mubr.bf16.gmra.mxu1 %v6319_v11  ;;  %6820 = vmatmul.mubr.bf16.gmra.mxu0 %v6319_v11  ;;  %v6224_v38 = vmul.f32 %v14143_v46, %v6185_v21  ;;  %v10057_v15 = vld [vmem:[%s11063_s20 + $0xe0] sm:$0xff]   ;;  %v10060_v11 = vld [vmem:[%s11063_s20 + $0x58] sm:$0xff]  }
0x13a9   : > { %v10619_v18 = vpop.eup %10618  ;;  %6636 = vmatprep.mubr.bf16.mxu1 %v15698_v41  ;;  %6829 = vmatprep.mubr.bf16.mxu0 %v15698_v41  ;;  %v14302_v4 = vadd.f32 %v10730_v35, %v6262_v29  ;;  %v6225_v31 = vmul.f32 %v14143_v46, %v6186_v3  ;;  %v10061_v21 = vld [vmem:[%s11063_s20 + $0xd8] sm:$0xff]   ;;  %v10071_v35 = vld [vmem:[%s11063_s20 + $0x88] sm:$0xff]  }
0x13aa   : > { %v6263_v40 = vadd.f32 %v14154_v43, %v6224_v38  ;;  %v6187_v1 = vmul.f32 %v10619_v18, %v14100_v27  ;;  %v10054_v27 = vld [vmem:[%s11063_s20 + $0x28] sm:$0xff]   ;;  %8969 = vmatprep.subr.bf16.mxu1 %v10052_v61  ;;  %9083 = vmatprep.subr.bf16.mxu0 %v10057_v15  ;;  %v10062_v38 = vld [vmem:[%s11063_s20 + $0x18] sm:$0xff]   ;;  %v10066_v18 = vld [vmem:[%s11063_s20 + $0x10] sm:$0xff]  }
0x13ab   : > { %15702 = vst [vmem:[#allocation54_spill] sm:$0xff] %v14302_v4  ;;  %8970 = vmatpush3.bf16.msra.mxu1 %v10054_v27  ;;  %v6264_v44 = vadd.f32 %v14154_v43, %v6225_v31  ;;  %9084 = vmatpush3.bf16.msra.mxu0 %v10059_v12  ;;  %v10063_v29 = vld [vmem:[%s11063_s20 + $0x98] sm:$0xff]   ;;  %v10073_v31 = vld [vmem:[%s11063_s20 + $0xc0] sm:$0xff]  }
0x13ac   : > { %v14304_v25 = vadd.f32 %v10731_v16, %v6263_v40  ;;  %v6226_v49 = vmul.f32 %v14143_v46, %v6187_v1  ;;  %8971 = vmatprep.subr.bf16.mxu1 %v10056_v50  ;;  %9085 = vmatprep.subr.bf16.mxu0 %v10061_v21  ;;  %v10069_v40 = vld [vmem:[%s11063_s20 + $0xc8] sm:$0xff]   ;;  %v10072_v16 = vld [vmem:[%s11063_s20 + $0x40] sm:$0xff]  }
0x13ad   : > { %v14324_v7 = vadd.f32 %v10733_v37, %v6264_v44  ;;  %v10070_v1 = vld [vmem:[%s11063_s20 + $0x8] sm:$0xff]   ;;  %v10075_v61 = vld [vmem:[%s11063_s20 + $0x80] sm:$0xff]  }
0x13ae   : > { %15703 = vst [vmem:[#allocation51_spill] sm:$0xff] %v14304_v25  ;;  %v6320_v30 = vpack.c.bf16 %v14304_v25, %v14302_v4  ;;  %v6265_v24 = vadd.f32 %v14154_v43, %v6226_v49  ;;  %v10074_v49 = vld [vmem:[%s11063_s20] sm:$0xff]  }
0x13af   : > { %8972 = vmatpush3.bf16.msra.mxu1 %v10058_v8  ;;  %15705 = vst [vmem:[#allocation37_spill] sm:$0xff] %v14324_v7  ;;  %9086 = vmatpush3.bf16.msra.mxu0 %v10063_v29 }
0x13b0   : > { %6637 = vmatmul.mubr.bf16.gmra.mxu1 %v6320_v30  ;;  %6830 = vmatmul.mubr.bf16.gmra.mxu0 %v6320_v30  ;;  %v14322_v23 = vadd.f32 %v10732_v20, %v6265_v24 }
0x13b1   : > { %6646 = vmatprep.mubr.bf16.mxu1 %v15698_v41  ;;  %6839 = vmatprep.mubr.bf16.mxu0 %v15698_v41 }
0x13b2   : > { %15704 = vst [vmem:[#allocation55_spill] sm:$0xff] %v14322_v23  ;;  %v6321_v3 = vpack.c.bf16 %v14322_v23, %v14324_v7  ;;  %8973 = vmatprep.subr.bf16.mxu1 %v10060_v11  ;;  %9087 = vmatprep.subr.bf16.mxu0 %v10065_v6 }
0x13b3   : > { %8974 = vmatpush3.bf16.msra.mxu1 %v10062_v38  ;;  %9088 = vmatpush3.bf16.msra.mxu0 %v10067_v0 }
0x13b4   : > { %8975 = vmatprep.subr.bf16.mxu1 %v10064_v57  ;;  %9089 = vmatprep.subr.bf16.mxu0 %v10069_v40 }
0x13b7   : > { %8976 = vmatpush3.bf16.msra.mxu1 %v10066_v18  ;;  %9090 = vmatpush3.bf16.msra.mxu0 %v10071_v35 }
0x13b8   : > { %6647 = vmatmul.mubr.bf16.gmra.mxu1 %v6321_v3  ;;  %6840 = vmatmul.mubr.bf16.gmra.mxu0 %v6321_v3 }
0x13b9   : > { %6656 = vmatprep.mubr.bf16.mxu1 %v15698_v41  ;;  %6849 = vmatprep.mubr.bf16.mxu0 %v15698_v41 }
0x13ba   : > { %8977 = vmatprep.subr.bf16.mxu1 %v10068_v56  ;;  %9091 = vmatprep.subr.bf16.mxu0 %v10073_v31 }
0x13bb   : > { %8978 = vmatpush3.bf16.msra.mxu1 %v10070_v1  ;;  %9092 = vmatpush3.bf16.msra.mxu0 %v10075_v61 }
0x13bc   : > { %8979 = vmatprep.subr.bf16.mxu1 %v10072_v16 }
0x13bf   : > { %8980 = vmatpush3.bf16.msra.mxu1 %v10074_v49 }
0x13c3   : > { %v6045_v26 = vpop.xlane.xlu0 %6044 }
0x13c4   : > { %v6092_v27 = vmul.f32 0.0078125, %v6045_v26 }
0x13c6   : > { %v6124_v32 = vadd.f32 1e-05, %v6092_v27 }
0x13c7   : > { %v6047_v30 = vpop.xlane.xlu1 %6046  ;;  %v6049_v24 = vpop.xlane.xlu0 %6048 }
0x13c8   : > { %10620 = vrsqrt.f32 %v6124_v32  ;;  %v6093_v44 = vmul.f32 0.0078125, %v6047_v30  ;;  %v6094_v50 = vmul.f32 0.0078125, %v6049_v24  ;;  %v10734_v24 = vld [vmem:[#allocation2 + $0x38] sm:$0xff] }
0x13ca   : > { %v6125_v15 = vadd.f32 1e-05, %v6093_v44  ;;  %v6126_v8 = vadd.f32 1e-05, %v6094_v50  ;;  %v10735_v50 = vld [vmem:[#allocation2 + $0x58] sm:$0xff] }
0x13cb   : > { %v6051_v12 = vpop.xlane.xlu1 %6050 }
0x13cc   : > { %10622 = vrsqrt.f32 %v6125_v15  ;;  %v6095_v20 = vmul.f32 0.0078125, %v6051_v12 }
0x13cd   : > { %10624 = vrsqrt.f32 %v6126_v8 }
0x13ce   : > { %v6127_v37 = vadd.f32 1e-05, %v6095_v20 }
0x13d0   : > { %10626 = vrsqrt.f32 %v6127_v37 }
0x13d3   : > { %v6053_v11 = vpop.xlane.xlu0 %6052 }
0x13d4   : > { %v6096_v21 = vmul.f32 0.0078125, %v6053_v11 }
0x13d5   : > { %v10621_v38 = vpop.eup %10620 }
0x13d6   : > { %v6128_v29 = vadd.f32 1e-05, %v6096_v21  ;;  %v6188_v3 = vmul.f32 %v10621_v38, %v14109_v22  ;;  %v10736_v21 = vld [vmem:[#allocation2 + $0xc8] sm:$0xff] }
0x13d7   : > { %v6055_v57 = vpop.xlane.xlu1 %6054 }
0x13d8   : > { %10628 = vrsqrt.f32 %v6128_v29  ;;  %v6097_v6 = vmul.f32 0.0078125, %v6055_v57  ;;  %v6227_v18 = vmul.f32 %v14143_v46, %v6188_v3  ;;  %v10737_v3 = vld [vmem:[#allocation2 + $0x40] sm:$0xff] }
0x13d9   : > { %v10623_v0 = vpop.eup %10622 }
0x13da   : > { %v10625_v56 = vpop.eup %10624  ;;  %v6129_v40 = vadd.f32 1e-05, %v6097_v6  ;;  %v6189_v1 = vmul.f32 %v10623_v0, %v14114_v55  ;;  %v6266_v35 = vadd.f32 %v14154_v43, %v6227_v18 }
0x13db   : > { %v6190_v49 = vmul.f32 %v10625_v56, %v14117_v60 }
0x13dc   : > { %10630 = vrsqrt.f32 %v6129_v40  ;;  %v6057_v16 = vpop.xlane.xlu0 %6056  ;;  %v6228_v31 = vmul.f32 %v14143_v46, %v6189_v1  ;;  %v14354_v44 = vadd.f32 %v10734_v24, %v6266_v35 }
0x13dd   : > { %v10627_v61 = vpop.eup %10626  ;;  %v6098_v22 = vmul.f32 0.0078125, %v6057_v16  ;;  %v6229_v8 = vmul.f32 %v14143_v46, %v6190_v49 }
0x13de   : > { %v6267_v26 = vadd.f32 %v14154_v43, %v6228_v31  ;;  %v6191_v27 = vmul.f32 %v10627_v61, %v14124_v59  ;;  %15706 = vst [vmem:[#allocation34_spill] sm:$0xff] %v14354_v44  ;;  %v10738_v31 = vld [vmem:[#allocation2 + $0xe0] sm:$0xff]  ;;  %v10739_v61 = vld [vmem:[#allocation2 + $0x90] sm:$0xff] }
0x13df   : > { %v6130_v32 = vadd.f32 1e-05, %v6098_v22  ;;  %v6059_v30 = vpop.xlane.xlu1 %6058  ;;  %v6268_v37 = vadd.f32 %v14154_v43, %v6229_v8  ;;  %v10741_v8 = vld [vmem:[#allocation2 + $0xc0] sm:$0xff] }
0x13e0   : > { %v6099_v55 = vmul.f32 0.0078125, %v6059_v30  ;;  %v14356_v15 = vadd.f32 %v10735_v50, %v6267_v26  ;;  %v6230_v12 = vmul.f32 %v14143_v46, %v6191_v27 }
0x13e1   : > { %10632 = vrsqrt.f32 %v6130_v32  ;;  %v14369_v57 = vadd.f32 %v10737_v3, %v6268_v37 }
0x13e2   : > { %15707 = vst [vmem:[#allocation38_spill] sm:$0xff] %v14356_v15  ;;  %v6131_v60 = vadd.f32 1e-05, %v6099_v55  ;;  %v6322_v20 = vpack.c.bf16 %v14356_v15, %v14354_v44  ;;  %v6269_v59 = vadd.f32 %v14154_v43, %v6230_v12  ;;  %v10740_v55 = vld [vmem:[#allocation2 + $0x70] sm:$0xff] }
0x13e3   : > { %15709 = vst [vmem:[#allocation32_spill] sm:$0xff] %v14369_v57 }
0x13e4   : > { %10634 = vrsqrt.f32 %v6131_v60  ;;  %6657 = vmatmul.mubr.bf16.gmra.mxu1 %v6322_v20  ;;  %6850 = vmatmul.mubr.bf16.gmra.mxu0 %v6322_v20  ;;  %v14366_v38 = vadd.f32 %v10736_v21, %v6269_v59 }
0x13e5   : > { %v10629_v11 = vpop.eup %10628  ;;  %6666 = vmatprep.mubr.bf16.mxu1 %v15698_v41  ;;  %6859 = vmatprep.mubr.bf16.mxu0 %v15698_v41 }
0x13e6   : > { %15708 = vst [vmem:[#allocation31_spill] sm:$0xff] %v14366_v38  ;;  %v6192_v29 = vmul.f32 %v10629_v11, %v14129_v58  ;;  %v6323_v0 = vpack.c.bf16 %v14366_v38, %v14369_v57 }
0x13e8   : > { %v6231_v6 = vmul.f32 %v14143_v46, %v6192_v29 }
0x13e9   : > { %v10631_v18 = vpop.eup %10630 }
0x13ea   : > { %v6193_v56 = vmul.f32 %v10631_v18, %v14134_v9  ;;  %v6270_v1 = vadd.f32 %v14154_v43, %v6231_v6 }
0x13ec   : > { %6667 = vmatmul.mubr.bf16.gmra.mxu1 %v6323_v0  ;;  %6860 = vmatmul.mubr.bf16.gmra.mxu0 %v6323_v0  ;;  %v6232_v40 = vmul.f32 %v14143_v46, %v6193_v56  ;;  %v14381_v49 = vadd.f32 %v10738_v31, %v6270_v1 }
0x13ed   : > { %6676 = vmatprep.mubr.bf16.mxu1 %v15698_v41  ;;  %6869 = vmatprep.mubr.bf16.mxu0 %v15698_v41 }
0x13ee   : > { %v10633_v58 = vpop.eup %10632  ;;  %v6271_v35 = vadd.f32 %v14154_v43, %v6232_v40  ;;  %15710 = vst [vmem:[#allocation27_spill] sm:$0xff] %v14381_v49 }
0x13ef   : > { %v6194_v16 = vmul.f32 %v10633_v58, %v14147_v13 }
0x13f0   : > { %v14383_v9 = vadd.f32 %v10739_v61, %v6271_v35 }
0x13f1   : > { %v10635_v22 = vpop.eup %10634  ;;  %v6233_v26 = vmul.f32 %v14143_v46, %v6194_v16 }
0x13f2   : > { %15711 = vst [vmem:[#allocation28_spill] sm:$0xff] %v14383_v9  ;;  %v6324_v27 = vpack.c.bf16 %v14383_v9, %v14381_v49  ;;  %v6195_v32 = vmul.f32 %v10635_v22, %v14161_v36 }
0x13f3   : > { %v6272_v13 = vadd.f32 %v14154_v43, %v6233_v26 }
0x13f4   : > { %6677 = vmatmul.mubr.bf16.gmra.mxu1 %v6324_v27  ;;  %6870 = vmatmul.mubr.bf16.gmra.mxu0 %v6324_v27  ;;  %v6234_v30 = vmul.f32 %v14143_v46, %v6195_v32 }
0x13f5   : > { %6686 = vmatprep.mubr.bf16.mxu1 %v15698_v41  ;;  %6879 = vmatprep.mubr.bf16.mxu0 %v15698_v41  ;;  %v14394_v50 = vadd.f32 %v10740_v55, %v6272_v13 }
0x13f6   : > { %v6273_v24 = vadd.f32 %v14154_v43, %v6234_v30 }
0x13f7   : > { %15712 = vst [vmem:[#allocation23_spill] sm:$0xff] %v14394_v50 }
0x13f8   : > { %v14396_v12 = vadd.f32 %v10741_v8, %v6273_v24 }
0x13fa   : > { %15713 = vst [vmem:[#allocation24_spill] sm:$0xff] %v14396_v12  ;;  %v6325_v36 = vpack.c.bf16 %v14396_v12, %v14394_v50 }
0x13fc   : > { %6687 = vmatmul.mubr.bf16.gmra.mxu1 %v6325_v36  ;;  %6880 = vmatmul.mubr.bf16.gmra.mxu0 %v6325_v36 }
0x13fd   : > { %6696 = vmatprep.mubr.bf16.mxu1 %v15698_v41  ;;  %6889 = vmatprep.mubr.bf16.mxu0 %v15698_v41 }
0x1401   : > { %v6061_v60 = vpop.xlane.xlu0 %6060 }
0x1402   : > { %v6100_v20 = vmul.f32 0.0078125, %v6061_v60 }
0x1404   : > { %v6132_v59 = vadd.f32 1e-05, %v6100_v20 }
0x1405   : > { %v6063_v37 = vpop.xlane.xlu1 %6062 }
0x1406   : > { %10636 = vrsqrt.f32 %v6132_v59  ;;  %v6101_v11 = vmul.f32 0.0078125, %v6063_v37  ;;  %v10742_v37 = vld [vmem:[#allocation2 + $0xa8] sm:$0xff] }
0x1408   : > { %v6133_v21 = vadd.f32 1e-05, %v6101_v11 }
0x1409   : > { %v6065_v29 = vpop.xlane.xlu0 %6064 }
0x140a   : > { %10638 = vrsqrt.f32 %v6133_v21  ;;  %v6102_v3 = vmul.f32 0.0078125, %v6065_v29  ;;  %v10743_v21 = vld [vmem:[#allocation2 + $0xd0] sm:$0xff] }
0x140c   : > { %v6134_v6 = vadd.f32 1e-05, %v6102_v3 }
0x140d   : > { %v6067_v18 = vpop.xlane.xlu1 %6066 }
0x140e   : > { %10640 = vrsqrt.f32 %v6134_v6  ;;  %v6103_v0 = vmul.f32 0.0078125, %v6067_v18 }
0x1410   : > { %v6135_v56 = vadd.f32 1e-05, %v6103_v0 }
0x1412   : > { %10642 = vrsqrt.f32 %v6135_v56 }
0x1413   : > { %v10637_v40 = vpop.eup %10636  ;;  %v6069_v1 = vpop.xlane.xlu0 %6068 }
0x1414   : > { %v6196_v58 = vmul.f32 %v10637_v40, %v14205_v34  ;;  %v6104_v35 = vmul.f32 0.0078125, %v6069_v1 }
0x1416   : > { %v6235_v16 = vmul.f32 %v14143_v46, %v6196_v58  ;;  %v6136_v61 = vadd.f32 1e-05, %v6104_v35 }
0x1417   : > { %v10639_v31 = vpop.eup %10638  ;;  %v6071_v22 = vpop.xlane.xlu1 %6070 }
0x1418   : > { %v6197_v26 = vmul.f32 %v10639_v31, %v14210_v19  ;;  %10644 = vrsqrt.f32 %v6136_v61  ;;  %v6105_v27 = vmul.f32 0.0078125, %v6071_v22  ;;  %v6274_v30 = vadd.f32 %v14154_v43, %v6235_v16 }
0x141a   : > { %v6236_v32 = vmul.f32 %v14143_v46, %v6197_v26  ;;  %v6137_v24 = vadd.f32 1e-05, %v6105_v27  ;;  %v14417_v11 = vadd.f32 %v10742_v37, %v6274_v30  ;;  %v10744_v27 = vld [vmem:[#allocation2 + $0x10] sm:$0xff]  ;;  %v10745_v30 = vld [vmem:[#allocation2 + $0x28] sm:$0xff] }
0x141b   : > { %v10641_v13 = vpop.eup %10640 }
0x141c   : > { %v14407_v55 = vpop.f32.mrf.mxu1  ;;  %v14409_v8 = vpop.f32.mrf.mxu0  ;;  %v6275_v34 = vadd.f32 %v14154_v43, %v6236_v32  ;;  %v6198_v36 = vmul.f32 %v10641_v13, %v14215_v14  ;;  %10646 = vrsqrt.f32 %v6137_v24  ;;  %15714 = vst [vmem:[#allocation76_spill] sm:$0xff] %v14417_v11 }
0x141d   : > { %v6073_v60 = vpop.xlane.xlu0 %6072 }
0x141e   : > { %v6106_v20 = vmul.f32 0.0078125, %v6073_v60  ;;  %v14413_v19 = vpop.f32.mrf.mxu1  ;;  %v14415_v59 = vpop.f32.mrf.mxu0  ;;  %v14419_v29 = vadd.f32 %v10743_v21, %v6275_v34  ;;  %v6237_v3 = vmul.f32 %v14143_v46, %v6198_v36 }
0x141f   : > { %v10643_v6 = vpop.eup %10642 }
0x1420   : > { %15715 = vst [vmem:[#allocation83_spill] sm:$0xff] %v14419_v29  ;;  %v6138_v18 = vadd.f32 1e-05, %v6106_v20  ;;  %v6075_v0 = vpop.xlane.xlu1 %6074  ;;  %v6326_v14 = vpack.c.bf16 %v14419_v29, %v14417_v11  ;;  %v6199_v56 = vmul.f32 %v10643_v6, %v14220_v39  ;;  %v14425_v1 = vpop.f32.mrf.mxu1  ;;  %v6276_v16 = vadd.f32 %v14154_v43, %v6237_v3 }
0x1421   : > { %v6107_v40 = vmul.f32 0.0078125, %v6075_v0  ;;  %v14427_v58 = vpop.f32.mrf.mxu0 }
0x1422   : > { %10648 = vrsqrt.f32 %v6138_v18  ;;  %6697 = vmatmul.mubr.bf16.gmra.mxu1 %v6326_v14  ;;  %6890 = vmatmul.mubr.bf16.gmra.mxu0 %v6326_v14  ;;  %v6238_v35 = vmul.f32 %v14143_v46, %v6199_v56  ;;  %v6584_v22 = vpop.f32.mrf.mxu1  ;;  %v14434_v32 = vadd.f32 %v10744_v27, %v6276_v16 }
0x1423   : > { %v6139_v31 = vadd.f32 1e-05, %v6107_v40  ;;  %6706 = vmatprep.mubr.bf16.mxu1 %v15698_v41  ;;  %6899 = vmatprep.mubr.bf16.mxu0 %v15698_v41  ;;  %v6777_v26 = vpop.f32.mrf.mxu0  ;;  %v15718_v40 = vld [vmem:[#allocation22_spill] sm:$0xff] }
0x1424   : > { %v6277_v61 = vadd.f32 %v14154_v43, %v6238_v35  ;;  %15716 = vst [vmem:[#allocation73_spill] sm:$0xff] %v14434_v32  ;;  %v6378_v35 = vsub.s32 3, %v15718_v40 }
0x1425   : > { %10650 = vrsqrt.f32 %v6139_v31  ;;  %v10645_v39 = vpop.eup %10644 }
0x1426   : > { %v14436_v13 = vadd.f32 %v10745_v30, %v6277_v61  ;;  %v6200_v24 = vmul.f32 %v10645_v39, %v14225_v17  ;;  %v6362_v39 = vld [vmem:[%s11058_s0] sm:$0xf] }
0x1428   : > { %15717 = vst [vmem:[#allocation74_spill] sm:$0xff] %v14436_v13  ;;  %v14439_v34 = vpop.f32.mrf.mxu1  ;;  %v14441_v36 = vpop.f32.mrf.mxu0  ;;  %v6327_v60 = vpack.c.bf16 %v14436_v13, %v14434_v32  ;;  %v6239_v3 = vmul.f32 %v14143_v46, %v6200_v24  ;;  %v14472_v32 = vrot.slane %v6362_v39, %v6378_v35 }
0x1429   : > { %v10647_v20 = vpop.eup %10646 }
0x142a   : > { %v14445_v37 = vpop.f32.mrf.mxu1  ;;  %6707 = vmatmul.mubr.bf16.gmra.mxu1 %v6327_v60  ;;  %v14447_v21 = vpop.f32.mrf.mxu0  ;;  %6900 = vmatmul.mubr.bf16.gmra.mxu0 %v6327_v60  ;;  %v6201_v17 = vmul.f32 %v10647_v20, %v14232_v33  ;;  %v6278_v14 = vadd.f32 %v14154_v43, %v6239_v3  ;;  %v10746_v33 = vld [vmem:[#allocation2 + $0xa0] sm:$0xff]  ;;  %v10747_v60 = vld [vmem:[#allocation2 + $0xf8] sm:$0xff]  ;;  %v15721_v3 = vsub.s32 1, %v15718_v40 }
0x142b   : > { %6716 = vmatprep.mubr.bf16.mxu1 %v15698_v41  ;;  %6909 = vmatprep.mubr.bf16.mxu0 %v15698_v41 }
0x142c   : > { %v14453_v6 = vpop.f32.mrf.mxu1  ;;  %v14455_v18 = vpop.f32.mrf.mxu0  ;;  %v6240_v0 = vmul.f32 %v14143_v46, %v6201_v17  ;;  %v14463_v24 = vadd.f32 %v10746_v33, %v6278_v14  ;;  %v14470_v13 = vrot.slane %v6362_v39, %v15721_v3  ;;  %v6778_v14 = vadd.f32 %v6777_v26, %v14472_v32 }
0x142d   : > { %v15722_v3 = vsub.s32 0, %v15718_v40 }
0x142e   : > { %v6279_v16 = vadd.f32 %v14154_v43, %v6240_v0  ;;  %v6594_v27 = vpop.f32.mrf.mxu1  ;;  %v6787_v30 = vpop.f32.mrf.mxu0  ;;  %15719 = vst [vmem:[#allocation70_spill] sm:$0xff] %v14463_v24 }
0x142f   : > { %v10649_v56 = vpop.eup %10648 }
0x1430   : > { %v6202_v31 = vmul.f32 %v10649_v56, %v14240_v10  ;;  %v14465_v20 = vadd.f32 %v10747_v60, %v6279_v16  ;;  %v6585_v56 = vadd.f32 %v6584_v22, %v14470_v13  ;;  %v14479_v33 = vpop.f32.mrf.mxu1  ;;  %v14481_v16 = vpop.f32.mrf.mxu0  ;;  %v6937_v60 = vmax.f32 %v6778_v14, 0.0 }
0x1432   : > { %v10651_v61 = vpop.eup %10650  ;;  %15720 = vst [vmem:[#allocation71_spill] sm:$0xff] %v14465_v20  ;;  %v6241_v17 = vmul.f32 %v14143_v46, %v6202_v31  ;;  %v6328_v0 = vpack.c.bf16 %v14465_v20, %v14463_v24  ;;  %v6935_v26 = vmax.f32 %v6585_v56, 0.0  ;;  %v10748_v20 = vld [vmem:[#allocation2 + $0x20] sm:$0xff]  ;;  %v10749_v24 = vld [vmem:[#allocation2 + $0x98] sm:$0xff] }
0x1433   : > { %v6203_v10 = vmul.f32 %v10651_v61, %v14252_v62  ;;  %v6581_v62 = vadd.f32 %v14413_v19, %v14470_v13  ;;  %v6774_v61 = vadd.f32 %v14415_v59, %v14472_v32  ;;  %v6600_v19 = vpop.f32.mrf.mxu1 }
0x1434   : > { %6717 = vmatmul.mubr.bf16.gmra.mxu1 %v6328_v0  ;;  %6910 = vmatmul.mubr.bf16.gmra.mxu0 %v6328_v0  ;;  %v6280_v35 = vadd.f32 %v14154_v43, %v6241_v17  ;;  %v14494_v0 = vrot.slane %v6362_v39, %v15722_v3 }
0x1435   : > { %v6242_v31 = vmul.f32 %v14143_v46, %v6203_v10  ;;  %6726 = vmatprep.mubr.bf16.mxu1 %v15698_v41  ;;  %6919 = vmatprep.mubr.bf16.mxu0 %v15698_v41  ;;  %v15723_v46 = vsub.s32 2, %v15718_v40  ;;  %v6793_v10 = vpop.f32.mrf.mxu0  ;;  %v6931_v41 = vmax.f32 %v6581_v62, 0.0 }
0x1436   : > { %v14500_v59 = vadd.f32 %v10748_v20, %v6280_v35  ;;  %v6583_v56 = vadd.f32 %v14425_v1, %v14494_v0 }
0x1437   : > { %v6281_v22 = vadd.f32 %v14154_v43, %v6242_v31  ;;  %v14498_v17 = vrot.slane %v6362_v39, %v15723_v46  ;;  %v6933_v43 = vmax.f32 %v6774_v61, 0.0  ;;  %v6595_v39 = vadd.f32 %v6594_v27, %v14470_v13  ;;  %v6602_v61 = vpop.f32.mrf.mxu1  ;;  %v6795_v1 = vpop.f32.mrf.mxu0 }
0x1438   : > { %15724 = vst [vmem:[#allocation67_spill] sm:$0xff] %v14500_v59  ;;  %v6788_v31 = vadd.f32 %v6787_v30, %v14472_v32  ;;  %v7059_v20 = vpack.c.bf16 %v6935_v26, %v6931_v41  ;;  %v6784_v27 = vadd.f32 %v14447_v21, %v14472_v32  ;;  %v6934_v30 = vmax.f32 %v6583_v56, 0.0 }
0x1439   : > { %v14502_v29 = vadd.f32 %v10749_v24, %v6281_v22  ;;  %v6776_v14 = vadd.f32 %v14427_v58, %v14498_v17  ;;  %v7061_v35 = vpack.c.bf16 %v6937_v60, %v6933_v43  ;;  %v6579_v24 = vadd.f32 %v14407_v55, %v14494_v0  ;;  %v6604_v46 = vpop.f32.mrf.mxu1 }
0x143a   : > { %v6772_v62 = vadd.f32 %v14409_v8, %v14498_v17  ;;  %v6591_v58 = vadd.f32 %v14445_v37, %v14470_v13  ;;  %v6943_v26 = vmax.f32 %v6595_v39, 0.0  ;;  %v6945_v60 = vmax.f32 %v6788_v31, 0.0  ;;  %v6797_v8 = vpop.f32.mrf.mxu0 }
0x143b   : > { %15725 = vst [vmem:[#allocation68_spill] sm:$0xff] %v14502_v29  ;;  %v6329_v40 = vpack.c.bf16 %v14502_v29, %v14500_v59  ;;  %v6936_v22 = vmax.f32 %v6776_v14, 0.0  ;;  %v6930_v55 = vmax.f32 %v6579_v24, 0.0  ;;  %v6941_v43 = vmax.f32 %v6784_v27, 0.0 }
0x143c   : > { %v6932_v3 = vmax.f32 %v6772_v62, 0.0  ;;  %v6939_v41 = vmax.f32 %v6591_v58, 0.0  ;;  %v6593_v37 = vadd.f32 %v14453_v6, %v14494_v0  ;;  %v6786_v21 = vadd.f32 %v14455_v18, %v14498_v17 }
0x143d   : > { %6727 = vmatmul.mubr.bf16.gmra.mxu1 %v6329_v40  ;;  %6920 = vmatmul.mubr.bf16.gmra.mxu0 %v6329_v40  ;;  %v7058_v29 = vpack.c.bf16 %v6934_v30, %v6930_v55  ;;  %v6798_v56 = vadd.f32 %v6797_v8, %v14472_v32  ;;  %v7065_v39 = vpack.c.bf16 %v6945_v60, %v6941_v43 }
0x143e   : > { %7417 = vmatprep.mubr.bf16.mxu1 %v7059_v20  ;;  %7578 = vmatprep.mubr.bf16.mxu0 %v7061_v35  ;;  %v7060_v40 = vpack.c.bf16 %v6936_v22, %v6932_v3  ;;  %v6605_v20 = vadd.f32 %v6604_v46, %v14470_v13  ;;  %v7063_v14 = vpack.c.bf16 %v6943_v26, %v6939_v41  ;;  %v6942_v18 = vmax.f32 %v6593_v37, 0.0 }
0x143f   : > { %v6589_v31 = vadd.f32 %v14439_v34, %v14494_v0  ;;  %v6782_v35 = vadd.f32 %v14441_v36, %v14498_v17  ;;  %v6601_v24 = vadd.f32 %v6600_v19, %v14470_v13  ;;  %v6794_v6 = vadd.f32 %v6793_v10, %v14472_v32 }
0x1440   : > { %v6944_v62 = vmax.f32 %v6786_v21, 0.0  ;;  %v6951_v58 = vmax.f32 %v6605_v20, 0.0  ;;  %v6953_v27 = vmax.f32 %v6798_v56, 0.0  ;;  %v6603_v36 = vadd.f32 %v6602_v61, %v14494_v0 }
0x1441   : > { %v6938_v30 = vmax.f32 %v6589_v31, 0.0  ;;  %v6940_v22 = vmax.f32 %v6782_v35, 0.0  ;;  %v6947_v26 = vmax.f32 %v6601_v24, 0.0  ;;  %v6949_v60 = vmax.f32 %v6794_v6, 0.0 }
0x1442   : > { %v6599_v10 = vadd.f32 %v14479_v33, %v14494_v0  ;;  %v6792_v46 = vadd.f32 %v14481_v16, %v14498_v17  ;;  %v6950_v8 = vmax.f32 %v6603_v36, 0.0 }
0x1443   : > { %v7062_v34 = vpack.c.bf16 %v6942_v18, %v6938_v30  ;;  %v7064_v55 = vpack.c.bf16 %v6944_v62, %v6940_v22  ;;  %v7067_v3 = vpack.c.bf16 %v6951_v58, %v6947_v26  ;;  %v7069_v19 = vpack.c.bf16 %v6953_v27, %v6949_v60 }
0x1444   : > { %v6946_v43 = vmax.f32 %v6599_v10, 0.0 }
0x1445   : > { %7418 = vmatmul.mubr.bf16.vlgmr.msra.gmra.mxu1 %v7058_v29  ;;  %7579 = vmatmul.mubr.bf16.vlgmr.msra.gmra.mxu0 %v7060_v40  ;;  %v6796_v29 = vadd.f32 %v6795_v1, %v14498_v17  ;;  %v6948_v40 = vmax.f32 %v6792_v46, 0.0 }
0x1446   : > { %7425 = vmatprep.mubr.bf16.mxu1 %v7063_v14  ;;  %7586 = vmatprep.mubr.bf16.mxu0 %v7065_v39  ;;  %v7066_v37 = vpack.c.bf16 %v6950_v8, %v6946_v43 }
0x1447   : > { %v6952_v41 = vmax.f32 %v6796_v29, 0.0 }
0x1449   : > { %v7068_v61 = vpack.c.bf16 %v6952_v41, %v6948_v40 }
0x144d   : > { %7426 = vmatmul.mubr.bf16.gmra.mxu1 %v7062_v34  ;;  %7587 = vmatmul.mubr.bf16.gmra.mxu0 %v7064_v55 }
0x144e   : > { %7433 = vmatprep.mubr.bf16.mxu1 %v7067_v3  ;;  %7594 = vmatprep.mubr.bf16.mxu0 %v7069_v19 }
0x1455   : > { %7434 = vmatmul.mubr.bf16.gmra.mxu1 %v7066_v37  ;;  %7595 = vmatmul.mubr.bf16.gmra.mxu0 %v7068_v61 }
0x1456   : > { %v6608_v1 = vpop.f32.mrf.mxu1  ;;  %v6801_v21 = vpop.f32.mrf.mxu0 }
0x1457   : > { %v6609_v24 = vadd.f32 %v6608_v1, %v14494_v0  ;;  %v6802_v6 = vadd.f32 %v6801_v21, %v14498_v17 }
0x1458   : > { %v6610_v20 = vpop.f32.mrf.mxu1  ;;  %v6803_v56 = vpop.f32.mrf.mxu0 }
0x1459   : > { %v6611_v16 = vadd.f32 %v6610_v20, %v14470_v13  ;;  %v6804_v39 = vadd.f32 %v6803_v56, %v14472_v32  ;;  %v6954_v3 = vmax.f32 %v6609_v24, 0.0  ;;  %v6956_v19 = vmax.f32 %v6802_v6, 0.0 }
0x145a   : > { %v6612_v33 = vpop.f32.mrf.mxu1  ;;  %v6805_v14 = vpop.f32.mrf.mxu0 }
0x145b   : > { %v6613_v31 = vadd.f32 %v6612_v33, %v14494_v0  ;;  %v6806_v35 = vadd.f32 %v6805_v14, %v14498_v17  ;;  %v6955_v34 = vmax.f32 %v6611_v16, 0.0  ;;  %v6957_v55 = vmax.f32 %v6804_v39, 0.0 }
0x145c   : > { %v6614_v18 = vpop.f32.mrf.mxu1  ;;  %v6807_v62 = vpop.f32.mrf.mxu0 }
0x145d   : > { %v6615_v58 = vadd.f32 %v6614_v18, %v14470_v13  ;;  %v6808_v27 = vadd.f32 %v6807_v62, %v14472_v32  ;;  %v6958_v30 = vmax.f32 %v6613_v31, 0.0  ;;  %v6960_v22 = vmax.f32 %v6806_v35, 0.0 }
0x145e   : > { %v6618_v26 = vpop.f32.mrf.mxu1  ;;  %v6811_v60 = vpop.f32.mrf.mxu0 }
0x145f   : > { %v6959_v36 = vmax.f32 %v6615_v58, 0.0  ;;  %v6961_v29 = vmax.f32 %v6808_v27, 0.0  ;;  %v7070_v43 = vpack.c.bf16 %v6958_v30, %v6954_v3  ;;  %v7072_v40 = vpack.c.bf16 %v6960_v22, %v6956_v19 }
0x1460   : > { %v6620_v10 = vpop.f32.mrf.mxu1  ;;  %v6813_v46 = vpop.f32.mrf.mxu0  ;;  %v6619_v33 = vadd.f32 %v6618_v26, %v14494_v0  ;;  %v6812_v14 = vadd.f32 %v6811_v60, %v14498_v17 }
0x1461   : > { %v7071_v8 = vpack.c.bf16 %v6959_v36, %v6955_v34  ;;  %v7073_v41 = vpack.c.bf16 %v6961_v29, %v6957_v55  ;;  %v6621_v37 = vadd.f32 %v6620_v10, %v14470_v13  ;;  %v6814_v21 = vadd.f32 %v6813_v46, %v14472_v32 }
0x1462   : > { %v6622_v61 = vpop.f32.mrf.mxu1  ;;  %v6815_v1 = vpop.f32.mrf.mxu0  ;;  %v6962_v30 = vmax.f32 %v6619_v33, 0.0  ;;  %v6964_v22 = vmax.f32 %v6812_v14, 0.0 }
0x1463   : > { %v6623_v20 = vadd.f32 %v6622_v61, %v14494_v0  ;;  %v6816_v56 = vadd.f32 %v6815_v1, %v14498_v17  ;;  %7441 = vmatprep.mubr.bf16.mxu1 %v7071_v8  ;;  %7602 = vmatprep.mubr.bf16.mxu0 %v7073_v41  ;;  %v6963_v18 = vmax.f32 %v6621_v37, 0.0  ;;  %v6965_v62 = vmax.f32 %v6814_v21, 0.0 }
0x1464   : > { %v6624_v16 = vpop.f32.mrf.mxu1  ;;  %v6817_v39 = vpop.f32.mrf.mxu0  ;;  %7442 = vmatmul.mubr.bf16.gmra.mxu1 %v7070_v43  ;;  %7603 = vmatmul.mubr.bf16.gmra.mxu0 %v7072_v40 }
0x1465   : > { %v6625_v31 = vadd.f32 %v6624_v16, %v14470_v13  ;;  %v6818_v35 = vadd.f32 %v6817_v39, %v14472_v32  ;;  %v6966_v24 = vmax.f32 %v6623_v20, 0.0  ;;  %v6968_v6 = vmax.f32 %v6816_v56, 0.0 }
0x1467   : > { %v6967_v58 = vmax.f32 %v6625_v31, 0.0  ;;  %v6969_v27 = vmax.f32 %v6818_v35, 0.0  ;;  %v7074_v36 = vpack.c.bf16 %v6966_v24, %v6962_v30  ;;  %v7076_v29 = vpack.c.bf16 %v6968_v6, %v6964_v22 }
0x1468   : > { %v6628_v55 = vpop.f32.mrf.mxu1  ;;  %v6821_v60 = vpop.f32.mrf.mxu0 }
0x1469   : > { %v7075_v34 = vpack.c.bf16 %v6967_v58, %v6963_v18  ;;  %v7077_v26 = vpack.c.bf16 %v6969_v27, %v6965_v62  ;;  %v6629_v37 = vadd.f32 %v6628_v55, %v14494_v0  ;;  %v6822_v61 = vadd.f32 %v6821_v60, %v14498_v17 }
0x146a   : > { %v6630_v3 = vpop.f32.mrf.mxu1  ;;  %v6823_v19 = vpop.f32.mrf.mxu0 }
0x146b   : > { %7449 = vmatprep.mubr.bf16.mxu1 %v7075_v34  ;;  %7610 = vmatprep.mubr.bf16.mxu0 %v7077_v26  ;;  %v6631_v8 = vadd.f32 %v6630_v3, %v14470_v13  ;;  %v6824_v41 = vadd.f32 %v6823_v19, %v14472_v32  ;;  %v6970_v18 = vmax.f32 %v6629_v37, 0.0  ;;  %v6972_v62 = vmax.f32 %v6822_v61, 0.0 }
0x146c   : > { %7450 = vmatmul.mubr.bf16.gmra.mxu1 %v7074_v36  ;;  %7611 = vmatmul.mubr.bf16.gmra.mxu0 %v7076_v29  ;;  %v6632_v10 = vpop.f32.mrf.mxu1  ;;  %v6825_v46 = vpop.f32.mrf.mxu0 }
0x146d   : > { %v6633_v43 = vadd.f32 %v6632_v10, %v14494_v0  ;;  %v6826_v40 = vadd.f32 %v6825_v46, %v14498_v17  ;;  %v6971_v31 = vmax.f32 %v6631_v8, 0.0  ;;  %v6973_v35 = vmax.f32 %v6824_v41, 0.0 }
0x146e   : > { %v6634_v1 = vpop.f32.mrf.mxu1  ;;  %v6827_v21 = vpop.f32.mrf.mxu0 }
0x146f   : > { %v6635_v20 = vadd.f32 %v6634_v1, %v14470_v13  ;;  %v6828_v56 = vadd.f32 %v6827_v21, %v14472_v32  ;;  %v6974_v33 = vmax.f32 %v6633_v43, 0.0  ;;  %v6976_v14 = vmax.f32 %v6826_v40, 0.0 }
0x1470   : > { %v6638_v16 = vpop.f32.mrf.mxu1  ;;  %v6831_v39 = vpop.f32.mrf.mxu0 }
0x1471   : > { %v6975_v24 = vmax.f32 %v6635_v20, 0.0  ;;  %v6977_v6 = vmax.f32 %v6828_v56, 0.0  ;;  %v7078_v34 = vpack.c.bf16 %v6974_v33, %v6970_v18  ;;  %v7080_v26 = vpack.c.bf16 %v6976_v14, %v6972_v62 }
0x1472   : > { %v6640_v58 = vpop.f32.mrf.mxu1  ;;  %v6833_v27 = vpop.f32.mrf.mxu0  ;;  %v6639_v10 = vadd.f32 %v6638_v16, %v14494_v0  ;;  %v6832_v46 = vadd.f32 %v6831_v39, %v14498_v17 }
0x1473   : > { %v7079_v30 = vpack.c.bf16 %v6975_v24, %v6971_v31  ;;  %v7081_v22 = vpack.c.bf16 %v6977_v6, %v6973_v35  ;;  %v6641_v55 = vadd.f32 %v6640_v58, %v14470_v13  ;;  %v6834_v29 = vadd.f32 %v6833_v27, %v14472_v32 }
0x1474   : > { %v6642_v60 = vpop.f32.mrf.mxu1  ;;  %v6835_v36 = vpop.f32.mrf.mxu0  ;;  %v6978_v31 = vmax.f32 %v6639_v10, 0.0  ;;  %v6980_v16 = vmax.f32 %v6832_v46, 0.0 }
0x1475   : > { %v6643_v3 = vadd.f32 %v6642_v60, %v14494_v0  ;;  %v6836_v19 = vadd.f32 %v6835_v36, %v14498_v17  ;;  %7457 = vmatprep.mubr.bf16.mxu1 %v7079_v30  ;;  %7618 = vmatprep.mubr.bf16.mxu0 %v7081_v22  ;;  %v6979_v20 = vmax.f32 %v6641_v55, 0.0  ;;  %v6981_v56 = vmax.f32 %v6834_v29, 0.0 }
0x1476   : > { %v6644_v8 = vpop.f32.mrf.mxu1  ;;  %v6837_v41 = vpop.f32.mrf.mxu0  ;;  %7458 = vmatmul.mubr.bf16.gmra.mxu1 %v7078_v34  ;;  %7619 = vmatmul.mubr.bf16.gmra.mxu0 %v7080_v26 }
0x1477   : > { %v6645_v43 = vadd.f32 %v6644_v8, %v14470_v13  ;;  %v6838_v40 = vadd.f32 %v6837_v41, %v14472_v32  ;;  %v6982_v37 = vmax.f32 %v6643_v3, 0.0  ;;  %v6984_v61 = vmax.f32 %v6836_v19, 0.0 }
0x1478   : > { %v6648_v1 = vpop.f32.mrf.mxu1  ;;  %v6841_v21 = vpop.f32.mrf.mxu0 }
0x1479   : > { %v6983_v33 = vmax.f32 %v6645_v43, 0.0  ;;  %v6985_v14 = vmax.f32 %v6838_v40, 0.0  ;;  %v7082_v18 = vpack.c.bf16 %v6982_v37, %v6978_v31  ;;  %v7084_v62 = vpack.c.bf16 %v6984_v61, %v6980_v16 }
0x147a   : > { %v6650_v35 = vpop.f32.mrf.mxu1  ;;  %v6843_v39 = vpop.f32.mrf.mxu0  ;;  %v6649_v55 = vadd.f32 %v6648_v1, %v14494_v0  ;;  %v6842_v60 = vadd.f32 %v6841_v21, %v14498_v17 }
0x147b   : > { %v7083_v24 = vpack.c.bf16 %v6983_v33, %v6979_v20  ;;  %v7085_v6 = vpack.c.bf16 %v6985_v14, %v6981_v56  ;;  %v6651_v58 = vadd.f32 %v6650_v35, %v14470_v13  ;;  %v6844_v22 = vadd.f32 %v6843_v39, %v14472_v32 }
0x147c   : > { %v6652_v27 = vpop.f32.mrf.mxu1  ;;  %v6845_v30 = vpop.f32.mrf.mxu0  ;;  %v6986_v37 = vmax.f32 %v6649_v55, 0.0  ;;  %v6988_v61 = vmax.f32 %v6842_v60, 0.0 }
0x147d   : > { %v6653_v34 = vadd.f32 %v6652_v27, %v14494_v0  ;;  %v6846_v26 = vadd.f32 %v6845_v30, %v14498_v17  ;;  %7465 = vmatprep.mubr.bf16.mxu1 %v7083_v24  ;;  %7626 = vmatprep.mubr.bf16.mxu0 %v7085_v6  ;;  %v6987_v8 = vmax.f32 %v6651_v58, 0.0  ;;  %v6989_v41 = vmax.f32 %v6844_v22, 0.0 }
0x147e   : > { %v6654_v36 = vpop.f32.mrf.mxu1  ;;  %v6847_v29 = vpop.f32.mrf.mxu0  ;;  %7466 = vmatmul.mubr.bf16.gmra.mxu1 %v7082_v18  ;;  %7627 = vmatmul.mubr.bf16.gmra.mxu0 %v7084_v62 }
0x147f   : > { %v6655_v3 = vadd.f32 %v6654_v36, %v14470_v13  ;;  %v6848_v19 = vadd.f32 %v6847_v29, %v14472_v32  ;;  %v6990_v10 = vmax.f32 %v6653_v34, 0.0  ;;  %v6992_v46 = vmax.f32 %v6846_v26, 0.0 }
0x1481   : > { %v6991_v43 = vmax.f32 %v6655_v3, 0.0  ;;  %v6993_v40 = vmax.f32 %v6848_v19, 0.0  ;;  %v7086_v56 = vpack.c.bf16 %v6990_v10, %v6986_v37  ;;  %v7088_v21 = vpack.c.bf16 %v6992_v46, %v6988_v61 }
0x1483   : > { %v7087_v20 = vpack.c.bf16 %v6991_v43, %v6987_v8  ;;  %v7089_v1 = vpack.c.bf16 %v6993_v40, %v6989_v41 }
0x1485   : > { %7473 = vmatprep.mubr.bf16.mxu1 %v7087_v20  ;;  %7634 = vmatprep.mubr.bf16.mxu0 %v7089_v1 }
0x1486   : > { %7474 = vmatmul.mubr.bf16.gmra.mxu1 %v7086_v56  ;;  %7635 = vmatmul.mubr.bf16.gmra.mxu0 %v7088_v21 }
0x14a4   : > { %v6658_v33 = vpop.f32.mrf.mxu1  ;;  %v6851_v14 = vpop.f32.mrf.mxu0 }
0x14a5   : > { %v6659_v58 = vadd.f32 %v6658_v33, %v14494_v0  ;;  %v6852_v27 = vadd.f32 %v6851_v14, %v14498_v17 }
0x14a6   : > { %v6660_v31 = vpop.f32.mrf.mxu1  ;;  %v6853_v16 = vpop.f32.mrf.mxu0 }
0x14a7   : > { %v6661_v24 = vadd.f32 %v6660_v31, %v14470_v13  ;;  %v6854_v6 = vadd.f32 %v6853_v16, %v14472_v32  ;;  %v6994_v8 = vmax.f32 %v6659_v58, 0.0  ;;  %v6996_v41 = vmax.f32 %v6852_v27, 0.0 }
0x14a8   : > { %v6662_v35 = vpop.f32.mrf.mxu1  ;;  %v6855_v39 = vpop.f32.mrf.mxu0 }
0x14a9   : > { %v6663_v18 = vadd.f32 %v6662_v35, %v14494_v0  ;;  %v6856_v62 = vadd.f32 %v6855_v39, %v14498_v17  ;;  %v6995_v3 = vmax.f32 %v6661_v24, 0.0  ;;  %v6997_v19 = vmax.f32 %v6854_v6, 0.0 }
0x14aa   : > { %v6664_v30 = vpop.f32.mrf.mxu1  ;;  %v6857_v22 = vpop.f32.mrf.mxu0 }
0x14ab   : > { %v6665_v34 = vadd.f32 %v6664_v30, %v14470_v13  ;;  %v6858_v26 = vadd.f32 %v6857_v22, %v14472_v32  ;;  %v6998_v55 = vmax.f32 %v6663_v18, 0.0  ;;  %v7000_v60 = vmax.f32 %v6856_v62, 0.0 }
0x14ac   : > { %v6668_v36 = vpop.f32.mrf.mxu1  ;;  %v6861_v29 = vpop.f32.mrf.mxu0 }
0x14ad   : > { %v6999_v10 = vmax.f32 %v6665_v34, 0.0  ;;  %v7001_v46 = vmax.f32 %v6858_v26, 0.0  ;;  %v7090_v20 = vpack.c.bf16 %v6998_v55, %v6994_v8  ;;  %v7092_v1 = vpack.c.bf16 %v7000_v60, %v6996_v41 }
0x14ae   : > { %v6670_v43 = vpop.f32.mrf.mxu1  ;;  %v6863_v40 = vpop.f32.mrf.mxu0  ;;  %v6669_v35 = vadd.f32 %v6668_v36, %v14494_v0  ;;  %v6862_v39 = vadd.f32 %v6861_v29, %v14498_v17 }
0x14af   : > { %v7091_v37 = vpack.c.bf16 %v6999_v10, %v6995_v3  ;;  %v7093_v61 = vpack.c.bf16 %v7001_v46, %v6997_v19  ;;  %v6671_v56 = vadd.f32 %v6670_v43, %v14470_v13  ;;  %v6864_v14 = vadd.f32 %v6863_v40, %v14472_v32 }
0x14b0   : > { %v6672_v21 = vpop.f32.mrf.mxu1  ;;  %v6865_v33 = vpop.f32.mrf.mxu0  ;;  %v7002_v3 = vmax.f32 %v6669_v35, 0.0  ;;  %v7004_v36 = vmax.f32 %v6862_v39, 0.0 }
0x14b1   : > { %v6673_v31 = vadd.f32 %v6672_v21, %v14494_v0  ;;  %v6866_v16 = vadd.f32 %v6865_v33, %v14498_v17  ;;  %7481 = vmatprep.mubr.bf16.mxu1 %v7091_v37  ;;  %7642 = vmatprep.mubr.bf16.mxu0 %v7093_v61  ;;  %v7003_v34 = vmax.f32 %v6671_v56, 0.0  ;;  %v7005_v26 = vmax.f32 %v6864_v14, 0.0 }
0x14b2   : > { %v6674_v24 = vpop.f32.mrf.mxu1  ;;  %v6867_v6 = vpop.f32.mrf.mxu0  ;;  %7482 = vmatmul.mubr.bf16.gmra.mxu1 %v7090_v20  ;;  %7643 = vmatmul.mubr.bf16.gmra.mxu0 %v7092_v1 }
0x14b3   : > { %v6675_v18 = vadd.f32 %v6674_v24, %v14470_v13  ;;  %v6868_v62 = vadd.f32 %v6867_v6, %v14472_v32  ;;  %v7006_v58 = vmax.f32 %v6673_v31, 0.0  ;;  %v7008_v27 = vmax.f32 %v6866_v16, 0.0 }
0x14b4   : > { %v6678_v30 = vpop.f32.mrf.mxu1  ;;  %v6871_v22 = vpop.f32.mrf.mxu0 }
0x14b5   : > { %v7007_v55 = vmax.f32 %v6675_v18, 0.0  ;;  %v7009_v60 = vmax.f32 %v6868_v62, 0.0  ;;  %v7094_v8 = vpack.c.bf16 %v7006_v58, %v7002_v3  ;;  %v7096_v41 = vpack.c.bf16 %v7008_v27, %v7004_v36 }
0x14b6   : > { %v6680_v19 = vpop.f32.mrf.mxu1  ;;  %v6873_v29 = vpop.f32.mrf.mxu0  ;;  %v6679_v56 = vadd.f32 %v6678_v30, %v14494_v0  ;;  %v6872_v21 = vadd.f32 %v6871_v22, %v14498_v17 }
0x14b7   : > { %v7095_v10 = vpack.c.bf16 %v7007_v55, %v7003_v34  ;;  %v7097_v46 = vpack.c.bf16 %v7009_v60, %v7005_v26  ;;  %v6681_v43 = vadd.f32 %v6680_v19, %v14470_v13  ;;  %v6874_v61 = vadd.f32 %v6873_v29, %v14472_v32 }
0x14b8   : > { %v6682_v40 = vpop.f32.mrf.mxu1  ;;  %v6875_v37 = vpop.f32.mrf.mxu0  ;;  %v7010_v34 = vmax.f32 %v6679_v56, 0.0  ;;  %v7012_v30 = vmax.f32 %v6872_v21, 0.0 }
0x14b9   : > { %v6683_v20 = vadd.f32 %v6682_v40, %v14494_v0  ;;  %v6876_v1 = vadd.f32 %v6875_v37, %v14498_v17  ;;  %7489 = vmatprep.mubr.bf16.mxu1 %v7095_v10  ;;  %7650 = vmatprep.mubr.bf16.mxu0 %v7097_v46  ;;  %v7011_v18 = vmax.f32 %v6681_v43, 0.0  ;;  %v7013_v62 = vmax.f32 %v6874_v61, 0.0 }
0x14ba   : > { %v6684_v33 = vpop.f32.mrf.mxu1  ;;  %v6877_v14 = vpop.f32.mrf.mxu0  ;;  %7490 = vmatmul.mubr.bf16.gmra.mxu1 %v7094_v8  ;;  %7651 = vmatmul.mubr.bf16.gmra.mxu0 %v7096_v41 }
0x14bb   : > { %v6685_v31 = vadd.f32 %v6684_v33, %v14470_v13  ;;  %v6878_v16 = vadd.f32 %v6877_v14, %v14472_v32  ;;  %v7014_v35 = vmax.f32 %v6683_v20, 0.0  ;;  %v7016_v39 = vmax.f32 %v6876_v1, 0.0 }
0x14bc   : > { %v6688_v24 = vpop.f32.mrf.mxu1  ;;  %v6881_v6 = vpop.f32.mrf.mxu0 }
0x14bd   : > { %v7015_v58 = vmax.f32 %v6685_v31, 0.0  ;;  %v7017_v27 = vmax.f32 %v6878_v16, 0.0  ;;  %v7098_v3 = vpack.c.bf16 %v7014_v35, %v7010_v34  ;;  %v7100_v36 = vpack.c.bf16 %v7016_v39, %v7012_v30 }
0x14be   : > { %v6690_v26 = vpop.f32.mrf.mxu1  ;;  %v6883_v22 = vpop.f32.mrf.mxu0  ;;  %v6689_v43 = vadd.f32 %v6688_v24, %v14494_v0  ;;  %v6882_v40 = vadd.f32 %v6881_v6, %v14498_v17 }
0x14bf   : > { %v7099_v55 = vpack.c.bf16 %v7015_v58, %v7011_v18  ;;  %v7101_v60 = vpack.c.bf16 %v7017_v27, %v7013_v62  ;;  %v6691_v19 = vadd.f32 %v6690_v26, %v14470_v13  ;;  %v6884_v46 = vadd.f32 %v6883_v22, %v14472_v32 }
0x14c0   : > { %v6692_v29 = vpop.f32.mrf.mxu1  ;;  %v6885_v10 = vpop.f32.mrf.mxu0  ;;  %v7018_v35 = vmax.f32 %v6689_v43, 0.0  ;;  %v7020_v39 = vmax.f32 %v6882_v40, 0.0 }
0x14c1   : > { %v6693_v8 = vadd.f32 %v6692_v29, %v14494_v0  ;;  %v6886_v41 = vadd.f32 %v6885_v10, %v14498_v17  ;;  %7497 = vmatprep.mubr.bf16.mxu1 %v7099_v55  ;;  %7658 = vmatprep.mubr.bf16.mxu0 %v7101_v60  ;;  %v7019_v33 = vmax.f32 %v6691_v19, 0.0  ;;  %v7021_v14 = vmax.f32 %v6884_v46, 0.0 }
0x14c2   : > { %v6694_v37 = vpop.f32.mrf.mxu1  ;;  %v6887_v61 = vpop.f32.mrf.mxu0  ;;  %7498 = vmatmul.mubr.bf16.gmra.mxu1 %v7098_v3  ;;  %7659 = vmatmul.mubr.bf16.gmra.mxu0 %v7100_v36 }
0x14c3   : > { %v6695_v20 = vadd.f32 %v6694_v37, %v14470_v13  ;;  %v6888_v1 = vadd.f32 %v6887_v61, %v14472_v32  ;;  %v7022_v56 = vmax.f32 %v6693_v8, 0.0  ;;  %v7024_v21 = vmax.f32 %v6886_v41, 0.0 }
0x14c5   : > { %v7023_v31 = vmax.f32 %v6695_v20, 0.0  ;;  %v7025_v16 = vmax.f32 %v6888_v1, 0.0  ;;  %v7102_v62 = vpack.c.bf16 %v7022_v56, %v7018_v35  ;;  %v7104_v6 = vpack.c.bf16 %v7024_v21, %v7020_v39 }
0x14c7   : > { %v7103_v18 = vpack.c.bf16 %v7023_v31, %v7019_v33  ;;  %v7105_v24 = vpack.c.bf16 %v7025_v16, %v7021_v14 }
0x14c9   : > { %7505 = vmatprep.mubr.bf16.mxu1 %v7103_v18  ;;  %7666 = vmatprep.mubr.bf16.mxu0 %v7105_v24 }
0x14ca   : > { %7506 = vmatmul.mubr.bf16.gmra.mxu1 %v7102_v62  ;;  %7667 = vmatmul.mubr.bf16.gmra.mxu0 %v7104_v6 }
0x14e2   : > { %v6698_v58 = vpop.f32.mrf.mxu1  ;;  %v6891_v27 = vpop.f32.mrf.mxu0 }
0x14e3   : > { %v6699_v19 = vadd.f32 %v6698_v58, %v14494_v0  ;;  %v6892_v29 = vadd.f32 %v6891_v27, %v14498_v17 }
0x14e4   : > { %v6700_v34 = vpop.f32.mrf.mxu1  ;;  %v6893_v30 = vpop.f32.mrf.mxu0 }
0x14e5   : > { %v6701_v55 = vadd.f32 %v6700_v34, %v14470_v13  ;;  %v6894_v60 = vadd.f32 %v6893_v30, %v14472_v32  ;;  %v7026_v33 = vmax.f32 %v6699_v19, 0.0  ;;  %v7028_v14 = vmax.f32 %v6892_v29, 0.0 }
0x14e6   : > { %v6702_v26 = vpop.f32.mrf.mxu1  ;;  %v6895_v22 = vpop.f32.mrf.mxu0 }
0x14e7   : > { %v6703_v3 = vadd.f32 %v6702_v26, %v14494_v0  ;;  %v6896_v36 = vadd.f32 %v6895_v22, %v14498_v17  ;;  %v7027_v20 = vmax.f32 %v6701_v55, 0.0  ;;  %v7029_v1 = vmax.f32 %v6894_v60, 0.0 }
0x14e8   : > { %v6704_v10 = vpop.f32.mrf.mxu1  ;;  %v6897_v46 = vpop.f32.mrf.mxu0 }
0x14e9   : > { %v6705_v8 = vadd.f32 %v6704_v10, %v14470_v13  ;;  %v6898_v41 = vadd.f32 %v6897_v46, %v14472_v32  ;;  %v7030_v43 = vmax.f32 %v6703_v3, 0.0  ;;  %v7032_v40 = vmax.f32 %v6896_v36, 0.0 }
0x14ea   : > { %v6708_v37 = vpop.f32.mrf.mxu1  ;;  %v6901_v61 = vpop.f32.mrf.mxu0 }
0x14eb   : > { %v7031_v56 = vmax.f32 %v6705_v8, 0.0  ;;  %v7033_v21 = vmax.f32 %v6898_v41, 0.0  ;;  %v7106_v18 = vpack.c.bf16 %v7030_v43, %v7026_v33  ;;  %v7108_v24 = vpack.c.bf16 %v7032_v40, %v7028_v14 }
0x14ec   : > { %v6710_v31 = vpop.f32.mrf.mxu1  ;;  %v6903_v16 = vpop.f32.mrf.mxu0  ;;  %v6709_v26 = vadd.f32 %v6708_v37, %v14494_v0  ;;  %v6902_v22 = vadd.f32 %v6901_v61, %v14498_v17 }
0x14ed   : > { %v7107_v35 = vpack.c.bf16 %v7031_v56, %v7027_v20  ;;  %v7109_v39 = vpack.c.bf16 %v7033_v21, %v7029_v1  ;;  %v6711_v62 = vadd.f32 %v6710_v31, %v14470_v13  ;;  %v6904_v27 = vadd.f32 %v6903_v16, %v14472_v32 }
0x14ee   : > { %v6712_v6 = vpop.f32.mrf.mxu1  ;;  %v6905_v58 = vpop.f32.mrf.mxu0  ;;  %v7034_v43 = vmax.f32 %v6709_v26, 0.0  ;;  %v7036_v40 = vmax.f32 %v6902_v22, 0.0 }
0x14ef   : > { %v6713_v34 = vadd.f32 %v6712_v6, %v14494_v0  ;;  %v6906_v30 = vadd.f32 %v6905_v58, %v14498_v17  ;;  %7513 = vmatprep.mubr.bf16.mxu1 %v7107_v35  ;;  %7674 = vmatprep.mubr.bf16.mxu0 %v7109_v39  ;;  %v7035_v10 = vmax.f32 %v6711_v62, 0.0  ;;  %v7037_v46 = vmax.f32 %v6904_v27, 0.0 }
0x14f0   : > { %v6714_v55 = vpop.f32.mrf.mxu1  ;;  %v6907_v60 = vpop.f32.mrf.mxu0  ;;  %7514 = vmatmul.mubr.bf16.gmra.mxu1 %v7106_v18  ;;  %7675 = vmatmul.mubr.bf16.gmra.mxu0 %v7108_v24 }
0x14f1   : > { %v6715_v3 = vadd.f32 %v6714_v55, %v14470_v13  ;;  %v6908_v36 = vadd.f32 %v6907_v60, %v14472_v32  ;;  %v7038_v19 = vmax.f32 %v6713_v34, 0.0  ;;  %v7040_v29 = vmax.f32 %v6906_v30, 0.0 }
0x14f3   : > { %v7039_v8 = vmax.f32 %v6715_v3, 0.0  ;;  %v7041_v41 = vmax.f32 %v6908_v36, 0.0  ;;  %v7110_v1 = vpack.c.bf16 %v7038_v19, %v7034_v43  ;;  %v7112_v61 = vpack.c.bf16 %v7040_v29, %v7036_v40 }
0x14f4   : > { %v6718_v56 = vpop.f32.mrf.mxu1  ;;  %v6911_v21 = vpop.f32.mrf.mxu0 }
0x14f5   : > { %v7111_v20 = vpack.c.bf16 %v7039_v8, %v7035_v10  ;;  %v7113_v37 = vpack.c.bf16 %v7041_v41, %v7037_v46  ;;  %v6719_v62 = vadd.f32 %v6718_v56, %v14494_v0  ;;  %v6912_v6 = vadd.f32 %v6911_v21, %v14498_v17 }
0x14f6   : > { %v6720_v33 = vpop.f32.mrf.mxu1  ;;  %v6913_v14 = vpop.f32.mrf.mxu0 }
0x14f7   : > { %7521 = vmatprep.mubr.bf16.mxu1 %v7111_v20  ;;  %7682 = vmatprep.mubr.bf16.mxu0 %v7113_v37  ;;  %v6721_v35 = vadd.f32 %v6720_v33, %v14470_v13  ;;  %v6914_v39 = vadd.f32 %v6913_v14, %v14472_v32  ;;  %v7042_v10 = vmax.f32 %v6719_v62, 0.0  ;;  %v7044_v46 = vmax.f32 %v6912_v6, 0.0 }
0x14f8   : > { %7522 = vmatmul.mubr.bf16.gmra.mxu1 %v7110_v1  ;;  %7683 = vmatmul.mubr.bf16.gmra.mxu0 %v7112_v61  ;;  %v6722_v31 = vpop.f32.mrf.mxu1  ;;  %v6915_v16 = vpop.f32.mrf.mxu0 }
0x14f9   : > { %v6723_v18 = vadd.f32 %v6722_v31, %v14494_v0  ;;  %v6916_v24 = vadd.f32 %v6915_v16, %v14498_v17  ;;  %v7043_v3 = vmax.f32 %v6721_v35, 0.0  ;;  %v7045_v36 = vmax.f32 %v6914_v39, 0.0 }
0x14fa   : > { %v6724_v58 = vpop.f32.mrf.mxu1  ;;  %v6917_v27 = vpop.f32.mrf.mxu0 }
0x14fb   : > { %v6725_v34 = vadd.f32 %v6724_v58, %v14470_v13  ;;  %v6918_v30 = vadd.f32 %v6917_v27, %v14472_v32  ;;  %v7046_v26 = vmax.f32 %v6723_v18, 0.0  ;;  %v7048_v22 = vmax.f32 %v6916_v24, 0.0 }
0x14fd   : > { %v6728_v55 = vpop.f32.mrf.mxu1  ;;  %v6921_v60 = vpop.f32.mrf.mxu0  ;;  %v7047_v19 = vmax.f32 %v6725_v34, 0.0  ;;  %v7049_v29 = vmax.f32 %v6918_v30, 0.0  ;;  %v7114_v20 = vpack.c.bf16 %v7046_v26, %v7042_v10  ;;  %v7116_v37 = vpack.c.bf16 %v7048_v22, %v7044_v46 }
0x14fe   : > { %v6729_v31 = vadd.f32 %v6728_v55, %v14494_v0  ;;  %v6922_v16 = vadd.f32 %v6921_v60, %v14498_v17 }
0x14ff   : > { %v6730_v8 = vpop.f32.mrf.mxu1  ;;  %v6923_v41 = vpop.f32.mrf.mxu0  ;;  %v7115_v43 = vpack.c.bf16 %v7047_v19, %v7043_v3  ;;  %v7117_v40 = vpack.c.bf16 %v7049_v29, %v7045_v36 }
0x1500   : > { %v6731_v1 = vadd.f32 %v6730_v8, %v14470_v13  ;;  %v6924_v21 = vadd.f32 %v6923_v41, %v14472_v32  ;;  %v7052_v55 = vmax.f32 %v6922_v16, 0.0 }
0x1501   : > { %v6732_v61 = vpop.f32.mrf.mxu1  ;;  %v6925_v56 = vpop.f32.mrf.mxu0  ;;  %7529 = vmatprep.mubr.bf16.mxu1 %v7115_v43  ;;  %7690 = vmatprep.mubr.bf16.mxu0 %v7117_v40 }
0x1502   : > { %v6733_v33 = vadd.f32 %v6732_v61, %v14494_v0  ;;  %v6926_v14 = vadd.f32 %v6925_v56, %v14498_v17  ;;  %7530 = vmatmul.mubr.bf16.gmra.mxu1 %v7114_v20  ;;  %7691 = vmatmul.mubr.bf16.gmra.mxu0 %v7116_v37  ;;  %v7051_v34 = vmax.f32 %v6731_v1, 0.0  ;;  %v7053_v30 = vmax.f32 %v6924_v21, 0.0  ;;  %v14647_v17 = vld [vmem:[%s720_s25] ss:$0 sm:$0xff] }
0x1503   : > { %v6734_v35 = vpop.f32.mrf.mxu1  ;;  %v6927_v39 = vpop.f32.mrf.mxu0  ;;  %v7050_v0 = vmax.f32 %v6729_v31, 0.0 }
0x1504   : > { %v6735_v18 = vadd.f32 %v6734_v35, %v14470_v13  ;;  %v6928_v24 = vadd.f32 %v6927_v39, %v14472_v32  ;;  %v7054_v62 = vmax.f32 %v6733_v33, 0.0  ;;  %v7056_v6 = vmax.f32 %v6926_v14, 0.0 }
0x1505   : > { %v8981_v58 = vpop.f32.mrf.mxu1  ;;  %v9093_v27 = vpop.f32.mrf.mxu0 }
0x1506   : > { %v7055_v26 = vmax.f32 %v6735_v18, 0.0  ;;  %v7057_v22 = vmax.f32 %v6928_v24, 0.0  ;;  %v7118_v19 = vpack.c.bf16 %v7054_v62, %v7050_v0  ;;  %v7120_v29 = vpack.c.bf16 %v7056_v6, %v7052_v55 }
0x1507   : > { %v8982_v60 = vpop.f32.mrf.mxu1  ;;  %v9094_v13 = vpop.f32.mrf.mxu0 }
0x1508   : > { %v7119_v3 = vpack.c.bf16 %v7055_v26, %v7051_v34  ;;  %v7121_v32 = vpack.c.bf16 %v7057_v22, %v7053_v30  ;;  %v8983_v36 = vadd.f32 %v8982_v60, %v8981_v58  ;;  %v9095_v41 = vadd.f32 %v9094_v13, %v9093_v27 }
0x1509   : > { %v8984_v10 = vpop.f32.mrf.mxu1  ;;  %v9096_v46 = vpop.f32.mrf.mxu0 }
0x150a   : > { %v7420_v8 = vadd.f32 %v8983_v36, %v14647_v17  ;;  %7537 = vmatprep.mubr.bf16.mxu1 %v7119_v3  ;;  %7698 = vmatprep.mubr.bf16.mxu0 %v7121_v32 }
0x150b   : > { %v8985_v43 = vpop.f32.mrf.mxu1  ;;  %7538 = vmatmul.mubr.bf16.gmra.mxu1 %v7118_v19  ;;  %v9097_v40 = vpop.f32.mrf.mxu0  ;;  %7699 = vmatmul.mubr.bf16.gmra.mxu0 %v7120_v29 }
0x150c   : > { %v14650_v20 = vadd.f32 %v9095_v41, %v7420_v8  ;;  %v8986_v37 = vadd.f32 %v8985_v43, %v8984_v10  ;;  %v9098_v21 = vadd.f32 %v9097_v40, %v9096_v46 }
0x150d   : > { %v8987_v1 = vpop.f32.mrf.mxu1  ;;  %v9099_v61 = vpop.f32.mrf.mxu0 }
0x150e   : > { %v7423_v56 = vadd.f32 %v8986_v37, %v14647_v17  ;;  %7707 = vadd.xlane.f32.xlu0 %v14650_v20 }
0x150f   : > { %v8988_v33 = vpop.f32.mrf.mxu1  ;;  %v9100_v14 = vpop.f32.mrf.mxu0 }
0x1510   : > { %v14654_v31 = vadd.f32 %v9098_v21, %v7423_v56  ;;  %v8989_v16 = vadd.f32 %v8988_v33, %v8987_v1  ;;  %v9101_v24 = vadd.f32 %v9100_v14, %v9099_v61 }
0x1511   : > { %v8990_v35 = vpop.f32.mrf.mxu1  ;;  %v9102_v39 = vpop.f32.mrf.mxu0 }
0x1512   : > { %v7428_v18 = vadd.f32 %v8989_v16, %v14647_v17  ;;  %7709 = vadd.xlane.f32.xlu1 %v14654_v31 }
0x1513   : > { %v8991_v62 = vpop.f32.mrf.mxu1  ;;  %v9103_v6 = vpop.f32.mrf.mxu0 }
0x1514   : > { %v14658_v58 = vadd.f32 %v9101_v24, %v7428_v18  ;;  %v8992_v27 = vadd.f32 %v8991_v62, %v8990_v35  ;;  %v9104_v22 = vadd.f32 %v9103_v6, %v9102_v39 }
0x1515   : > { %v8993_v34 = vpop.f32.mrf.mxu1  ;;  %v9105_v30 = vpop.f32.mrf.mxu0 }
0x1516   : > { %v7431_v26 = vadd.f32 %v8992_v27, %v14647_v17  ;;  %7711 = vadd.xlane.f32.xlu0 %v14658_v58 }
0x1517   : > { %v8994_v0 = vpop.f32.mrf.mxu1  ;;  %v9106_v55 = vpop.f32.mrf.mxu0 }
0x1518   : > { %v14662_v60 = vadd.f32 %v9104_v22, %v7431_v26  ;;  %v8995_v13 = vadd.f32 %v8994_v0, %v8993_v34  ;;  %v9107_v19 = vadd.f32 %v9106_v55, %v9105_v30 }
0x1519   : > { %v8996_v3 = vpop.f32.mrf.mxu1  ;;  %v9108_v32 = vpop.f32.mrf.mxu0 }
0x151a   : > { %v7436_v36 = vadd.f32 %v8995_v13, %v14647_v17  ;;  %7713 = vadd.xlane.f32.xlu1 %v14662_v60 }
0x151b   : > { %v8997_v29 = vpop.f32.mrf.mxu1  ;;  %v9109_v10 = vpop.f32.mrf.mxu0 }
0x151c   : > { %v14666_v46 = vadd.f32 %v9107_v19, %v7436_v36  ;;  %v8998_v8 = vadd.f32 %v8997_v29, %v8996_v3  ;;  %v9110_v43 = vadd.f32 %v9109_v10, %v9108_v32 }
0x151e   : > { %v7439_v41 = vadd.f32 %v8998_v8, %v14647_v17  ;;  %7715 = vadd.xlane.f32.xlu0 %v14666_v46 }
0x1520   : > { %v14670_v40 = vadd.f32 %v9110_v43, %v7439_v41 }
0x1522   : > { %7717 = vadd.xlane.f32.xlu1 %v14670_v40 }
0x1524   : > { %v8999_v37 = vpop.f32.mrf.mxu1  ;;  %v9111_v1 = vpop.f32.mrf.mxu0 }
0x1526   : > { %v9000_v61 = vpop.f32.mrf.mxu1  ;;  %v9112_v56 = vpop.f32.mrf.mxu0 }
0x1527   : > { %v9001_v21 = vadd.f32 %v9000_v61, %v8999_v37  ;;  %v9113_v35 = vadd.f32 %v9112_v56, %v9111_v1 }
0x1528   : > { %v9002_v33 = vpop.f32.mrf.mxu1  ;;  %v9114_v14 = vpop.f32.mrf.mxu0 }
0x1529   : > { %v7444_v16 = vadd.f32 %v9001_v21, %v14647_v17 }
0x152a   : > { %v9003_v39 = vpop.f32.mrf.mxu1  ;;  %v9115_v18 = vpop.f32.mrf.mxu0 }
0x152b   : > { %v14674_v24 = vadd.f32 %v9113_v35, %v7444_v16  ;;  %v9004_v62 = vadd.f32 %v9003_v39, %v9002_v33  ;;  %v9116_v30 = vadd.f32 %v9115_v18, %v9114_v14 }
0x152c   : > { %v9005_v6 = vpop.f32.mrf.mxu1  ;;  %v9117_v27 = vpop.f32.mrf.mxu0 }
0x152d   : > { %v7447_v34 = vadd.f32 %v9004_v62, %v14647_v17  ;;  %7719 = vadd.xlane.f32.xlu0 %v14674_v24 }
0x152e   : > { %v9006_v26 = vpop.f32.mrf.mxu1  ;;  %v9118_v22 = vpop.f32.mrf.mxu0 }
0x152f   : > { %v14678_v0 = vadd.f32 %v9116_v30, %v7447_v34  ;;  %v9007_v55 = vadd.f32 %v9006_v26, %v9005_v6  ;;  %v9119_v36 = vadd.f32 %v9118_v22, %v9117_v27 }
0x1530   : > { %v9008_v13 = vpop.f32.mrf.mxu1  ;;  %v9120_v3 = vpop.f32.mrf.mxu0 }
0x1531   : > { %v7452_v32 = vadd.f32 %v9007_v55, %v14647_v17  ;;  %7721 = vadd.xlane.f32.xlu1 %v14678_v0 }
0x1532   : > { %v9009_v19 = vpop.f32.mrf.mxu1  ;;  %v9121_v29 = vpop.f32.mrf.mxu0 }
0x1533   : > { %v14682_v10 = vadd.f32 %v9119_v36, %v7452_v32  ;;  %v9010_v8 = vadd.f32 %v9009_v19, %v9008_v13  ;;  %v9122_v43 = vadd.f32 %v9121_v29, %v9120_v3 }
0x1535   : > { %v7455_v41 = vadd.f32 %v9010_v8, %v14647_v17  ;;  %7723 = vadd.xlane.f32.xlu0 %v14682_v10 }
0x1536   : > { %v9011_v1 = vpop.f32.mrf.mxu1  ;;  %v9123_v61 = vpop.f32.mrf.mxu0 }
0x1537   : > { %v14686_v37 = vadd.f32 %v9122_v43, %v7455_v41 }
0x1538   : > { %v9012_v56 = vpop.f32.mrf.mxu1  ;;  %v9124_v21 = vpop.f32.mrf.mxu0 }
0x1539   : > { %7725 = vadd.xlane.f32.xlu1 %v14686_v37  ;;  %v9013_v33 = vadd.f32 %v9012_v56, %v9011_v1  ;;  %v9125_v39 = vadd.f32 %v9124_v21, %v9123_v61 }
0x153a   : > { %v9014_v14 = vpop.f32.mrf.mxu1  ;;  %v9126_v16 = vpop.f32.mrf.mxu0 }
0x153b   : > { %v7460_v35 = vadd.f32 %v9013_v33, %v14647_v17 }
0x153c   : > { %v9015_v18 = vpop.f32.mrf.mxu1  ;;  %v9127_v62 = vpop.f32.mrf.mxu0 }
0x153d   : > { %v14690_v6 = vadd.f32 %v9125_v39, %v7460_v35  ;;  %v9016_v27 = vadd.f32 %v9015_v18, %v9014_v14  ;;  %v9128_v22 = vadd.f32 %v9127_v62, %v9126_v16 }
0x153e   : > { %v9017_v34 = vpop.f32.mrf.mxu1  ;;  %v9129_v30 = vpop.f32.mrf.mxu0 }
0x153f   : > { %v7463_v26 = vadd.f32 %v9016_v27, %v14647_v17  ;;  %7727 = vadd.xlane.f32.xlu0 %v14690_v6 }
0x1540   : > { %v9018_v55 = vpop.f32.mrf.mxu1  ;;  %v9130_v13 = vpop.f32.mrf.mxu0 }
0x1541   : > { %v14694_v3 = vadd.f32 %v9128_v22, %v7463_v26  ;;  %v9019_v32 = vadd.f32 %v9018_v55, %v9017_v34  ;;  %v9131_v8 = vadd.f32 %v9130_v13, %v9129_v30 }
0x1542   : > { %v9020_v36 = vpop.f32.mrf.mxu1  ;;  %v9132_v19 = vpop.f32.mrf.mxu0 }
0x1543   : > { %v7468_v29 = vadd.f32 %v9019_v32, %v14647_v17  ;;  %7729 = vadd.xlane.f32.xlu1 %v14694_v3 }
0x1544   : > { %v9021_v41 = vpop.f32.mrf.mxu1  ;;  %v9133_v43 = vpop.f32.mrf.mxu0 }
0x1545   : > { %v14698_v1 = vadd.f32 %v9131_v8, %v7468_v29  ;;  %v9022_v61 = vadd.f32 %v9021_v41, %v9020_v36  ;;  %v9134_v14 = vadd.f32 %v9133_v43, %v9132_v19 }
0x1546   : > { %v9023_v56 = vpop.f32.mrf.mxu1  ;;  %v9135_v21 = vpop.f32.mrf.mxu0 }
0x1547   : > { %v7471_v33 = vadd.f32 %v9022_v61, %v14647_v17  ;;  %7731 = vadd.xlane.f32.xlu0 %v14698_v1 }
0x1548   : > { %v9024_v16 = vpop.f32.mrf.mxu1  ;;  %v9136_v35 = vpop.f32.mrf.mxu0 }
0x1549   : > { %v14702_v39 = vadd.f32 %v9134_v14, %v7471_v33  ;;  %v9025_v18 = vadd.f32 %v9024_v16, %v9023_v56  ;;  %v9137_v30 = vadd.f32 %v9136_v35, %v9135_v21 }
0x154a   : > { %v9026_v62 = vpop.f32.mrf.mxu1  ;;  %v9138_v27 = vpop.f32.mrf.mxu0 }
0x154b   : > { %v7476_v34 = vadd.f32 %v9025_v18, %v14647_v17  ;;  %7733 = vadd.xlane.f32.xlu1 %v14702_v39 }
0x154c   : > { %v9027_v26 = vpop.f32.mrf.mxu1  ;;  %v9139_v22 = vpop.f32.mrf.mxu0 }
0x154d   : > { %v14706_v55 = vadd.f32 %v9137_v30, %v7476_v34  ;;  %v9028_v13 = vadd.f32 %v9027_v26, %v9026_v62  ;;  %v9140_v36 = vadd.f32 %v9139_v22, %v9138_v27 }
0x154f   : > { %v7479_v32 = vadd.f32 %v9028_v13, %v14647_v17  ;;  %7735 = vadd.xlane.f32.xlu0 %v14706_v55 }
0x1551   : > { %v14710_v19 = vadd.f32 %v9140_v36, %v7479_v32 }
0x1553   : > { %7737 = vadd.xlane.f32.xlu1 %v14710_v19 }
0x1572   : > { %v9029_v29 = vpop.f32.mrf.mxu1  ;;  %v9141_v8 = vpop.f32.mrf.mxu0 }
0x1574   : > { %v9030_v41 = vpop.f32.mrf.mxu1  ;;  %v9142_v43 = vpop.f32.mrf.mxu0 }
0x1575   : > { %v9031_v61 = vadd.f32 %v9030_v41, %v9029_v29  ;;  %v9143_v14 = vadd.f32 %v9142_v43, %v9141_v8 }
0x1576   : > { %v9032_v56 = vpop.f32.mrf.mxu1  ;;  %v9144_v21 = vpop.f32.mrf.mxu0 }
0x1577   : > { %v7484_v33 = vadd.f32 %v9031_v61, %v14647_v17 }
0x1578   : > { %v9033_v16 = vpop.f32.mrf.mxu1  ;;  %v9145_v35 = vpop.f32.mrf.mxu0 }
0x1579   : > { %v14714_v18 = vadd.f32 %v9143_v14, %v7484_v33  ;;  %v9034_v62 = vadd.f32 %v9033_v16, %v9032_v56  ;;  %v9146_v26 = vadd.f32 %v9145_v35, %v9144_v21 }
0x157a   : > { %v9035_v27 = vpop.f32.mrf.mxu1  ;;  %v9147_v34 = vpop.f32.mrf.mxu0 }
0x157b   : > { %v7487_v30 = vadd.f32 %v9034_v62, %v14647_v17  ;;  %7739 = vadd.xlane.f32.xlu0 %v14714_v18 }
0x157c   : > { %v9036_v22 = vpop.f32.mrf.mxu1  ;;  %v9148_v13 = vpop.f32.mrf.mxu0 }
0x157d   : > { %v14718_v32 = vadd.f32 %v9146_v26, %v7487_v30  ;;  %v9037_v36 = vadd.f32 %v9036_v22, %v9035_v27  ;;  %v9149_v43 = vadd.f32 %v9148_v13, %v9147_v34 }
0x157e   : > { %v9038_v29 = vpop.f32.mrf.mxu1  ;;  %v9150_v41 = vpop.f32.mrf.mxu0 }
0x157f   : > { %v7492_v8 = vadd.f32 %v9037_v36, %v14647_v17  ;;  %7741 = vadd.xlane.f32.xlu1 %v14718_v32 }
0x1580   : > { %v9039_v61 = vpop.f32.mrf.mxu1  ;;  %v9151_v56 = vpop.f32.mrf.mxu0 }
0x1581   : > { %v14722_v33 = vadd.f32 %v9149_v43, %v7492_v8  ;;  %v9040_v14 = vadd.f32 %v9039_v61, %v9038_v29  ;;  %v9152_v62 = vadd.f32 %v9151_v56, %v9150_v41 }
0x1582   : > { %v9041_v21 = vpop.f32.mrf.mxu1  ;;  %v9153_v16 = vpop.f32.mrf.mxu0 }
0x1583   : > { %v7495_v35 = vadd.f32 %v9040_v14, %v14647_v17  ;;  %7743 = vadd.xlane.f32.xlu0 %v14722_v33 }
0x1584   : > { %v9042_v27 = vpop.f32.mrf.mxu1  ;;  %v9154_v30 = vpop.f32.mrf.mxu0 }
0x1585   : > { %v14726_v26 = vadd.f32 %v9152_v62, %v7495_v35  ;;  %v9043_v22 = vadd.f32 %v9042_v27, %v9041_v21  ;;  %v9155_v59 = vadd.f32 %v9154_v30, %v9153_v16 }
0x1586   : > { %v9044_v34 = vpop.f32.mrf.mxu1  ;;  %v9156_v13 = vpop.f32.mrf.mxu0 }
0x1587   : > { %v7500_v36 = vadd.f32 %v9043_v22, %v14647_v17  ;;  %7745 = vadd.xlane.f32.xlu1 %v14726_v26 }
0x1588   : > { %v9045_v29 = vpop.f32.mrf.mxu1  ;;  %v9157_v8 = vpop.f32.mrf.mxu0 }
0x1589   : > { %v14730_v43 = vadd.f32 %v9155_v59, %v7500_v36  ;;  %v9046_v61 = vadd.f32 %v9045_v29, %v9044_v34  ;;  %v9158_v11 = vadd.f32 %v9157_v8, %v9156_v13 }
0x158a   : > { %v9047_v41 = vpop.f32.mrf.mxu1  ;;  %v9159_v56 = vpop.f32.mrf.mxu0 }
0x158b   : > { %v7503_v14 = vadd.f32 %v9046_v61, %v14647_v17  ;;  %7747 = vadd.xlane.f32.xlu0 %v14730_v43 }
0x158c   : > { %v9048_v21 = vpop.f32.mrf.mxu1  ;;  %v9160_v35 = vpop.f32.mrf.mxu0 }
0x158d   : > { %v14734_v62 = vadd.f32 %v9158_v11, %v7503_v14  ;;  %v9049_v27 = vadd.f32 %v9048_v21, %v9047_v41  ;;  %v9161_v12 = vadd.f32 %v9160_v35, %v9159_v56 }
0x158e   : > { %v9050_v16 = vpop.f32.mrf.mxu1  ;;  %v9162_v30 = vpop.f32.mrf.mxu0 }
0x158f   : > { %v7508_v22 = vadd.f32 %v9049_v27, %v14647_v17  ;;  %7749 = vadd.xlane.f32.xlu1 %v14734_v62 }
0x1590   : > { %v9051_v59 = vpop.f32.mrf.mxu1  ;;  %v9163_v34 = vpop.f32.mrf.mxu0 }
0x1591   : > { %v14738_v36 = vadd.f32 %v9161_v12, %v7508_v22  ;;  %v9052_v29 = vadd.f32 %v9051_v59, %v9050_v16  ;;  %v9164_v8 = vadd.f32 %v9163_v34, %v9162_v30 }
0x1593   : > { %v7511_v13 = vadd.f32 %v9052_v29, %v14647_v17  ;;  %7751 = vadd.xlane.f32.xlu0 %v14738_v36 }
0x1595   : > { %v14742_v11 = vadd.f32 %v9164_v8, %v7511_v13 }
0x1597   : > { %7753 = vadd.xlane.f32.xlu1 %v14742_v11 }
0x159b   : > { %v7710_v23 = vpop.xlane.xlu1 %7709 }
0x15b0   : > { %v9053_v61 = vpop.f32.mrf.mxu1  ;;  %v9165_v41 = vpop.f32.mrf.mxu0 }
0x15b2   : > { %v9054_v14 = vpop.f32.mrf.mxu1  ;;  %v9166_v56 = vpop.f32.mrf.mxu0 }
0x15b3   : > { %v9055_v21 = vadd.f32 %v9054_v14, %v9053_v61  ;;  %v9167_v22 = vadd.f32 %v9166_v56, %v9165_v41 }
0x15b4   : > { %v9056_v35 = vpop.f32.mrf.mxu1  ;;  %v9168_v27 = vpop.f32.mrf.mxu0 }
0x15b5   : > { %v7516_v12 = vadd.f32 %v9055_v21, %v14647_v17 }
0x15b6   : > { %v9057_v16 = vpop.f32.mrf.mxu1  ;;  %v9169_v59 = vpop.f32.mrf.mxu0 }
0x15b7   : > { %v14746_v29 = vadd.f32 %v9167_v22, %v7516_v12  ;;  %v9058_v30 = vadd.f32 %v9057_v16, %v9056_v35  ;;  %v9170_v50 = vadd.f32 %v9169_v59, %v9168_v27 }
0x15b8   : > { %v9059_v34 = vpop.f32.mrf.mxu1  ;;  %v9171_v13 = vpop.f32.mrf.mxu0 }
0x15b9   : > { %v7519_v8 = vadd.f32 %v9058_v30, %v14647_v17  ;;  %7755 = vadd.xlane.f32.xlu0 %v14746_v29 }
0x15ba   : > { %v9060_v9 = vpop.f32.mrf.mxu1  ;;  %v9172_v49 = vpop.f32.mrf.mxu0 }
0x15bb   : > { %v14750_v61 = vadd.f32 %v9170_v50, %v7519_v8  ;;  %v9061_v14 = vadd.f32 %v9060_v9, %v9059_v34  ;;  %v9173_v56 = vadd.f32 %v9172_v49, %v9171_v13 }
0x15bc   : > { %v9062_v38 = vpop.f32.mrf.mxu1  ;;  %v9174_v21 = vpop.f32.mrf.mxu0 }
0x15bd   : > { %v7524_v41 = vadd.f32 %v9061_v14, %v14647_v17  ;;  %7757 = vadd.xlane.f32.xlu1 %v14750_v61 }
0x15be   : > { %v9063_v35 = vpop.f32.mrf.mxu1  ;;  %v9175_v12 = vpop.f32.mrf.mxu0 }
0x15bf   : > { %v14754_v22 = vadd.f32 %v9173_v56, %v7524_v41  ;;  %v9064_v16 = vadd.f32 %v9063_v35, %v9062_v38  ;;  %v9176_v59 = vadd.f32 %v9175_v12, %v9174_v21 }
0x15c1   : > { %v7527_v27 = vadd.f32 %v9064_v16, %v14647_v17  ;;  %7759 = vadd.xlane.f32.xlu0 %v14754_v22  ;;  %v7708_v16 = vpop.xlane.xlu0 %7707 }
0x15c2   : > { %v9065_v9 = vpop.f32.mrf.mxu1  ;;  %v9177_v30 = vpop.f32.mrf.mxu0  ;;  %v7771_v44 = vmul.f32 0.0078125, %v7708_v16 }
0x15c3   : > { %v14758_v50 = vadd.f32 %v9176_v59, %v7527_v27 }
0x15c4   : > { %v9066_v34 = vpop.f32.mrf.mxu1  ;;  %v9178_v49 = vpop.f32.mrf.mxu0 }
0x15c5   : > { %7761 = vadd.xlane.f32.xlu1 %v14758_v50  ;;  %v9067_v13 = vadd.f32 %v9066_v34, %v9065_v9  ;;  %v9179_v56 = vadd.f32 %v9178_v49, %v9177_v30  ;;  %v7712_v7 = vpop.xlane.xlu0 %7711 }
0x15c6   : > { %v9068_v8 = vpop.f32.mrf.mxu1  ;;  %v9180_v14 = vpop.f32.mrf.mxu0  ;;  %v7773_v16 = vmul.f32 0.0078125, %v7712_v7 }
0x15c7   : > { %v7532_v41 = vadd.f32 %v9067_v13, %v14647_v17 }
0x15c8   : > { %v9069_v38 = vpop.f32.mrf.mxu1  ;;  %v9181_v35 = vpop.f32.mrf.mxu0 }
0x15c9   : > { %v14762_v21 = vadd.f32 %v9179_v56, %v7532_v41  ;;  %v9070_v12 = vadd.f32 %v9069_v38, %v9068_v8  ;;  %v9182_v15 = vadd.f32 %v9181_v35, %v9180_v14  ;;  %v14771_v56 = vsub.f32 %v14650_v20, %v7771_v44 }
0x15ca   : > { %v7772_v35 = vmul.f32 0.0078125, %v7710_v23  ;;  %v14783_v23 = vsub.f32 %v14658_v58, %v7773_v16 }
0x15cb   : > { %v9071_v27 = vpop.f32.mrf.mxu1  ;;  %v9183_v59 = vpop.f32.mrf.mxu0  ;;  %v7535_v57 = vadd.f32 %v9070_v12, %v14647_v17  ;;  %7763 = vadd.xlane.f32.xlu0 %v14762_v21 }
0x15cc   : > { %v7714_v12 = vpop.xlane.xlu1 %7713  ;;  %v14780_v44 = vsub.f32 %v14654_v31, %v7772_v35 }
0x15cd   : > { %v9184_v9 = vpop.f32.mrf.mxu0  ;;  %v9072_v34 = vpop.f32.mrf.mxu1  ;;  %v14766_v13 = vadd.f32 %v9182_v15, %v7535_v57 }
0x15ce   : > { %v9073_v30 = vadd.f32 %v9072_v34, %v9071_v27  ;;  %v9185_v41 = vadd.f32 %v9184_v9, %v9183_v59  ;;  %v7716_v15 = vpop.xlane.xlu0 %7715  ;;  %v7774_v59 = vmul.f32 0.0078125, %v7714_v12  ;;  %v7835_v9 = vmul.f32 %v14771_v56, %v14771_v56 }
0x15cf   : > { %v9074_v49 = vpop.f32.mrf.mxu1  ;;  %v9186_v25 = vpop.f32.mrf.mxu0  ;;  %7765 = vadd.xlane.f32.xlu1 %v14766_v13  ;;  %v7775_v7 = vmul.f32 0.0078125, %v7716_v15  ;;  %v7836_v58 = vmul.f32 %v14780_v44, %v14780_v44 }
0x15d0   : > { %v7540_v8 = vadd.f32 %v9073_v30, %v14647_v17  ;;  %v7718_v20 = vpop.xlane.xlu1 %7717 }
0x15d1   : > { %v9187_v14 = vpop.f32.mrf.mxu0  ;;  %v9075_v38 = vpop.f32.mrf.mxu1 }
0x15d2   : > { %v9076_v4 = vadd.f32 %v9075_v38, %v9074_v49  ;;  %v14773_v47 = vadd.f32 %v9185_v41, %v7540_v8  ;;  %v9188_v57 = vadd.f32 %v9187_v14, %v9186_v25  ;;  %v7720_v30 = vpop.xlane.xlu0 %7719  ;;  %v7776_v25 = vmul.f32 0.0078125, %v7718_v20 }
0x15d3   : > { %v7777_v31 = vmul.f32 0.0078125, %v7720_v30  ;;  %v7837_v41 = vmul.f32 %v14783_v23, %v14783_v23 }
0x15d4   : > { %v7543_v27 = vadd.f32 %v9076_v4, %v14647_v17  ;;  %7767 = vadd.xlane.f32.xlu0 %v14773_v47  ;;  %v14789_v4 = vsub.f32 %v14662_v60, %v7774_v59  ;;  %v14792_v17 = vsub.f32 %v14666_v46, %v7775_v7  ;;  %v7722_v49 = vpop.xlane.xlu1 %7721  ;;  %v14799_v14 = vsub.f32 %v14670_v40, %v7776_v25 }
0x15d5   : > { %v14804_v46 = vsub.f32 %v14674_v24, %v7777_v31  ;;  %v7778_v38 = vmul.f32 0.0078125, %v7722_v49 }
0x15d6   : > { %v14785_v34 = vadd.f32 %v9188_v57, %v7543_v27  ;;  %v7724_v8 = vpop.xlane.xlu0 %7723  ;;  %v7838_v60 = vmul.f32 %v14789_v4, %v14789_v4  ;;  %v7839_v12 = vmul.f32 %v14792_v17, %v14792_v17  ;;  %v7840_v40 = vmul.f32 %v14799_v14, %v14799_v14 }
0x15d7   : > { %v7779_v35 = vmul.f32 0.0078125, %v7724_v8  ;;  %v14811_v27 = vsub.f32 %v14678_v0, %v7778_v38  ;;  %v7841_v7 = vmul.f32 %v14804_v46, %v14804_v46 }
0x15d8   : > { %7769 = vadd.xlane.f32.xlu1 %v14785_v34  ;;  %7867 = vadd.xlane.f32.xlu0 %v7835_v9  ;;  %v7726_v16 = vpop.xlane.xlu1 %7725 }
0x15d9   : > { %v7780_v57 = vmul.f32 0.0078125, %v7726_v16  ;;  %v14814_v59 = vsub.f32 %v14682_v10, %v7779_v35  ;;  %v7842_v10 = vmul.f32 %v14811_v27, %v14811_v27 }
0x15da   : > { %v7728_v15 = vpop.xlane.xlu0 %7727 }
0x15db   : > { %v7781_v24 = vmul.f32 0.0078125, %v7728_v15  ;;  %v14819_v30 = vsub.f32 %v14686_v37, %v7780_v57  ;;  %v7843_v49 = vmul.f32 %v14814_v59, %v14814_v59 }
0x15dc   : > { %7869 = vadd.xlane.f32.xlu1 %v7836_v58  ;;  %7871 = vadd.xlane.f32.xlu0 %v7837_v41  ;;  %v7730_v9 = vpop.xlane.xlu1 %7729 }
0x15dd   : > { %v7782_v25 = vmul.f32 0.0078125, %v7730_v9  ;;  %v14822_v31 = vsub.f32 %v14690_v6, %v7781_v24  ;;  %v7844_v37 = vmul.f32 %v14819_v30, %v14819_v30 }
0x15de   : > { %v7732_v20 = vpop.xlane.xlu0 %7731 }
0x15df   : > { %v7783_v0 = vmul.f32 0.0078125, %v7732_v20  ;;  %v14829_v8 = vsub.f32 %v14694_v3, %v7782_v25  ;;  %v7845_v35 = vmul.f32 %v14822_v31, %v14822_v31 }
0x15e0   : > { %7873 = vadd.xlane.f32.xlu1 %v7838_v60  ;;  %7875 = vadd.xlane.f32.xlu0 %v7839_v12  ;;  %v7734_v58 = vpop.xlane.xlu1 %7733 }
0x15e1   : > { %v14834_v6 = vsub.f32 %v14698_v1, %v7783_v0  ;;  %v7784_v60 = vmul.f32 0.0078125, %v7734_v58  ;;  %v7846_v12 = vmul.f32 %v14829_v8, %v14829_v8 }
0x15e2   : > { %v7736_v41 = vpop.xlane.xlu0 %7735 }
0x15e3   : > { %v7785_v38 = vmul.f32 0.0078125, %v7736_v41  ;;  %v14841_v3 = vsub.f32 %v14702_v39, %v7784_v60  ;;  %v7847_v1 = vmul.f32 %v14834_v6, %v14834_v6 }
0x15e4   : > { %7877 = vadd.xlane.f32.xlu1 %v7840_v40  ;;  %7879 = vadd.xlane.f32.xlu0 %v7841_v7  ;;  %v7738_v16 = vpop.xlane.xlu1 %7737 }
0x15e5   : > { %v14844_v15 = vsub.f32 %v14706_v55, %v7785_v38  ;;  %v7786_v57 = vmul.f32 0.0078125, %v7738_v16  ;;  %v7848_v24 = vmul.f32 %v14841_v3, %v14841_v3 }
0x15e7   : > { %v14849_v40 = vsub.f32 %v14710_v19, %v7786_v57  ;;  %v7849_v9 = vmul.f32 %v14844_v15, %v14844_v15 }
0x15e8   : > { %7881 = vadd.xlane.f32.xlu1 %v7842_v10  ;;  %7883 = vadd.xlane.f32.xlu0 %v7843_v49 }
0x15e9   : > { %v7850_v39 = vmul.f32 %v14849_v40, %v14849_v40 }
0x15ec   : > { %7885 = vadd.xlane.f32.xlu1 %v7844_v37  ;;  %7887 = vadd.xlane.f32.xlu0 %v7845_v35 }
0x15f0   : > { %7889 = vadd.xlane.f32.xlu1 %v7846_v12  ;;  %7891 = vadd.xlane.f32.xlu0 %v7847_v1 }
0x15f4   : > { %7893 = vadd.xlane.f32.xlu1 %v7848_v24  ;;  %7895 = vadd.xlane.f32.xlu0 %v7849_v9 }
0x15f8   : > { %7897 = vadd.xlane.f32.xlu1 %v7850_v39 }
0x1604   : > { %v7740_v55 = vpop.xlane.xlu0 %7739 }
0x1605   : > { %v7787_v7 = vmul.f32 0.0078125, %v7740_v55 }
0x1607   : > { %v14858_v20 = vsub.f32 %v14714_v18, %v7787_v7 }
0x1608   : > { %v7742_v25 = vpop.xlane.xlu1 %7741 }
0x1609   : > { %v7788_v19 = vmul.f32 0.0078125, %v7742_v25  ;;  %v7851_v0 = vmul.f32 %v14858_v20, %v14858_v20 }
0x160b   : > { %v14863_v10 = vsub.f32 %v14718_v32, %v7788_v19  ;;  %7899 = vadd.xlane.f32.xlu0 %v7851_v0 }
0x160c   : > { %v7744_v49 = vpop.xlane.xlu0 %7743 }
0x160d   : > { %v7789_v58 = vmul.f32 0.0078125, %v7744_v49  ;;  %v7852_v41 = vmul.f32 %v14863_v10, %v14863_v10 }
0x160f   : > { %v14868_v37 = vsub.f32 %v14722_v33, %v7789_v58  ;;  %7901 = vadd.xlane.f32.xlu1 %v7852_v41 }
0x1610   : > { %v7746_v18 = vpop.xlane.xlu1 %7745 }
0x1611   : > { %v7790_v60 = vmul.f32 0.0078125, %v7746_v18  ;;  %v7853_v38 = vmul.f32 %v14868_v37, %v14868_v37 }
0x1613   : > { %v14873_v35 = vsub.f32 %v14726_v26, %v7790_v60  ;;  %7903 = vadd.xlane.f32.xlu0 %v7853_v38 }
0x1614   : > { %v7748_v32 = vpop.xlane.xlu0 %7747 }
0x1615   : > { %v7791_v16 = vmul.f32 0.0078125, %v7748_v32  ;;  %v7854_v12 = vmul.f32 %v14873_v35, %v14873_v35 }
0x1617   : > { %v14878_v57 = vsub.f32 %v14730_v43, %v7791_v16  ;;  %7905 = vadd.xlane.f32.xlu1 %v7854_v12 }
0x1618   : > { %v7750_v33 = vpop.xlane.xlu1 %7749 }
0x1619   : > { %v7792_v1 = vmul.f32 0.0078125, %v7750_v33  ;;  %v7855_v24 = vmul.f32 %v14878_v57, %v14878_v57 }
0x161b   : > { %v14883_v9 = vsub.f32 %v14734_v62, %v7792_v1  ;;  %7907 = vadd.xlane.f32.xlu0 %v7855_v24 }
0x161c   : > { %v7752_v26 = vpop.xlane.xlu0 %7751 }
0x161d   : > { %v7793_v39 = vmul.f32 0.0078125, %v7752_v26  ;;  %v7856_v55 = vmul.f32 %v14883_v9, %v14883_v9 }
0x161f   : > { %v14888_v7 = vsub.f32 %v14738_v36, %v7793_v39  ;;  %7909 = vadd.xlane.f32.xlu1 %v7856_v55 }
0x1620   : > { %v7754_v43 = vpop.xlane.xlu1 %7753 }
0x1621   : > { %v7794_v25 = vmul.f32 0.0078125, %v7754_v43  ;;  %v7857_v19 = vmul.f32 %v14888_v7, %v14888_v7 }
0x1623   : > { %v14893_v0 = vsub.f32 %v14742_v11, %v7794_v25  ;;  %7911 = vadd.xlane.f32.xlu0 %v7857_v19 }
0x1625   : > { %v7858_v62 = vmul.f32 %v14893_v0, %v14893_v0 }
0x1627   : > { %7913 = vadd.xlane.f32.xlu1 %v7858_v62 }
0x1642   : > { %v7756_v49 = vpop.xlane.xlu0 %7755 }
0x1643   : > { %v7795_v58 = vmul.f32 0.0078125, %v7756_v49 }
0x1645   : > { %v14898_v41 = vsub.f32 %v14746_v29, %v7795_v58 }
0x1646   : > { %v7758_v36 = vpop.xlane.xlu1 %7757 }
0x1647   : > { %v7796_v18 = vmul.f32 0.0078125, %v7758_v36  ;;  %v7859_v60 = vmul.f32 %v14898_v41, %v14898_v41 }
0x1649   : > { %v14903_v38 = vsub.f32 %v14750_v61, %v7796_v18  ;;  %7915 = vadd.xlane.f32.xlu0 %v7859_v60 }
0x164a   : > { %v7760_v11 = vpop.xlane.xlu0 %7759 }
0x164b   : > { %v7797_v32 = vmul.f32 0.0078125, %v7760_v11  ;;  %v7860_v16 = vmul.f32 %v14903_v38, %v14903_v38 }
0x164d   : > { %v14908_v12 = vsub.f32 %v14754_v22, %v7797_v32  ;;  %7917 = vadd.xlane.f32.xlu1 %v7860_v16 }
0x164e   : > { %v7762_v29 = vpop.xlane.xlu1 %7761 }
0x164f   : > { %v7798_v33 = vmul.f32 0.0078125, %v7762_v29  ;;  %v7861_v1 = vmul.f32 %v14908_v12, %v14908_v12 }
0x1651   : > { %v14913_v24 = vsub.f32 %v14758_v50, %v7798_v33  ;;  %7919 = vadd.xlane.f32.xlu0 %v7861_v1 }
0x1653   : > { %v7862_v61 = vmul.f32 %v14913_v24, %v14913_v24 }
0x1654   : > { %v7764_v26 = vpop.xlane.xlu0 %7763 }
0x1655   : > { %7921 = vadd.xlane.f32.xlu1 %v7862_v61  ;;  %v7799_v39 = vmul.f32 0.0078125, %v7764_v26 }
0x1657   : > { %v14918_v55 = vsub.f32 %v14762_v21, %v7799_v39 }
0x1658   : > { %v7766_v22 = vpop.xlane.xlu1 %7765 }
0x1659   : > { %v7800_v43 = vmul.f32 0.0078125, %v7766_v22  ;;  %v7863_v25 = vmul.f32 %v14918_v55, %v14918_v55 }
0x165b   : > { %v14923_v19 = vsub.f32 %v14766_v13, %v7800_v43  ;;  %7923 = vadd.xlane.f32.xlu0 %v7863_v25 }
0x165d   : > { %v7768_v50 = vpop.xlane.xlu0 %7767  ;;  %v7864_v49 = vmul.f32 %v14923_v19, %v14923_v19 }
0x165e   : > { %v7801_v62 = vmul.f32 0.0078125, %v7768_v50 }
0x165f   : > { %7925 = vadd.xlane.f32.xlu1 %v7864_v49 }
0x1660   : > { %v14928_v58 = vsub.f32 %v14773_v47, %v7801_v62 }
0x1661   : > { %v7770_v21 = vpop.xlane.xlu1 %7769  ;;  %v7868_v36 = vpop.xlane.xlu0 %7867 }
0x1662   : > { %v7802_v18 = vmul.f32 0.0078125, %v7770_v21  ;;  %v7931_v60 = vmul.f32 0.0078125, %v7868_v36  ;;  %v7865_v11 = vmul.f32 %v14928_v58, %v14928_v58 }
0x1664   : > { %v14933_v13 = vsub.f32 %v14785_v34, %v7802_v18  ;;  %v7963_v32 = vadd.f32 1e-05, %v7931_v60  ;;  %7927 = vadd.xlane.f32.xlu0 %v7865_v11 }
0x1665   : > { %v7870_v16 = vpop.xlane.xlu1 %7869  ;;  %v7872_v29 = vpop.xlane.xlu0 %7871 }
0x1666   : > { %10652 = vrsqrt.f32 %v7963_v32  ;;  %v7932_v33 = vmul.f32 0.0078125, %v7870_v16  ;;  %v7933_v1 = vmul.f32 0.0078125, %v7872_v29  ;;  %v7866_v47 = vmul.f32 %v14933_v13, %v14933_v13 }
0x1668   : > { %v7964_v61 = vadd.f32 1e-05, %v7932_v33  ;;  %v7965_v26 = vadd.f32 1e-05, %v7933_v1  ;;  %7929 = vadd.xlane.f32.xlu1 %v7866_v47  ;;  %v14942_v1 = vld [vmem:[%s723_s5] ss:$0 sm:$0xff] }
0x1669   : > { %v7874_v39 = vpop.xlane.xlu1 %7873  ;;  %v7876_v22 = vpop.xlane.xlu0 %7875 }
0x166a   : > { %10654 = vrsqrt.f32 %v7964_v61  ;;  %v7934_v43 = vmul.f32 0.0078125, %v7874_v39  ;;  %v7935_v25 = vmul.f32 0.0078125, %v7876_v22  ;;  %v14950_v39 = vld [vmem:[%s726_s9] ss:$0 sm:$0xff]  ;;  %s15747_s9 = sld [smem:[#allocation10_spill]] }
0x166b   : > { %10656 = vrsqrt.f32 %v7965_v26 }
0x166c   : > { %v7966_v34 = vadd.f32 1e-05, %v7934_v43  ;;  %v7967_v50 = vadd.f32 1e-05, %v7935_v25 }
0x166d   : > { %v7878_v62 = vpop.xlane.xlu1 %7877  ;;  %v7880_v49 = vpop.xlane.xlu0 %7879 }
0x166e   : > { %10658 = vrsqrt.f32 %v7966_v34  ;;  %v7936_v21 = vmul.f32 0.0078125, %v7878_v62  ;;  %v7937_v36 = vmul.f32 0.0078125, %v7880_v49 }
0x166f   : > { %10660 = vrsqrt.f32 %v7967_v50 }
0x1670   : > { %v7968_v18 = vadd.f32 1e-05, %v7936_v21  ;;  %v7969_v60 = vadd.f32 1e-05, %v7937_v36  ;;  %p8648_p1 = scmp.ne.s32.totalorder %s15747_s9, 5 }
0x1671   : > { %v7882_v11 = vpop.xlane.xlu1 %7881  ;;  %v7884_v32 = vpop.xlane.xlu0 %7883 }
0x1672   : > { %10662 = vrsqrt.f32 %v7968_v18  ;;  %v7938_v16 = vmul.f32 0.0078125, %v7882_v11  ;;  %v7939_v29 = vmul.f32 0.0078125, %v7884_v32 }
0x1673   : > { %v10653_v33 = vpop.eup %10652  ;;  %10664 = vrsqrt.f32 %v7969_v60 }
0x1674   : > { %v8027_v47 = vmul.f32 %v10653_v33, %v14771_v56  ;;  %v7970_v61 = vadd.f32 1e-05, %v7938_v16  ;;  %v7971_v26 = vadd.f32 1e-05, %v7939_v29 }
0x1675   : > { %v7886_v22 = vpop.xlane.xlu1 %7885  ;;  %v7888_v43 = vpop.xlane.xlu0 %7887 }
0x1676   : > { %v8066_v25 = vmul.f32 %v14942_v1, %v8027_v47  ;;  %10666 = vrsqrt.f32 %v7970_v61  ;;  %v7940_v34 = vmul.f32 0.0078125, %v7886_v22  ;;  %v7941_v50 = vmul.f32 0.0078125, %v7888_v43 }
0x1677   : > { %v10655_v62 = vpop.eup %10654  ;;  %10668 = vrsqrt.f32 %v7971_v26 }
0x1678   : > { %v10657_v49 = vpop.eup %10656  ;;  %v8105_v56 = vadd.f32 %v14950_v39, %v8066_v25  ;;  %v8028_v21 = vmul.f32 %v10655_v62, %v14780_v44  ;;  %v7972_v36 = vadd.f32 1e-05, %v7940_v34  ;;  %v7973_v18 = vadd.f32 1e-05, %v7941_v50 }
0x1679   : > { %v8029_v60 = vmul.f32 %v10657_v49, %v14783_v23  ;;  %v7890_v11 = vpop.xlane.xlu1 %7889  ;;  %v7892_v32 = vpop.xlane.xlu0 %7891 }
0x167a   : > { %v14957_v16 = vadd.f32 %v8105_v56, %v14168_v5  ;;  %v8067_v29 = vmul.f32 %v14942_v1, %v8028_v21  ;;  %10670 = vrsqrt.f32 %v7972_v36  ;;  %v7942_v33 = vmul.f32 0.0078125, %v7890_v11 }
0x167b   : > { %v10659_v47 = vpop.eup %10658  ;;  %v8068_v61 = vmul.f32 %v14942_v1, %v8029_v60  ;;  %10672 = vrsqrt.f32 %v7973_v18  ;;  %v7943_v26 = vmul.f32 0.0078125, %v7892_v32 }
0x167c   : > { %v10661_v22 = vpop.eup %10660  ;;  %8169 = vst [vmem:[#allocation2 + $0xb0] sm:$0xff] %v14957_v16  ;;  %v8106_v44 = vadd.f32 %v14950_v39, %v8067_v29  ;;  %v8030_v23 = vmul.f32 %v10659_v47, %v14789_v4  ;;  %v7974_v43 = vadd.f32 1e-05, %v7942_v33 }
0x167d   : > { %v8107_v5 = vadd.f32 %v14950_v39, %v8068_v61  ;;  %v8031_v25 = vmul.f32 %v10661_v22, %v14792_v17  ;;  %v7975_v34 = vadd.f32 1e-05, %v7943_v26  ;;  %v7894_v50 = vpop.xlane.xlu1 %7893  ;;  %v7896_v62 = vpop.xlane.xlu0 %7895 }
0x167e   : > { %v14967_v49 = vadd.f32 %v8106_v44, %v14170_v54  ;;  %v8069_v56 = vmul.f32 %v14942_v1, %v8030_v23  ;;  %10674 = vrsqrt.f32 %v7974_v43  ;;  %v7944_v21 = vmul.f32 0.0078125, %v7894_v50 }
0x167f   : > { %v10663_v36 = vpop.eup %10662  ;;  %v14971_v18 = vadd.f32 %v8107_v5, %v14183_v28  ;;  %v8070_v4 = vmul.f32 %v14942_v1, %v8031_v25  ;;  %10676 = vrsqrt.f32 %v7975_v34  ;;  %v7945_v60 = vmul.f32 0.0078125, %v7896_v62 }
0x1680   : > { %v10665_v11 = vpop.eup %10664  ;;  %8170 = vst [vmem:[#allocation2] sm:$0xff] %v14967_v49  ;;  %v8108_v17 = vadd.f32 %v14950_v39, %v8069_v56  ;;  %v8032_v54 = vmul.f32 %v10663_v36, %v14799_v14  ;;  %v7976_v32 = vadd.f32 1e-05, %v7944_v21 }
0x1681   : > { %8171 = vst [vmem:[#allocation2 + $0xd8] sm:$0xff] %v14971_v18  ;;  %v8109_v29 = vadd.f32 %v14950_v39, %v8070_v4  ;;  %v8033_v33 = vmul.f32 %v10665_v11, %v14804_v46  ;;  %v7977_v28 = vadd.f32 1e-05, %v7945_v60  ;;  %v7898_v47 = vpop.xlane.xlu1 %7897 }
0x1682   : > { %v14981_v61 = vadd.f32 %v8108_v17, %v14185_v51  ;;  %v8071_v26 = vmul.f32 %v14942_v1, %v8032_v54  ;;  %10678 = vrsqrt.f32 %v7976_v32  ;;  %v7946_v22 = vmul.f32 0.0078125, %v7898_v47 }
0x1683   : > { %v10667_v44 = vpop.eup %10666  ;;  %v14985_v23 = vadd.f32 %v8109_v29, %v14196_v48  ;;  %v8072_v14 = vmul.f32 %v14942_v1, %v8033_v33  ;;  %10680 = vrsqrt.f32 %v7977_v28 }
0x1684   : > { %v10669_v43 = vpop.eup %10668  ;;  %8172 = vst [vmem:[#allocation2 + $0x18] sm:$0xff] %v14981_v61  ;;  %v8110_v46 = vadd.f32 %v14950_v39, %v8071_v26  ;;  %v8034_v5 = vmul.f32 %v10667_v44, %v14811_v27  ;;  %v7978_v51 = vadd.f32 1e-05, %v7946_v22 }
0x1685   : > { %8173 = vst [vmem:[#allocation2 + $0x50] sm:$0xff] %v14985_v23  ;;  %v8111_v25 = vadd.f32 %v14950_v39, %v8072_v14  ;;  %v8035_v34 = vmul.f32 %v10669_v43, %v14814_v59  ;;  %v15726_v14 = vld [vmem:[#allocation50_spill] sm:$0xff] }
0x1686   : > { %v14995_v48 = vadd.f32 %v8110_v46, %v14198_v42  ;;  %v8073_v50 = vmul.f32 %v14942_v1, %v8034_v5  ;;  %10682 = vrsqrt.f32 %v7978_v51  ;;  %v15727_v5 = vld [vmem:[#allocation54_spill] sm:$0xff] }
0x1687   : > { %v10671_v62 = vpop.eup %10670  ;;  %v14999_v56 = vadd.f32 %v8111_v25, %v14246_v53  ;;  %v8074_v21 = vmul.f32 %v14942_v1, %v8035_v34 }
0x1688   : > { %v10673_v27 = vpop.eup %10672  ;;  %8174 = vst [vmem:[#allocation2 + $0x68] sm:$0xff] %v14995_v48  ;;  %v8112_v36 = vadd.f32 %v14950_v39, %v8073_v50  ;;  %v8036_v4 = vmul.f32 %v10671_v62, %v14819_v30 }
0x1689   : > { %8175 = vst [vmem:[#allocation2 + $0x30] sm:$0xff] %v14999_v56  ;;  %v8113_v42 = vadd.f32 %v14950_v39, %v8074_v21  ;;  %v8037_v59 = vmul.f32 %v10673_v27, %v14822_v31  ;;  %v15728_v21 = vld [vmem:[#allocation51_spill] sm:$0xff] }
0x168a   : > { %v15009_v60 = vadd.f32 %v8112_v36, %v14248_v63  ;;  %v8075_v53 = vmul.f32 %v14942_v1, %v8036_v4 }
0x168b   : > { %v10675_v11 = vpop.eup %10674  ;;  %v15013_v17 = vadd.f32 %v8113_v42, %v14264_v52  ;;  %v8076_v54 = vmul.f32 %v14942_v1, %v8037_v59  ;;  %v15729_v42 = vld [vmem:[#allocation37_spill] sm:$0xff] }
0x168c   : > { %v10677_v32 = vpop.eup %10676  ;;  %8176 = vst [vmem:[#allocation2 + $0x48] sm:$0xff] %v15009_v60  ;;  %v8114_v30 = vadd.f32 %v14950_v39, %v8075_v53  ;;  %v8038_v29 = vmul.f32 %v10675_v11, %v14829_v8 }
0x168d   : > { %8177 = vst [vmem:[#allocation2 + $0x80] sm:$0xff] %v15013_v17  ;;  %v8115_v63 = vadd.f32 %v14950_v39, %v8076_v54  ;;  %v8039_v31 = vmul.f32 %v10677_v32, %v14834_v6  ;;  %v15730_v54 = vld [vmem:[#allocation55_spill] sm:$0xff] }
0x168e   : > { %v15023_v33 = vadd.f32 %v8114_v30, %v14266_v45  ;;  %v8077_v52 = vmul.f32 %v14942_v1, %v8038_v29 }
0x168f   : > { %v10679_v28 = vpop.eup %10678  ;;  %v15027_v47 = vadd.f32 %v8115_v63, %v14279_v2  ;;  %v8078_v26 = vmul.f32 %v14942_v1, %v8039_v31 }
0x1690   : > { %v10681_v22 = vpop.eup %10680  ;;  %8178 = vst [vmem:[#allocation2 + $0x88] sm:$0xff] %v15023_v33  ;;  %v8116_v8 = vadd.f32 %v14950_v39, %v8077_v52  ;;  %v8040_v44 = vmul.f32 %v10679_v28, %v14841_v3 }
0x1691   : > { %8179 = vst [vmem:[#allocation2 + $0xe8] sm:$0xff] %v15027_v47  ;;  %v8117_v45 = vadd.f32 %v14950_v39, %v8078_v26  ;;  %v8041_v6 = vmul.f32 %v10681_v22, %v14844_v15 }
0x1692   : > { %v15037_v43 = vadd.f32 %v8116_v8, %v15726_v14  ;;  %v8079_v2 = vmul.f32 %v14942_v1, %v8040_v44 }
0x1693   : > { %v10683_v46 = vpop.eup %10682  ;;  %v15041_v51 = vadd.f32 %v8117_v45, %v15727_v5  ;;  %v8080_v25 = vmul.f32 %v14942_v1, %v8041_v6 }
0x1694   : > { %v7900_v34 = vpop.xlane.xlu0 %7899  ;;  %8180 = vst [vmem:[#allocation2 + $0xb8] sm:$0xff] %v15037_v43  ;;  %v8118_v3 = vadd.f32 %v14950_v39, %v8079_v2  ;;  %v8042_v50 = vmul.f32 %v10683_v46, %v14849_v40 }
0x1695   : > { %v7947_v62 = vmul.f32 0.0078125, %v7900_v34  ;;  %8181 = vst [vmem:[#allocation2 + $0x60] sm:$0xff] %v15041_v51  ;;  %v8119_v15 = vadd.f32 %v14950_v39, %v8080_v25 }
0x1696   : > { %v15050_v27 = vadd.f32 %v8118_v3, %v15728_v21  ;;  %v8081_v36 = vmul.f32 %v14942_v1, %v8042_v50 }
0x1697   : > { %v7979_v4 = vadd.f32 1e-05, %v7947_v62  ;;  %v15054_v59 = vadd.f32 %v8119_v15, %v15729_v42  ;;  %v15731_v62 = vld [vmem:[#allocation34_spill] sm:$0xff] }
0x1698   : > { %v7902_v53 = vpop.xlane.xlu1 %7901  ;;  %8182 = vst [vmem:[#allocation2 + $0xf0] sm:$0xff] %v15050_v27  ;;  %v8120_v11 = vadd.f32 %v14950_v39, %v8081_v36 }
0x1699   : > { %10684 = vrsqrt.f32 %v7979_v4  ;;  %v7948_v40 = vmul.f32 0.0078125, %v7902_v53  ;;  %8183 = vst [vmem:[#allocation2 + $0x8] sm:$0xff] %v15054_v59 }
0x169a   : > { %v15060_v32 = vadd.f32 %v8120_v11, %v15730_v54 }
0x169b   : > { %v7980_v30 = vadd.f32 1e-05, %v7948_v40  ;;  %v15732_v40 = vld [vmem:[#allocation38_spill] sm:$0xff] }
0x169c   : > { %v7904_v29 = vpop.xlane.xlu0 %7903  ;;  %8184 = vst [vmem:[#allocation2 + $0x78] sm:$0xff] %v15060_v32 }
0x169d   : > { %10686 = vrsqrt.f32 %v7980_v30  ;;  %v7949_v63 = vmul.f32 0.0078125, %v7904_v29 }
0x169f   : > { %v7981_v31 = vadd.f32 1e-05, %v7949_v63 }
0x16a0   : > { %v7906_v52 = vpop.xlane.xlu1 %7905 }
0x16a1   : > { %10688 = vrsqrt.f32 %v7981_v31  ;;  %v7950_v28 = vmul.f32 0.0078125, %v7906_v52 }
0x16a3   : > { %v7982_v26 = vadd.f32 1e-05, %v7950_v28  ;;  %v15733_v28 = vld [vmem:[#allocation32_spill] sm:$0xff] }
0x16a4   : > { %v7908_v22 = vpop.xlane.xlu0 %7907 }
0x16a5   : > { %10690 = vrsqrt.f32 %v7982_v26  ;;  %v7951_v8 = vmul.f32 0.0078125, %v7908_v22 }
0x16a6   : > { %v10685_v44 = vpop.eup %10684 }
0x16a7   : > { %v8043_v45 = vmul.f32 %v10685_v44, %v14858_v20  ;;  %v7983_v6 = vadd.f32 1e-05, %v7951_v8 }
0x16a8   : > { %v7910_v14 = vpop.xlane.xlu1 %7909 }
0x16a9   : > { %v8082_v2 = vmul.f32 %v14942_v1, %v8043_v45  ;;  %10692 = vrsqrt.f32 %v7983_v6  ;;  %v7952_v46 = vmul.f32 0.0078125, %v7910_v14  ;;  %v15734_v45 = vld [vmem:[#allocation31_spill] sm:$0xff] }
0x16aa   : > { %v10687_v5 = vpop.eup %10686 }
0x16ab   : > { %v8121_v25 = vadd.f32 %v14950_v39, %v8082_v2  ;;  %v8044_v34 = vmul.f32 %v10687_v5, %v14863_v10  ;;  %v7984_v3 = vadd.f32 1e-05, %v7952_v46  ;;  %v15735_v5 = vld [vmem:[#allocation27_spill] sm:$0xff] }
0x16ac   : > { %v7912_v50 = vpop.xlane.xlu0 %7911 }
0x16ad   : > { %v15068_v15 = vadd.f32 %v8121_v25, %v15731_v62  ;;  %v8083_v21 = vmul.f32 %v14942_v1, %v8044_v34  ;;  %10694 = vrsqrt.f32 %v7984_v3  ;;  %v7953_v20 = vmul.f32 0.0078125, %v7912_v50  ;;  %v15736_v62 = vld [vmem:[#allocation28_spill] sm:$0xff] }
0x16ae   : > { %v10689_v36 = vpop.eup %10688 }
0x16af   : > { %8185 = vst [vmem:[#allocation2 + $0x38] sm:$0xff] %v15068_v15  ;;  %v8122_v4 = vadd.f32 %v14950_v39, %v8083_v21  ;;  %v8045_v42 = vmul.f32 %v10689_v36, %v14868_v37  ;;  %v7985_v53 = vadd.f32 1e-05, %v7953_v20 }
0x16b0   : > { %v7914_v11 = vpop.xlane.xlu1 %7913 }
0x16b1   : > { %v15075_v10 = vadd.f32 %v8122_v4, %v15732_v40  ;;  %v8084_v54 = vmul.f32 %v14942_v1, %v8045_v42  ;;  %10696 = vrsqrt.f32 %v7985_v53  ;;  %v7954_v30 = vmul.f32 0.0078125, %v7914_v11  ;;  %v15737_v42 = vld [vmem:[#allocation23_spill] sm:$0xff]  ;;  %v15738_v40 = vld [vmem:[#allocation24_spill] sm:$0xff] }
0x16b2   : > { %v10691_v29 = vpop.eup %10690 }
0x16b3   : > { %8186 = vst [vmem:[#allocation2 + $0x58] sm:$0xff] %v15075_v10  ;;  %v8123_v63 = vadd.f32 %v14950_v39, %v8084_v54  ;;  %v8046_v31 = vmul.f32 %v10691_v29, %v14873_v35  ;;  %v7986_v52 = vadd.f32 1e-05, %v7954_v30 }
0x16b5   : > { %v15082_v26 = vadd.f32 %v8123_v63, %v15733_v28  ;;  %v8085_v37 = vmul.f32 %v14942_v1, %v8046_v31  ;;  %10698 = vrsqrt.f32 %v7986_v52 }
0x16b6   : > { %v10693_v22 = vpop.eup %10692 }
0x16b7   : > { %8187 = vst [vmem:[#allocation2 + $0x40] sm:$0xff] %v15082_v26  ;;  %v8124_v8 = vadd.f32 %v14950_v39, %v8085_v37  ;;  %v8047_v44 = vmul.f32 %v10693_v22, %v14878_v57 }
0x16b9   : > { %v15089_v6 = vadd.f32 %v8124_v8, %v15734_v45  ;;  %v8086_v14 = vmul.f32 %v14942_v1, %v8047_v44 }
0x16ba   : > { %v10695_v35 = vpop.eup %10694 }
0x16bb   : > { %8188 = vst [vmem:[#allocation2 + $0xc8] sm:$0xff] %v15089_v6  ;;  %v8125_v2 = vadd.f32 %v14950_v39, %v8086_v14  ;;  %v8048_v46 = vmul.f32 %v10695_v35, %v14883_v9 }
0x16bd   : > { %v15096_v25 = vadd.f32 %v8125_v2, %v15735_v5  ;;  %v8087_v34 = vmul.f32 %v14942_v1, %v8048_v46 }
0x16be   : > { %v10697_v3 = vpop.eup %10696 }
0x16bf   : > { %8189 = vst [vmem:[#allocation2 + $0xe0] sm:$0xff] %v15096_v25  ;;  %v8126_v57 = vadd.f32 %v14950_v39, %v8087_v34  ;;  %v8049_v50 = vmul.f32 %v10697_v3, %v14888_v7 }
0x16c1   : > { %v15103_v21 = vadd.f32 %v8126_v57, %v15736_v62  ;;  %v8088_v20 = vmul.f32 %v14942_v1, %v8049_v50 }
0x16c2   : > { %v10699_v36 = vpop.eup %10698 }
0x16c3   : > { %8190 = vst [vmem:[#allocation2 + $0x90] sm:$0xff] %v15103_v21  ;;  %v8127_v9 = vadd.f32 %v14950_v39, %v8088_v20  ;;  %v8050_v4 = vmul.f32 %v10699_v36, %v14893_v0  ;;  %v15739_v20 = vld [vmem:[#allocation76_spill] sm:$0xff] }
0x16c5   : > { %v15110_v53 = vadd.f32 %v8127_v9, %v15737_v42  ;;  %v8089_v11 = vmul.f32 %v14942_v1, %v8050_v4 }
0x16c7   : > { %8191 = vst [vmem:[#allocation2 + $0x70] sm:$0xff] %v15110_v53  ;;  %v8128_v7 = vadd.f32 %v14950_v39, %v8089_v11 }
0x16c9   : > { %v15116_v54 = vadd.f32 %v8128_v7, %v15738_v40 }
0x16cb   : > { %8192 = vst [vmem:[#allocation2 + $0xc0] sm:$0xff] %v15116_v54 }
0x16d2   : > { %v7916_v30 = vpop.xlane.xlu0 %7915 }
0x16d3   : > { %v7955_v29 = vmul.f32 0.0078125, %v7916_v30  ;;  %v15740_v30 = vld [vmem:[#allocation83_spill] sm:$0xff] }
0x16d5   : > { %v7987_v63 = vadd.f32 1e-05, %v7955_v29 }
0x16d6   : > { %v7918_v31 = vpop.xlane.xlu1 %7917 }
0x16d7   : > { %10700 = vrsqrt.f32 %v7987_v63  ;;  %v7956_v0 = vmul.f32 0.0078125, %v7918_v31 }
0x16d9   : > { %v7988_v52 = vadd.f32 1e-05, %v7956_v0 }
0x16da   : > { %v7920_v28 = vpop.xlane.xlu0 %7919 }
0x16db   : > { %10702 = vrsqrt.f32 %v7988_v52  ;;  %v7957_v37 = vmul.f32 0.0078125, %v7920_v28 }
0x16dd   : > { %v7989_v22 = vadd.f32 1e-05, %v7957_v37 }
0x16de   : > { %v7922_v8 = vpop.xlane.xlu1 %7921 }
0x16df   : > { %10704 = vrsqrt.f32 %v7989_v22  ;;  %v7958_v44 = vmul.f32 0.0078125, %v7922_v8  ;;  %v15741_v22 = vld [vmem:[#allocation73_spill] sm:$0xff] }
0x16e1   : > { %v7990_v45 = vadd.f32 1e-05, %v7958_v44 }
0x16e3   : > { %10706 = vrsqrt.f32 %v7990_v45 }
0x16e4   : > { %v10701_v14 = vpop.eup %10700  ;;  %v7924_v2 = vpop.xlane.xlu0 %7923 }
0x16e5   : > { %v8051_v35 = vmul.f32 %v10701_v14, %v14898_v41  ;;  %v7959_v5 = vmul.f32 0.0078125, %v7924_v2 }
0x16e7   : > { %v8090_v46 = vmul.f32 %v14942_v1, %v8051_v35  ;;  %v7991_v50 = vadd.f32 1e-05, %v7959_v5  ;;  %v15742_v35 = vld [vmem:[#allocation74_spill] sm:$0xff] }
0x16e8   : > { %v10703_v34 = vpop.eup %10702  ;;  %v7926_v62 = vpop.xlane.xlu1 %7925 }
0x16e9   : > { %v8129_v3 = vadd.f32 %v14950_v39, %v8090_v46  ;;  %v8052_v57 = vmul.f32 %v10703_v34, %v14903_v38  ;;  %10708 = vrsqrt.f32 %v7991_v50  ;;  %v7960_v4 = vmul.f32 0.0078125, %v7926_v62  ;;  %v15743_v50 = vld [vmem:[#allocation70_spill] sm:$0xff] }
0x16eb   : > { %v15124_v36 = vadd.f32 %v8129_v3, %v15739_v20  ;;  %v8091_v9 = vmul.f32 %v14942_v1, %v8052_v57  ;;  %v7992_v7 = vadd.f32 1e-05, %v7960_v4 }
0x16ec   : > { %v10705_v42 = vpop.eup %10704 }
0x16ed   : > { %8193 = vst [vmem:[#allocation2 + $0xa8] sm:$0xff] %v15124_v36  ;;  %v8130_v41 = vadd.f32 %v14950_v39, %v8091_v9  ;;  %v8053_v11 = vmul.f32 %v10705_v42, %v14908_v12  ;;  %v7928_v40 = vpop.xlane.xlu0 %7927  ;;  %10710 = vrsqrt.f32 %v7992_v7 }
0x16ee   : > { %v7961_v63 = vmul.f32 0.0078125, %v7928_v40 }
0x16ef   : > { %v15131_v38 = vadd.f32 %v8130_v41, %v15740_v30  ;;  %v8092_v29 = vmul.f32 %v14942_v1, %v8053_v11  ;;  %v15744_v41 = vld [vmem:[#allocation71_spill] sm:$0xff] }
0x16f0   : > { %v10707_v31 = vpop.eup %10706  ;;  %v7993_v28 = vadd.f32 1e-05, %v7961_v63  ;;  %v15745_v30 = vld [vmem:[#allocation67_spill] sm:$0xff] }
0x16f1   : > { %8194 = vst [vmem:[#allocation2 + $0xd0] sm:$0xff] %v15131_v38  ;;  %v8131_v0 = vadd.f32 %v14950_v39, %v8092_v29  ;;  %v8054_v52 = vmul.f32 %v10707_v31, %v14913_v24  ;;  %v7930_v37 = vpop.xlane.xlu1 %7929 }
0x16f2   : > { %10712 = vrsqrt.f32 %v7993_v28  ;;  %v7962_v44 = vmul.f32 0.0078125, %v7930_v37 }
0x16f3   : > { %v8163_v12 = vadd.f32 %v8131_v0, %v15741_v22  ;;  %v8093_v8 = vmul.f32 %v14942_v1, %v8054_v52  ;;  %v15746_v0 = vld [vmem:[#allocation68_spill] sm:$0xff] }
0x16f4   : > { %v7994_v14 = vadd.f32 1e-05, %v7962_v44 }
0x16f5   : > { %8195 = vst [vmem:[#allocation2 + $0x10] sm:$0xff] %v8163_v12  ;;  %v8132_v45 = vadd.f32 %v14950_v39, %v8093_v8 }
0x16f6   : > { %10714 = vrsqrt.f32 %v7994_v14  ;;  %v10709_v46 = vpop.eup %10708 }
0x16f7   : > { %v8164_v2 = vadd.f32 %v8132_v45, %v15742_v35  ;;  %v8055_v5 = vmul.f32 %v10709_v46, %v14918_v55 }
0x16f9   : > { %8196 = vst [vmem:[#allocation2 + $0x28] sm:$0xff] %v8164_v2  ;;  %v8094_v24 = vmul.f32 %v14942_v1, %v8055_v5 }
0x16fa   : > { %v10711_v34 = vpop.eup %10710 }
0x16fb   : > { %v8133_v3 = vadd.f32 %v14950_v39, %v8094_v24  ;;  %v8056_v57 = vmul.f32 %v10711_v34, %v14923_v19 }
0x16fd   : > { %v8165_v62 = vadd.f32 %v8133_v3, %v15743_v50  ;;  %v8095_v20 = vmul.f32 %v14942_v1, %v8056_v57 }
0x16ff   : > { %v10713_v9 = vpop.eup %10712  ;;  %8197 = vst [vmem:[#allocation2 + $0xa0] sm:$0xff] %v8165_v62  ;;  %v8134_v4 = vadd.f32 %v14950_v39, %v8095_v20 }
0x1700   : > { %v8057_v42 = vmul.f32 %v10713_v9, %v14928_v58 }
0x1701   : > { %v8166_v11 = vadd.f32 %v8134_v4, %v15744_v41 }
0x1702   : > { %v8096_v55 = vmul.f32 %v14942_v1, %v8057_v42 }
0x1703   : > { %v10715_v7 = vpop.eup %10714  ;;  %8198 = vst [vmem:[#allocation2 + $0xf8] sm:$0xff] %v8166_v11 }
0x1704   : > { %v8135_v40 = vadd.f32 %v14950_v39, %v8096_v55  ;;  %v8058_v19 = vmul.f32 %v10715_v7, %v14933_v13 }
0x1706   : > { %v8167_v29 = vadd.f32 %v8135_v40, %v15745_v30  ;;  %v8097_v63 = vmul.f32 %v14942_v1, %v8058_v19 }
0x1708   : > { %8199 = vst [vmem:[#allocation2 + $0x20] sm:$0xff] %v8167_v29  ;;  %v8136_v31 = vadd.f32 %v14950_v39, %v8097_v63  ;;  %8204 = sbr.rel (%p8648_p1) target bundleno = 5917 (0x171d), region = 88 }
0x170a   : > { %v8168_v52 = vadd.f32 %v8136_v31, %v15746_v0 }
0x170c   : > { %8200 = vst [vmem:[#allocation2 + $0x98] sm:$0xff] %v8168_v52 }
0x170d   : > { %8205 = vst [vmem:[%s11077_s15] sm:$0xff] %v14957_v16  ;;  %8206 = vst [vmem:[%s11077_s15 + $0x8] sm:$0xff] %v14967_v49 }
0x170e   : > { %8207 = vst [vmem:[%s11077_s15 + $0x10] sm:$0xff] %v14971_v18  ;;  %8208 = vst [vmem:[%s11077_s15 + $0x18] sm:$0xff] %v14981_v61 }
0x170f   : > { %8209 = vst [vmem:[%s11077_s15 + $0x20] sm:$0xff] %v14985_v23  ;;  %8210 = vst [vmem:[%s11077_s15 + $0x28] sm:$0xff] %v14995_v48 }
0x1710   : > { %8211 = vst [vmem:[%s11077_s15 + $0x30] sm:$0xff] %v14999_v56  ;;  %8212 = vst [vmem:[%s11077_s15 + $0x38] sm:$0xff] %v15009_v60 }
0x1711   : > { %8213 = vst [vmem:[%s11077_s15 + $0x40] sm:$0xff] %v15013_v17  ;;  %8214 = vst [vmem:[%s11077_s15 + $0x48] sm:$0xff] %v15023_v33 }
0x1712   : > { %8215 = vst [vmem:[%s11077_s15 + $0x50] sm:$0xff] %v15027_v47  ;;  %8216 = vst [vmem:[%s11077_s15 + $0x58] sm:$0xff] %v15037_v43 }
0x1713   : > { %8217 = vst [vmem:[%s11077_s15 + $0x60] sm:$0xff] %v15041_v51  ;;  %8218 = vst [vmem:[%s11077_s15 + $0x68] sm:$0xff] %v15050_v27 }
0x1714   : > { %8219 = vst [vmem:[%s11077_s15 + $0x70] sm:$0xff] %v15054_v59  ;;  %8220 = vst [vmem:[%s11077_s15 + $0x78] sm:$0xff] %v15060_v32 }
0x1715   : > { %8221 = vst [vmem:[%s11077_s15 + $0x80] sm:$0xff] %v15068_v15  ;;  %8222 = vst [vmem:[%s11077_s15 + $0x88] sm:$0xff] %v15075_v10 }
0x1716   : > { %8223 = vst [vmem:[%s11077_s15 + $0x90] sm:$0xff] %v15082_v26  ;;  %8224 = vst [vmem:[%s11077_s15 + $0x98] sm:$0xff] %v15089_v6 }
0x1717   : > { %8225 = vst [vmem:[%s11077_s15 + $0xa0] sm:$0xff] %v15096_v25  ;;  %8226 = vst [vmem:[%s11077_s15 + $0xa8] sm:$0xff] %v15103_v21 }
0x1718   : > { %8227 = vst [vmem:[%s11077_s15 + $0xb0] sm:$0xff] %v15110_v53  ;;  %8228 = vst [vmem:[%s11077_s15 + $0xb8] sm:$0xff] %v15116_v54 }
0x1719   : > { %8229 = vst [vmem:[%s11077_s15 + $0xc0] sm:$0xff] %v15124_v36  ;;  %8230 = vst [vmem:[%s11077_s15 + $0xc8] sm:$0xff] %v15131_v38 }
0x171a   : > { %8231 = vst [vmem:[%s11077_s15 + $0xd0] sm:$0xff] %v8163_v12  ;;  %8232 = vst [vmem:[%s11077_s15 + $0xd8] sm:$0xff] %v8164_v2 }
0x171b   : > { %8233 = vst [vmem:[%s11077_s15 + $0xe0] sm:$0xff] %v8165_v62  ;;  %8234 = vst [vmem:[%s11077_s15 + $0xe8] sm:$0xff] %v8166_v11 }
0x171c   : > { %8235 = vst [vmem:[%s11077_s15 + $0xf0] sm:$0xff] %v8167_v29  ;;  %8236 = vst [vmem:[%s11077_s15 + $0xf8] sm:$0xff] %v8168_v52 }
0x171d PF: > { %s15748_s16 = sld [smem:[#allocation11_spill]]  ;;  %s8252_s26 = sshll.u32 %s11077_s15, 4  ;;  %s15223_s26 = int_to_ptr.vmem [resolvable:$true] %s8252_s26 }
0x171e   : > { %s15749_s5 = sld [smem:[#allocation8_spill]]  ;;  %s10750_s22 = scalar_lea.vmem %s15223_s26, 4096 }
0x171f   : > { %s15751_s4 = sld [smem:[#allocation110_spill]]  ;;  %p10751_p2 = scmp.ne.s32.totalorder %s15223_s26, %s10750_s22 }
0x1720   : > { %s10848_s29 = smov [#allocation4]  }
0x1721   : > { %p10752_p4 = pnand %p10751_p2, %p10980_p3  ;;  %s10754_s30 = sshll.u32 %s10848_s29, 4  ;;  %s10755_s30 = int_to_ptr.vmem [resolvable:$false] %s10754_s30 }
0x1722   : > { %s10756_s0 = scalar_lea.vmem %s10755_s30, 8192  ;;  %p10757_p6 = scmp.lt.s32.totalorder %s15223_s26, %s10755_s30 }
0x1723   : > { %s8660_s2 = sshll.u32 %s15748_s16, 12  ;;  %p10753_p5 = pneg %p10752_p4 }
0x1724   : > { %s15752_s19 = sand.u32 1, %s15749_s5   ;;  %p10758_p7 = scmp.lt.s32.totalorder %s10756_s0, %s10750_s22 }
0x1725   : > { %s15220_s18 = scalar_lea.hbm %s15751_s4, %s8660_s2  ;;  %s15227_s24 = scalar_lea.sflag [#allocation5], %s15752_s19 }
0x1726   : > { %p10759_p8 = por %p10758_p7, %p10757_p6 }
0x1728   : > { %p10760_p10 = pnand %p10759_p8, %p10753_p5 }
0x172a   : > { %10763 = shalt.err (!%p10760_p10)
}
0x172b   : > { %s10764_s15 = scalar_lea.hbm %s15220_s18, 4096  ;;  %s10768_s21 = scalar_lea.hbm %s15751_s4, 8192 }
0x172c   : > { %p10765_p11 = scmp.ne.s32.totalorder %s15220_s18, %s10764_s15  ;;  %p10769_p0 = scmp.lt.s32.totalorder %s15220_s18, %s15751_s4 }
0x172d   : > { %p10770_p1 = scmp.lt.s32.totalorder %s10768_s21, %s10764_s15 }
0x172e   : > { %p10766_p12 = pnand %p10765_p11, %p10980_p3 }
0x172f   : > { %p10771_p2 = por %p10770_p1, %p10769_p0 }
0x1730   : > { %p10767_p13 = pneg %p10766_p12 }
0x1732   : > { %p10772_p4 = pnand %p10771_p2, %p10767_p13 }
0x1734   : > { %10775 = shalt.err (!%p10772_p4)
}
0x1735   : > { %s10849_s9 = smov 128   ;;  %s10850_s16 = smov 8  }
0x1736   : > { %9879 = dma.vmem_to_hbm [thread:$0]  (%p10980_p3), %s15223_s26, 4096, %s15220_s18, %s15227_s24, %s10849_s9, %s10849_s9, %s10850_s16  }
0x1737 PF: > { %s15753_s5 = sld [smem:[#allocation14_spill]] }
0x1738   : > { %s15754_s2 = sld [smem:[#allocation7_spill]] }
0x173d   : > { %p9885_p5 = scmp.ge.s32.totalorder %s15753_s5, 2 }
0x173e   : > { %s8267_s23 = sand.u32 1, %s15754_s2  }
0x173f   : > { %p9882_p6 = pnand %p9885_p5, %p10990_p9  ;;  %s8268_s19 = scalar_lea.sflag [#allocation5], %s8267_s23 }
0x1741   : > { %p9883_p7 = pneg %p9882_p6 }
0x1743   : > { %10809 = dma.done.wait (%p9883_p7), %s8268_s19, 4096  }
0x1744   : > { %10811 = vsyncadd (%p9883_p7), %s8268_s19, 4294963200  ;;  %s28_s25 = sadd.s32 1, %s15753_s5   ;;  %s15756_s18 = sld [smem:[#allocation8_spill]] }
0x1745   : > { %p25_p8 = scmp.ge.s32.totalorder %s28_s25, 14   ;;  %s15757_s19 = sld [smem:[#allocation9_spill]] }
0x1746   : > { %s15758_s20 = sld [smem:[#allocation19_spill]] }
0x1747   : > { %s15759_s21 = sld [smem:[#allocation12_spill]]  ;;  %27 = sbr.rel (!%p25_p8) target bundleno = 14 (0xe), region = 163 }
0x1748   : > { %s15760_s22 = sld [smem:[#allocation13_spill]] }
0x1749   : > { %s15761_s23 = sld [smem:[#allocation15_spill]] }
0x174a   : > { %s15762_s24 = sld [smem:[#allocation17_spill]] }
0x174c   :  { %8273 = vsyncpa [#allocation5], 1 }
0x174d   :  { %8275 = vsyncpa [#allocation5 + $0x1], 1 }

</bundles_post_ra>
